<compile_context>
chip_gen: v7x
topology: tpu7x:2x2x1
jax: 0.10.0
libtpu: 0.0.40
codegen_flags: <defaults>
</compile_context>

<pallas_src>
import functools

import jax
import jax.numpy as jnp
from jax import lax
from jax.experimental import pallas as pl
from jax.experimental.pallas import tpu as pltpu


# -----------------------------------------------------------------------------
# 3x3 "same" convolution (stride 1, pad 1) + bias + activation, im2col form.
# grid = (batch, row_block). The unpadded image of the current batch element is
# resident in VMEM across row blocks (its block index only depends on n); at
# row-block 0 it is copied into a zero-bordered VMEM scratch (in-kernel halo).
# -----------------------------------------------------------------------------
def _conv3x3_kernel(x_ref, w_ref, b_ref, o_ref, xpad_ref, lhs_ref, *,
                    TH, H, W, Cin, act):
    rb = pl.program_id(1)

    @pl.when(rb == 0)
    def _():
        # Build the zero-padded image once per batch element (halo in VMEM,
        # no HBM pad / re-read).
        xpad_ref[...] = jnp.zeros_like(xpad_ref)
        xpad_ref[1:H + 1, 1:W + 1, :] = x_ref[0]

    r0 = rb * TH
    # Gather the nine shifted taps into the im2col scratch (unrolled, 9 copies).
    for t in range(9):
        dy, dx = t // 3, t % 3
        lhs_ref[:, :, t * Cin:(t + 1) * Cin] = (
            xpad_ref[pl.ds(r0 + dy, TH), dx:dx + W, :])

    # One (TH*W, 9*Cin) x (9*Cin, Cout) MXU matmul, bf16 in / f32 accumulate.
    lhs = lhs_ref[...].reshape(TH * W, 9 * Cin).astype(jnp.bfloat16)
    acc = jnp.dot(lhs, w_ref[...], preferred_element_type=jnp.float32)
    acc = acc + b_ref[...]                       # (1, Cout) broadcast, f32
    if act == "relu":
        acc = jnp.maximum(acc, 0.0)
    elif act == "tanh":
        acc = jnp.tanh(acc)
    o_ref[0, :, :] = acc.astype(o_ref.dtype)


def _pick_row_block(H, W):
    """Smallest divisor TH of H with TH*W >= 256 (fills the MXU M dim on
    v6e/v7x and 2x the v5e width); whole image if H*W < 256."""
    for th in range(1, H + 1):
        if H % th == 0 and th * W >= 256:
            return th
    return H


def conv3x3(x, w_hwio, b, act="none"):
    """x: (N, H, W, Cin) f32; w_hwio: (3, 3, Cin, Cout) HWIO; b: (Cout,)."""
    N, H, W, Cin = x.shape
    Cout = w_hwio.shape[-1]
    TH = _pick_row_block(H, W)
    RB = H // TH
    # im2col weights, stored/fed as bf16 MXU operand (tap order matches kernel).
    w2d = w_hwio.reshape(9 * Cin, Cout).astype(jnp.bfloat16)
    kern = functools.partial(_conv3x3_kernel, TH=TH, H=H, W=W, Cin=Cin, act=act)
    out = pl.pallas_call(
        kern,
        out_shape=jax.ShapeDtypeStruct((N, H * W, Cout), x.dtype),
        grid=(N, RB),
        in_specs=[
            # Full image resident across row blocks (re-DMA'd only when n changes).
            # TODO(synk): at production resolutions on v7x (64 MiB VMEM) replace
            # this with a (TH+2)-row halo tile instead of the whole image.
            pl.BlockSpec((1, H, W, Cin), lambda n, r: (n, 0, 0, 0)),
            pl.BlockSpec((9 * Cin, Cout), lambda n, r: (0, 0)),
            pl.BlockSpec((1, Cout), lambda n, r: (0, 0)),
        ],
        # Output kept flat over pixels (TH*W rows per block); reshaped for free
        # in the wrapper.
        out_specs=pl.BlockSpec((1, TH * W, Cout), lambda n, r: (n, r, 0)),
        scratch_shapes=[
            pltpu.VMEM((H + 2, W + 2, Cin), jnp.float32),   # zero-padded image
            pltpu.VMEM((TH, W, 9 * Cin), jnp.float32),      # im2col LHS
        ],
        compiler_params=pltpu.CompilerParams(
            dimension_semantics=("parallel", "arbitrary")),
    )(x, w2d, b.reshape(1, Cout))
    return out.reshape(N, H, W, Cout)


# -----------------------------------------------------------------------------
# 2x2 average pool, stride 2 (F.avg_pool2d(x, 2)), lane-merged (2*C) layout.
# -----------------------------------------------------------------------------
def _avgpool2_kernel(x_ref, o_ref, *, C):
    # x_ref: (Ho, 2, Wo, 2*C) row pairs with (col-pair, channel) merged in lanes.
    top = x_ref[:, 0, :, :]
    bot = x_ref[:, 1, :, :]
    s = top[:, :, :C] + top[:, :, C:] + bot[:, :, :C] + bot[:, :, C:]
    o_ref[...] = (s * 0.25).astype(o_ref.dtype)


def avgpool2(x):
    """x: (N, H, W, C) -> (N, H//2, W//2, C)."""
    N, H, W, C = x.shape
    Ho, Wo = H // 2, W // 2
    xr = x.reshape(N * Ho, 2, Wo, 2 * C)       # free row-major relabel
    out = pl.pallas_call(
        functools.partial(_avgpool2_kernel, C=C),
        out_shape=jax.ShapeDtypeStruct((N * Ho, Wo, C), x.dtype),
        grid=(N,),
        in_specs=[pl.BlockSpec((Ho, 2, Wo, 2 * C), lambda n: (n, 0, 0, 0))],
        out_specs=pl.BlockSpec((Ho, Wo, C), lambda n: (n, 0, 0)),
        compiler_params=pltpu.CompilerParams(dimension_semantics=("parallel",)),
    )(xr)
    return out.reshape(N, Ho, Wo, C)


# -----------------------------------------------------------------------------
# Nearest 2x upsample (F.interpolate(..., scale_factor=2)) + skip add, fused,
# with lane-merged (2*C) layout: full-slab adds and two wide stores per row pair.
# -----------------------------------------------------------------------------
def _upsample2_add_kernel(d_ref, s_ref, o_ref):
    # d_ref: (H2, W2, C) low-res; s_ref / o_ref: (H2, 2, W2, 2*C) lane-merged.
    d = d_ref[...]
    dd = jnp.concatenate([d, d], axis=-1)      # nearest x2 along W in merged layout
    o_ref[:, 0, :, :] = (dd + s_ref[:, 0, :, :]).astype(o_ref.dtype)
    o_ref[:, 1, :, :] = (dd + s_ref[:, 1, :, :]).astype(o_ref.dtype)


def upsample2_add(d, skip):
    """nearest-2x upsample of d (N,H2,W2,C) plus skip (N,2H2,2W2,C)."""
    # TODO(synk): for production, fuse this into the following conv's input
    # stage to avoid one HBM round trip of the full-resolution tensor.
    N, H2, W2, C = d.shape
    dr = d.reshape(N * H2, W2, C)
    sr = skip.reshape(N * H2, 2, W2, 2 * C)
    out = pl.pallas_call(
        _upsample2_add_kernel,
        out_shape=jax.ShapeDtypeStruct((N * H2, 2, W2, 2 * C), d.dtype),
        grid=(N,),
        in_specs=[
            pl.BlockSpec((H2, W2, C), lambda n: (n, 0, 0)),
            pl.BlockSpec((H2, 2, W2, 2 * C), lambda n: (n, 0, 0, 0)),
        ],
        out_specs=pl.BlockSpec((H2, 2, W2, 2 * C), lambda n: (n, 0, 0, 0)),
        compiler_params=pltpu.CompilerParams(dimension_semantics=("parallel",)),
    )(dr, sr)
    return out.reshape(N, 2 * H2, 2 * W2, C)


# -----------------------------------------------------------------------------
# Parameters (deterministic synthetic init, PyTorch-equivalent layouts -> HWIO).
# -----------------------------------------------------------------------------
def init_params(key, in_channels=3, out_channels=3, base=32):
    ks = jax.random.split(key, 12)

    def conv_w(k, cout, cin):                   # nn.Conv2d weight layout
        return (jax.random.normal(k, (cout, cin, 3, 3), jnp.float32)
                / jnp.sqrt(cin * 9.0))

    def convT_w(k, cin, cout):                  # nn.ConvTranspose2d weight layout
        return (jax.random.normal(k, (cin, cout, 3, 3), jnp.float32)
                / jnp.sqrt(cin * 9.0))

    def bias(k, c):
        return 0.05 * jax.random.normal(k, (c,), jnp.float32)

    def conv_to_hwio(w):                        # (Cout,Cin,kh,kw) -> (kh,kw,Cin,Cout)
        return jnp.transpose(w, (2, 3, 1, 0))

    def convT_to_hwio(w):                       # ConvT(s=1,p=1) == conv with flipped,
        return jnp.transpose(w[:, :, ::-1, ::-1], (2, 3, 0, 1))  # channel-swapped weights

    p = {}
    p["enc1_w"] = conv_to_hwio(conv_w(ks[0], base, in_channels))
    p["enc1_b"] = bias(ks[1], base)
    p["enc2_w"] = conv_to_hwio(conv_w(ks[2], base * 2, base))
    p["enc2_b"] = bias(ks[3], base * 2)
    p["enc3_w"] = conv_to_hwio(conv_w(ks[4], base * 4, base * 2))
    p["enc3_b"] = bias(ks[5], base * 4)
    p["dec3_w"] = convT_to_hwio(convT_w(ks[6], base * 4, base * 2))
    p["dec3_b"] = bias(ks[7], base * 2)
    p["dec2_w"] = convT_to_hwio(convT_w(ks[8], base * 2, base))
    p["dec2_b"] = bias(ks[9], base)
    p["dec1_w"] = conv_to_hwio(conv_w(ks[10], out_channels, base))
    p["dec1_b"] = bias(ks[11], out_channels)
    return p


@jax.jit
def unet_forward(x_nchw, params):
    x = jnp.transpose(x_nchw, (0, 2, 3, 1))                       # NCHW -> NHWC
    x1 = conv3x3(x, params["enc1_w"], params["enc1_b"], act="relu")
    x2 = conv3x3(avgpool2(x1), params["enc2_w"], params["enc2_b"], act="relu")
    x3 = conv3x3(avgpool2(x2), params["enc3_w"], params["enc3_b"], act="relu")
    d3 = conv3x3(x3, params["dec3_w"], params["dec3_b"], act="relu")
    u3 = upsample2_add(d3, x2)                                    # interpolate + skip
    d2 = conv3x3(u3, params["dec2_w"], params["dec2_b"], act="relu")
    u2 = upsample2_add(d2, x1)
    y = conv3x3(u2, params["dec1_w"], params["dec1_b"], act="tanh")
    return jnp.transpose(y, (0, 3, 1, 2))                         # NHWC -> NCHW


# -----------------------------------------------------------------------------
# Pure-JAX f32 reference (for a loose numerical sanity check of the kernels;
# the Pallas path uses bf16 MXU operands, hence the generous tolerance).
# -----------------------------------------------------------------------------
@jax.jit
def _ref_forward(x_nchw, params):
    x = jnp.transpose(x_nchw, (0, 2, 3, 1))

    def conv(v, w, b):
        return lax.conv_general_dilated(
            v, w, (1, 1), ((1, 1), (1, 1)),
            dimension_numbers=("NHWC", "HWIO", "NHWC")) + b

    def pool(v):
        n, h, w, c = v.shape
        return v.reshape(n, h // 2, 2, w // 2, 2, c).mean(axis=(2, 4))

    def up(v):
        return jnp.repeat(jnp.repeat(v, 2, axis=1), 2, axis=2)

    x1 = jax.nn.relu(conv(x, params["enc1_w"], params["enc1_b"]))
    x2 = jax.nn.relu(conv(pool(x1), params["enc2_w"], params["enc2_b"]))
    x3 = jax.nn.relu(conv(pool(x2), params["enc3_w"], params["enc3_b"]))
    d3 = up(jax.nn.relu(conv(x3, params["dec3_w"], params["dec3_b"])))
    d2 = up(jax.nn.relu(conv(d3 + x2, params["dec2_w"], params["dec2_b"])))
    y = jnp.tanh(conv(d2 + x1, params["dec1_w"], params["dec1_b"]))
    return jnp.transpose(y, (0, 3, 1, 2))


if __name__ == "__main__":
    key = jax.random.PRNGKey(0)
    kp, kx = jax.random.split(key)
    N, C_in, H, W = 2, 3, 16, 16
    base = 32                                   # small but shape-consistent UNet
    params = init_params(kp, in_channels=C_in, out_channels=3, base=base)
    x = jax.random.normal(kx, (N, C_in, H, W), jnp.float32)

    y = unet_forward(x, params)
    jax.block_until_ready(y)

    assert y.shape == (N, 3, H, W), y.shape
    assert bool(jnp.all(jnp.isfinite(y)))

    y_ref = _ref_forward(x, params)
    err = float(jnp.max(jnp.abs(y - y_ref)))
    assert err < 0.2, f"max abs err vs reference: {err}"

    print("KERNEL_OK")
</pallas_src>

<mosaic_0001>
module attributes {stable_mosaic.version = 11 : i64} {
  func.func @_conv3x3_kernel(%arg0: i32, %arg1: i32, %arg2: memref<1x16x16x3xf32, #tpu.memory_space<vmem>>, %arg3: memref<27x32xbf16, #tpu.memory_space<vmem>>, %arg4: memref<1x32xf32, #tpu.memory_space<vmem>>, %arg5: memref<1x256x32xf32, #tpu.memory_space<vmem>>, %arg6: memref<18x18x3xf32, #tpu.memory_space<vmem>>, %arg7: memref<16x16x27xf32, #tpu.memory_space<vmem>>) attributes {dimension_semantics = [#tpu.dimension_semantics<parallel>, #tpu.dimension_semantics<arbitrary>], iteration_bounds = array<i64: 2, 1>, scalar_prefetch = 0 : i64, scratch_operands = 2 : i64, tpu.core_type = #tpu.core_type<tc>, window_params = [{transform_indices = @transform_0, window_bounds = array<i64: 1, 16, 16, 3>}, {pipeline_mode = #tpu.pipeline_mode<synchronous>, transform_indices = @transform_1, window_bounds = array<i64: 27, 32>}, {pipeline_mode = #tpu.pipeline_mode<synchronous>, transform_indices = @transform_2, window_bounds = array<i64: 1, 32>}, {transform_indices = @transform_3, window_bounds = array<i64: 1, 256, 32>}]} {
    %c0_i32 = arith.constant 0 : i32
    %0 = arith.cmpi eq, %arg1, %c0_i32 : i32
    %1 = arith.extui %0 : i1 to i32
    %c0_i32_0 = arith.constant 0 : i32
    %2 = arith.cmpi ne, %1, %c0_i32_0 : i32
    scf.if %2 {
      %cst_53 = arith.constant 0.000000e+00 : f32
      %53 = vector.broadcast %cst_53 : f32 to vector<18x18x3xf32>
      %c0_54 = arith.constant 0 : index
      %c0_55 = arith.constant 0 : index
      %c0_56 = arith.constant 0 : index
      %54 = vector.load %arg6[%c0_54, %c0_55, %c0_56] : memref<18x18x3xf32, #tpu.memory_space<vmem>>, vector<18x18x3xf32>
      tpu.vector_store %arg6[%c0_54, %c0_55, %c0_56], %53 {strides = array<i32>} : memref<18x18x3xf32, #tpu.memory_space<vmem>>, vector<18x18x3xf32>,
      %c0_57 = arith.constant 0 : index
      %c0_58 = arith.constant 0 : index
      %c0_59 = arith.constant 0 : index
      %c0_60 = arith.constant 0 : index
      %55 = vector.load %arg2[%c0_57, %c0_58, %c0_59, %c0_60] : memref<1x16x16x3xf32, #tpu.memory_space<vmem>>, vector<1x16x16x3xf32>
      %56 = vector.shape_cast %55 : vector<1x16x16x3xf32> to vector<16x16x3xf32>
      %c1_61 = arith.constant 1 : index
      %c1_62 = arith.constant 1 : index
      %c0_63 = arith.constant 0 : index
      %57 = vector.load %arg6[%c1_61, %c1_62, %c0_63] : memref<18x18x3xf32, #tpu.memory_space<vmem>>, vector<16x16x3xf32>
      tpu.vector_store %arg6[%c1_61, %c1_62, %c0_63], %56 {strides = array<i32>} : memref<18x18x3xf32, #tpu.memory_space<vmem>>, vector<16x16x3xf32>,
    } else {
    }
    %c16_i32 = arith.constant 16 : i32
    %3 = arith.muli %arg1, %c16_i32 : i32
    %c0_i32_1 = arith.constant 0 : i32
    %4 = arith.addi %3, %c0_i32_1 : i32
    %5 = arith.index_cast %4 : i32 to index
    %c0 = arith.constant 0 : index
    %c0_2 = arith.constant 0 : index
    %6 = vector.load %arg6[%5, %c0, %c0_2] : memref<18x18x3xf32, #tpu.memory_space<vmem>>, vector<16x16x3xf32>
    %c0_3 = arith.constant 0 : index
    %c0_4 = arith.constant 0 : index
    %c0_5 = arith.constant 0 : index
    %7 = vector.load %arg7[%c0_3, %c0_4, %c0_5] : memref<16x16x27xf32, #tpu.memory_space<vmem>>, vector<16x16x3xf32>
    tpu.vector_store %arg7[%c0_3, %c0_4, %c0_5], %6 {strides = array<i32>} : memref<16x16x27xf32, #tpu.memory_space<vmem>>, vector<16x16x3xf32>,
    %c0_i32_6 = arith.constant 0 : i32
    %8 = arith.addi %3, %c0_i32_6 : i32
    %9 = arith.index_cast %8 : i32 to index
    %c1 = arith.constant 1 : index
    %c0_7 = arith.constant 0 : index
    %10 = vector.load %arg6[%9, %c1, %c0_7] : memref<18x18x3xf32, #tpu.memory_space<vmem>>, vector<16x16x3xf32>
    %c0_8 = arith.constant 0 : index
    %c0_9 = arith.constant 0 : index
    %c3 = arith.constant 3 : index
    %11 = vector.load %arg7[%c0_8, %c0_9, %c3] : memref<16x16x27xf32, #tpu.memory_space<vmem>>, vector<16x16x3xf32>
    tpu.vector_store %arg7[%c0_8, %c0_9, %c3], %10 {strides = array<i32>} : memref<16x16x27xf32, #tpu.memory_space<vmem>>, vector<16x16x3xf32>,
    %c0_i32_10 = arith.constant 0 : i32
    %12 = arith.addi %3, %c0_i32_10 : i32
    %13 = arith.index_cast %12 : i32 to index
    %c2 = arith.constant 2 : index
    %c0_11 = arith.constant 0 : index
    %14 = vector.load %arg6[%13, %c2, %c0_11] : memref<18x18x3xf32, #tpu.memory_space<vmem>>, vector<16x16x3xf32>
    %c0_12 = arith.constant 0 : index
    %c0_13 = arith.constant 0 : index
    %c6 = arith.constant 6 : index
    %15 = vector.load %arg7[%c0_12, %c0_13, %c6] : memref<16x16x27xf32, #tpu.memory_space<vmem>>, vector<16x16x3xf32>
    tpu.vector_store %arg7[%c0_12, %c0_13, %c6], %14 {strides = array<i32>} : memref<16x16x27xf32, #tpu.memory_space<vmem>>, vector<16x16x3xf32>,
    %c1_i32 = arith.constant 1 : i32
    %16 = arith.addi %3, %c1_i32 : i32
    %17 = arith.index_cast %16 : i32 to index
    %c0_14 = arith.constant 0 : index
    %c0_15 = arith.constant 0 : index
    %18 = vector.load %arg6[%17, %c0_14, %c0_15] : memref<18x18x3xf32, #tpu.memory_space<vmem>>, vector<16x16x3xf32>
    %c0_16 = arith.constant 0 : index
    %c0_17 = arith.constant 0 : index
    %c9 = arith.constant 9 : index
    %19 = vector.load %arg7[%c0_16, %c0_17, %c9] : memref<16x16x27xf32, #tpu.memory_space<vmem>>, vector<16x16x3xf32>
    tpu.vector_store %arg7[%c0_16, %c0_17, %c9], %18 {strides = array<i32>} : memref<16x16x27xf32, #tpu.memory_space<vmem>>, vector<16x16x3xf32>,
    %c1_i32_18 = arith.constant 1 : i32
    %20 = arith.addi %3, %c1_i32_18 : i32
    %21 = arith.index_cast %20 : i32 to index
    %c1_19 = arith.constant 1 : index
    %c0_20 = arith.constant 0 : index
    %22 = vector.load %arg6[%21, %c1_19, %c0_20] : memref<18x18x3xf32, #tpu.memory_space<vmem>>, vector<16x16x3xf32>
    %c0_21 = arith.constant 0 : index
    %c0_22 = arith.constant 0 : index
    %c12 = arith.constant 12 : index
    %23 = vector.load %arg7[%c0_21, %c0_22, %c12] : memref<16x16x27xf32, #tpu.memory_space<vmem>>, vector<16x16x3xf32>
    tpu.vector_store %arg7[%c0_21, %c0_22, %c12], %22 {strides = array<i32>} : memref<16x16x27xf32, #tpu.memory_space<vmem>>, vector<16x16x3xf32>,
    %c1_i32_23 = arith.constant 1 : i32
    %24 = arith.addi %3, %c1_i32_23 : i32
    %25 = arith.index_cast %24 : i32 to index
    %c2_24 = arith.constant 2 : index
    %c0_25 = arith.constant 0 : index
    %26 = vector.load %arg6[%25, %c2_24, %c0_25] : memref<18x18x3xf32, #tpu.memory_space<vmem>>, vector<16x16x3xf32>
    %c0_26 = arith.constant 0 : index
    %c0_27 = arith.constant 0 : index
    %c15 = arith.constant 15 : index
    %27 = vector.load %arg7[%c0_26, %c0_27, %c15] : memref<16x16x27xf32, #tpu.memory_space<vmem>>, vector<16x16x3xf32>
    tpu.vector_store %arg7[%c0_26, %c0_27, %c15], %26 {strides = array<i32>} : memref<16x16x27xf32, #tpu.memory_space<vmem>>, vector<16x16x3xf32>,
    %c2_i32 = arith.constant 2 : i32
    %28 = arith.addi %3, %c2_i32 : i32
    %29 = arith.index_cast %28 : i32 to index
    %c0_28 = arith.constant 0 : index
    %c0_29 = arith.constant 0 : index
    %30 = vector.load %arg6[%29, %c0_28, %c0_29] : memref<18x18x3xf32, #tpu.memory_space<vmem>>, vector<16x16x3xf32>
    %c0_30 = arith.constant 0 : index
    %c0_31 = arith.constant 0 : index
    %c18 = arith.constant 18 : index
    %31 = vector.load %arg7[%c0_30, %c0_31, %c18] : memref<16x16x27xf32, #tpu.memory_space<vmem>>, vector<16x16x3xf32>
    tpu.vector_store %arg7[%c0_30, %c0_31, %c18], %30 {strides = array<i32>} : memref<16x16x27xf32, #tpu.memory_space<vmem>>, vector<16x16x3xf32>,
    %c2_i32_32 = arith.constant 2 : i32
    %32 = arith.addi %3, %c2_i32_32 : i32
    %33 = arith.index_cast %32 : i32 to index
    %c1_33 = arith.constant 1 : index
    %c0_34 = arith.constant 0 : index
    %34 = vector.load %arg6[%33, %c1_33, %c0_34] : memref<18x18x3xf32, #tpu.memory_space<vmem>>, vector<16x16x3xf32>
    %c0_35 = arith.constant 0 : index
    %c0_36 = arith.constant 0 : index
    %c21 = arith.constant 21 : index
    %35 = vector.load %arg7[%c0_35, %c0_36, %c21] : memref<16x16x27xf32, #tpu.memory_space<vmem>>, vector<16x16x3xf32>
    tpu.vector_store %arg7[%c0_35, %c0_36, %c21], %34 {strides = array<i32>} : memref<16x16x27xf32, #tpu.memory_space<vmem>>, vector<16x16x3xf32>,
    %c2_i32_37 = arith.constant 2 : i32
    %36 = arith.addi %3, %c2_i32_37 : i32
    %37 = arith.index_cast %36 : i32 to index
    %c2_38 = arith.constant 2 : index
    %c0_39 = arith.constant 0 : index
    %38 = vector.load %arg6[%37, %c2_38, %c0_39] : memref<18x18x3xf32, #tpu.memory_space<vmem>>, vector<16x16x3xf32>
    %c0_40 = arith.constant 0 : index
    %c0_41 = arith.constant 0 : index
    %c24 = arith.constant 24 : index
    %39 = vector.load %arg7[%c0_40, %c0_41, %c24] : memref<16x16x27xf32, #tpu.memory_space<vmem>>, vector<16x16x3xf32>
    tpu.vector_store %arg7[%c0_40, %c0_41, %c24], %38 {strides = array<i32>} : memref<16x16x27xf32, #tpu.memory_space<vmem>>, vector<16x16x3xf32>,
    %c0_42 = arith.constant 0 : index
    %c0_43 = arith.constant 0 : index
    %c0_44 = arith.constant 0 : index
    %40 = vector.load %arg7[%c0_42, %c0_43, %c0_44] : memref<16x16x27xf32, #tpu.memory_space<vmem>>, vector<16x16x27xf32>
    %41 = vector.shape_cast %40 : vector<16x16x27xf32> to vector<256x27xf32>
    %42 = arith.truncf %41 : vector<256x27xf32> to vector<256x27xbf16>
    %c0_45 = arith.constant 0 : index
    %c0_46 = arith.constant 0 : index
    %43 = vector.load %arg3[%c0_45, %c0_46] : memref<27x32xbf16, #tpu.memory_space<vmem>>, vector<27x32xbf16>
    %cst = arith.constant dense<0.000000e+00> : vector<256x32xf32>
    %44 = tpu.matmul %42, %43, %cst {dimension_numbers = #tpu.dot_dimension_numbers<[1], [0], [0], [1], [0, 0, 1, 1], [], []>} : vector<256x27xbf16>, vector<27x32xbf16>, vector<256x32xf32> -> vector<256x32xf32>
    %c0_47 = arith.constant 0 : index
    %c0_48 = arith.constant 0 : index
    %45 = vector.load %arg4[%c0_47, %c0_48] : memref<1x32xf32, #tpu.memory_space<vmem>>, vector<1x32xf32>
    %46 = vector.broadcast %45 : vector<1x32xf32> to vector<256x32xf32>
    %47 = arith.addf %44, %46 : vector<256x32xf32>
    %cst_49 = arith.constant 0.000000e+00 : f32
    %48 = vector.broadcast %cst_49 : f32 to vector<256x32xf32>
    %49 = arith.maximumf %47, %48 : vector<256x32xf32>
    %c0_50 = arith.constant 0 : index
    %c0_51 = arith.constant 0 : index
    %c0_52 = arith.constant 0 : index
    %50 = vector.load %arg5[%c0_50, %c0_51, %c0_52] : memref<1x256x32xf32, #tpu.memory_space<vmem>>, vector<1x256x32xf32>
    %51 = vector.shape_cast %50 : vector<1x256x32xf32> to vector<256x32xf32>
    %52 = vector.shape_cast %49 : vector<256x32xf32> to vector<1x256x32xf32>
    tpu.vector_store %arg5[%c0_50, %c0_51, %c0_52], %52 {strides = array<i32>} : memref<1x256x32xf32, #tpu.memory_space<vmem>>, vector<1x256x32xf32>,
    return
  }
  func.func @transform_0(%arg0: i32, %arg1: i32) -> (i32, i32, i32, i32) {
    %c0_i32 = arith.constant 0 : i32
    %c0_i32_0 = arith.constant 0 : i32
    %c0_i32_1 = arith.constant 0 : i32
    %c0_i32_2 = arith.constant 0 : i32
    return %arg0, %c0_i32, %c0_i32_0, %c0_i32_1 : i32, i32, i32, i32
  }
  func.func @transform_1(%arg0: i32, %arg1: i32) -> (i32, i32) {
    %c0_i32 = arith.constant 0 : i32
    %c0_i32_0 = arith.constant 0 : i32
    %c0_i32_1 = arith.constant 0 : i32
    return %c0_i32, %c0_i32_0 : i32, i32
  }
  func.func @transform_2(%arg0: i32, %arg1: i32) -> (i32, i32) {
    %c0_i32 = arith.constant 0 : i32
    %c0_i32_0 = arith.constant 0 : i32
    %c0_i32_1 = arith.constant 0 : i32
    return %c0_i32, %c0_i32_0 : i32, i32
  }
  func.func @transform_3(%arg0: i32, %arg1: i32) -> (i32, i32, i32) {
    %c0_i32 = arith.constant 0 : i32
    %c0_i32_0 = arith.constant 0 : i32
    return %arg0, %arg1, %c0_i32 : i32, i32, i32
  }
}

module attributes {stable_mosaic.version = 11 : i64} {
  func.func @_avgpool2_kernel(%arg0: i32, %arg1: memref<8x2x8x64xf32, #tpu.memory_space<vmem>>, %arg2: memref<8x8x32xf32, #tpu.memory_space<vmem>>) attributes {dimension_semantics = [#tpu.dimension_semantics<parallel>], iteration_bounds = array<i64: 2>, scalar_prefetch = 0 : i64, scratch_operands = 0 : i64, tpu.core_type = #tpu.core_type<tc>, window_params = [{transform_indices = @transform_0, window_bounds = array<i64: 8, 2, 8, 64>}, {transform_indices = @transform_1, window_bounds = array<i64: 8, 8, 32>}]} {
    %c0 = arith.constant 0 : index
    %c0_0 = arith.constant 0 : index
    %c0_1 = arith.constant 0 : index
    %c0_2 = arith.constant 0 : index
    %0 = vector.load %arg1[%c0, %c0_0, %c0_1, %c0_2] : memref<8x2x8x64xf32, #tpu.memory_space<vmem>>, vector<8x1x8x64xf32>
    %1 = vector.shape_cast %0 : vector<8x1x8x64xf32> to vector<8x8x64xf32>
    %c0_3 = arith.constant 0 : index
    %c1 = arith.constant 1 : index
    %c0_4 = arith.constant 0 : index
    %c0_5 = arith.constant 0 : index
    %2 = vector.load %arg1[%c0_3, %c1, %c0_4, %c0_5] : memref<8x2x8x64xf32, #tpu.memory_space<vmem>>, vector<8x1x8x64xf32>
    %3 = vector.shape_cast %2 : vector<8x1x8x64xf32> to vector<8x8x64xf32>
    %4 = vector.extract_strided_slice %1 {offsets = [0, 0, 0], sizes = [8, 8, 32], strides = [1, 1, 1]} : vector<8x8x64xf32> to vector<8x8x32xf32>
    %5 = vector.extract_strided_slice %1 {offsets = [0, 0, 32], sizes = [8, 8, 32], strides = [1, 1, 1]} : vector<8x8x64xf32> to vector<8x8x32xf32>
    %6 = arith.addf %4, %5 : vector<8x8x32xf32>
    %7 = vector.extract_strided_slice %3 {offsets = [0, 0, 0], sizes = [8, 8, 32], strides = [1, 1, 1]} : vector<8x8x64xf32> to vector<8x8x32xf32>
    %8 = arith.addf %6, %7 : vector<8x8x32xf32>
    %9 = vector.extract_strided_slice %3 {offsets = [0, 0, 32], sizes = [8, 8, 32], strides = [1, 1, 1]} : vector<8x8x64xf32> to vector<8x8x32xf32>
    %10 = arith.addf %8, %9 : vector<8x8x32xf32>
    %cst = arith.constant 2.500000e-01 : f32
    %11 = vector.broadcast %cst : f32 to vector<8x8x32xf32>
    %12 = arith.mulf %10, %11 : vector<8x8x32xf32>
    %c0_6 = arith.constant 0 : index
    %c0_7 = arith.constant 0 : index
    %c0_8 = arith.constant 0 : index
    %13 = vector.load %arg2[%c0_6, %c0_7, %c0_8] : memref<8x8x32xf32, #tpu.memory_space<vmem>>, vector<8x8x32xf32>
    tpu.vector_store %arg2[%c0_6, %c0_7, %c0_8], %12 {strides = array<i32>} : memref<8x8x32xf32, #tpu.memory_space<vmem>>, vector<8x8x32xf32>,
    return
  }
  func.func @transform_0(%arg0: i32) -> (i32, i32, i32, i32) {
    %c0_i32 = arith.constant 0 : i32
    %c0_i32_0 = arith.constant 0 : i32
    %c0_i32_1 = arith.constant 0 : i32
    %c0_i32_2 = arith.constant 0 : i32
    return %arg0, %c0_i32, %c0_i32_0, %c0_i32_1 : i32, i32, i32, i32
  }
  func.func @transform_1(%arg0: i32) -> (i32, i32, i32) {
    %c0_i32 = arith.constant 0 : i32
    %c0_i32_0 = arith.constant 0 : i32
    %c0_i32_1 = arith.constant 0 : i32
    return %arg0, %c0_i32, %c0_i32_0 : i32, i32, i32
  }
}

module attributes {stable_mosaic.version = 11 : i64} {
  func.func @_conv3x3_kernel(%arg0: i32, %arg1: i32, %arg2: memref<1x8x8x32xf32, #tpu.memory_space<vmem>>, %arg3: memref<288x64xbf16, #tpu.memory_space<vmem>>, %arg4: memref<1x64xf32, #tpu.memory_space<vmem>>, %arg5: memref<1x64x64xf32, #tpu.memory_space<vmem>>, %arg6: memref<10x10x32xf32, #tpu.memory_space<vmem>>, %arg7: memref<8x8x288xf32, #tpu.memory_space<vmem>>) attributes {dimension_semantics = [#tpu.dimension_semantics<parallel>, #tpu.dimension_semantics<arbitrary>], iteration_bounds = array<i64: 2, 1>, scalar_prefetch = 0 : i64, scratch_operands = 2 : i64, tpu.core_type = #tpu.core_type<tc>, window_params = [{transform_indices = @transform_0, window_bounds = array<i64: 1, 8, 8, 32>}, {pipeline_mode = #tpu.pipeline_mode<synchronous>, transform_indices = @transform_1, window_bounds = array<i64: 288, 64>}, {pipeline_mode = #tpu.pipeline_mode<synchronous>, transform_indices = @transform_2, window_bounds = array<i64: 1, 64>}, {transform_indices = @transform_3, window_bounds = array<i64: 1, 64, 64>}]} {
    %c0_i32 = arith.constant 0 : i32
    %0 = arith.cmpi eq, %arg1, %c0_i32 : i32
    %1 = arith.extui %0 : i1 to i32
    %c0_i32_0 = arith.constant 0 : i32
    %2 = arith.cmpi ne, %1, %c0_i32_0 : i32
    scf.if %2 {
      %cst_53 = arith.constant 0.000000e+00 : f32
      %53 = vector.broadcast %cst_53 : f32 to vector<10x10x32xf32>
      %c0_54 = arith.constant 0 : index
      %c0_55 = arith.constant 0 : index
      %c0_56 = arith.constant 0 : index
      %54 = vector.load %arg6[%c0_54, %c0_55, %c0_56] : memref<10x10x32xf32, #tpu.memory_space<vmem>>, vector<10x10x32xf32>
      tpu.vector_store %arg6[%c0_54, %c0_55, %c0_56], %53 {strides = array<i32>} : memref<10x10x32xf32, #tpu.memory_space<vmem>>, vector<10x10x32xf32>,
      %c0_57 = arith.constant 0 : index
      %c0_58 = arith.constant 0 : index
      %c0_59 = arith.constant 0 : index
      %c0_60 = arith.constant 0 : index
      %55 = vector.load %arg2[%c0_57, %c0_58, %c0_59, %c0_60] : memref<1x8x8x32xf32, #tpu.memory_space<vmem>>, vector<1x8x8x32xf32>
      %56 = vector.shape_cast %55 : vector<1x8x8x32xf32> to vector<8x8x32xf32>
      %c1_61 = arith.constant 1 : index
      %c1_62 = arith.constant 1 : index
      %c0_63 = arith.constant 0 : index
      %57 = vector.load %arg6[%c1_61, %c1_62, %c0_63] : memref<10x10x32xf32, #tpu.memory_space<vmem>>, vector<8x8x32xf32>
      tpu.vector_store %arg6[%c1_61, %c1_62, %c0_63], %56 {strides = array<i32>} : memref<10x10x32xf32, #tpu.memory_space<vmem>>, vector<8x8x32xf32>,
    } else {
    }
    %c8_i32 = arith.constant 8 : i32
    %3 = arith.muli %arg1, %c8_i32 : i32
    %c0_i32_1 = arith.constant 0 : i32
    %4 = arith.addi %3, %c0_i32_1 : i32
    %5 = arith.index_cast %4 : i32 to index
    %c0 = arith.constant 0 : index
    %c0_2 = arith.constant 0 : index
    %6 = vector.load %arg6[%5, %c0, %c0_2] : memref<10x10x32xf32, #tpu.memory_space<vmem>>, vector<8x8x32xf32>
    %c0_3 = arith.constant 0 : index
    %c0_4 = arith.constant 0 : index
    %c0_5 = arith.constant 0 : index
    %7 = vector.load %arg7[%c0_3, %c0_4, %c0_5] : memref<8x8x288xf32, #tpu.memory_space<vmem>>, vector<8x8x32xf32>
    tpu.vector_store %arg7[%c0_3, %c0_4, %c0_5], %6 {strides = array<i32>} : memref<8x8x288xf32, #tpu.memory_space<vmem>>, vector<8x8x32xf32>,
    %c0_i32_6 = arith.constant 0 : i32
    %8 = arith.addi %3, %c0_i32_6 : i32
    %9 = arith.index_cast %8 : i32 to index
    %c1 = arith.constant 1 : index
    %c0_7 = arith.constant 0 : index
    %10 = vector.load %arg6[%9, %c1, %c0_7] : memref<10x10x32xf32, #tpu.memory_space<vmem>>, vector<8x8x32xf32>
    %c0_8 = arith.constant 0 : index
    %c0_9 = arith.constant 0 : index
    %c32 = arith.constant 32 : index
    %11 = vector.load %arg7[%c0_8, %c0_9, %c32] : memref<8x8x288xf32, #tpu.memory_space<vmem>>, vector<8x8x32xf32>
    tpu.vector_store %arg7[%c0_8, %c0_9, %c32], %10 {strides = array<i32>} : memref<8x8x288xf32, #tpu.memory_space<vmem>>, vector<8x8x32xf32>,
    %c0_i32_10 = arith.constant 0 : i32
    %12 = arith.addi %3, %c0_i32_10 : i32
    %13 = arith.index_cast %12 : i32 to index
    %c2 = arith.constant 2 : index
    %c0_11 = arith.constant 0 : index
    %14 = vector.load %arg6[%13, %c2, %c0_11] : memref<10x10x32xf32, #tpu.memory_space<vmem>>, vector<8x8x32xf32>
    %c0_12 = arith.constant 0 : index
    %c0_13 = arith.constant 0 : index
    %c64 = arith.constant 64 : index
    %15 = vector.load %arg7[%c0_12, %c0_13, %c64] : memref<8x8x288xf32, #tpu.memory_space<vmem>>, vector<8x8x32xf32>
    tpu.vector_store %arg7[%c0_12, %c0_13, %c64], %14 {strides = array<i32>} : memref<8x8x288xf32, #tpu.memory_space<vmem>>, vector<8x8x32xf32>,
    %c1_i32 = arith.constant 1 : i32
    %16 = arith.addi %3, %c1_i32 : i32
    %17 = arith.index_cast %16 : i32 to index
    %c0_14 = arith.constant 0 : index
    %c0_15 = arith.constant 0 : index
    %18 = vector.load %arg6[%17, %c0_14, %c0_15] : memref<10x10x32xf32, #tpu.memory_space<vmem>>, vector<8x8x32xf32>
    %c0_16 = arith.constant 0 : index
    %c0_17 = arith.constant 0 : index
    %c96 = arith.constant 96 : index
    %19 = vector.load %arg7[%c0_16, %c0_17, %c96] : memref<8x8x288xf32, #tpu.memory_space<vmem>>, vector<8x8x32xf32>
    tpu.vector_store %arg7[%c0_16, %c0_17, %c96], %18 {strides = array<i32>} : memref<8x8x288xf32, #tpu.memory_space<vmem>>, vector<8x8x32xf32>,
    %c1_i32_18 = arith.constant 1 : i32
    %20 = arith.addi %3, %c1_i32_18 : i32
    %21 = arith.index_cast %20 : i32 to index
    %c1_19 = arith.constant 1 : index
    %c0_20 = arith.constant 0 : index
    %22 = vector.load %arg6[%21, %c1_19, %c0_20] : memref<10x10x32xf32, #tpu.memory_space<vmem>>, vector<8x8x32xf32>
    %c0_21 = arith.constant 0 : index
    %c0_22 = arith.constant 0 : index
    %c128 = arith.constant 128 : index
    %23 = vector.load %arg7[%c0_21, %c0_22, %c128] : memref<8x8x288xf32, #tpu.memory_space<vmem>>, vector<8x8x32xf32>
    tpu.vector_store %arg7[%c0_21, %c0_22, %c128], %22 {strides = array<i32>} : memref<8x8x288xf32, #tpu.memory_space<vmem>>, vector<8x8x32xf32>,
    %c1_i32_23 = arith.constant 1 : i32
    %24 = arith.addi %3, %c1_i32_23 : i32
    %25 = arith.index_cast %24 : i32 to index
    %c2_24 = arith.constant 2 : index
    %c0_25 = arith.constant 0 : index
    %26 = vector.load %arg6[%25, %c2_24, %c0_25] : memref<10x10x32xf32, #tpu.memory_space<vmem>>, vector<8x8x32xf32>
    %c0_26 = arith.constant 0 : index
    %c0_27 = arith.constant 0 : index
    %c160 = arith.constant 160 : index
    %27 = vector.load %arg7[%c0_26, %c0_27, %c160] : memref<8x8x288xf32, #tpu.memory_space<vmem>>, vector<8x8x32xf32>
    tpu.vector_store %arg7[%c0_26, %c0_27, %c160], %26 {strides = array<i32>} : memref<8x8x288xf32, #tpu.memory_space<vmem>>, vector<8x8x32xf32>,
    %c2_i32 = arith.constant 2 : i32
    %28 = arith.addi %3, %c2_i32 : i32
    %29 = arith.index_cast %28 : i32 to index
    %c0_28 = arith.constant 0 : index
    %c0_29 = arith.constant 0 : index
    %30 = vector.load %arg6[%29, %c0_28, %c0_29] : memref<10x10x32xf32, #tpu.memory_space<vmem>>, vector<8x8x32xf32>
    %c0_30 = arith.constant 0 : index
    %c0_31 = arith.constant 0 : index
    %c192 = arith.constant 192 : index
    %31 = vector.load %arg7[%c0_30, %c0_31, %c192] : memref<8x8x288xf32, #tpu.memory_space<vmem>>, vector<8x8x32xf32>
    tpu.vector_store %arg7[%c0_30, %c0_31, %c192], %30 {strides = array<i32>} : memref<8x8x288xf32, #tpu.memory_space<vmem>>, vector<8x8x32xf32>,
    %c2_i32_32 = arith.constant 2 : i32
    %32 = arith.addi %3, %c2_i32_32 : i32
    %33 = arith.index_cast %32 : i32 to index
    %c1_33 = arith.constant 1 : index
    %c0_34 = arith.constant 0 : index
    %34 = vector.load %arg6[%33, %c1_33, %c0_34] : memref<10x10x32xf32, #tpu.memory_space<vmem>>, vector<8x8x32xf32>
    %c0_35 = arith.constant 0 : index
    %c0_36 = arith.constant 0 : index
    %c224 = arith.constant 224 : index
    %35 = vector.load %arg7[%c0_35, %c0_36, %c224] : memref<8x8x288xf32, #tpu.memory_space<vmem>>, vector<8x8x32xf32>
    tpu.vector_store %arg7[%c0_35, %c0_36, %c224], %34 {strides = array<i32>} : memref<8x8x288xf32, #tpu.memory_space<vmem>>, vector<8x8x32xf32>,
    %c2_i32_37 = arith.constant 2 : i32
    %36 = arith.addi %3, %c2_i32_37 : i32
    %37 = arith.index_cast %36 : i32 to index
    %c2_38 = arith.constant 2 : index
    %c0_39 = arith.constant 0 : index
    %38 = vector.load %arg6[%37, %c2_38, %c0_39] : memref<10x10x32xf32, #tpu.memory_space<vmem>>, vector<8x8x32xf32>
    %c0_40 = arith.constant 0 : index
    %c0_41 = arith.constant 0 : index
    %c256 = arith.constant 256 : index
    %39 = vector.load %arg7[%c0_40, %c0_41, %c256] : memref<8x8x288xf32, #tpu.memory_space<vmem>>, vector<8x8x32xf32>
    tpu.vector_store %arg7[%c0_40, %c0_41, %c256], %38 {strides = array<i32>} : memref<8x8x288xf32, #tpu.memory_space<vmem>>, vector<8x8x32xf32>,
    %c0_42 = arith.constant 0 : index
    %c0_43 = arith.constant 0 : index
    %c0_44 = arith.constant 0 : index
    %40 = vector.load %arg7[%c0_42, %c0_43, %c0_44] : memref<8x8x288xf32, #tpu.memory_space<vmem>>, vector<8x8x288xf32>
    %41 = vector.shape_cast %40 : vector<8x8x288xf32> to vector<64x288xf32>
    %42 = arith.truncf %41 : vector<64x288xf32> to vector<64x288xbf16>
    %c0_45 = arith.constant 0 : index
    %c0_46 = arith.constant 0 : index
    %43 = vector.load %arg3[%c0_45, %c0_46] : memref<288x64xbf16, #tpu.memory_space<vmem>>, vector<288x64xbf16>
    %cst = arith.constant dense<0.000000e+00> : vector<64x64xf32>
    %44 = tpu.matmul %42, %43, %cst {dimension_numbers = #tpu.dot_dimension_numbers<[1], [0], [0], [1], [0, 0, 1, 1], [], []>} : vector<64x288xbf16>, vector<288x64xbf16>, vector<64x64xf32> -> vector<64x64xf32>
    %c0_47 = arith.constant 0 : index
    %c0_48 = arith.constant 0 : index
    %45 = vector.load %arg4[%c0_47, %c0_48] : memref<1x64xf32, #tpu.memory_space<vmem>>, vector<1x64xf32>
    %46 = vector.broadcast %45 : vector<1x64xf32> to vector<64x64xf32>
    %47 = arith.addf %44, %46 : vector<64x64xf32>
    %cst_49 = arith.constant 0.000000e+00 : f32
    %48 = vector.broadcast %cst_49 : f32 to vector<64x64xf32>
    %49 = arith.maximumf %47, %48 : vector<64x64xf32>
    %c0_50 = arith.constant 0 : index
    %c0_51 = arith.constant 0 : index
    %c0_52 = arith.constant 0 : index
    %50 = vector.load %arg5[%c0_50, %c0_51, %c0_52] : memref<1x64x64xf32, #tpu.memory_space<vmem>>, vector<1x64x64xf32>
    %51 = vector.shape_cast %50 : vector<1x64x64xf32> to vector<64x64xf32>
    %52 = vector.shape_cast %49 : vector<64x64xf32> to vector<1x64x64xf32>
    tpu.vector_store %arg5[%c0_50, %c0_51, %c0_52], %52 {strides = array<i32>} : memref<1x64x64xf32, #tpu.memory_space<vmem>>, vector<1x64x64xf32>,
    return
  }
  func.func @transform_0(%arg0: i32, %arg1: i32) -> (i32, i32, i32, i32) {
    %c0_i32 = arith.constant 0 : i32
    %c0_i32_0 = arith.constant 0 : i32
    %c0_i32_1 = arith.constant 0 : i32
    %c0_i32_2 = arith.constant 0 : i32
    return %arg0, %c0_i32, %c0_i32_0, %c0_i32_1 : i32, i32, i32, i32
  }
  func.func @transform_1(%arg0: i32, %arg1: i32) -> (i32, i32) {
    %c0_i32 = arith.constant 0 : i32
    %c0_i32_0 = arith.constant 0 : i32
    %c0_i32_1 = arith.constant 0 : i32
    return %c0_i32, %c0_i32_0 : i32, i32
  }
  func.func @transform_2(%arg0: i32, %arg1: i32) -> (i32, i32) {
    %c0_i32 = arith.constant 0 : i32
    %c0_i32_0 = arith.constant 0 : i32
    %c0_i32_1 = arith.constant 0 : i32
    return %c0_i32, %c0_i32_0 : i32, i32
  }
  func.func @transform_3(%arg0: i32, %arg1: i32) -> (i32, i32, i32) {
    %c0_i32 = arith.constant 0 : i32
    %c0_i32_0 = arith.constant 0 : i32
    return %arg0, %arg1, %c0_i32 : i32, i32, i32
  }
}

module attributes {stable_mosaic.version = 11 : i64} {
  func.func @_avgpool2_kernel(%arg0: i32, %arg1: memref<4x2x4x128xf32, #tpu.memory_space<vmem>>, %arg2: memref<4x4x64xf32, #tpu.memory_space<vmem>>) attributes {dimension_semantics = [#tpu.dimension_semantics<parallel>], iteration_bounds = array<i64: 2>, scalar_prefetch = 0 : i64, scratch_operands = 0 : i64, tpu.core_type = #tpu.core_type<tc>, window_params = [{transform_indices = @transform_0, window_bounds = array<i64: 4, 2, 4, 128>}, {transform_indices = @transform_1, window_bounds = array<i64: 4, 4, 64>}]} {
    %c0 = arith.constant 0 : index
    %c0_0 = arith.constant 0 : index
    %c0_1 = arith.constant 0 : index
    %c0_2 = arith.constant 0 : index
    %0 = vector.load %arg1[%c0, %c0_0, %c0_1, %c0_2] : memref<4x2x4x128xf32, #tpu.memory_space<vmem>>, vector<4x1x4x128xf32>
    %1 = vector.shape_cast %0 : vector<4x1x4x128xf32> to vector<4x4x128xf32>
    %c0_3 = arith.constant 0 : index
    %c1 = arith.constant 1 : index
    %c0_4 = arith.constant 0 : index
    %c0_5 = arith.constant 0 : index
    %2 = vector.load %arg1[%c0_3, %c1, %c0_4, %c0_5] : memref<4x2x4x128xf32, #tpu.memory_space<vmem>>, vector<4x1x4x128xf32>
    %3 = vector.shape_cast %2 : vector<4x1x4x128xf32> to vector<4x4x128xf32>
    %4 = vector.extract_strided_slice %1 {offsets = [0, 0, 0], sizes = [4, 4, 64], strides = [1, 1, 1]} : vector<4x4x128xf32> to vector<4x4x64xf32>
    %5 = vector.extract_strided_slice %1 {offsets = [0, 0, 64], sizes = [4, 4, 64], strides = [1, 1, 1]} : vector<4x4x128xf32> to vector<4x4x64xf32>
    %6 = arith.addf %4, %5 : vector<4x4x64xf32>
    %7 = vector.extract_strided_slice %3 {offsets = [0, 0, 0], sizes = [4, 4, 64], strides = [1, 1, 1]} : vector<4x4x128xf32> to vector<4x4x64xf32>
    %8 = arith.addf %6, %7 : vector<4x4x64xf32>
    %9 = vector.extract_strided_slice %3 {offsets = [0, 0, 64], sizes = [4, 4, 64], strides = [1, 1, 1]} : vector<4x4x128xf32> to vector<4x4x64xf32>
    %10 = arith.addf %8, %9 : vector<4x4x64xf32>
    %cst = arith.constant 2.500000e-01 : f32
    %11 = vector.broadcast %cst : f32 to vector<4x4x64xf32>
    %12 = arith.mulf %10, %11 : vector<4x4x64xf32>
    %c0_6 = arith.constant 0 : index
    %c0_7 = arith.constant 0 : index
    %c0_8 = arith.constant 0 : index
    %13 = vector.load %arg2[%c0_6, %c0_7, %c0_8] : memref<4x4x64xf32, #tpu.memory_space<vmem>>, vector<4x4x64xf32>
    tpu.vector_store %arg2[%c0_6, %c0_7, %c0_8], %12 {strides = array<i32>} : memref<4x4x64xf32, #tpu.memory_space<vmem>>, vector<4x4x64xf32>,
    return
  }
  func.func @transform_0(%arg0: i32) -> (i32, i32, i32, i32) {
    %c0_i32 = arith.constant 0 : i32
    %c0_i32_0 = arith.constant 0 : i32
    %c0_i32_1 = arith.constant 0 : i32
    %c0_i32_2 = arith.constant 0 : i32
    return %arg0, %c0_i32, %c0_i32_0, %c0_i32_1 : i32, i32, i32, i32
  }
  func.func @transform_1(%arg0: i32) -> (i32, i32, i32) {
    %c0_i32 = arith.constant 0 : i32
    %c0_i32_0 = arith.constant 0 : i32
    %c0_i32_1 = arith.constant 0 : i32
    return %arg0, %c0_i32, %c0_i32_0 : i32, i32, i32
  }
}

module attributes {stable_mosaic.version = 11 : i64} {
  func.func @_conv3x3_kernel(%arg0: i32, %arg1: i32, %arg2: memref<1x4x4x64xf32, #tpu.memory_space<vmem>>, %arg3: memref<576x128xbf16, #tpu.memory_space<vmem>>, %arg4: memref<1x128xf32, #tpu.memory_space<vmem>>, %arg5: memref<1x16x128xf32, #tpu.memory_space<vmem>>, %arg6: memref<6x6x64xf32, #tpu.memory_space<vmem>>, %arg7: memref<4x4x576xf32, #tpu.memory_space<vmem>>) attributes {dimension_semantics = [#tpu.dimension_semantics<parallel>, #tpu.dimension_semantics<arbitrary>], iteration_bounds = array<i64: 2, 1>, scalar_prefetch = 0 : i64, scratch_operands = 2 : i64, tpu.core_type = #tpu.core_type<tc>, window_params = [{transform_indices = @transform_0, window_bounds = array<i64: 1, 4, 4, 64>}, {pipeline_mode = #tpu.pipeline_mode<synchronous>, transform_indices = @transform_1, window_bounds = array<i64: 576, 128>}, {pipeline_mode = #tpu.pipeline_mode<synchronous>, transform_indices = @transform_2, window_bounds = array<i64: 1, 128>}, {transform_indices = @transform_3, window_bounds = array<i64: 1, 16, 128>}]} {
    %c0_i32 = arith.constant 0 : i32
    %0 = arith.cmpi eq, %arg1, %c0_i32 : i32
    %1 = arith.extui %0 : i1 to i32
    %c0_i32_0 = arith.constant 0 : i32
    %2 = arith.cmpi ne, %1, %c0_i32_0 : i32
    scf.if %2 {
      %cst_53 = arith.constant 0.000000e+00 : f32
      %53 = vector.broadcast %cst_53 : f32 to vector<6x6x64xf32>
      %c0_54 = arith.constant 0 : index
      %c0_55 = arith.constant 0 : index
      %c0_56 = arith.constant 0 : index
      %54 = vector.load %arg6[%c0_54, %c0_55, %c0_56] : memref<6x6x64xf32, #tpu.memory_space<vmem>>, vector<6x6x64xf32>
      tpu.vector_store %arg6[%c0_54, %c0_55, %c0_56], %53 {strides = array<i32>} : memref<6x6x64xf32, #tpu.memory_space<vmem>>, vector<6x6x64xf32>,
      %c0_57 = arith.constant 0 : index
      %c0_58 = arith.constant 0 : index
      %c0_59 = arith.constant 0 : index
      %c0_60 = arith.constant 0 : index
      %55 = vector.load %arg2[%c0_57, %c0_58, %c0_59, %c0_60] : memref<1x4x4x64xf32, #tpu.memory_space<vmem>>, vector<1x4x4x64xf32>
      %56 = vector.shape_cast %55 : vector<1x4x4x64xf32> to vector<4x4x64xf32>
      %c1_61 = arith.constant 1 : index
      %c1_62 = arith.constant 1 : index
      %c0_63 = arith.constant 0 : index
      %57 = vector.load %arg6[%c1_61, %c1_62, %c0_63] : memref<6x6x64xf32, #tpu.memory_space<vmem>>, vector<4x4x64xf32>
      tpu.vector_store %arg6[%c1_61, %c1_62, %c0_63], %56 {strides = array<i32>} : memref<6x6x64xf32, #tpu.memory_space<vmem>>, vector<4x4x64xf32>,
    } else {
    }
    %c4_i32 = arith.constant 4 : i32
    %3 = arith.muli %arg1, %c4_i32 : i32
    %c0_i32_1 = arith.constant 0 : i32
    %4 = arith.addi %3, %c0_i32_1 : i32
    %5 = arith.index_cast %4 : i32 to index
    %c0 = arith.constant 0 : index
    %c0_2 = arith.constant 0 : index
    %6 = vector.load %arg6[%5, %c0, %c0_2] : memref<6x6x64xf32, #tpu.memory_space<vmem>>, vector<4x4x64xf32>
    %c0_3 = arith.constant 0 : index
    %c0_4 = arith.constant 0 : index
    %c0_5 = arith.constant 0 : index
    %7 = vector.load %arg7[%c0_3, %c0_4, %c0_5] : memref<4x4x576xf32, #tpu.memory_space<vmem>>, vector<4x4x64xf32>
    tpu.vector_store %arg7[%c0_3, %c0_4, %c0_5], %6 {strides = array<i32>} : memref<4x4x576xf32, #tpu.memory_space<vmem>>, vector<4x4x64xf32>,
    %c0_i32_6 = arith.constant 0 : i32
    %8 = arith.addi %3, %c0_i32_6 : i32
    %9 = arith.index_cast %8 : i32 to index
    %c1 = arith.constant 1 : index
    %c0_7 = arith.constant 0 : index
    %10 = vector.load %arg6[%9, %c1, %c0_7] : memref<6x6x64xf32, #tpu.memory_space<vmem>>, vector<4x4x64xf32>
    %c0_8 = arith.constant 0 : index
    %c0_9 = arith.constant 0 : index
    %c64 = arith.constant 64 : index
    %11 = vector.load %arg7[%c0_8, %c0_9, %c64] : memref<4x4x576xf32, #tpu.memory_space<vmem>>, vector<4x4x64xf32>
    tpu.vector_store %arg7[%c0_8, %c0_9, %c64], %10 {strides = array<i32>} : memref<4x4x576xf32, #tpu.memory_space<vmem>>, vector<4x4x64xf32>,
    %c0_i32_10 = arith.constant 0 : i32
    %12 = arith.addi %3, %c0_i32_10 : i32
    %13 = arith.index_cast %12 : i32 to index
    %c2 = arith.constant 2 : index
    %c0_11 = arith.constant 0 : index
    %14 = vector.load %arg6[%13, %c2, %c0_11] : memref<6x6x64xf32, #tpu.memory_space<vmem>>, vector<4x4x64xf32>
    %c0_12 = arith.constant 0 : index
    %c0_13 = arith.constant 0 : index
    %c128 = arith.constant 128 : index
    %15 = vector.load %arg7[%c0_12, %c0_13, %c128] : memref<4x4x576xf32, #tpu.memory_space<vmem>>, vector<4x4x64xf32>
    tpu.vector_store %arg7[%c0_12, %c0_13, %c128], %14 {strides = array<i32>} : memref<4x4x576xf32, #tpu.memory_space<vmem>>, vector<4x4x64xf32>,
    %c1_i32 = arith.constant 1 : i32
    %16 = arith.addi %3, %c1_i32 : i32
    %17 = arith.index_cast %16 : i32 to index
    %c0_14 = arith.constant 0 : index
    %c0_15 = arith.constant 0 : index
    %18 = vector.load %arg6[%17, %c0_14, %c0_15] : memref<6x6x64xf32, #tpu.memory_space<vmem>>, vector<4x4x64xf32>
    %c0_16 = arith.constant 0 : index
    %c0_17 = arith.constant 0 : index
    %c192 = arith.constant 192 : index
    %19 = vector.load %arg7[%c0_16, %c0_17, %c192] : memref<4x4x576xf32, #tpu.memory_space<vmem>>, vector<4x4x64xf32>
    tpu.vector_store %arg7[%c0_16, %c0_17, %c192], %18 {strides = array<i32>} : memref<4x4x576xf32, #tpu.memory_space<vmem>>, vector<4x4x64xf32>,
    %c1_i32_18 = arith.constant 1 : i32
    %20 = arith.addi %3, %c1_i32_18 : i32
    %21 = arith.index_cast %20 : i32 to index
    %c1_19 = arith.constant 1 : index
    %c0_20 = arith.constant 0 : index
    %22 = vector.load %arg6[%21, %c1_19, %c0_20] : memref<6x6x64xf32, #tpu.memory_space<vmem>>, vector<4x4x64xf32>
    %c0_21 = arith.constant 0 : index
    %c0_22 = arith.constant 0 : index
    %c256 = arith.constant 256 : index
    %23 = vector.load %arg7[%c0_21, %c0_22, %c256] : memref<4x4x576xf32, #tpu.memory_space<vmem>>, vector<4x4x64xf32>
    tpu.vector_store %arg7[%c0_21, %c0_22, %c256], %22 {strides = array<i32>} : memref<4x4x576xf32, #tpu.memory_space<vmem>>, vector<4x4x64xf32>,
    %c1_i32_23 = arith.constant 1 : i32
    %24 = arith.addi %3, %c1_i32_23 : i32
    %25 = arith.index_cast %24 : i32 to index
    %c2_24 = arith.constant 2 : index
    %c0_25 = arith.constant 0 : index
    %26 = vector.load %arg6[%25, %c2_24, %c0_25] : memref<6x6x64xf32, #tpu.memory_space<vmem>>, vector<4x4x64xf32>
    %c0_26 = arith.constant 0 : index
    %c0_27 = arith.constant 0 : index
    %c320 = arith.constant 320 : index
    %27 = vector.load %arg7[%c0_26, %c0_27, %c320] : memref<4x4x576xf32, #tpu.memory_space<vmem>>, vector<4x4x64xf32>
    tpu.vector_store %arg7[%c0_26, %c0_27, %c320], %26 {strides = array<i32>} : memref<4x4x576xf32, #tpu.memory_space<vmem>>, vector<4x4x64xf32>,
    %c2_i32 = arith.constant 2 : i32
    %28 = arith.addi %3, %c2_i32 : i32
    %29 = arith.index_cast %28 : i32 to index
    %c0_28 = arith.constant 0 : index
    %c0_29 = arith.constant 0 : index
    %30 = vector.load %arg6[%29, %c0_28, %c0_29] : memref<6x6x64xf32, #tpu.memory_space<vmem>>, vector<4x4x64xf32>
    %c0_30 = arith.constant 0 : index
    %c0_31 = arith.constant 0 : index
    %c384 = arith.constant 384 : index
    %31 = vector.load %arg7[%c0_30, %c0_31, %c384] : memref<4x4x576xf32, #tpu.memory_space<vmem>>, vector<4x4x64xf32>
    tpu.vector_store %arg7[%c0_30, %c0_31, %c384], %30 {strides = array<i32>} : memref<4x4x576xf32, #tpu.memory_space<vmem>>, vector<4x4x64xf32>,
    %c2_i32_32 = arith.constant 2 : i32
    %32 = arith.addi %3, %c2_i32_32 : i32
    %33 = arith.index_cast %32 : i32 to index
    %c1_33 = arith.constant 1 : index
    %c0_34 = arith.constant 0 : index
    %34 = vector.load %arg6[%33, %c1_33, %c0_34] : memref<6x6x64xf32, #tpu.memory_space<vmem>>, vector<4x4x64xf32>
    %c0_35 = arith.constant 0 : index
    %c0_36 = arith.constant 0 : index
    %c448 = arith.constant 448 : index
    %35 = vector.load %arg7[%c0_35, %c0_36, %c448] : memref<4x4x576xf32, #tpu.memory_space<vmem>>, vector<4x4x64xf32>
    tpu.vector_store %arg7[%c0_35, %c0_36, %c448], %34 {strides = array<i32>} : memref<4x4x576xf32, #tpu.memory_space<vmem>>, vector<4x4x64xf32>,
    %c2_i32_37 = arith.constant 2 : i32
    %36 = arith.addi %3, %c2_i32_37 : i32
    %37 = arith.index_cast %36 : i32 to index
    %c2_38 = arith.constant 2 : index
    %c0_39 = arith.constant 0 : index
    %38 = vector.load %arg6[%37, %c2_38, %c0_39] : memref<6x6x64xf32, #tpu.memory_space<vmem>>, vector<4x4x64xf32>
    %c0_40 = arith.constant 0 : index
    %c0_41 = arith.constant 0 : index
    %c512 = arith.constant 512 : index
    %39 = vector.load %arg7[%c0_40, %c0_41, %c512] : memref<4x4x576xf32, #tpu.memory_space<vmem>>, vector<4x4x64xf32>
    tpu.vector_store %arg7[%c0_40, %c0_41, %c512], %38 {strides = array<i32>} : memref<4x4x576xf32, #tpu.memory_space<vmem>>, vector<4x4x64xf32>,
    %c0_42 = arith.constant 0 : index
    %c0_43 = arith.constant 0 : index
    %c0_44 = arith.constant 0 : index
    %40 = vector.load %arg7[%c0_42, %c0_43, %c0_44] : memref<4x4x576xf32, #tpu.memory_space<vmem>>, vector<4x4x576xf32>
    %41 = vector.shape_cast %40 : vector<4x4x576xf32> to vector<16x576xf32>
    %42 = arith.truncf %41 : vector<16x576xf32> to vector<16x576xbf16>
    %c0_45 = arith.constant 0 : index
    %c0_46 = arith.constant 0 : index
    %43 = vector.load %arg3[%c0_45, %c0_46] : memref<576x128xbf16, #tpu.memory_space<vmem>>, vector<576x128xbf16>
    %cst = arith.constant dense<0.000000e+00> : vector<16x128xf32>
    %44 = tpu.matmul %42, %43, %cst {dimension_numbers = #tpu.dot_dimension_numbers<[1], [0], [0], [1], [0, 0, 1, 1], [], []>} : vector<16x576xbf16>, vector<576x128xbf16>, vector<16x128xf32> -> vector<16x128xf32>
    %c0_47 = arith.constant 0 : index
    %c0_48 = arith.constant 0 : index
    %45 = vector.load %arg4[%c0_47, %c0_48] : memref<1x128xf32, #tpu.memory_space<vmem>>, vector<1x128xf32>
    %46 = vector.broadcast %45 : vector<1x128xf32> to vector<16x128xf32>
    %47 = arith.addf %44, %46 : vector<16x128xf32>
    %cst_49 = arith.constant 0.000000e+00 : f32
    %48 = vector.broadcast %cst_49 : f32 to vector<16x128xf32>
    %49 = arith.maximumf %47, %48 : vector<16x128xf32>
    %c0_50 = arith.constant 0 : index
    %c0_51 = arith.constant 0 : index
    %c0_52 = arith.constant 0 : index
    %50 = vector.load %arg5[%c0_50, %c0_51, %c0_52] : memref<1x16x128xf32, #tpu.memory_space<vmem>>, vector<1x16x128xf32>
    %51 = vector.shape_cast %50 : vector<1x16x128xf32> to vector<16x128xf32>
    %52 = vector.shape_cast %49 : vector<16x128xf32> to vector<1x16x128xf32>
    tpu.vector_store %arg5[%c0_50, %c0_51, %c0_52], %52 {strides = array<i32>} : memref<1x16x128xf32, #tpu.memory_space<vmem>>, vector<1x16x128xf32>,
    return
  }
  func.func @transform_0(%arg0: i32, %arg1: i32) -> (i32, i32, i32, i32) {
    %c0_i32 = arith.constant 0 : i32
    %c0_i32_0 = arith.constant 0 : i32
    %c0_i32_1 = arith.constant 0 : i32
    %c0_i32_2 = arith.constant 0 : i32
    return %arg0, %c0_i32, %c0_i32_0, %c0_i32_1 : i32, i32, i32, i32
  }
  func.func @transform_1(%arg0: i32, %arg1: i32) -> (i32, i32) {
    %c0_i32 = arith.constant 0 : i32
    %c0_i32_0 = arith.constant 0 : i32
    %c0_i32_1 = arith.constant 0 : i32
    return %c0_i32, %c0_i32_0 : i32, i32
  }
  func.func @transform_2(%arg0: i32, %arg1: i32) -> (i32, i32) {
    %c0_i32 = arith.constant 0 : i32
    %c0_i32_0 = arith.constant 0 : i32
    %c0_i32_1 = arith.constant 0 : i32
    return %c0_i32, %c0_i32_0 : i32, i32
  }
  func.func @transform_3(%arg0: i32, %arg1: i32) -> (i32, i32, i32) {
    %c0_i32 = arith.constant 0 : i32
    %c0_i32_0 = arith.constant 0 : i32
    return %arg0, %arg1, %c0_i32 : i32, i32, i32
  }
}

module attributes {stable_mosaic.version = 11 : i64} {
  func.func @_conv3x3_kernel(%arg0: i32, %arg1: i32, %arg2: memref<1x4x4x128xf32, #tpu.memory_space<vmem>>, %arg3: memref<1152x64xbf16, #tpu.memory_space<vmem>>, %arg4: memref<1x64xf32, #tpu.memory_space<vmem>>, %arg5: memref<1x16x64xf32, #tpu.memory_space<vmem>>, %arg6: memref<6x6x128xf32, #tpu.memory_space<vmem>>, %arg7: memref<4x4x1152xf32, #tpu.memory_space<vmem>>) attributes {dimension_semantics = [#tpu.dimension_semantics<parallel>, #tpu.dimension_semantics<arbitrary>], iteration_bounds = array<i64: 2, 1>, scalar_prefetch = 0 : i64, scratch_operands = 2 : i64, tpu.core_type = #tpu.core_type<tc>, window_params = [{transform_indices = @transform_0, window_bounds = array<i64: 1, 4, 4, 128>}, {pipeline_mode = #tpu.pipeline_mode<synchronous>, transform_indices = @transform_1, window_bounds = array<i64: 1152, 64>}, {pipeline_mode = #tpu.pipeline_mode<synchronous>, transform_indices = @transform_2, window_bounds = array<i64: 1, 64>}, {transform_indices = @transform_3, window_bounds = array<i64: 1, 16, 64>}]} {
    %c0_i32 = arith.constant 0 : i32
    %0 = arith.cmpi eq, %arg1, %c0_i32 : i32
    %1 = arith.extui %0 : i1 to i32
    %c0_i32_0 = arith.constant 0 : i32
    %2 = arith.cmpi ne, %1, %c0_i32_0 : i32
    scf.if %2 {
      %cst_53 = arith.constant 0.000000e+00 : f32
      %53 = vector.broadcast %cst_53 : f32 to vector<6x6x128xf32>
      %c0_54 = arith.constant 0 : index
      %c0_55 = arith.constant 0 : index
      %c0_56 = arith.constant 0 : index
      %54 = vector.load %arg6[%c0_54, %c0_55, %c0_56] : memref<6x6x128xf32, #tpu.memory_space<vmem>>, vector<6x6x128xf32>
      tpu.vector_store %arg6[%c0_54, %c0_55, %c0_56], %53 {strides = array<i32>} : memref<6x6x128xf32, #tpu.memory_space<vmem>>, vector<6x6x128xf32>,
      %c0_57 = arith.constant 0 : index
      %c0_58 = arith.constant 0 : index
      %c0_59 = arith.constant 0 : index
      %c0_60 = arith.constant 0 : index
      %55 = vector.load %arg2[%c0_57, %c0_58, %c0_59, %c0_60] : memref<1x4x4x128xf32, #tpu.memory_space<vmem>>, vector<1x4x4x128xf32>
      %56 = vector.shape_cast %55 : vector<1x4x4x128xf32> to vector<4x4x128xf32>
      %c1_61 = arith.constant 1 : index
      %c1_62 = arith.constant 1 : index
      %c0_63 = arith.constant 0 : index
      %57 = vector.load %arg6[%c1_61, %c1_62, %c0_63] : memref<6x6x128xf32, #tpu.memory_space<vmem>>, vector<4x4x128xf32>
      tpu.vector_store %arg6[%c1_61, %c1_62, %c0_63], %56 {strides = array<i32>} : memref<6x6x128xf32, #tpu.memory_space<vmem>>, vector<4x4x128xf32>,
    } else {
    }
    %c4_i32 = arith.constant 4 : i32
    %3 = arith.muli %arg1, %c4_i32 : i32
    %c0_i32_1 = arith.constant 0 : i32
    %4 = arith.addi %3, %c0_i32_1 : i32
    %5 = arith.index_cast %4 : i32 to index
    %c0 = arith.constant 0 : index
    %c0_2 = arith.constant 0 : index
    %6 = vector.load %arg6[%5, %c0, %c0_2] : memref<6x6x128xf32, #tpu.memory_space<vmem>>, vector<4x4x128xf32>
    %c0_3 = arith.constant 0 : index
    %c0_4 = arith.constant 0 : index
    %c0_5 = arith.constant 0 : index
    %7 = vector.load %arg7[%c0_3, %c0_4, %c0_5] : memref<4x4x1152xf32, #tpu.memory_space<vmem>>, vector<4x4x128xf32>
    tpu.vector_store %arg7[%c0_3, %c0_4, %c0_5], %6 {strides = array<i32>} : memref<4x4x1152xf32, #tpu.memory_space<vmem>>, vector<4x4x128xf32>,
    %c0_i32_6 = arith.constant 0 : i32
    %8 = arith.addi %3, %c0_i32_6 : i32
    %9 = arith.index_cast %8 : i32 to index
    %c1 = arith.constant 1 : index
    %c0_7 = arith.constant 0 : index
    %10 = vector.load %arg6[%9, %c1, %c0_7] : memref<6x6x128xf32, #tpu.memory_space<vmem>>, vector<4x4x128xf32>
    %c0_8 = arith.constant 0 : index
    %c0_9 = arith.constant 0 : index
    %c128 = arith.constant 128 : index
    %11 = vector.load %arg7[%c0_8, %c0_9, %c128] : memref<4x4x1152xf32, #tpu.memory_space<vmem>>, vector<4x4x128xf32>
    tpu.vector_store %arg7[%c0_8, %c0_9, %c128], %10 {strides = array<i32>} : memref<4x4x1152xf32, #tpu.memory_space<vmem>>, vector<4x4x128xf32>,
    %c0_i32_10 = arith.constant 0 : i32
    %12 = arith.addi %3, %c0_i32_10 : i32
    %13 = arith.index_cast %12 : i32 to index
    %c2 = arith.constant 2 : index
    %c0_11 = arith.constant 0 : index
    %14 = vector.load %arg6[%13, %c2, %c0_11] : memref<6x6x128xf32, #tpu.memory_space<vmem>>, vector<4x4x128xf32>
    %c0_12 = arith.constant 0 : index
    %c0_13 = arith.constant 0 : index
    %c256 = arith.constant 256 : index
    %15 = vector.load %arg7[%c0_12, %c0_13, %c256] : memref<4x4x1152xf32, #tpu.memory_space<vmem>>, vector<4x4x128xf32>
    tpu.vector_store %arg7[%c0_12, %c0_13, %c256], %14 {strides = array<i32>} : memref<4x4x1152xf32, #tpu.memory_space<vmem>>, vector<4x4x128xf32>,
    %c1_i32 = arith.constant 1 : i32
    %16 = arith.addi %3, %c1_i32 : i32
    %17 = arith.index_cast %16 : i32 to index
    %c0_14 = arith.constant 0 : index
    %c0_15 = arith.constant 0 : index
    %18 = vector.load %arg6[%17, %c0_14, %c0_15] : memref<6x6x128xf32, #tpu.memory_space<vmem>>, vector<4x4x128xf32>
    %c0_16 = arith.constant 0 : index
    %c0_17 = arith.constant 0 : index
    %c384 = arith.constant 384 : index
    %19 = vector.load %arg7[%c0_16, %c0_17, %c384] : memref<4x4x1152xf32, #tpu.memory_space<vmem>>, vector<4x4x128xf32>
    tpu.vector_store %arg7[%c0_16, %c0_17, %c384], %18 {strides = array<i32>} : memref<4x4x1152xf32, #tpu.memory_space<vmem>>, vector<4x4x128xf32>,
    %c1_i32_18 = arith.constant 1 : i32
    %20 = arith.addi %3, %c1_i32_18 : i32
    %21 = arith.index_cast %20 : i32 to index
    %c1_19 = arith.constant 1 : index
    %c0_20 = arith.constant 0 : index
    %22 = vector.load %arg6[%21, %c1_19, %c0_20] : memref<6x6x128xf32, #tpu.memory_space<vmem>>, vector<4x4x128xf32>
    %c0_21 = arith.constant 0 : index
    %c0_22 = arith.constant 0 : index
    %c512 = arith.constant 512 : index
    %23 = vector.load %arg7[%c0_21, %c0_22, %c512] : memref<4x4x1152xf32, #tpu.memory_space<vmem>>, vector<4x4x128xf32>
    tpu.vector_store %arg7[%c0_21, %c0_22, %c512], %22 {strides = array<i32>} : memref<4x4x1152xf32, #tpu.memory_space<vmem>>, vector<4x4x128xf32>,
    %c1_i32_23 = arith.constant 1 : i32
    %24 = arith.addi %3, %c1_i32_23 : i32
    %25 = arith.index_cast %24 : i32 to index
    %c2_24 = arith.constant 2 : index
    %c0_25 = arith.constant 0 : index
    %26 = vector.load %arg6[%25, %c2_24, %c0_25] : memref<6x6x128xf32, #tpu.memory_space<vmem>>, vector<4x4x128xf32>
    %c0_26 = arith.constant 0 : index
    %c0_27 = arith.constant 0 : index
    %c640 = arith.constant 640 : index
    %27 = vector.load %arg7[%c0_26, %c0_27, %c640] : memref<4x4x1152xf32, #tpu.memory_space<vmem>>, vector<4x4x128xf32>
    tpu.vector_store %arg7[%c0_26, %c0_27, %c640], %26 {strides = array<i32>} : memref<4x4x1152xf32, #tpu.memory_space<vmem>>, vector<4x4x128xf32>,
    %c2_i32 = arith.constant 2 : i32
    %28 = arith.addi %3, %c2_i32 : i32
    %29 = arith.index_cast %28 : i32 to index
    %c0_28 = arith.constant 0 : index
    %c0_29 = arith.constant 0 : index
    %30 = vector.load %arg6[%29, %c0_28, %c0_29] : memref<6x6x128xf32, #tpu.memory_space<vmem>>, vector<4x4x128xf32>
    %c0_30 = arith.constant 0 : index
    %c0_31 = arith.constant 0 : index
    %c768 = arith.constant 768 : index
    %31 = vector.load %arg7[%c0_30, %c0_31, %c768] : memref<4x4x1152xf32, #tpu.memory_space<vmem>>, vector<4x4x128xf32>
    tpu.vector_store %arg7[%c0_30, %c0_31, %c768], %30 {strides = array<i32>} : memref<4x4x1152xf32, #tpu.memory_space<vmem>>, vector<4x4x128xf32>,
    %c2_i32_32 = arith.constant 2 : i32
    %32 = arith.addi %3, %c2_i32_32 : i32
    %33 = arith.index_cast %32 : i32 to index
    %c1_33 = arith.constant 1 : index
    %c0_34 = arith.constant 0 : index
    %34 = vector.load %arg6[%33, %c1_33, %c0_34] : memref<6x6x128xf32, #tpu.memory_space<vmem>>, vector<4x4x128xf32>
    %c0_35 = arith.constant 0 : index
    %c0_36 = arith.constant 0 : index
    %c896 = arith.constant 896 : index
    %35 = vector.load %arg7[%c0_35, %c0_36, %c896] : memref<4x4x1152xf32, #tpu.memory_space<vmem>>, vector<4x4x128xf32>
    tpu.vector_store %arg7[%c0_35, %c0_36, %c896], %34 {strides = array<i32>} : memref<4x4x1152xf32, #tpu.memory_space<vmem>>, vector<4x4x128xf32>,
    %c2_i32_37 = arith.constant 2 : i32
    %36 = arith.addi %3, %c2_i32_37 : i32
    %37 = arith.index_cast %36 : i32 to index
    %c2_38 = arith.constant 2 : index
    %c0_39 = arith.constant 0 : index
    %38 = vector.load %arg6[%37, %c2_38, %c0_39] : memref<6x6x128xf32, #tpu.memory_space<vmem>>, vector<4x4x128xf32>
    %c0_40 = arith.constant 0 : index
    %c0_41 = arith.constant 0 : index
    %c1024 = arith.constant 1024 : index
    %39 = vector.load %arg7[%c0_40, %c0_41, %c1024] : memref<4x4x1152xf32, #tpu.memory_space<vmem>>, vector<4x4x128xf32>
    tpu.vector_store %arg7[%c0_40, %c0_41, %c1024], %38 {strides = array<i32>} : memref<4x4x1152xf32, #tpu.memory_space<vmem>>, vector<4x4x128xf32>,
    %c0_42 = arith.constant 0 : index
    %c0_43 = arith.constant 0 : index
    %c0_44 = arith.constant 0 : index
    %40 = vector.load %arg7[%c0_42, %c0_43, %c0_44] : memref<4x4x1152xf32, #tpu.memory_space<vmem>>, vector<4x4x1152xf32>
    %41 = vector.shape_cast %40 : vector<4x4x1152xf32> to vector<16x1152xf32>
    %42 = arith.truncf %41 : vector<16x1152xf32> to vector<16x1152xbf16>
    %c0_45 = arith.constant 0 : index
    %c0_46 = arith.constant 0 : index
    %43 = vector.load %arg3[%c0_45, %c0_46] : memref<1152x64xbf16, #tpu.memory_space<vmem>>, vector<1152x64xbf16>
    %cst = arith.constant dense<0.000000e+00> : vector<16x64xf32>
    %44 = tpu.matmul %42, %43, %cst {dimension_numbers = #tpu.dot_dimension_numbers<[1], [0], [0], [1], [0, 0, 1, 1], [], []>} : vector<16x1152xbf16>, vector<1152x64xbf16>, vector<16x64xf32> -> vector<16x64xf32>
    %c0_47 = arith.constant 0 : index
    %c0_48 = arith.constant 0 : index
    %45 = vector.load %arg4[%c0_47, %c0_48] : memref<1x64xf32, #tpu.memory_space<vmem>>, vector<1x64xf32>
    %46 = vector.broadcast %45 : vector<1x64xf32> to vector<16x64xf32>
    %47 = arith.addf %44, %46 : vector<16x64xf32>
    %cst_49 = arith.constant 0.000000e+00 : f32
    %48 = vector.broadcast %cst_49 : f32 to vector<16x64xf32>
    %49 = arith.maximumf %47, %48 : vector<16x64xf32>
    %c0_50 = arith.constant 0 : index
    %c0_51 = arith.constant 0 : index
    %c0_52 = arith.constant 0 : index
    %50 = vector.load %arg5[%c0_50, %c0_51, %c0_52] : memref<1x16x64xf32, #tpu.memory_space<vmem>>, vector<1x16x64xf32>
    %51 = vector.shape_cast %50 : vector<1x16x64xf32> to vector<16x64xf32>
    %52 = vector.shape_cast %49 : vector<16x64xf32> to vector<1x16x64xf32>
    tpu.vector_store %arg5[%c0_50, %c0_51, %c0_52], %52 {strides = array<i32>} : memref<1x16x64xf32, #tpu.memory_space<vmem>>, vector<1x16x64xf32>,
    return
  }
  func.func @transform_0(%arg0: i32, %arg1: i32) -> (i32, i32, i32, i32) {
    %c0_i32 = arith.constant 0 : i32
    %c0_i32_0 = arith.constant 0 : i32
    %c0_i32_1 = arith.constant 0 : i32
    %c0_i32_2 = arith.constant 0 : i32
    return %arg0, %c0_i32, %c0_i32_0, %c0_i32_1 : i32, i32, i32, i32
  }
  func.func @transform_1(%arg0: i32, %arg1: i32) -> (i32, i32) {
    %c0_i32 = arith.constant 0 : i32
    %c0_i32_0 = arith.constant 0 : i32
    %c0_i32_1 = arith.constant 0 : i32
    return %c0_i32, %c0_i32_0 : i32, i32
  }
  func.func @transform_2(%arg0: i32, %arg1: i32) -> (i32, i32) {
    %c0_i32 = arith.constant 0 : i32
    %c0_i32_0 = arith.constant 0 : i32
    %c0_i32_1 = arith.constant 0 : i32
    return %c0_i32, %c0_i32_0 : i32, i32
  }
  func.func @transform_3(%arg0: i32, %arg1: i32) -> (i32, i32, i32) {
    %c0_i32 = arith.constant 0 : i32
    %c0_i32_0 = arith.constant 0 : i32
    return %arg0, %arg1, %c0_i32 : i32, i32, i32
  }
}

module attributes {stable_mosaic.version = 11 : i64} {
  func.func @_upsample2_add_kernel(%arg0: i32, %arg1: memref<4x4x64xf32, #tpu.memory_space<vmem>>, %arg2: memref<4x2x4x128xf32, #tpu.memory_space<vmem>>, %arg3: memref<4x2x4x128xf32, #tpu.memory_space<vmem>>) attributes {dimension_semantics = [#tpu.dimension_semantics<parallel>], iteration_bounds = array<i64: 2>, scalar_prefetch = 0 : i64, scratch_operands = 0 : i64, tpu.core_type = #tpu.core_type<tc>, window_params = [{transform_indices = @transform_0, window_bounds = array<i64: 4, 4, 64>}, {transform_indices = @transform_1, window_bounds = array<i64: 4, 2, 4, 128>}, {transform_indices = @transform_2, window_bounds = array<i64: 4, 2, 4, 128>}]} {
    %c0 = arith.constant 0 : index
    %c0_0 = arith.constant 0 : index
    %c0_1 = arith.constant 0 : index
    %0 = vector.load %arg1[%c0, %c0_0, %c0_1] : memref<4x4x64xf32, #tpu.memory_space<vmem>>, vector<4x4x64xf32>
    %1 = tpu.concatenate %0, %0 in 2 : vector<4x4x64xf32>, vector<4x4x64xf32> -> vector<4x4x128xf32>
    %c0_2 = arith.constant 0 : index
    %c0_3 = arith.constant 0 : index
    %c0_4 = arith.constant 0 : index
    %c0_5 = arith.constant 0 : index
    %2 = vector.load %arg2[%c0_2, %c0_3, %c0_4, %c0_5] : memref<4x2x4x128xf32, #tpu.memory_space<vmem>>, vector<4x1x4x128xf32>
    %3 = vector.shape_cast %2 : vector<4x1x4x128xf32> to vector<4x4x128xf32>
    %4 = arith.addf %1, %3 : vector<4x4x128xf32>
    %c0_6 = arith.constant 0 : index
    %c0_7 = arith.constant 0 : index
    %c0_8 = arith.constant 0 : index
    %c0_9 = arith.constant 0 : index
    %5 = vector.load %arg3[%c0_6, %c0_7, %c0_8, %c0_9] : memref<4x2x4x128xf32, #tpu.memory_space<vmem>>, vector<4x1x4x128xf32>
    %6 = vector.shape_cast %5 : vector<4x1x4x128xf32> to vector<4x4x128xf32>
    %7 = vector.shape_cast %4 : vector<4x4x128xf32> to vector<4x1x4x128xf32>
    tpu.vector_store %arg3[%c0_6, %c0_7, %c0_8, %c0_9], %7 {strides = array<i32>} : memref<4x2x4x128xf32, #tpu.memory_space<vmem>>, vector<4x1x4x128xf32>,
    %c0_10 = arith.constant 0 : index
    %c1 = arith.constant 1 : index
    %c0_11 = arith.constant 0 : index
    %c0_12 = arith.constant 0 : index
    %8 = vector.load %arg2[%c0_10, %c1, %c0_11, %c0_12] : memref<4x2x4x128xf32, #tpu.memory_space<vmem>>, vector<4x1x4x128xf32>
    %9 = vector.shape_cast %8 : vector<4x1x4x128xf32> to vector<4x4x128xf32>
    %10 = arith.addf %1, %9 : vector<4x4x128xf32>
    %c0_13 = arith.constant 0 : index
    %c1_14 = arith.constant 1 : index
    %c0_15 = arith.constant 0 : index
    %c0_16 = arith.constant 0 : index
    %11 = vector.load %arg3[%c0_13, %c1_14, %c0_15, %c0_16] : memref<4x2x4x128xf32, #tpu.memory_space<vmem>>, vector<4x1x4x128xf32>
    %12 = vector.shape_cast %11 : vector<4x1x4x128xf32> to vector<4x4x128xf32>
    %13 = vector.shape_cast %10 : vector<4x4x128xf32> to vector<4x1x4x128xf32>
    tpu.vector_store %arg3[%c0_13, %c1_14, %c0_15, %c0_16], %13 {strides = array<i32>} : memref<4x2x4x128xf32, #tpu.memory_space<vmem>>, vector<4x1x4x128xf32>,
    return
  }
  func.func @transform_0(%arg0: i32) -> (i32, i32, i32) {
    %c0_i32 = arith.constant 0 : i32
    %c0_i32_0 = arith.constant 0 : i32
    %c0_i32_1 = arith.constant 0 : i32
    return %arg0, %c0_i32, %c0_i32_0 : i32, i32, i32
  }
  func.func @transform_1(%arg0: i32) -> (i32, i32, i32, i32) {
    %c0_i32 = arith.constant 0 : i32
    %c0_i32_0 = arith.constant 0 : i32
    %c0_i32_1 = arith.constant 0 : i32
    %c0_i32_2 = arith.constant 0 : i32
    return %arg0, %c0_i32, %c0_i32_0, %c0_i32_1 : i32, i32, i32, i32
  }
  func.func @transform_2(%arg0: i32) -> (i32, i32, i32, i32) {
    %c0_i32 = arith.constant 0 : i32
    %c0_i32_0 = arith.constant 0 : i32
    %c0_i32_1 = arith.constant 0 : i32
    %c0_i32_2 = arith.constant 0 : i32
    return %arg0, %c0_i32, %c0_i32_0, %c0_i32_1 : i32, i32, i32, i32
  }
}

module attributes {stable_mosaic.version = 11 : i64} {
  func.func @_conv3x3_kernel(%arg0: i32, %arg1: i32, %arg2: memref<1x8x8x64xf32, #tpu.memory_space<vmem>>, %arg3: memref<576x32xbf16, #tpu.memory_space<vmem>>, %arg4: memref<1x32xf32, #tpu.memory_space<vmem>>, %arg5: memref<1x64x32xf32, #tpu.memory_space<vmem>>, %arg6: memref<10x10x64xf32, #tpu.memory_space<vmem>>, %arg7: memref<8x8x576xf32, #tpu.memory_space<vmem>>) attributes {dimension_semantics = [#tpu.dimension_semantics<parallel>, #tpu.dimension_semantics<arbitrary>], iteration_bounds = array<i64: 2, 1>, scalar_prefetch = 0 : i64, scratch_operands = 2 : i64, tpu.core_type = #tpu.core_type<tc>, window_params = [{transform_indices = @transform_0, window_bounds = array<i64: 1, 8, 8, 64>}, {pipeline_mode = #tpu.pipeline_mode<synchronous>, transform_indices = @transform_1, window_bounds = array<i64: 576, 32>}, {pipeline_mode = #tpu.pipeline_mode<synchronous>, transform_indices = @transform_2, window_bounds = array<i64: 1, 32>}, {transform_indices = @transform_3, window_bounds = array<i64: 1, 64, 32>}]} {
    %c0_i32 = arith.constant 0 : i32
    %0 = arith.cmpi eq, %arg1, %c0_i32 : i32
    %1 = arith.extui %0 : i1 to i32
    %c0_i32_0 = arith.constant 0 : i32
    %2 = arith.cmpi ne, %1, %c0_i32_0 : i32
    scf.if %2 {
      %cst_53 = arith.constant 0.000000e+00 : f32
      %53 = vector.broadcast %cst_53 : f32 to vector<10x10x64xf32>
      %c0_54 = arith.constant 0 : index
      %c0_55 = arith.constant 0 : index
      %c0_56 = arith.constant 0 : index
      %54 = vector.load %arg6[%c0_54, %c0_55, %c0_56] : memref<10x10x64xf32, #tpu.memory_space<vmem>>, vector<10x10x64xf32>
      tpu.vector_store %arg6[%c0_54, %c0_55, %c0_56], %53 {strides = array<i32>} : memref<10x10x64xf32, #tpu.memory_space<vmem>>, vector<10x10x64xf32>,
      %c0_57 = arith.constant 0 : index
      %c0_58 = arith.constant 0 : index
      %c0_59 = arith.constant 0 : index
      %c0_60 = arith.constant 0 : index
      %55 = vector.load %arg2[%c0_57, %c0_58, %c0_59, %c0_60] : memref<1x8x8x64xf32, #tpu.memory_space<vmem>>, vector<1x8x8x64xf32>
      %56 = vector.shape_cast %55 : vector<1x8x8x64xf32> to vector<8x8x64xf32>
      %c1_61 = arith.constant 1 : index
      %c1_62 = arith.constant 1 : index
      %c0_63 = arith.constant 0 : index
      %57 = vector.load %arg6[%c1_61, %c1_62, %c0_63] : memref<10x10x64xf32, #tpu.memory_space<vmem>>, vector<8x8x64xf32>
      tpu.vector_store %arg6[%c1_61, %c1_62, %c0_63], %56 {strides = array<i32>} : memref<10x10x64xf32, #tpu.memory_space<vmem>>, vector<8x8x64xf32>,
    } else {
    }
    %c8_i32 = arith.constant 8 : i32
    %3 = arith.muli %arg1, %c8_i32 : i32
    %c0_i32_1 = arith.constant 0 : i32
    %4 = arith.addi %3, %c0_i32_1 : i32
    %5 = arith.index_cast %4 : i32 to index
    %c0 = arith.constant 0 : index
    %c0_2 = arith.constant 0 : index
    %6 = vector.load %arg6[%5, %c0, %c0_2] : memref<10x10x64xf32, #tpu.memory_space<vmem>>, vector<8x8x64xf32>
    %c0_3 = arith.constant 0 : index
    %c0_4 = arith.constant 0 : index
    %c0_5 = arith.constant 0 : index
    %7 = vector.load %arg7[%c0_3, %c0_4, %c0_5] : memref<8x8x576xf32, #tpu.memory_space<vmem>>, vector<8x8x64xf32>
    tpu.vector_store %arg7[%c0_3, %c0_4, %c0_5], %6 {strides = array<i32>} : memref<8x8x576xf32, #tpu.memory_space<vmem>>, vector<8x8x64xf32>,
    %c0_i32_6 = arith.constant 0 : i32
    %8 = arith.addi %3, %c0_i32_6 : i32
    %9 = arith.index_cast %8 : i32 to index
    %c1 = arith.constant 1 : index
    %c0_7 = arith.constant 0 : index
    %10 = vector.load %arg6[%9, %c1, %c0_7] : memref<10x10x64xf32, #tpu.memory_space<vmem>>, vector<8x8x64xf32>
    %c0_8 = arith.constant 0 : index
    %c0_9 = arith.constant 0 : index
    %c64 = arith.constant 64 : index
    %11 = vector.load %arg7[%c0_8, %c0_9, %c64] : memref<8x8x576xf32, #tpu.memory_space<vmem>>, vector<8x8x64xf32>
    tpu.vector_store %arg7[%c0_8, %c0_9, %c64], %10 {strides = array<i32>} : memref<8x8x576xf32, #tpu.memory_space<vmem>>, vector<8x8x64xf32>,
    %c0_i32_10 = arith.constant 0 : i32
    %12 = arith.addi %3, %c0_i32_10 : i32
    %13 = arith.index_cast %12 : i32 to index
    %c2 = arith.constant 2 : index
    %c0_11 = arith.constant 0 : index
    %14 = vector.load %arg6[%13, %c2, %c0_11] : memref<10x10x64xf32, #tpu.memory_space<vmem>>, vector<8x8x64xf32>
    %c0_12 = arith.constant 0 : index
    %c0_13 = arith.constant 0 : index
    %c128 = arith.constant 128 : index
    %15 = vector.load %arg7[%c0_12, %c0_13, %c128] : memref<8x8x576xf32, #tpu.memory_space<vmem>>, vector<8x8x64xf32>
    tpu.vector_store %arg7[%c0_12, %c0_13, %c128], %14 {strides = array<i32>} : memref<8x8x576xf32, #tpu.memory_space<vmem>>, vector<8x8x64xf32>,
    %c1_i32 = arith.constant 1 : i32
    %16 = arith.addi %3, %c1_i32 : i32
    %17 = arith.index_cast %16 : i32 to index
    %c0_14 = arith.constant 0 : index
    %c0_15 = arith.constant 0 : index
    %18 = vector.load %arg6[%17, %c0_14, %c0_15] : memref<10x10x64xf32, #tpu.memory_space<vmem>>, vector<8x8x64xf32>
    %c0_16 = arith.constant 0 : index
    %c0_17 = arith.constant 0 : index
    %c192 = arith.constant 192 : index
    %19 = vector.load %arg7[%c0_16, %c0_17, %c192] : memref<8x8x576xf32, #tpu.memory_space<vmem>>, vector<8x8x64xf32>
    tpu.vector_store %arg7[%c0_16, %c0_17, %c192], %18 {strides = array<i32>} : memref<8x8x576xf32, #tpu.memory_space<vmem>>, vector<8x8x64xf32>,
    %c1_i32_18 = arith.constant 1 : i32
    %20 = arith.addi %3, %c1_i32_18 : i32
    %21 = arith.index_cast %20 : i32 to index
    %c1_19 = arith.constant 1 : index
    %c0_20 = arith.constant 0 : index
    %22 = vector.load %arg6[%21, %c1_19, %c0_20] : memref<10x10x64xf32, #tpu.memory_space<vmem>>, vector<8x8x64xf32>
    %c0_21 = arith.constant 0 : index
    %c0_22 = arith.constant 0 : index
    %c256 = arith.constant 256 : index
    %23 = vector.load %arg7[%c0_21, %c0_22, %c256] : memref<8x8x576xf32, #tpu.memory_space<vmem>>, vector<8x8x64xf32>
    tpu.vector_store %arg7[%c0_21, %c0_22, %c256], %22 {strides = array<i32>} : memref<8x8x576xf32, #tpu.memory_space<vmem>>, vector<8x8x64xf32>,
    %c1_i32_23 = arith.constant 1 : i32
    %24 = arith.addi %3, %c1_i32_23 : i32
    %25 = arith.index_cast %24 : i32 to index
    %c2_24 = arith.constant 2 : index
    %c0_25 = arith.constant 0 : index
    %26 = vector.load %arg6[%25, %c2_24, %c0_25] : memref<10x10x64xf32, #tpu.memory_space<vmem>>, vector<8x8x64xf32>
    %c0_26 = arith.constant 0 : index
    %c0_27 = arith.constant 0 : index
    %c320 = arith.constant 320 : index
    %27 = vector.load %arg7[%c0_26, %c0_27, %c320] : memref<8x8x576xf32, #tpu.memory_space<vmem>>, vector<8x8x64xf32>
    tpu.vector_store %arg7[%c0_26, %c0_27, %c320], %26 {strides = array<i32>} : memref<8x8x576xf32, #tpu.memory_space<vmem>>, vector<8x8x64xf32>,
    %c2_i32 = arith.constant 2 : i32
    %28 = arith.addi %3, %c2_i32 : i32
    %29 = arith.index_cast %28 : i32 to index
    %c0_28 = arith.constant 0 : index
    %c0_29 = arith.constant 0 : index
    %30 = vector.load %arg6[%29, %c0_28, %c0_29] : memref<10x10x64xf32, #tpu.memory_space<vmem>>, vector<8x8x64xf32>
    %c0_30 = arith.constant 0 : index
    %c0_31 = arith.constant 0 : index
    %c384 = arith.constant 384 : index
    %31 = vector.load %arg7[%c0_30, %c0_31, %c384] : memref<8x8x576xf32, #tpu.memory_space<vmem>>, vector<8x8x64xf32>
    tpu.vector_store %arg7[%c0_30, %c0_31, %c384], %30 {strides = array<i32>} : memref<8x8x576xf32, #tpu.memory_space<vmem>>, vector<8x8x64xf32>,
    %c2_i32_32 = arith.constant 2 : i32
    %32 = arith.addi %3, %c2_i32_32 : i32
    %33 = arith.index_cast %32 : i32 to index
    %c1_33 = arith.constant 1 : index
    %c0_34 = arith.constant 0 : index
    %34 = vector.load %arg6[%33, %c1_33, %c0_34] : memref<10x10x64xf32, #tpu.memory_space<vmem>>, vector<8x8x64xf32>
    %c0_35 = arith.constant 0 : index
    %c0_36 = arith.constant 0 : index
    %c448 = arith.constant 448 : index
    %35 = vector.load %arg7[%c0_35, %c0_36, %c448] : memref<8x8x576xf32, #tpu.memory_space<vmem>>, vector<8x8x64xf32>
    tpu.vector_store %arg7[%c0_35, %c0_36, %c448], %34 {strides = array<i32>} : memref<8x8x576xf32, #tpu.memory_space<vmem>>, vector<8x8x64xf32>,
    %c2_i32_37 = arith.constant 2 : i32
    %36 = arith.addi %3, %c2_i32_37 : i32
    %37 = arith.index_cast %36 : i32 to index
    %c2_38 = arith.constant 2 : index
    %c0_39 = arith.constant 0 : index
    %38 = vector.load %arg6[%37, %c2_38, %c0_39] : memref<10x10x64xf32, #tpu.memory_space<vmem>>, vector<8x8x64xf32>
    %c0_40 = arith.constant 0 : index
    %c0_41 = arith.constant 0 : index
    %c512 = arith.constant 512 : index
    %39 = vector.load %arg7[%c0_40, %c0_41, %c512] : memref<8x8x576xf32, #tpu.memory_space<vmem>>, vector<8x8x64xf32>
    tpu.vector_store %arg7[%c0_40, %c0_41, %c512], %38 {strides = array<i32>} : memref<8x8x576xf32, #tpu.memory_space<vmem>>, vector<8x8x64xf32>,
    %c0_42 = arith.constant 0 : index
    %c0_43 = arith.constant 0 : index
    %c0_44 = arith.constant 0 : index
    %40 = vector.load %arg7[%c0_42, %c0_43, %c0_44] : memref<8x8x576xf32, #tpu.memory_space<vmem>>, vector<8x8x576xf32>
    %41 = vector.shape_cast %40 : vector<8x8x576xf32> to vector<64x576xf32>
    %42 = arith.truncf %41 : vector<64x576xf32> to vector<64x576xbf16>
    %c0_45 = arith.constant 0 : index
    %c0_46 = arith.constant 0 : index
    %43 = vector.load %arg3[%c0_45, %c0_46] : memref<576x32xbf16, #tpu.memory_space<vmem>>, vector<576x32xbf16>
    %cst = arith.constant dense<0.000000e+00> : vector<64x32xf32>
    %44 = tpu.matmul %42, %43, %cst {dimension_numbers = #tpu.dot_dimension_numbers<[1], [0], [0], [1], [0, 0, 1, 1], [], []>} : vector<64x576xbf16>, vector<576x32xbf16>, vector<64x32xf32> -> vector<64x32xf32>
    %c0_47 = arith.constant 0 : index
    %c0_48 = arith.constant 0 : index
    %45 = vector.load %arg4[%c0_47, %c0_48] : memref<1x32xf32, #tpu.memory_space<vmem>>, vector<1x32xf32>
    %46 = vector.broadcast %45 : vector<1x32xf32> to vector<64x32xf32>
    %47 = arith.addf %44, %46 : vector<64x32xf32>
    %cst_49 = arith.constant 0.000000e+00 : f32
    %48 = vector.broadcast %cst_49 : f32 to vector<64x32xf32>
    %49 = arith.maximumf %47, %48 : vector<64x32xf32>
    %c0_50 = arith.constant 0 : index
    %c0_51 = arith.constant 0 : index
    %c0_52 = arith.constant 0 : index
    %50 = vector.load %arg5[%c0_50, %c0_51, %c0_52] : memref<1x64x32xf32, #tpu.memory_space<vmem>>, vector<1x64x32xf32>
    %51 = vector.shape_cast %50 : vector<1x64x32xf32> to vector<64x32xf32>
    %52 = vector.shape_cast %49 : vector<64x32xf32> to vector<1x64x32xf32>
    tpu.vector_store %arg5[%c0_50, %c0_51, %c0_52], %52 {strides = array<i32>} : memref<1x64x32xf32, #tpu.memory_space<vmem>>, vector<1x64x32xf32>,
    return
  }
  func.func @transform_0(%arg0: i32, %arg1: i32) -> (i32, i32, i32, i32) {
    %c0_i32 = arith.constant 0 : i32
    %c0_i32_0 = arith.constant 0 : i32
    %c0_i32_1 = arith.constant 0 : i32
    %c0_i32_2 = arith.constant 0 : i32
    return %arg0, %c0_i32, %c0_i32_0, %c0_i32_1 : i32, i32, i32, i32
  }
  func.func @transform_1(%arg0: i32, %arg1: i32) -> (i32, i32) {
    %c0_i32 = arith.constant 0 : i32
    %c0_i32_0 = arith.constant 0 : i32
    %c0_i32_1 = arith.constant 0 : i32
    return %c0_i32, %c0_i32_0 : i32, i32
  }
  func.func @transform_2(%arg0: i32, %arg1: i32) -> (i32, i32) {
    %c0_i32 = arith.constant 0 : i32
    %c0_i32_0 = arith.constant 0 : i32
    %c0_i32_1 = arith.constant 0 : i32
    return %c0_i32, %c0_i32_0 : i32, i32
  }
  func.func @transform_3(%arg0: i32, %arg1: i32) -> (i32, i32, i32) {
    %c0_i32 = arith.constant 0 : i32
    %c0_i32_0 = arith.constant 0 : i32
    return %arg0, %arg1, %c0_i32 : i32, i32, i32
  }
}

module attributes {stable_mosaic.version = 11 : i64} {
  func.func @_upsample2_add_kernel(%arg0: i32, %arg1: memref<8x8x32xf32, #tpu.memory_space<vmem>>, %arg2: memref<8x2x8x64xf32, #tpu.memory_space<vmem>>, %arg3: memref<8x2x8x64xf32, #tpu.memory_space<vmem>>) attributes {dimension_semantics = [#tpu.dimension_semantics<parallel>], iteration_bounds = array<i64: 2>, scalar_prefetch = 0 : i64, scratch_operands = 0 : i64, tpu.core_type = #tpu.core_type<tc>, window_params = [{transform_indices = @transform_0, window_bounds = array<i64: 8, 8, 32>}, {transform_indices = @transform_1, window_bounds = array<i64: 8, 2, 8, 64>}, {transform_indices = @transform_2, window_bounds = array<i64: 8, 2, 8, 64>}]} {
    %c0 = arith.constant 0 : index
    %c0_0 = arith.constant 0 : index
    %c0_1 = arith.constant 0 : index
    %0 = vector.load %arg1[%c0, %c0_0, %c0_1] : memref<8x8x32xf32, #tpu.memory_space<vmem>>, vector<8x8x32xf32>
    %1 = tpu.concatenate %0, %0 in 2 : vector<8x8x32xf32>, vector<8x8x32xf32> -> vector<8x8x64xf32>
    %c0_2 = arith.constant 0 : index
    %c0_3 = arith.constant 0 : index
    %c0_4 = arith.constant 0 : index
    %c0_5 = arith.constant 0 : index
    %2 = vector.load %arg2[%c0_2, %c0_3, %c0_4, %c0_5] : memref<8x2x8x64xf32, #tpu.memory_space<vmem>>, vector<8x1x8x64xf32>
    %3 = vector.shape_cast %2 : vector<8x1x8x64xf32> to vector<8x8x64xf32>
    %4 = arith.addf %1, %3 : vector<8x8x64xf32>
    %c0_6 = arith.constant 0 : index
    %c0_7 = arith.constant 0 : index
    %c0_8 = arith.constant 0 : index
    %c0_9 = arith.constant 0 : index
    %5 = vector.load %arg3[%c0_6, %c0_7, %c0_8, %c0_9] : memref<8x2x8x64xf32, #tpu.memory_space<vmem>>, vector<8x1x8x64xf32>
    %6 = vector.shape_cast %5 : vector<8x1x8x64xf32> to vector<8x8x64xf32>
    %7 = vector.shape_cast %4 : vector<8x8x64xf32> to vector<8x1x8x64xf32>
    tpu.vector_store %arg3[%c0_6, %c0_7, %c0_8, %c0_9], %7 {strides = array<i32>} : memref<8x2x8x64xf32, #tpu.memory_space<vmem>>, vector<8x1x8x64xf32>,
    %c0_10 = arith.constant 0 : index
    %c1 = arith.constant 1 : index
    %c0_11 = arith.constant 0 : index
    %c0_12 = arith.constant 0 : index
    %8 = vector.load %arg2[%c0_10, %c1, %c0_11, %c0_12] : memref<8x2x8x64xf32, #tpu.memory_space<vmem>>, vector<8x1x8x64xf32>
    %9 = vector.shape_cast %8 : vector<8x1x8x64xf32> to vector<8x8x64xf32>
    %10 = arith.addf %1, %9 : vector<8x8x64xf32>
    %c0_13 = arith.constant 0 : index
    %c1_14 = arith.constant 1 : index
    %c0_15 = arith.constant 0 : index
    %c0_16 = arith.constant 0 : index
    %11 = vector.load %arg3[%c0_13, %c1_14, %c0_15, %c0_16] : memref<8x2x8x64xf32, #tpu.memory_space<vmem>>, vector<8x1x8x64xf32>
    %12 = vector.shape_cast %11 : vector<8x1x8x64xf32> to vector<8x8x64xf32>
    %13 = vector.shape_cast %10 : vector<8x8x64xf32> to vector<8x1x8x64xf32>
    tpu.vector_store %arg3[%c0_13, %c1_14, %c0_15, %c0_16], %13 {strides = array<i32>} : memref<8x2x8x64xf32, #tpu.memory_space<vmem>>, vector<8x1x8x64xf32>,
    return
  }
  func.func @transform_0(%arg0: i32) -> (i32, i32, i32) {
    %c0_i32 = arith.constant 0 : i32
    %c0_i32_0 = arith.constant 0 : i32
    %c0_i32_1 = arith.constant 0 : i32
    return %arg0, %c0_i32, %c0_i32_0 : i32, i32, i32
  }
  func.func @transform_1(%arg0: i32) -> (i32, i32, i32, i32) {
    %c0_i32 = arith.constant 0 : i32
    %c0_i32_0 = arith.constant 0 : i32
    %c0_i32_1 = arith.constant 0 : i32
    %c0_i32_2 = arith.constant 0 : i32
    return %arg0, %c0_i32, %c0_i32_0, %c0_i32_1 : i32, i32, i32, i32
  }
  func.func @transform_2(%arg0: i32) -> (i32, i32, i32, i32) {
    %c0_i32 = arith.constant 0 : i32
    %c0_i32_0 = arith.constant 0 : i32
    %c0_i32_1 = arith.constant 0 : i32
    %c0_i32_2 = arith.constant 0 : i32
    return %arg0, %c0_i32, %c0_i32_0, %c0_i32_1 : i32, i32, i32, i32
  }
}

module attributes {stable_mosaic.version = 11 : i64} {
  func.func @_conv3x3_kernel(%arg0: i32, %arg1: i32, %arg2: memref<1x16x16x32xf32, #tpu.memory_space<vmem>>, %arg3: memref<288x3xbf16, #tpu.memory_space<vmem>>, %arg4: memref<1x3xf32, #tpu.memory_space<vmem>>, %arg5: memref<1x256x3xf32, #tpu.memory_space<vmem>>, %arg6: memref<18x18x32xf32, #tpu.memory_space<vmem>>, %arg7: memref<16x16x288xf32, #tpu.memory_space<vmem>>) attributes {dimension_semantics = [#tpu.dimension_semantics<parallel>, #tpu.dimension_semantics<arbitrary>], iteration_bounds = array<i64: 2, 1>, scalar_prefetch = 0 : i64, scratch_operands = 2 : i64, tpu.core_type = #tpu.core_type<tc>, window_params = [{transform_indices = @transform_0, window_bounds = array<i64: 1, 16, 16, 32>}, {pipeline_mode = #tpu.pipeline_mode<synchronous>, transform_indices = @transform_1, window_bounds = array<i64: 288, 3>}, {pipeline_mode = #tpu.pipeline_mode<synchronous>, transform_indices = @transform_2, window_bounds = array<i64: 1, 3>}, {transform_indices = @transform_3, window_bounds = array<i64: 1, 256, 3>}]} {
    %c0_i32 = arith.constant 0 : i32
    %0 = arith.cmpi eq, %arg1, %c0_i32 : i32
    %1 = arith.extui %0 : i1 to i32
    %c0_i32_0 = arith.constant 0 : i32
    %2 = arith.cmpi ne, %1, %c0_i32_0 : i32
    scf.if %2 {
      %cst_52 = arith.constant 0.000000e+00 : f32
      %52 = vector.broadcast %cst_52 : f32 to vector<18x18x32xf32>
      %c0_53 = arith.constant 0 : index
      %c0_54 = arith.constant 0 : index
      %c0_55 = arith.constant 0 : index
      %53 = vector.load %arg6[%c0_53, %c0_54, %c0_55] : memref<18x18x32xf32, #tpu.memory_space<vmem>>, vector<18x18x32xf32>
      tpu.vector_store %arg6[%c0_53, %c0_54, %c0_55], %52 {strides = array<i32>} : memref<18x18x32xf32, #tpu.memory_space<vmem>>, vector<18x18x32xf32>,
      %c0_56 = arith.constant 0 : index
      %c0_57 = arith.constant 0 : index
      %c0_58 = arith.constant 0 : index
      %c0_59 = arith.constant 0 : index
      %54 = vector.load %arg2[%c0_56, %c0_57, %c0_58, %c0_59] : memref<1x16x16x32xf32, #tpu.memory_space<vmem>>, vector<1x16x16x32xf32>
      %55 = vector.shape_cast %54 : vector<1x16x16x32xf32> to vector<16x16x32xf32>
      %c1_60 = arith.constant 1 : index
      %c1_61 = arith.constant 1 : index
      %c0_62 = arith.constant 0 : index
      %56 = vector.load %arg6[%c1_60, %c1_61, %c0_62] : memref<18x18x32xf32, #tpu.memory_space<vmem>>, vector<16x16x32xf32>
      tpu.vector_store %arg6[%c1_60, %c1_61, %c0_62], %55 {strides = array<i32>} : memref<18x18x32xf32, #tpu.memory_space<vmem>>, vector<16x16x32xf32>,
    } else {
    }
    %c16_i32 = arith.constant 16 : i32
    %3 = arith.muli %arg1, %c16_i32 : i32
    %c0_i32_1 = arith.constant 0 : i32
    %4 = arith.addi %3, %c0_i32_1 : i32
    %5 = arith.index_cast %4 : i32 to index
    %c0 = arith.constant 0 : index
    %c0_2 = arith.constant 0 : index
    %6 = vector.load %arg6[%5, %c0, %c0_2] : memref<18x18x32xf32, #tpu.memory_space<vmem>>, vector<16x16x32xf32>
    %c0_3 = arith.constant 0 : index
    %c0_4 = arith.constant 0 : index
    %c0_5 = arith.constant 0 : index
    %7 = vector.load %arg7[%c0_3, %c0_4, %c0_5] : memref<16x16x288xf32, #tpu.memory_space<vmem>>, vector<16x16x32xf32>
    tpu.vector_store %arg7[%c0_3, %c0_4, %c0_5], %6 {strides = array<i32>} : memref<16x16x288xf32, #tpu.memory_space<vmem>>, vector<16x16x32xf32>,
    %c0_i32_6 = arith.constant 0 : i32
    %8 = arith.addi %3, %c0_i32_6 : i32
    %9 = arith.index_cast %8 : i32 to index
    %c1 = arith.constant 1 : index
    %c0_7 = arith.constant 0 : index
    %10 = vector.load %arg6[%9, %c1, %c0_7] : memref<18x18x32xf32, #tpu.memory_space<vmem>>, vector<16x16x32xf32>
    %c0_8 = arith.constant 0 : index
    %c0_9 = arith.constant 0 : index
    %c32 = arith.constant 32 : index
    %11 = vector.load %arg7[%c0_8, %c0_9, %c32] : memref<16x16x288xf32, #tpu.memory_space<vmem>>, vector<16x16x32xf32>
    tpu.vector_store %arg7[%c0_8, %c0_9, %c32], %10 {strides = array<i32>} : memref<16x16x288xf32, #tpu.memory_space<vmem>>, vector<16x16x32xf32>,
    %c0_i32_10 = arith.constant 0 : i32
    %12 = arith.addi %3, %c0_i32_10 : i32
    %13 = arith.index_cast %12 : i32 to index
    %c2 = arith.constant 2 : index
    %c0_11 = arith.constant 0 : index
    %14 = vector.load %arg6[%13, %c2, %c0_11] : memref<18x18x32xf32, #tpu.memory_space<vmem>>, vector<16x16x32xf32>
    %c0_12 = arith.constant 0 : index
    %c0_13 = arith.constant 0 : index
    %c64 = arith.constant 64 : index
    %15 = vector.load %arg7[%c0_12, %c0_13, %c64] : memref<16x16x288xf32, #tpu.memory_space<vmem>>, vector<16x16x32xf32>
    tpu.vector_store %arg7[%c0_12, %c0_13, %c64], %14 {strides = array<i32>} : memref<16x16x288xf32, #tpu.memory_space<vmem>>, vector<16x16x32xf32>,
    %c1_i32 = arith.constant 1 : i32
    %16 = arith.addi %3, %c1_i32 : i32
    %17 = arith.index_cast %16 : i32 to index
    %c0_14 = arith.constant 0 : index
    %c0_15 = arith.constant 0 : index
    %18 = vector.load %arg6[%17, %c0_14, %c0_15] : memref<18x18x32xf32, #tpu.memory_space<vmem>>, vector<16x16x32xf32>
    %c0_16 = arith.constant 0 : index
    %c0_17 = arith.constant 0 : index
    %c96 = arith.constant 96 : index
    %19 = vector.load %arg7[%c0_16, %c0_17, %c96] : memref<16x16x288xf32, #tpu.memory_space<vmem>>, vector<16x16x32xf32>
    tpu.vector_store %arg7[%c0_16, %c0_17, %c96], %18 {strides = array<i32>} : memref<16x16x288xf32, #tpu.memory_space<vmem>>, vector<16x16x32xf32>,
    %c1_i32_18 = arith.constant 1 : i32
    %20 = arith.addi %3, %c1_i32_18 : i32
    %21 = arith.index_cast %20 : i32 to index
    %c1_19 = arith.constant 1 : index
    %c0_20 = arith.constant 0 : index
    %22 = vector.load %arg6[%21, %c1_19, %c0_20] : memref<18x18x32xf32, #tpu.memory_space<vmem>>, vector<16x16x32xf32>
    %c0_21 = arith.constant 0 : index
    %c0_22 = arith.constant 0 : index
    %c128 = arith.constant 128 : index
    %23 = vector.load %arg7[%c0_21, %c0_22, %c128] : memref<16x16x288xf32, #tpu.memory_space<vmem>>, vector<16x16x32xf32>
    tpu.vector_store %arg7[%c0_21, %c0_22, %c128], %22 {strides = array<i32>} : memref<16x16x288xf32, #tpu.memory_space<vmem>>, vector<16x16x32xf32>,
    %c1_i32_23 = arith.constant 1 : i32
    %24 = arith.addi %3, %c1_i32_23 : i32
    %25 = arith.index_cast %24 : i32 to index
    %c2_24 = arith.constant 2 : index
    %c0_25 = arith.constant 0 : index
    %26 = vector.load %arg6[%25, %c2_24, %c0_25] : memref<18x18x32xf32, #tpu.memory_space<vmem>>, vector<16x16x32xf32>
    %c0_26 = arith.constant 0 : index
    %c0_27 = arith.constant 0 : index
    %c160 = arith.constant 160 : index
    %27 = vector.load %arg7[%c0_26, %c0_27, %c160] : memref<16x16x288xf32, #tpu.memory_space<vmem>>, vector<16x16x32xf32>
    tpu.vector_store %arg7[%c0_26, %c0_27, %c160], %26 {strides = array<i32>} : memref<16x16x288xf32, #tpu.memory_space<vmem>>, vector<16x16x32xf32>,
    %c2_i32 = arith.constant 2 : i32
    %28 = arith.addi %3, %c2_i32 : i32
    %29 = arith.index_cast %28 : i32 to index
    %c0_28 = arith.constant 0 : index
    %c0_29 = arith.constant 0 : index
    %30 = vector.load %arg6[%29, %c0_28, %c0_29] : memref<18x18x32xf32, #tpu.memory_space<vmem>>, vector<16x16x32xf32>
    %c0_30 = arith.constant 0 : index
    %c0_31 = arith.constant 0 : index
    %c192 = arith.constant 192 : index
    %31 = vector.load %arg7[%c0_30, %c0_31, %c192] : memref<16x16x288xf32, #tpu.memory_space<vmem>>, vector<16x16x32xf32>
    tpu.vector_store %arg7[%c0_30, %c0_31, %c192], %30 {strides = array<i32>} : memref<16x16x288xf32, #tpu.memory_space<vmem>>, vector<16x16x32xf32>,
    %c2_i32_32 = arith.constant 2 : i32
    %32 = arith.addi %3, %c2_i32_32 : i32
    %33 = arith.index_cast %32 : i32 to index
    %c1_33 = arith.constant 1 : index
    %c0_34 = arith.constant 0 : index
    %34 = vector.load %arg6[%33, %c1_33, %c0_34] : memref<18x18x32xf32, #tpu.memory_space<vmem>>, vector<16x16x32xf32>
    %c0_35 = arith.constant 0 : index
    %c0_36 = arith.constant 0 : index
    %c224 = arith.constant 224 : index
    %35 = vector.load %arg7[%c0_35, %c0_36, %c224] : memref<16x16x288xf32, #tpu.memory_space<vmem>>, vector<16x16x32xf32>
    tpu.vector_store %arg7[%c0_35, %c0_36, %c224], %34 {strides = array<i32>} : memref<16x16x288xf32, #tpu.memory_space<vmem>>, vector<16x16x32xf32>,
    %c2_i32_37 = arith.constant 2 : i32
    %36 = arith.addi %3, %c2_i32_37 : i32
    %37 = arith.index_cast %36 : i32 to index
    %c2_38 = arith.constant 2 : index
    %c0_39 = arith.constant 0 : index
    %38 = vector.load %arg6[%37, %c2_38, %c0_39] : memref<18x18x32xf32, #tpu.memory_space<vmem>>, vector<16x16x32xf32>
    %c0_40 = arith.constant 0 : index
    %c0_41 = arith.constant 0 : index
    %c256 = arith.constant 256 : index
    %39 = vector.load %arg7[%c0_40, %c0_41, %c256] : memref<16x16x288xf32, #tpu.memory_space<vmem>>, vector<16x16x32xf32>
    tpu.vector_store %arg7[%c0_40, %c0_41, %c256], %38 {strides = array<i32>} : memref<16x16x288xf32, #tpu.memory_space<vmem>>, vector<16x16x32xf32>,
    %c0_42 = arith.constant 0 : index
    %c0_43 = arith.constant 0 : index
    %c0_44 = arith.constant 0 : index
    %40 = vector.load %arg7[%c0_42, %c0_43, %c0_44] : memref<16x16x288xf32, #tpu.memory_space<vmem>>, vector<16x16x288xf32>
    %41 = vector.shape_cast %40 : vector<16x16x288xf32> to vector<256x288xf32>
    %42 = arith.truncf %41 : vector<256x288xf32> to vector<256x288xbf16>
    %c0_45 = arith.constant 0 : index
    %c0_46 = arith.constant 0 : index
    %43 = vector.load %arg3[%c0_45, %c0_46] : memref<288x3xbf16, #tpu.memory_space<vmem>>, vector<288x3xbf16>
    %cst = arith.constant dense<0.000000e+00> : vector<256x3xf32>
    %44 = tpu.matmul %42, %43, %cst {dimension_numbers = #tpu.dot_dimension_numbers<[1], [0], [0], [1], [0, 0, 1, 1], [], []>} : vector<256x288xbf16>, vector<288x3xbf16>, vector<256x3xf32> -> vector<256x3xf32>
    %c0_47 = arith.constant 0 : index
    %c0_48 = arith.constant 0 : index
    %45 = vector.load %arg4[%c0_47, %c0_48] : memref<1x3xf32, #tpu.memory_space<vmem>>, vector<1x3xf32>
    %46 = vector.broadcast %45 : vector<1x3xf32> to vector<256x3xf32>
    %47 = arith.addf %44, %46 : vector<256x3xf32>
    %48 = math.tanh %47 : vector<256x3xf32>
    %c0_49 = arith.constant 0 : index
    %c0_50 = arith.constant 0 : index
    %c0_51 = arith.constant 0 : index
    %49 = vector.load %arg5[%c0_49, %c0_50, %c0_51] : memref<1x256x3xf32, #tpu.memory_space<vmem>>, vector<1x256x3xf32>
    %50 = vector.shape_cast %49 : vector<1x256x3xf32> to vector<256x3xf32>
    %51 = vector.shape_cast %48 : vector<256x3xf32> to vector<1x256x3xf32>
    tpu.vector_store %arg5[%c0_49, %c0_50, %c0_51], %51 {strides = array<i32>} : memref<1x256x3xf32, #tpu.memory_space<vmem>>, vector<1x256x3xf32>,
    return
  }
  func.func @transform_0(%arg0: i32, %arg1: i32) -> (i32, i32, i32, i32) {
    %c0_i32 = arith.constant 0 : i32
    %c0_i32_0 = arith.constant 0 : i32
    %c0_i32_1 = arith.constant 0 : i32
    %c0_i32_2 = arith.constant 0 : i32
    return %arg0, %c0_i32, %c0_i32_0, %c0_i32_1 : i32, i32, i32, i32
  }
  func.func @transform_1(%arg0: i32, %arg1: i32) -> (i32, i32) {
    %c0_i32 = arith.constant 0 : i32
    %c0_i32_0 = arith.constant 0 : i32
    %c0_i32_1 = arith.constant 0 : i32
    return %c0_i32, %c0_i32_0 : i32, i32
  }
  func.func @transform_2(%arg0: i32, %arg1: i32) -> (i32, i32) {
    %c0_i32 = arith.constant 0 : i32
    %c0_i32_0 = arith.constant 0 : i32
    %c0_i32_1 = arith.constant 0 : i32
    return %c0_i32, %c0_i32_0 : i32, i32
  }
  func.func @transform_3(%arg0: i32, %arg1: i32) -> (i32, i32, i32) {
    %c0_i32 = arith.constant 0 : i32
    %c0_i32_0 = arith.constant 0 : i32
    return %arg0, %arg1, %c0_i32 : i32, i32, i32
  }
}

</mosaic_0001>

<bundles_post_ra>
// kernel: unet_forward.11
= control target key start
LH: loop header
LB: loop body
LE: loop exit
PB: predicated region body
PF: predicated region fallthrough
CT: control target
= control target key end

     0   :  { %s350_s6 = smov 0   ;;  %s407_s0 = inlined_call_operand.vmem [shape: f32[16,2,8,64], index: 0, kind: input, shape index: {}]   ;;  %s408_s1 = inlined_call_operand.vmem [shape: f32[16,8,32], index: 1, kind: output, shape index: {}]  }
   0x1 LB: > { %s301_s7 = sadd.s32 4294967295, %s337_s6   ;;  %p305_p0 = scmp.ge.s32.totalorder %s337_s6, 1  ;;  %s337_s6 = sphi %s350_s6, %s11_s6  }
   0x2   : > { %p89_p1 = scmp.lt.s32.totalorder %s337_s6, 3 }
   0x4   : > { %p90_p2 = pnand %p305_p0, %p89_p1 }
   0x5   : > { %s306_s8 = sshll.u32 (!%p90_p2), %s301_s7, 3  ;;  %s339_s13 = smov (!%p90_p2), 96   ;;  %vm236_vm0 = vcmask (!%p90_p2), 261120  }
   0x6   : > { %93 = sbr.rel (%p90_p2) target bundleno = 166 (0xa6), region = 24  ;;  %p111_p3 = scmp.lt.s32.totalorder (!%p90_p2), %s306_s8, 15 }
   0xd   : > { %s410_s8 = smov (!%p111_p3, %s306_s8), 15 }
   0xe   : > { %s321_s9 = sshll.u32 %s410_s8, 4  ;;  %s310_s14 = sshll.u32 %s410_s8, 3 }
   0xf   : > { %s364_s12 = scalar_lea.vmem %s407_s0, %s321_s9  ;;  %s386_s17 = scalar_lea.vmem %s408_s1, %s310_s14 }
  0x10   : > { %v125_v0 = vld [vmem:[%s364_s12 + $0x20] sm:$0xff]  ;;  %v126_v2 = vld [vmem:[%s364_s12 + $0x30] sm:$0xff]  ;;  %v312_v8 = vld [vmem:[%s364_s12 + $0x18] sm:$0xff] }
  0x11   : > { %v123_v1 = vld [vmem:[%s364_s12] sm:$0xff]  ;;  %152 = vrot.lane.b32.xlu1 %v125_v0, %s339_s13  ;;  %v124_v3 = vld [vmem:[%s364_s12 + $0x10] sm:$0xff]  ;;  %v311_v9 = vld [vmem:[%s364_s12 + $0x8] sm:$0xff] }
  0x12   : > { %148 = vrot.lane.b32.xlu0 %v123_v1, %s339_s13  ;;  %v128_v4 = vld [vmem:[%s364_s12 + $0x50] sm:$0xff]  ;;  %v127_v5 = vld [vmem:[%s364_s12 + $0x40] sm:$0xff]  ;;  %v314_v10 = vld [vmem:[%s364_s12 + $0x38] sm:$0xff] }
  0x13   : > { %v130_v6 = vld [vmem:[%s364_s12 + $0x70] sm:$0xff]  ;;  %v129_v7 = vld [vmem:[%s364_s12 + $0x60] sm:$0xff]  ;;  %v313_v11 = vld [vmem:[%s364_s12 + $0x28] sm:$0xff] }
  0x14   : > { %v316_v12 = vld [vmem:[%s364_s12 + $0x58] sm:$0xff]  ;;  %v315_v13 = vld [vmem:[%s364_s12 + $0x48] sm:$0xff] }
  0x15   : > { %154 = vrot.lane.b32.xlu1 %v126_v2, %s339_s13  ;;  %v318_v14 = vld [vmem:[%s364_s12 + $0x78] sm:$0xff]  ;;  %v317_v15 = vld [vmem:[%s364_s12 + $0x68] sm:$0xff] }
  0x16   : > { %150 = vrot.lane.b32.xlu0 %v124_v3, %s339_s13 }
  0x19   : > { %158 = vrot.lane.b32.xlu1 %v128_v4, %s339_s13 }
  0x1a   : > { %156 = vrot.lane.b32.xlu0 %v127_v5, %s339_s13 }
  0x1d   : > { %162 = vrot.lane.b32.xlu1 %v130_v6, %s339_s13 }
  0x1e   : > { %160 = vrot.lane.b32.xlu0 %v129_v7, %s339_s13 }
  0x21   : > { %198 = vrot.lane.b32.xlu1 %v312_v8, %s339_s13 }
  0x22   : > { %196 = vrot.lane.b32.xlu0 %v311_v9, %s339_s13 }
  0x25   : > { %202 = vrot.lane.b32.xlu1 %v314_v10, %s339_s13 }
  0x26   : > { %200 = vrot.lane.b32.xlu0 %v313_v11, %s339_s13 }
  0x29   : > { %206 = vrot.lane.b32.xlu1 %v316_v12, %s339_s13 }
  0x2a   : > { %204 = vrot.lane.b32.xlu0 %v315_v13, %s339_s13 }
  0x2d   : > { %210 = vrot.lane.b32.xlu1 %v318_v14, %s339_s13 }
  0x2e   : > { %208 = vrot.lane.b32.xlu0 %v317_v15, %s339_s13 }
  0x83   : > { %v153_v16 = vpop.permute.xlu1 %152 }
  0x84   : > { %v149_v17 = vpop.permute.xlu0 %148  ;;  %v174_v26 = vadd.f32 %v153_v16, %v125_v0 }
  0x85   : > { %v172_v22 = vadd.f32 %v149_v17, %v123_v1 }
  0x86   : > { %v182_v39 = vadd.f32 %v313_v11, %v174_v26 }
  0x87   : > { %v155_v18 = vpop.permute.xlu1 %154  ;;  %v180_v29 = vadd.f32 %v311_v9, %v172_v22 }
  0x88   : > { %v151_v19 = vpop.permute.xlu0 %150  ;;  %v175_v27 = vadd.f32 %v155_v18, %v126_v2 }
  0x89   : > { %v173_v23 = vadd.f32 %v151_v19, %v124_v3 }
  0x8a   : > { %v183_v38 = vadd.f32 %v314_v10, %v175_v27 }
  0x8b   : > { %v159_v20 = vpop.permute.xlu1 %158  ;;  %v181_v28 = vadd.f32 %v312_v8, %v173_v23 }
  0x8c   : > { %v157_v21 = vpop.permute.xlu0 %156  ;;  %v177_v34 = vadd.f32 %v159_v20, %v128_v4 }
  0x8d   : > { %v176_v35 = vadd.f32 %v157_v21, %v127_v5 }
  0x8e   : > { %v185_v44 = vadd.f32 %v316_v12, %v177_v34 }
  0x8f   : > { %v163_v24 = vpop.permute.xlu1 %162  ;;  %v184_v45 = vadd.f32 %v315_v13, %v176_v35 }
  0x90   : > { %v161_v25 = vpop.permute.xlu0 %160  ;;  %v179_v46 = vadd.f32 %v163_v24, %v130_v6 }
  0x91   : > { %v178_v47 = vadd.f32 %v161_v25, %v129_v7 }
  0x92   : > { %v187_v56 = vadd.f32 %v318_v14, %v179_v46 }
  0x93   : > { %v199_v30 = vpop.permute.xlu1 %198  ;;  %v186_v57 = vadd.f32 %v317_v15, %v178_v47 }
  0x94   : > { %v197_v31 = vpop.permute.xlu0 %196  ;;  %v221_v32 = vadd.f32 %v199_v30, %v181_v28 }
  0x95   : > { %v220_v33 = vadd.f32 %v197_v31, %v180_v29 }
  0x96   : > { %v229_v36 = vmul.f32 0.25, %v221_v32 }
  0x97   : > { %v228_v37 = vmul.f32 0.25, %v220_v33  ;;  %v203_v40 = vpop.permute.xlu1 %202 }
  0x98   : > { %v201_v41 = vpop.permute.xlu0 %200  ;;  %238 = vst.msk [vmem:[%s386_s17 + $0x8] sm:$0xff] %vm236_vm0, %v229_v36  ;;  %v223_v42 = vadd.f32 %v203_v40, %v183_v38 }
  0x99   : > { %237 = vst.msk [vmem:[%s386_s17] sm:$0xff] %vm236_vm0, %v228_v37  ;;  %v222_v43 = vadd.f32 %v201_v41, %v182_v39 }
  0x9a   : > { %v231_v48 = vmul.f32 0.25, %v223_v42 }
  0x9b   : > { %v230_v49 = vmul.f32 0.25, %v222_v43  ;;  %v207_v50 = vpop.permute.xlu1 %206 }
  0x9c   : > { %v205_v51 = vpop.permute.xlu0 %204  ;;  %240 = vst.msk [vmem:[%s386_s17 + $0x18] sm:$0xff] %vm236_vm0, %v231_v48  ;;  %v225_v52 = vadd.f32 %v207_v50, %v185_v44 }
  0x9d   : > { %239 = vst.msk [vmem:[%s386_s17 + $0x10] sm:$0xff] %vm236_vm0, %v230_v49  ;;  %v224_v53 = vadd.f32 %v205_v51, %v184_v45 }
  0x9e   : > { %v233_v54 = vmul.f32 0.25, %v225_v52 }
  0x9f   : > { %v232_v55 = vmul.f32 0.25, %v224_v53  ;;  %v211_v58 = vpop.permute.xlu1 %210 }
  0xa0   : > { %v209_v59 = vpop.permute.xlu0 %208  ;;  %242 = vst.msk [vmem:[%s386_s17 + $0x28] sm:$0xff] %vm236_vm0, %v233_v54  ;;  %v227_v60 = vadd.f32 %v211_v58, %v187_v56 }
  0xa1   : > { %241 = vst.msk [vmem:[%s386_s17 + $0x20] sm:$0xff] %vm236_vm0, %v232_v55  ;;  %v226_v61 = vadd.f32 %v209_v59, %v186_v57 }
  0xa2   : > { %v235_v62 = vmul.f32 0.25, %v227_v60 }
  0xa3   : > { %v234_v63 = vmul.f32 0.25, %v226_v61 }
  0xa4   : > { %244 = vst.msk [vmem:[%s386_s17 + $0x38] sm:$0xff] %vm236_vm0, %v235_v62 }
  0xa5   : > { %243 = vst.msk [vmem:[%s386_s17 + $0x30] sm:$0xff] %vm236_vm0, %v234_v63 }
  0xa6 PF: > { %s11_s6 = sadd.s32 1, %s337_s6  }
  0xa7   : > { %p8_p4 = scmp.ge.s32.totalorder %s11_s6, 4  }
  0xa9   :  { %10 = sbr.rel (!%p8_p4) target bundleno = 1 (0x1), region = 55 }

// kernel: unet_forward.13
= control target key start
LH: loop header
LB: loop body
LE: loop exit
PB: predicated region body
PF: predicated region fallthrough
CT: control target
= control target key end

     0   :  { %s286_s6 = smov 0   ;;  %s307_s0 = inlined_call_operand.vmem [shape: f32[8,2,4,128], index: 0, kind: input, shape index: {}]   ;;  %s308_s1 = inlined_call_operand.vmem [shape: f32[8,4,64], index: 1, kind: output, shape index: {}]  }
   0x1 LB: > { %s241_s7 = sadd.s32 4294967295, %s273_s6   ;;  %p245_p0 = scmp.ge.s32.totalorder %s273_s6, 1  ;;  %s273_s6 = sphi %s286_s6, %s11_s6  }
   0x2   : > { %p89_p1 = scmp.lt.s32.totalorder %s273_s6, 3 }
   0x4   : > { %p90_p2 = pnand %p245_p0, %p89_p1 }
   0x5   : > { %s246_s8 = sshll.u32 (!%p90_p2), %s241_s7, 2  ;;  %s275_s13 = smov (!%p90_p2), 64   ;;  %vm180_vm0 = vcmask (!%p90_p2), 519168  }
   0x6   : > { %93 = sbr.rel (%p90_p2) target bundleno = 149 (0x95), region = 24  ;;  %p111_p3 = scmp.lt.s32.totalorder (!%p90_p2), %s246_s8, 7 }
   0xd   : > { %s310_s8 = smov (!%p111_p3, %s246_s8), 7 }
   0xe   : > { %s257_s9 = sshll.u32 %s310_s8, 3  ;;  %s250_s14 = sshll.u32 %s310_s8, 2 }
   0xf   : > { %s115_s12 = scalar_lea.vmem %s307_s0, %s257_s9  ;;  %s121_s17 = scalar_lea.vmem %s308_s1, %s250_s14 }
  0x10   : > { %v125_v0 = vld [vmem:[%s115_s12 + $0x10] sm:$0xf]  ;;  %v123_v1 = vld [vmem:[%s115_s12] sm:$0xf]  ;;  %v126_v2 = vld [vmem:[%s115_s12 + $0x18] sm:$0xf] }
  0x11   : > { %140 = vrot.lane.b32.xlu1 %v125_v0, %s275_s13  ;;  %136 = vrot.lane.b32.xlu0 %v123_v1, %s275_s13  ;;  %v124_v3 = vld [vmem:[%s115_s12 + $0x8] sm:$0xf]  ;;  %v252_v4 = vld [vmem:[%s115_s12 + $0xc] sm:$0xf] }
  0x12   : > { %v251_v5 = vld [vmem:[%s115_s12 + $0x4] sm:$0xf]  ;;  %v254_v6 = vld [vmem:[%s115_s12 + $0x1c] sm:$0xf]  ;;  %v253_v7 = vld [vmem:[%s115_s12 + $0x14] sm:$0xf] }
  0x15   : > { %142 = vrot.lane.b32.xlu1 %v126_v2, %s275_s13  ;;  %138 = vrot.lane.b32.xlu0 %v124_v3, %s275_s13 }
  0x19   : > { %162 = vrot.lane.b32.xlu1 %v252_v4, %s275_s13  ;;  %160 = vrot.lane.b32.xlu0 %v251_v5, %s275_s13 }
  0x1d   : > { %166 = vrot.lane.b32.xlu1 %v254_v6, %s275_s13  ;;  %164 = vrot.lane.b32.xlu0 %v253_v7, %s275_s13 }
  0x83   : > { %v141_v8 = vpop.permute.xlu1 %140  ;;  %v137_v9 = vpop.permute.xlu0 %136 }
  0x84   : > { %v148_v10 = vadd.f32 %v137_v9, %v123_v1  ;;  %v150_v14 = vadd.f32 %v141_v8, %v125_v0 }
  0x86   : > { %v152_v17 = vadd.f32 %v251_v5, %v148_v10  ;;  %v154_v25 = vadd.f32 %v253_v7, %v150_v14 }
  0x87   : > { %v143_v11 = vpop.permute.xlu1 %142  ;;  %v139_v12 = vpop.permute.xlu0 %138 }
  0x88   : > { %v149_v13 = vadd.f32 %v139_v12, %v124_v3  ;;  %v151_v15 = vadd.f32 %v143_v11, %v126_v2 }
  0x8a   : > { %v153_v16 = vadd.f32 %v252_v4, %v149_v13  ;;  %v155_v24 = vadd.f32 %v254_v6, %v151_v15 }
  0x8b   : > { %v163_v18 = vpop.permute.xlu1 %162  ;;  %v161_v19 = vpop.permute.xlu0 %160 }
  0x8c   : > { %v173_v20 = vadd.f32 %v163_v18, %v153_v16  ;;  %v172_v21 = vadd.f32 %v161_v19, %v152_v17 }
  0x8e   : > { %v177_v22 = vmul.f32 0.25, %v173_v20  ;;  %v176_v23 = vmul.f32 0.25, %v172_v21 }
  0x8f   : > { %v167_v26 = vpop.permute.xlu1 %166  ;;  %v165_v27 = vpop.permute.xlu0 %164 }
  0x90   : > { %181 = vst.msk [vmem:[%s121_s17] sm:$0xf] %vm180_vm0, %v176_v23  ;;  %v175_v28 = vadd.f32 %v167_v26, %v155_v24  ;;  %v174_v29 = vadd.f32 %v165_v27, %v154_v25  ;;  %182 = vst.msk [vmem:[%s121_s17 + $0x4] sm:$0xf] %vm180_vm0, %v177_v22 }
  0x92   : > { %v179_v30 = vmul.f32 0.25, %v175_v28  ;;  %v178_v31 = vmul.f32 0.25, %v174_v29 }
  0x94   : > { %183 = vst.msk [vmem:[%s121_s17 + $0x8] sm:$0xf] %vm180_vm0, %v178_v31  ;;  %184 = vst.msk [vmem:[%s121_s17 + $0xc] sm:$0xf] %vm180_vm0, %v179_v30 }
  0x95 PF: > { %s11_s6 = sadd.s32 1, %s273_s6  }
  0x96   : > { %p8_p4 = scmp.ge.s32.totalorder %s11_s6, 4  }
  0x98   :  { %10 = sbr.rel (!%p8_p4) target bundleno = 1 (0x1), region = 55 }

// kernel: unet_forward.12
= control target key start
LH: loop header
LB: loop body
LE: loop exit
PB: predicated region body
PF: predicated region fallthrough
CT: control target
= control target key end

     0   :  { %s1276_s12 = smov 0   ;;  %s1278_s13 = smov 0   ;;  %s1645_s0 = inlined_call_operand.vmem [shape: f32[2,8,8,32], index: 0, kind: input, shape index: {}]   ;;  %s1646_s1 = inlined_call_operand.vmem [shape: bf16[288,64], index: 1, kind: input, shape index: {}]   ;;  %s1647_s2 = inlined_call_operand.vmem [shape: f32[1,64], index: 2, kind: input, shape index: {}]   ;;  %s1648_s3 = inlined_call_operand.vmem [shape: f32[2,64,64], index: 3, kind: output, shape index: {}]  }
   0x1   :  { %s1280_s14 = smov 0  }
   0x2 LB: > { %s25_s15 = sadd.s32 1, %s1246_s13  ;;  %p1028_p0 = scmp.ge.s32.totalorder %s1250_s14, 1  ;;  %s1250_s14 = sphi %s1280_s14, %s13_s14   ;;  %s1246_s13 = sphi %s1278_s13, %s1650_s13   ;;  %s1242_s12 = sphi %s1276_s12, %s1649_s12  }
   0x3   : > { %p27_p1 = scmp.ge.s32.totalorder %s25_s15, 2  ;;  %p151_p2 = scmp.lt.s32.totalorder %s1250_s14, 3 }
   0x5   : > { %s1652_s15 = smov (%p27_p1, %s25_s15), 0  ;;  %p152_p3 = pnand %p1028_p0, %p151_p2 }
   0x6   : > { %vm199_vm0 = vcmask (!%p152_p3), 261120   ;;  %vm201_vm1 = vcmask (!%p152_p3), 254976   ;;  %v1210_v0 = vld [vmem:[%s1646_s1 + $0x40] sm:$0xff] (!%p152_p3)   ;;  %v1252_v1 = vmov (!%p152_p3), 0.0   ;;  %p179_p4 = scmp.lt.s32.totalorder (!%p152_p3), %s1242_s12, 1  ;;  %v1212_v3 = vld [vmem:[%s1646_s1 + $0x48] sm:$0xff] (!%p152_p3)  }
   0x7   : > { %155 = sbr.rel (%p152_p3) target bundleno = 464 (0x1d0), region = 32  ;;  %200 = vst.msk [vmem:[#allocation2] sm:$0xff] (!%p152_p3), %vm199_vm0, %v1252_v1  ;;  %203 = vst.msk [vmem:[#allocation2 + $0x10] sm:$0xff] (!%p152_p3), %vm199_vm0, %v1252_v1  ;;  %1108 = vmatprep.subr.bf16.mxu0 (!%p152_p3), %v1210_v0  ;;  %v1211_v2 = vld [vmem:[%s1646_s1] sm:$0xff] (!%p152_p3)   ;;  %1166 = vmatprep.subr.bf16.mxu1 (!%p152_p3), %v1210_v0  ;;  %v1213_v4 = vld [vmem:[%s1646_s1 + $0x8] sm:$0xff] (!%p152_p3)   ;;  %s1253_s30 = smov (!%p152_p3), 32  }
   0x8   : > { %202 = vst.msk [vmem:[#allocation2 + $0x8] sm:$0x3] (!%p152_p3), %vm201_vm1, %v1252_v1  ;;  %204 = vst.msk [vmem:[#allocation2 + $0x18] sm:$0x3] (!%p152_p3), %vm201_vm1, %v1252_v1  ;;  %1109 = vmatpush3.bf16.msra.mxu0 (!%p152_p3), %v1211_v2  ;;  %1174 = vmatpush3.bf16.msra.mxu1 (!%p152_p3), %v1211_v2  ;;  %v1214_v5 = vld [vmem:[%s1646_s1 + $0x50] sm:$0xff] (!%p152_p3)   ;;  %s1254_s4 = smov (!%p152_p3), 64  }
   0x9   : > { %205 = vst.msk [vmem:[#allocation2 + $0x20] sm:$0xff] (!%p152_p3), %vm199_vm0, %v1252_v1  ;;  %207 = vst.msk [vmem:[#allocation2 + $0x30] sm:$0xff] (!%p152_p3), %vm199_vm0, %v1252_v1  ;;  %1110 = vmatprep.subr.bf16.mxu0 (!%p152_p3), %v1212_v3  ;;  %1167 = vmatprep.subr.bf16.mxu1 (!%p152_p3), %v1212_v3  ;;  %v1215_v17 = vld [vmem:[%s1646_s1 + $0x10] sm:$0xff] (!%p152_p3)   ;;  %v1216_v18 = vld [vmem:[%s1646_s1 + $0x58] sm:$0xff] (!%p152_p3)   ;;  %s1255_s26 = smov (!%p152_p3), 96   ;;  %vm298_vm2 = vcmask (!%p152_p3), 523520  }
   0xa   : > { %206 = vst.msk [vmem:[#allocation2 + $0x28] sm:$0x3] (!%p152_p3), %vm201_vm1, %v1252_v1  ;;  %208 = vst.msk [vmem:[#allocation2 + $0x38] sm:$0x3] (!%p152_p3), %vm201_vm1, %v1252_v1  ;;  %v1217_v19 = vld [vmem:[%s1646_s1 + $0x18] sm:$0xff] (!%p152_p3)   ;;  %v1218_v20 = vld [vmem:[%s1646_s1 + $0x60] sm:$0xff] (!%p152_p3)  }
   0xb   : > { %209 = vst.msk [vmem:[#allocation2 + $0x40] sm:$0xff] (!%p152_p3), %vm199_vm0, %v1252_v1  ;;  %211 = vst.msk [vmem:[#allocation2 + $0x50] sm:$0xff] (!%p152_p3), %vm199_vm0, %v1252_v1  ;;  %v1219_v44 = vld [vmem:[%s1646_s1 + $0x20] sm:$0xff] (!%p152_p3)   ;;  %v1220_v45 = vld [vmem:[%s1646_s1 + $0x68] sm:$0xff] (!%p152_p3)   ;;  %vm347_vm3 = vcmask (!%p152_p3), 785920   ;;  %vm399_vm4 = vcmask (!%p152_p3), 1048320  }
   0xc   : > { %210 = vst.msk [vmem:[#allocation2 + $0x48] sm:$0x3] (!%p152_p3), %vm201_vm1, %v1252_v1  ;;  %212 = vst.msk [vmem:[#allocation2 + $0x58] sm:$0x3] (!%p152_p3), %vm201_vm1, %v1252_v1  ;;  %1111 = vmatpush3.bf16.msra.mxu0 (!%p152_p3), %v1213_v4  ;;  %1175 = vmatpush3.bf16.msra.mxu1 (!%p152_p3), %v1213_v4  ;;  %v1221_v46 = vld [vmem:[%s1646_s1 + $0x28] sm:$0xff] (!%p152_p3)   ;;  %v1222_v47 = vld [vmem:[%s1646_s1 + $0x70] sm:$0xff] (!%p152_p3)  }
   0xd   : > { %213 = vst.msk [vmem:[#allocation2 + $0x60] sm:$0xff] (!%p152_p3), %vm199_vm0, %v1252_v1  ;;  %215 = vst.msk [vmem:[#allocation2 + $0x70] sm:$0xff] (!%p152_p3), %vm199_vm0, %v1252_v1  ;;  %1112 = vmatprep.subr.bf16.mxu0 (!%p152_p3), %v1214_v5  ;;  %1168 = vmatprep.subr.bf16.mxu1 (!%p152_p3), %v1214_v5  ;;  %v1223_v48 = vld [vmem:[%s1646_s1 + $0x30] sm:$0xff] (!%p152_p3)   ;;  %v1224_v49 = vld [vmem:[%s1646_s1 + $0x78] sm:$0xff] (!%p152_p3)   ;;  %vm924_vm5 = vcmask (!%p152_p3), 523264  }
   0xe   : > { %214 = vst.msk [vmem:[#allocation2 + $0x68] sm:$0x3] %vm201_vm1, %v1252_v1  ;;  %216 = vst.msk [vmem:[#allocation2 + $0x78] sm:$0x3] %vm201_vm1, %v1252_v1  ;;  %s1654_s12 = smov (!%p179_p4, %s1242_s12), 1  ;;  %v241_v16 = vld [vmem:[#allocation2] sm:$0xff] }
   0xf   : > { %217 = vst.msk [vmem:[#allocation2 + $0x80] sm:$0xff] %vm199_vm0, %v1252_v1  ;;  %219 = vst.msk [vmem:[#allocation2 + $0x90] sm:$0xff] %vm199_vm0, %v1252_v1  ;;  %s1106_s22 = sshll.u32 %s1654_s12, 6  ;;  %v258_v9 = vld [vmem:[#allocation2 + $0x1] sm:$0xff]  ;;  %v1225_v50 = vld [vmem:[%s1646_s1 + $0x38] sm:$0xff]  }
  0x10   : > { %218 = vst.msk [vmem:[#allocation2 + $0x88] sm:$0x3] %vm201_vm1, %v1252_v1  ;;  %220 = vst.msk [vmem:[#allocation2 + $0x98] sm:$0x3] %vm201_vm1, %v1252_v1  ;;  %s183_s27 = scalar_lea.vmem %s1645_s0, %s1106_s22  ;;  %v307_v10 = vld [vmem:[#allocation2 + $0x2] sm:$0xff]  ;;  %274 = vrot.lane.b32.xlu1 %v258_v9, %s1253_s30  ;;  %1113 = vmatpush3.bf16.msra.mxu0 %v1215_v17  ;;  %s1618_s18 = scalar_lea.vmem %s1648_s3, %s1106_s22 }
  0x11   : > { %v221_v6 = vld [vmem:[%s183_s27] sm:$0xff]  ;;  %v222_v7 = vld [vmem:[%s183_s27 + $0x8] sm:$0xff]  ;;  %v223_v8 = vld [vmem:[%s183_s27 + $0x10] sm:$0xff]  ;;  %323 = vrot.lane.b32.xlu0 %v307_v10, %s1254_s4  ;;  %250 = vst.msk [vmem:[#allocation3] sm:$0xff] %vm199_vm0, %v241_v16  ;;  %1176 = vmatpush3.bf16.msra.mxu1 %v1215_v17 }
  0x12   : > { %230 = vst.msk [vmem:[#allocation2 + $0x11] sm:$0xff] %vm199_vm0, %v221_v6  ;;  %231 = vst.msk [vmem:[#allocation2 + $0x21] sm:$0xff] %vm199_vm0, %v222_v7  ;;  %v227_v11 = vld [vmem:[%s183_s27 + $0x30] sm:$0xff]  ;;  %v228_v12 = vld [vmem:[%s183_s27 + $0x38] sm:$0xff]  ;;  %1114 = vmatprep.subr.bf16.mxu0 %v1216_v18  ;;  %1169 = vmatprep.subr.bf16.mxu1 %v1216_v18 }
  0x13   : > { %232 = vst.msk [vmem:[#allocation2 + $0x31] sm:$0xff] %vm199_vm0, %v223_v8  ;;  %236 = vst.msk [vmem:[#allocation2 + $0x71] sm:$0xff] %vm199_vm0, %v227_v11  ;;  %v226_v13 = vld [vmem:[%s183_s27 + $0x28] sm:$0xff]  ;;  %v224_v14 = vld [vmem:[%s183_s27 + $0x18] sm:$0xff] }
  0x14   : > { %237 = vst.msk [vmem:[#allocation2 + $0x81] sm:$0xff] %vm199_vm0, %v228_v12  ;;  %235 = vst.msk [vmem:[#allocation2 + $0x61] sm:$0xff] %vm199_vm0, %v226_v13  ;;  %v225_v15 = vld [vmem:[%s183_s27 + $0x20] sm:$0xff]  ;;  %1115 = vmatpush3.bf16.msra.mxu0 %v1217_v19 }
  0x15   : > { %233 = vst.msk [vmem:[#allocation2 + $0x41] sm:$0xff] %vm199_vm0, %v224_v14  ;;  %234 = vst.msk [vmem:[#allocation2 + $0x51] sm:$0xff] %vm199_vm0, %v225_v15  ;;  %1177 = vmatpush3.bf16.msra.mxu1 %v1217_v19  ;;  %1116 = vmatprep.subr.bf16.mxu0 %v1218_v20  ;;  %v1496_v54 = vld [vmem:[%s1646_s1 + $0x80] sm:$0xff]  }
  0x16   : > { %1170 = vmatprep.subr.bf16.mxu1 %v1218_v20  ;;  %v1064_v52 = vld [vmem:[#allocation2 + $0x90] sm:$0xff] }
  0x17   : > { %v1072_v53 = vld [vmem:[#allocation2 + $0x91] sm:$0xff] }
  0x18   : > { %1117 = vmatpush3.bf16.msra.mxu0 %v1219_v44  ;;  %v1080_v55 = vld [vmem:[#allocation2 + $0x92] sm:$0xff] }
  0x19   : > { %v1049_v21 = vld [vmem:[#allocation2 + $0x12] sm:$0xff]  ;;  %v1364_v23 = vld [vmem:[#allocation2 + $0x22] sm:$0xff]  ;;  %1178 = vmatpush3.bf16.msra.mxu1 %v1219_v44  ;;  %1118 = vmatprep.subr.bf16.mxu0 %v1220_v45  ;;  %586 = vst.msk [vmem:[#allocation3 + $0xb8] sm:$0xff] %vm199_vm0, %v1080_v55 }
  0x1a   : > { %v259_v22 = vld [vmem:[#allocation2 + $0x11] sm:$0xff]  ;;  %440 = vrot.lane.b32.xlu0 %v1049_v21, %s1253_s30  ;;  %v1370_v25 = vld [vmem:[#allocation2 + $0x20] sm:$0xff]  ;;  %579 = vst.msk [vmem:[#allocation3 + $0x10] sm:$0xff] %vm199_vm0, %v1364_v23  ;;  %1171 = vmatprep.subr.bf16.mxu1 %v1220_v45 }
  0x1b   : > { %276 = vrot.lane.b32.xlu1 %v259_v22, %s1253_s30  ;;  %v1368_v24 = vld [vmem:[#allocation2 + $0x30] sm:$0xff]  ;;  %v1372_v26 = vld [vmem:[#allocation2 + $0x21] sm:$0xff]  ;;  %416 = vst.msk [vmem:[#allocation3 + $0x8] sm:$0xff] %vm199_vm0, %v259_v22  ;;  %252 = vst.msk [vmem:[#allocation3 + $0x30] sm:$0xff] %vm199_vm0, %v1370_v25 }
  0x1c   : > { %v1377_v27 = vld [vmem:[#allocation2 + $0x31] sm:$0xff]  ;;  %417 = vst.msk [vmem:[#allocation3 + $0x20] sm:$0xff] %vm199_vm0, %v1372_v26  ;;  %253 = vst.msk [vmem:[#allocation3 + $0x48] sm:$0xff] %vm199_vm0, %v1368_v24  ;;  %v1056_v30 = vld [vmem:[#allocation2 + $0x82] sm:$0xff]  ;;  %1119 = vmatpush3.bf16.msra.mxu0 %v1221_v46 }
  0x1d   : > { %v1033_v28 = vld [vmem:[#allocation2 + $0x10] sm:$0xff]  ;;  %v1387_v31 = vld [vmem:[#allocation2 + $0x61] sm:$0xff]  ;;  %418 = vst.msk [vmem:[#allocation3 + $0x38] sm:$0xff] %vm199_vm0, %v1377_v27  ;;  %585 = vst.msk [vmem:[#allocation3 + $0xa0] sm:$0xff] %vm199_vm0, %v1056_v30  ;;  %1179 = vmatpush3.bf16.msra.mxu1 %v1221_v46  ;;  %1120 = vmatprep.subr.bf16.mxu0 %v1222_v47 }
  0x1e   : > { %v1379_v29 = vld [vmem:[#allocation2 + $0x72] sm:$0xff]  ;;  %251 = vst.msk [vmem:[#allocation3 + $0x18] sm:$0xff] %vm199_vm0, %v1033_v28  ;;  %v1396_v33 = vld [vmem:[#allocation2 + $0x62] sm:$0xff]  ;;  %421 = vst.msk [vmem:[#allocation3 + $0x80] sm:$0xff] %vm199_vm0, %v1387_v31  ;;  %442 = vrot.lane.b32.xlu0 %v1364_v23, %s1253_s30  ;;  %1172 = vmatprep.subr.bf16.mxu1 %v1222_v47 }
  0x1f   : > { %v1389_v32 = vld [vmem:[#allocation2 + $0x71] sm:$0xff]  ;;  %584 = vst.msk [vmem:[#allocation3 + $0x88] sm:$0xff] %vm199_vm0, %v1379_v29  ;;  %v1398_v34 = vld [vmem:[#allocation2 + $0x81] sm:$0xff]  ;;  %493 = vrot.lane.b32.xlu1 %v1368_v24, %s1254_s4  ;;  %583 = vst.msk [vmem:[#allocation3 + $0x70] sm:$0xff] %vm199_vm0, %v1396_v33 }
  0x20   : > { %422 = vst.msk [vmem:[#allocation3 + $0x98] sm:$0xff] %vm199_vm0, %v1389_v32  ;;  %v1409_v35 = vld [vmem:[#allocation2 + $0x70] sm:$0xff]  ;;  %v1413_v37 = vld [vmem:[#allocation2 + $0x42] sm:$0xff]  ;;  %423 = vst.msk [vmem:[#allocation3 + $0xb0] sm:$0xff] %vm199_vm0, %v1398_v34  ;;  %1121 = vmatpush3.bf16.msra.mxu0 %v1223_v48 }
  0x21   : > { %v1411_v36 = vld [vmem:[#allocation2 + $0x32] sm:$0xff]  ;;  %v1419_v38 = vld [vmem:[#allocation2 + $0x40] sm:$0xff]  ;;  %257 = vst.msk [vmem:[#allocation3 + $0xa8] sm:$0xff] %vm199_vm0, %v1409_v35  ;;  %581 = vst.msk [vmem:[#allocation3 + $0x40] sm:$0xff] %vm199_vm0, %v1413_v37  ;;  %1180 = vmatpush3.bf16.msra.mxu1 %v1223_v48  ;;  %1122 = vmatprep.subr.bf16.mxu0 %v1224_v49 }
  0x22   : > { %v1421_v39 = vld [vmem:[#allocation2 + $0x50] sm:$0xff]  ;;  %v1423_v40 = vld [vmem:[#allocation2 + $0x41] sm:$0xff]  ;;  %580 = vst.msk [vmem:[#allocation3 + $0x28] sm:$0xff] %vm199_vm0, %v1411_v36  ;;  %254 = vst.msk [vmem:[#allocation3 + $0x60] sm:$0xff] %vm199_vm0, %v1419_v38  ;;  %491 = vrot.lane.b32.xlu0 %v1370_v25, %s1254_s4  ;;  %1173 = vmatprep.subr.bf16.mxu1 %v1224_v49 }
  0x23   : > { %v1431_v41 = vld [vmem:[#allocation2 + $0x51] sm:$0xff]  ;;  %v1435_v43 = vld [vmem:[#allocation2 + $0x60] sm:$0xff]  ;;  %419 = vst.msk [vmem:[#allocation3 + $0x50] sm:$0xff] %vm199_vm0, %v1423_v40  ;;  %255 = vst.msk [vmem:[#allocation3 + $0x78] sm:$0xff] %vm199_vm0, %v1421_v39  ;;  %325 = vrot.lane.b32.xlu1 %v1049_v21, %s1254_s4 }
  0x24   : > { %v1433_v42 = vld [vmem:[#allocation2 + $0x52] sm:$0xff]  ;;  %256 = vst.msk [vmem:[#allocation3 + $0x90] sm:$0xff] %vm199_vm0, %v1435_v43  ;;  %420 = vst.msk [vmem:[#allocation3 + $0x68] sm:$0xff] %vm199_vm0, %v1431_v41  ;;  %1123 = vmatpush3.bf16.msra.mxu0 %v1225_v50  ;;  %v1063_v51 = vld [vmem:[#allocation2 + $0x80] sm:$0xff] }
  0x25   : > { %582 = vst.msk [vmem:[#allocation3 + $0x58] sm:$0xff] %vm199_vm0, %v1433_v42  ;;  %1181 = vmatpush3.bf16.msra.mxu1 %v1225_v50  ;;  %v607_v48 = vld [vmem:[#allocation3 + $0xa0] sm:$0xff]  ;;  %v610_v49 = vld [vmem:[#allocation3 + $0xb8] sm:$0xff] }
  0x26   : > { %539 = vrot.lane.b32.xlu0 %v1372_v26, %s1255_s26  ;;  %1154 = vmatprep.subr.bf16.mxu1 %v1496_v54  ;;  %v622_v50 = vpack.c.bf16 %v610_v49, %v607_v48 }
  0x27   : > { %541 = vrot.lane.b32.xlu1 %v1377_v27, %s1255_s26 }
  0x2a   : > { %375 = vrot.lane.b32.xlu0 %v1033_v28, %s1255_s26  ;;  %v592_v28 = vld [vmem:[#allocation3 + $0x28] sm:$0xff] }
  0x2b   : > { %377 = vrot.lane.b32.xlu1 %v1370_v25, %s1255_s26 }
  0x2e   : > { %452 = vrot.lane.b32.xlu0 %v1379_v29, %s1253_s30 }
  0x2f   : > { %454 = vrot.lane.b32.xlu1 %v1056_v30, %s1253_s30 }
  0x32   : > { %286 = vrot.lane.b32.xlu0 %v1387_v31, %s1253_s30 }
  0x33   : > { %288 = vrot.lane.b32.xlu1 %v1389_v32, %s1253_s30 }
  0x36   : > { %503 = vrot.lane.b32.xlu0 %v1063_v51, %s1254_s4 }
  0x37   : > { %505 = vrot.lane.b32.xlu1 %v1064_v52, %s1254_s4 }
  0x3a   : > { %335 = vrot.lane.b32.xlu0 %v1396_v33, %s1254_s4 }
  0x3b   : > { %337 = vrot.lane.b32.xlu1 %v1379_v29, %s1254_s4 }
  0x3e   : > { %551 = vrot.lane.b32.xlu0 %v1398_v34, %s1255_s26 }
  0x3f   : > { %553 = vrot.lane.b32.xlu1 %v1072_v53, %s1255_s26 }
  0x42   : > { %387 = vrot.lane.b32.xlu0 %v1409_v35, %s1255_s26 }
  0x43   : > { %389 = vrot.lane.b32.xlu1 %v1063_v51, %s1255_s26 }
  0x46   : > { %444 = vrot.lane.b32.xlu0 %v1411_v36, %s1253_s30 }
  0x47   : > { %446 = vrot.lane.b32.xlu1 %v1413_v37, %s1253_s30 }
  0x4a   : > { %278 = vrot.lane.b32.xlu0 %v1372_v26, %s1253_s30 }
  0x4b   : > { %280 = vrot.lane.b32.xlu1 %v1377_v27, %s1253_s30  ;;  %v589_v27 = vld [vmem:[#allocation3 + $0x10] sm:$0xff] }
  0x4e   : > { %495 = vrot.lane.b32.xlu0 %v1419_v38, %s1254_s4 }
  0x4f   : > { %497 = vrot.lane.b32.xlu1 %v1421_v39, %s1254_s4 }
  0x52   : > { %327 = vrot.lane.b32.xlu0 %v1364_v23, %s1254_s4 }
  0x53   : > { %329 = vrot.lane.b32.xlu1 %v1411_v36, %s1254_s4 }
  0x56   : > { %543 = vrot.lane.b32.xlu0 %v1423_v40, %s1255_s26 }
  0x57   : > { %545 = vrot.lane.b32.xlu1 %v1431_v41, %s1255_s26 }
  0x5a   : > { %379 = vrot.lane.b32.xlu0 %v1368_v24, %s1255_s26 }
  0x5b   : > { %381 = vrot.lane.b32.xlu1 %v1419_v38, %s1255_s26  ;;  %v595_v38 = vld [vmem:[#allocation3 + $0x40] sm:$0xff] }
  0x5e   : > { %448 = vrot.lane.b32.xlu0 %v1433_v42, %s1253_s30 }
  0x5f   : > { %450 = vrot.lane.b32.xlu1 %v1396_v33, %s1253_s30  ;;  %v613_v33 = vpack.c.bf16 %v592_v28, %v589_v27 }
  0x62   : > { %282 = vrot.lane.b32.xlu0 %v1423_v40, %s1253_s30  ;;  %v601_v40 = vld [vmem:[#allocation3 + $0x70] sm:$0xff] }
  0x63   : > { %284 = vrot.lane.b32.xlu1 %v1431_v41, %s1253_s30  ;;  %v604_v41 = vld [vmem:[#allocation3 + $0x88] sm:$0xff] }
  0x64   : > { %v619_v45 = vpack.c.bf16 %v604_v41, %v601_v40 }
  0x66   : > { %499 = vrot.lane.b32.xlu0 %v1435_v43, %s1254_s4 }
  0x67   : > { %501 = vrot.lane.b32.xlu1 %v1409_v35, %s1254_s4  ;;  %v1227_v35 = vld [vmem:[%s1646_s1 + $0x88] sm:$0xff]  }
  0x6a   : > { %331 = vrot.lane.b32.xlu0 %v1413_v37, %s1254_s4 }
  0x6b   : > { %333 = vrot.lane.b32.xlu1 %v1433_v42, %s1254_s4 }
  0x6e   : > { %547 = vrot.lane.b32.xlu0 %v1387_v31, %s1255_s26 }
  0x6f   : > { %549 = vrot.lane.b32.xlu1 %v1389_v32, %s1255_s26 }
  0x72   : > { %383 = vrot.lane.b32.xlu0 %v1421_v39, %s1255_s26  ;;  %v598_v39 = vld [vmem:[#allocation3 + $0x58] sm:$0xff] }
  0x73   : > { %385 = vrot.lane.b32.xlu1 %v1435_v43, %s1255_s26  ;;  %v616_v42 = vpack.c.bf16 %v598_v39, %v595_v38 }
  0x82   : > { %v275_v56 = vpop.permute.xlu1 %274 }
  0x83   : > { %v324_v57 = vpop.permute.xlu0 %323  ;;  %299 = vst.msk [vmem:[#allocation3] sm:$0xff] %vm298_vm2, %v275_v56 }
  0x84   : > { %348 = vst.msk [vmem:[#allocation3] sm:$0xff] %vm347_vm3, %v324_v57 }
  0x8c   : > { %v441_v58 = vpop.permute.xlu0 %440 }
  0x8d   : > { %v277_v59 = vpop.permute.xlu1 %276  ;;  %464 = vst.msk [vmem:[#allocation3 + $0x8] sm:$0xff] %vm298_vm2, %v441_v58 }
  0x8e   : > { %300 = vst.msk [vmem:[#allocation3 + $0x18] sm:$0xff] %vm298_vm2, %v277_v59 }
  0x90   : > { %v443_v60 = vpop.permute.xlu0 %442 }
  0x91   : > { %v494_v61 = vpop.permute.xlu1 %493  ;;  %465 = vst.msk [vmem:[#allocation3 + $0x20] sm:$0xff] %vm298_vm2, %v443_v60 }
  0x92   : > { %516 = vst.msk [vmem:[#allocation3 + $0x20] sm:$0xff] %vm347_vm3, %v494_v61 }
  0x94   : > { %v492_v62 = vpop.permute.xlu0 %491 }
  0x95   : > { %v326_v63 = vpop.permute.xlu1 %325  ;;  %515 = vst.msk [vmem:[#allocation3 + $0x8] sm:$0xff] %vm347_vm3, %v492_v62 }
  0x96   : > { %349 = vst.msk [vmem:[#allocation3 + $0x18] sm:$0xff] %vm347_vm3, %v326_v63 }
  0x98   : > { %v540_v0 = vpop.permute.xlu0 %539 }
  0x99   : > { %v542_v1 = vpop.permute.xlu1 %541  ;;  %563 = vst.msk [vmem:[#allocation3 + $0x8] sm:$0xff] %vm399_vm4, %v540_v0 }
  0x9a   : > { %564 = vst.msk [vmem:[#allocation3 + $0x20] sm:$0xff] %vm399_vm4, %v542_v1 }
  0x9c   : > { %v376_v2 = vpop.permute.xlu0 %375 }
  0x9d   : > { %v378_v3 = vpop.permute.xlu1 %377  ;;  %400 = vst.msk [vmem:[#allocation3] sm:$0xff] %vm399_vm4, %v376_v2 }
  0x9e   : > { %401 = vst.msk [vmem:[#allocation3 + $0x18] sm:$0xff] %vm399_vm4, %v378_v3 }
  0xa0   : > { %v453_v4 = vpop.permute.xlu0 %452  ;;  %v588_v6 = vld [vmem:[#allocation3 + $0x8] sm:$0xff] }
  0xa1   : > { %v455_v5 = vpop.permute.xlu1 %454  ;;  %v591_v7 = vld [vmem:[#allocation3 + $0x20] sm:$0xff]  ;;  %470 = vst.msk [vmem:[#allocation3 + $0x98] sm:$0xff] %vm298_vm2, %v453_v4 }
  0xa2   : > { %471 = vst.msk [vmem:[#allocation3 + $0xb0] sm:$0xff] %vm298_vm2, %v455_v5  ;;  %v612_v8 = vpack.c.bf16 %v591_v7, %v588_v6 }
  0xa4   : > { %818 = vmatprep.mubr.bf16.mxu0 %v612_v8  ;;  %v287_v9 = vpop.permute.xlu0 %286  ;;  %v587_v11 = vld [vmem:[#allocation3] sm:$0xff] }
  0xa5   : > { %v289_v10 = vpop.permute.xlu1 %288  ;;  %v590_v12 = vld [vmem:[#allocation3 + $0x18] sm:$0xff]  ;;  %305 = vst.msk [vmem:[#allocation3 + $0x90] sm:$0xff] %vm298_vm2, %v287_v9 }
  0xa6   : > { %306 = vst.msk [vmem:[#allocation3 + $0xa8] sm:$0xff] %vm298_vm2, %v289_v10  ;;  %v611_v13 = vpack.c.bf16 %v590_v12, %v587_v11 }
  0xa8   : > { %819 = vmatmul.mubr.bf16.vlgmr.msra.gmra.mrb[0].mxu0 %v611_v13  ;;  %v504_v14 = vpop.permute.xlu0 %503 }
  0xa9   : > { %v506_v15 = vpop.permute.xlu1 %505  ;;  %521 = vst.msk [vmem:[#allocation3 + $0x98] sm:$0xff] %vm347_vm3, %v504_v14 }
  0xaa   : > { %522 = vst.msk [vmem:[#allocation3 + $0xb0] sm:$0xff] %vm347_vm3, %v506_v15 }
  0xac   : > { %v336_v16 = vpop.permute.xlu0 %335 }
  0xad   : > { %v338_v17 = vpop.permute.xlu1 %337  ;;  %354 = vst.msk [vmem:[#allocation3 + $0x90] sm:$0xff] %vm347_vm3, %v336_v16 }
  0xae   : > { %355 = vst.msk [vmem:[#allocation3 + $0xa8] sm:$0xff] %vm347_vm3, %v338_v17 }
  0xb0   : > { %v552_v18 = vpop.permute.xlu0 %551 }
  0xb1   : > { %v554_v19 = vpop.permute.xlu1 %553  ;;  %569 = vst.msk [vmem:[#allocation3 + $0x98] sm:$0xff] %vm399_vm4, %v552_v18 }
  0xb2   : > { %570 = vst.msk [vmem:[#allocation3 + $0xb0] sm:$0xff] %vm399_vm4, %v554_v19 }
  0xb4   : > { %v388_v20 = vpop.permute.xlu0 %387 }
  0xb5   : > { %v390_v21 = vpop.permute.xlu1 %389  ;;  %406 = vst.msk [vmem:[#allocation3 + $0x90] sm:$0xff] %vm399_vm4, %v388_v20 }
  0xb6   : > { %407 = vst.msk [vmem:[#allocation3 + $0xa8] sm:$0xff] %vm399_vm4, %v390_v21 }
  0xb8   : > { %v445_v22 = vpop.permute.xlu0 %444  ;;  %v606_v24 = vld [vmem:[#allocation3 + $0x98] sm:$0xff] }
  0xb9   : > { %v447_v23 = vpop.permute.xlu1 %446  ;;  %v609_v25 = vld [vmem:[#allocation3 + $0xb0] sm:$0xff]  ;;  %466 = vst.msk [vmem:[#allocation3 + $0x38] sm:$0xff] %vm298_vm2, %v445_v22 }
  0xba   : > { %467 = vst.msk [vmem:[#allocation3 + $0x50] sm:$0xff] %vm298_vm2, %v447_v23  ;;  %v621_v26 = vpack.c.bf16 %v609_v25, %v606_v24  ;;  %v1081_v25 = vld [vmem:[%s1647_s2] ss:$0 sm:$0xff] }
  0xbc   : > { %842 = vmatprep.mubr.bf16.mxu1 %v621_v26  ;;  %v279_v29 = vpop.permute.xlu0 %278  ;;  %v605_v31 = vld [vmem:[#allocation3 + $0x90] sm:$0xff] }
  0xbd   : > { %v281_v30 = vpop.permute.xlu1 %280  ;;  %v608_v32 = vld [vmem:[#allocation3 + $0xa8] sm:$0xff]  ;;  %301 = vst.msk [vmem:[#allocation3 + $0x30] sm:$0xff] %vm298_vm2, %v279_v29 }
  0xbe   : > { %302 = vst.msk [vmem:[#allocation3 + $0x48] sm:$0xff] %vm298_vm2, %v281_v30  ;;  %v620_v34 = vpack.c.bf16 %v608_v32, %v605_v31 }
  0xc0   : > { %843 = vmatmul.mubr.bf16.vlgmr.msra.gmra.mrb[0].mxu1 %v620_v34  ;;  %v496_v36 = vpop.permute.xlu0 %495 }
  0xc1   : > { %1155 = vmatpush3.bf16.msra.mxu1 %v1496_v54  ;;  %v498_v37 = vpop.permute.xlu1 %497  ;;  %1158 = vmatprep.mubr.msk.bf16.mxu1 %vm199_vm0, %v613_v33  ;;  %517 = vst.msk [vmem:[#allocation3 + $0x38] sm:$0xff] %vm347_vm3, %v496_v36 }
  0xc2   : > { %518 = vst.msk [vmem:[#allocation3 + $0x50] sm:$0xff] %vm347_vm3, %v498_v37  ;;  %1156 = vmatprep.subr.bf16.mxu1 %v1227_v35 }
  0xc4   : > { %v328_v43 = vpop.permute.xlu0 %327 }
  0xc5   : > { %1157 = vmatpush3.bf16.msra.mxu1 %v1227_v35  ;;  %v330_v44 = vpop.permute.xlu1 %329  ;;  %350 = vst.msk [vmem:[#allocation3 + $0x30] sm:$0xff] %vm347_vm3, %v328_v43 }
  0xc6   : > { %351 = vst.msk [vmem:[#allocation3 + $0x48] sm:$0xff] %vm347_vm3, %v330_v44 }
  0xc8   : > { %1159 = vmatmul.mubr.msk.bf16.vlgmr.msra.gmra.mrb[4].mxu1 %vm199_vm0, %v616_v42  ;;  %v544_v46 = vpop.permute.xlu0 %543 }
  0xc9   : > { %v546_v47 = vpop.permute.xlu1 %545  ;;  %1162 = vmatprep.mubr.msk.bf16.mxu1 %vm199_vm0, %v619_v45  ;;  %565 = vst.msk [vmem:[#allocation3 + $0x38] sm:$0xff] %vm399_vm4, %v544_v46 }
  0xca   : > { %566 = vst.msk [vmem:[#allocation3 + $0x50] sm:$0xff] %vm399_vm4, %v546_v47 }
  0xcc   : > { %v380_v51 = vpop.permute.xlu0 %379 }
  0xcd   : > { %v382_v52 = vpop.permute.xlu1 %381  ;;  %402 = vst.msk [vmem:[#allocation3 + $0x30] sm:$0xff] %vm399_vm4, %v380_v51 }
  0xce   : > { %403 = vst.msk [vmem:[#allocation3 + $0x48] sm:$0xff] %vm399_vm4, %v382_v52 }
  0xd0   : > { %1163 = vmatmul.mubr.msk.bf16.gmra.mrb[8].mxu1 %vm199_vm0, %v622_v50  ;;  %v449_v53 = vpop.permute.xlu0 %448  ;;  %v594_v55 = vld [vmem:[#allocation3 + $0x38] sm:$0xff] }
  0xd1   : > { %v451_v54 = vpop.permute.xlu1 %450  ;;  %v597_v56 = vld [vmem:[#allocation3 + $0x50] sm:$0xff]  ;;  %468 = vst.msk [vmem:[#allocation3 + $0x68] sm:$0xff] %vm298_vm2, %v449_v53 }
  0xd2   : > { %469 = vst.msk [vmem:[#allocation3 + $0x80] sm:$0xff] %vm298_vm2, %v451_v54  ;;  %v615_v57 = vpack.c.bf16 %v597_v56, %v594_v55 }
  0xd4   : > { %826 = vmatprep.mubr.bf16.mxu0 %v615_v57  ;;  %v283_v58 = vpop.permute.xlu0 %282  ;;  %v593_v60 = vld [vmem:[#allocation3 + $0x30] sm:$0xff] }
  0xd5   : > { %v285_v59 = vpop.permute.xlu1 %284  ;;  %v596_v61 = vld [vmem:[#allocation3 + $0x48] sm:$0xff]  ;;  %303 = vst.msk [vmem:[#allocation3 + $0x60] sm:$0xff] %vm298_vm2, %v283_v58 }
  0xd6   : > { %304 = vst.msk [vmem:[#allocation3 + $0x78] sm:$0xff] %vm298_vm2, %v285_v59  ;;  %v614_v62 = vpack.c.bf16 %v596_v61, %v593_v60 }
  0xd8   : > { %827 = vmatmul.mubr.bf16.gmra.mrb[4].mxu0 %v614_v62  ;;  %v500_v63 = vpop.permute.xlu0 %499 }
  0xd9   : > { %v502_v0 = vpop.permute.xlu1 %501  ;;  %519 = vst.msk [vmem:[#allocation3 + $0x68] sm:$0xff] %vm347_vm3, %v500_v63 }
  0xda   : > { %520 = vst.msk [vmem:[#allocation3 + $0x80] sm:$0xff] %vm347_vm3, %v502_v0 }
  0xdc   : > { %v332_v1 = vpop.permute.xlu0 %331 }
  0xdd   : > { %v334_v2 = vpop.permute.xlu1 %333  ;;  %352 = vst.msk [vmem:[#allocation3 + $0x60] sm:$0xff] %vm347_vm3, %v332_v1 }
  0xde   : > { %353 = vst.msk [vmem:[#allocation3 + $0x78] sm:$0xff] %vm347_vm3, %v334_v2 }
  0xe0   : > { %v548_v3 = vpop.permute.xlu0 %547 }
  0xe1   : > { %v550_v4 = vpop.permute.xlu1 %549  ;;  %567 = vst.msk [vmem:[#allocation3 + $0x68] sm:$0xff] %vm399_vm4, %v548_v3 }
  0xe2   : > { %568 = vst.msk [vmem:[#allocation3 + $0x80] sm:$0xff] %vm399_vm4, %v550_v4 }
  0xe4   : > { %v384_v5 = vpop.permute.xlu0 %383 }
  0xe5   : > { %v386_v6 = vpop.permute.xlu1 %385  ;;  %404 = vst.msk [vmem:[#allocation3 + $0x60] sm:$0xff] %vm399_vm4, %v384_v5 }
  0xe6   : > { %405 = vst.msk [vmem:[#allocation3 + $0x78] sm:$0xff] %vm399_vm4, %v386_v6 }
  0xe8   : > { %v600_v7 = vld [vmem:[#allocation3 + $0x68] sm:$0xff] }
  0xe9   : > { %v603_v8 = vld [vmem:[#allocation3 + $0x80] sm:$0xff] }
  0xea   : > { %v618_v9 = vpack.c.bf16 %v603_v8, %v600_v7 }
  0xec   : > { %834 = vmatprep.mubr.bf16.mxu0 %v618_v9  ;;  %v599_v10 = vld [vmem:[#allocation3 + $0x60] sm:$0xff] }
  0xed   : > { %v602_v11 = vld [vmem:[#allocation3 + $0x78] sm:$0xff] }
  0xee   : > { %v617_v12 = vpack.c.bf16 %v602_v11, %v599_v10 }
  0xf0   : > { %835 = vmatmul.mubr.bf16.gmra.mrb[8].mxu0 %v617_v12 }
 0x17b   : > { %v1124_v13 = vpop.f32.mrb[0].mxu0 }
 0x17c   : > { %v1125_v14 = vpop.f32.mrb[1].mxu0 }
 0x17d   : > { %v1126_v15 = vadd.f32 %v1125_v14, %v1124_v13  ;;  %v1127_v16 = vpop.f32.mrb[2].mxu0 }
 0x17e   : > { %v1128_v17 = vpop.f32.mrb[3].mxu0 }
 0x17f   : > { %v1129_v18 = vadd.f32 %v1128_v17, %v1127_v16  ;;  %v821_v27 = vadd.f32 %v1126_v15, %v1081_v25 }
 0x181   : > { %v824_v31 = vadd.f32 %v1129_v18, %v1081_v25 }
 0x193   : > { %v1142_v19 = vpop.f32.mrb[0].mxu1 }
 0x194   : > { %v1143_v20 = vpop.f32.mrb[1].mxu1 }
 0x195   : > { %v1144_v21 = vadd.f32 %v1143_v20, %v1142_v19  ;;  %v1145_v22 = vpop.f32.mrb[2].mxu1 }
 0x196   : > { %v1146_v23 = vpop.f32.mrb[3].mxu1 }
 0x197   : > { %v1147_v24 = vadd.f32 %v1146_v23, %v1145_v22  ;;  %v845_v36 = vadd.f32 %v1144_v21, %v1081_v25 }
 0x199   : > { %v848_v40 = vadd.f32 %v1147_v24, %v1081_v25 }
 0x19b   : > { %v1160_v26 = vpop.f32.mrb[4].mxu1 }
 0x19c   : > { %v885_v28 = vpop.f32.mrb[5].mxu1 }
 0x19d   : > { %v886_v29 = vadd.f32 %v885_v28, %v821_v27  ;;  %v1161_v30 = vpop.f32.mrb[6].mxu1 }
 0x19e   : > { %v888_v32 = vpop.f32.mrb[7].mxu1 }
 0x19f   : > { %v916_v33 = vmax.f32 %v886_v29, 0.0  ;;  %v889_v34 = vadd.f32 %v888_v32, %v824_v31 }
 0x1a1   : > { %925 = vst.msk [vmem:[%s1618_s18] sm:$0xff] %vm924_vm5, %v916_v33  ;;  %v917_v35 = vmax.f32 %v889_v34, 0.0 }
 0x1a3   : > { %926 = vst.msk [vmem:[%s1618_s18 + $0x8] sm:$0xff] %vm924_vm5, %v917_v35  ;;  %v1164_v37 = vpop.f32.mrb[8].mxu1 }
 0x1a4   : > { %v910_v38 = vadd.f32 %v1164_v37, %v845_v36  ;;  %v901_v39 = vpop.f32.mrb[9].mxu1 }
 0x1a5   : > { %v1165_v41 = vpop.f32.mrb[10].mxu1 }
 0x1a6   : > { %v922_v42 = vmax.f32 %v910_v38, 0.0  ;;  %v913_v43 = vadd.f32 %v1165_v41, %v848_v40  ;;  %v904_v44 = vpop.f32.mrb[11].mxu1 }
 0x1a8   : > { %931 = vst.msk [vmem:[%s1618_s18 + $0x30] sm:$0xff] %vm924_vm5, %v922_v42  ;;  %v923_v45 = vmax.f32 %v913_v43, 0.0 }
 0x1aa   : > { %932 = vst.msk [vmem:[%s1618_s18 + $0x38] sm:$0xff] %vm924_vm5, %v923_v45 }
 0x1ab   : > { %v1130_v46 = vpop.f32.mrb[4].mxu0 }
 0x1ac   : > { %v1131_v47 = vpop.f32.mrb[5].mxu0 }
 0x1ad   : > { %v1132_v48 = vadd.f32 %v1131_v47, %v1130_v46  ;;  %v1133_v49 = vpop.f32.mrb[6].mxu0 }
 0x1ae   : > { %v1134_v50 = vpop.f32.mrb[7].mxu0 }
 0x1af   : > { %v829_v51 = vadd.f32 %v1132_v48, %v1081_v25  ;;  %v1135_v52 = vadd.f32 %v1134_v50, %v1133_v49 }
 0x1b1   : > { %v894_v53 = vadd.f32 %v1160_v26, %v829_v51  ;;  %v832_v54 = vadd.f32 %v1135_v52, %v1081_v25 }
 0x1b3   : > { %v918_v55 = vmax.f32 %v894_v53, 0.0  ;;  %v897_v56 = vadd.f32 %v1161_v30, %v832_v54 }
 0x1b5   : > { %927 = vst.msk [vmem:[%s1618_s18 + $0x10] sm:$0xff] %vm924_vm5, %v918_v55  ;;  %v919_v57 = vmax.f32 %v897_v56, 0.0 }
 0x1b7   : > { %928 = vst.msk [vmem:[%s1618_s18 + $0x18] sm:$0xff] %vm924_vm5, %v919_v57 }
 0x1c3   : > { %v1136_v58 = vpop.f32.mrb[8].mxu0 }
 0x1c4   : > { %v1137_v59 = vpop.f32.mrb[9].mxu0 }
 0x1c5   : > { %v1138_v60 = vadd.f32 %v1137_v59, %v1136_v58  ;;  %v1139_v61 = vpop.f32.mrb[10].mxu0 }
 0x1c6   : > { %v1140_v62 = vpop.f32.mrb[11].mxu0 }
 0x1c7   : > { %v837_v63 = vadd.f32 %v1138_v60, %v1081_v25  ;;  %v1141_v0 = vadd.f32 %v1140_v62, %v1139_v61 }
 0x1c9   : > { %v902_v1 = vadd.f32 %v901_v39, %v837_v63  ;;  %v840_v2 = vadd.f32 %v1141_v0, %v1081_v25 }
 0x1cb   : > { %v920_v3 = vmax.f32 %v902_v1, 0.0  ;;  %v905_v4 = vadd.f32 %v904_v44, %v840_v2 }
 0x1cd   : > { %929 = vst.msk [vmem:[%s1618_s18 + $0x20] sm:$0xff] %vm924_vm5, %v920_v3  ;;  %v921_v5 = vmax.f32 %v905_v4, 0.0 }
 0x1cf   : > { %930 = vst.msk [vmem:[%s1618_s18 + $0x28] sm:$0xff] %vm924_vm5, %v921_v5 }
 0x1d0 PF: > { %s13_s14 = sadd.s32 1, %s1250_s14   ;;  %s1649_s12 = smov %s1246_s13 }
 0x1d1   : > { %p10_p5 = scmp.ge.s32.totalorder %s13_s14, 4   ;;  %s1650_s13 = smov %s1652_s15 }
 0x1d3   :  { %12 = sbr.rel (!%p10_p5) target bundleno = 2 (0x2), region = 70 }

// kernel: unet_forward.14
= control target key start
LH: loop header
LB: loop body
LE: loop exit
PB: predicated region body
PF: predicated region fallthrough
CT: control target
= control target key end

     0   :  { %s1189_s12 = smov 0   ;;  %s1191_s13 = smov 0   ;;  %s1407_s0 = inlined_call_operand.vmem [shape: f32[2,4,4,64], index: 0, kind: input, shape index: {}]   ;;  %s1408_s1 = inlined_call_operand.vmem [shape: bf16[576,128], index: 1, kind: input, shape index: {}]   ;;  %s1409_s2 = inlined_call_operand.vmem [shape: f32[1,128], index: 2, kind: input, shape index: {}]   ;;  %s1410_s3 = inlined_call_operand.vmem [shape: f32[2,16,128], index: 3, kind: output, shape index: {}]  }
   0x1   :  { %s1193_s14 = smov 0  }
   0x2 LB: > { %s25_s15 = sadd.s32 1, %s1160_s13  ;;  %p933_p0 = scmp.ge.s32.totalorder %s1164_s14, 1  ;;  %s1164_s14 = sphi %s1193_s14, %s13_s14   ;;  %s1160_s13 = sphi %s1191_s13, %s1412_s13   ;;  %s1156_s12 = sphi %s1189_s12, %s1411_s12  }
   0x3   : > { %p27_p1 = scmp.ge.s32.totalorder %s25_s15, 2  ;;  %p151_p2 = scmp.lt.s32.totalorder %s1164_s14, 3 }
   0x5   : > { %s1414_s15 = smov (%p27_p1, %s25_s15), 0  ;;  %p152_p3 = pnand %p933_p0, %p151_p2 }
   0x6   : > { %vm199_vm0 = vcmask (!%p152_p3), 521216   ;;  %p179_p4 = scmp.lt.s32.totalorder (!%p152_p3), %s1156_s12, 1  ;;  %v1092_v0 = vld [vmem:[%s1408_s1 + $0x40] sm:$0xff] (!%p152_p3)   ;;  %v1166_v1 = vmov (!%p152_p3), 0.0   ;;  %vm211_vm1 = vcmask (!%p152_p3), 519168   ;;  %v1094_v3 = vld [vmem:[%s1408_s1 + $0x48] sm:$0xff] (!%p152_p3)  }
   0x7   : > { %155 = sbr.rel (%p152_p3) target bundleno = 404 (0x194), region = 32  ;;  %200 = vst.msk [vmem:[#allocation2] sm:$0x3f] (!%p152_p3), %vm199_vm0, %v1166_v1  ;;  %201 = vst.msk [vmem:[#allocation2 + $0x8] sm:$0x3f] (!%p152_p3), %vm199_vm0, %v1166_v1  ;;  %1004 = vmatprep.subr.bf16.mxu0 (!%p152_p3), %v1092_v0  ;;  %v1093_v2 = vld [vmem:[%s1408_s1] sm:$0xff] (!%p152_p3)  }
   0x8   : > { %202 = vst.msk [vmem:[#allocation2 + $0x10] sm:$0x3f] (!%p152_p3), %vm199_vm0, %v1166_v1  ;;  %203 = vst.msk [vmem:[#allocation2 + $0x18] sm:$0x3f] (!%p152_p3), %vm199_vm0, %v1166_v1  ;;  %1005 = vmatpush3.bf16.msra.mxu0 (!%p152_p3), %v1093_v2  ;;  %v1095_v4 = vld [vmem:[%s1408_s1 + $0x8] sm:$0xff] (!%p152_p3)   ;;  %v1096_v5 = vld [vmem:[%s1408_s1 + $0x50] sm:$0xff] (!%p152_p3)  }
   0x9   : > { %204 = vst.msk [vmem:[#allocation2 + $0x20] sm:$0x3f] (!%p152_p3), %vm199_vm0, %v1166_v1  ;;  %205 = vst.msk [vmem:[#allocation2 + $0x28] sm:$0x3f] (!%p152_p3), %vm199_vm0, %v1166_v1  ;;  %1006 = vmatprep.subr.bf16.mxu0 (!%p152_p3), %v1094_v3  ;;  %v1097_v12 = vld [vmem:[%s1408_s1 + $0x10] sm:$0xff] (!%p152_p3)   ;;  %s1167_s5 = smov (!%p152_p3), 64  }
   0xa   : > { %v1098_v14 = vld [vmem:[%s1408_s1 + $0x58] sm:$0xff] (!%p152_p3)   ;;  %v1100_v16 = vld [vmem:[%s1408_s1 + $0x60] sm:$0xff] (!%p152_p3)   ;;  %v1104_v35 = vld [vmem:[%s1408_s1 + $0x68] sm:$0xff] (!%p152_p3)   ;;  %vm248_vm2 = vcmask (!%p152_p3), 1043968   ;;  %vm1168_vm3 = vmmov (!%p152_p3), 0   ;;  %vm707_vm4 = vcmask (!%p152_p3), 523264  }
   0xb   : > { %v1099_v15 = vld [vmem:[%s1408_s1 + $0x18] sm:$0xff] (!%p152_p3)   ;;  %v1101_v17 = vld [vmem:[%s1408_s1 + $0xc0] sm:$0xff] (!%p152_p3)   ;;  %v1105_v37 = vld [vmem:[%s1408_s1 + $0xc8] sm:$0xff] (!%p152_p3)  }
   0xc   : > { %1007 = vmatpush3.bf16.msra.mxu0 (!%p152_p3), %v1095_v4  ;;  %1026 = vmatprep.subr.bf16.mxu1 (!%p152_p3), %v1101_v17  ;;  %v1102_v29 = vld [vmem:[%s1408_s1 + $0x20] sm:$0xff] (!%p152_p3)   ;;  %v1106_v38 = vld [vmem:[%s1408_s1 + $0x28] sm:$0xff] (!%p152_p3)   ;;  %v1108_v44 = vld [vmem:[%s1408_s1 + $0x70] sm:$0xff] (!%p152_p3)  }
   0xd   : > { %1008 = vmatprep.subr.bf16.mxu0 (!%p152_p3), %v1096_v5  ;;  %v1103_v30 = vld [vmem:[%s1408_s1 + $0x80] sm:$0xff] (!%p152_p3)   ;;  %v1107_v41 = vld [vmem:[%s1408_s1 + $0x88] sm:$0xff] (!%p152_p3)   ;;  %v1109_v45 = vld [vmem:[%s1408_s1 + $0xd0] sm:$0xff] (!%p152_p3)  }
   0xe   : > { %s1416_s12 = smov (!%p179_p4, %s1156_s12), 1  ;;  %v228_v10 = vld [vmem:[#allocation2 + $0x1] sm:$0xf]  ;;  %1027 = vmatpush3.bf16.msra.mxu1 %v1103_v30  ;;  %v1110_v48 = vld [vmem:[%s1408_s1 + $0x30] sm:$0xff]   ;;  %v1112_v51 = vld [vmem:[%s1408_s1 + $0x78] sm:$0xff]  }
   0xf   : > { %s1002_s22 = sshll.u32 %s1416_s12, 4  ;;  %v219_v11 = vld [vmem:[#allocation2] sm:$0xf]  ;;  %236 = vrot.lane.b32.xlu0 %v228_v10, %s1167_s5  ;;  %1028 = vmatprep.subr.bf16.mxu1 %v1105_v37  ;;  %v1111_v49 = vld [vmem:[%s1408_s1 + $0x90] sm:$0xff]   ;;  %v1113_v52 = vld [vmem:[%s1408_s1 + $0xd8] sm:$0xff]  }
  0x10   : > { %s183_s27 = scalar_lea.vmem %s1407_s0, %s1002_s22  ;;  %224 = vst.msk [vmem:[#allocation3] sm:$0xf] %vm211_vm1, %v219_v11  ;;  %v253_v13 = vld [vmem:[#allocation2 + $0x2] sm:$0xf]  ;;  %1009 = vmatpush3.bf16.msra.mxu0 %v1097_v12  ;;  %v1114_v55 = vld [vmem:[%s1408_s1 + $0x38] sm:$0xff]   ;;  %v1125_v0 = vld [vmem:[%s1408_s1 + $0xe8] sm:$0xff]   ;;  %s192_s6 = scalar_lea.vmem %s1410_s3, %s1002_s22 }
  0x11   : > { %v207_v6 = vld [vmem:[%s183_s27 + $0x4] sm:$0xf]  ;;  %v206_v7 = vld [vmem:[%s183_s27] sm:$0xf]  ;;  %v208_v8 = vld [vmem:[%s183_s27 + $0x8] sm:$0xf]  ;;  %1010 = vmatprep.subr.bf16.mxu0 %v1098_v14 }
  0x12   : > { %213 = vst.msk [vmem:[#allocation2 + $0x11] sm:$0xf] %vm211_vm1, %v207_v6  ;;  %212 = vst.msk [vmem:[#allocation2 + $0x9] sm:$0xf] %vm211_vm1, %v206_v7  ;;  %v209_v9 = vld [vmem:[%s183_s27 + $0xc] sm:$0xf]  ;;  %1029 = vmatpush3.bf16.msra.mxu1 %v1107_v41 }
  0x13   : > { %214 = vst.msk [vmem:[#allocation2 + $0x19] sm:$0xf] %vm211_vm1, %v208_v8  ;;  %215 = vst.msk [vmem:[#allocation2 + $0x21] sm:$0xf] %vm211_vm1, %v209_v9  ;;  %1030 = vmatprep.subr.bf16.mxu1 %v1109_v45  ;;  %v1115_v56 = vld [vmem:[%s1408_s1 + $0x98] sm:$0xff]   ;;  %v1122_v59 = vld [vmem:[%s1408_s1 + $0xe0] sm:$0xff]  }
  0x14   : > { %257 = vst.msk [vmem:[#allocation3 + $0x4] sm:$0xf] %vm211_vm1, %v253_v13  ;;  %1011 = vmatpush3.bf16.msra.mxu0 %v1099_v15  ;;  %v1123_v60 = vld [vmem:[%s1408_s1 + $0xa0] sm:$0xff]   ;;  %v953_v61 = vld [vmem:[#allocation2 + $0x28] sm:$0xf]  ;;  %v1128_v3 = vld [vmem:[%s1408_s1 + $0xf0] sm:$0xff]  }
  0x15   : > { %1012 = vmatprep.subr.bf16.mxu0 %v1100_v16  ;;  %v957_v62 = vld [vmem:[#allocation2 + $0x29] sm:$0xf]  ;;  %330 = vst.msk [vmem:[#allocation3 + $0x48] sm:$0xf] %vm211_vm1, %v953_v61  ;;  %v1129_v4 = vld [vmem:[%s1408_s1 + $0xb0] sm:$0xff]   ;;  %v1131_v5 = vld [vmem:[%s1408_s1 + $0xf8] sm:$0xff]  }
  0x16   : > { %1031 = vmatpush3.bf16.msra.mxu1 %v1111_v49  ;;  %v1126_v2 = vld [vmem:[%s1408_s1 + $0xa8] sm:$0xff]   ;;  %v1132_v6 = vld [vmem:[%s1408_s1 + $0xb8] sm:$0xff]  }
  0x17   : > { %1032 = vmatprep.subr.bf16.mxu1 %v1113_v52  ;;  %v961_v9 = vld [vmem:[#allocation2 + $0x2a] sm:$0xf]  ;;  %v1139_v37 = vld [vmem:[%s1408_s1 + $0x118] sm:$0xff]  }
  0x18   : > { %1013 = vmatpush3.bf16.msra.mxu0 %v1102_v29  ;;  %362 = vst.msk [vmem:[#allocation3 + $0x4c] sm:$0xf] %vm211_vm1, %v961_v9  ;;  %v1124_v29 = vld [vmem:[%s1408_s1 + $0x100] sm:$0xff]  }
  0x19   : > { %v230_v18 = vld [vmem:[#allocation2 + $0x11] sm:$0xf]  ;;  %v229_v19 = vld [vmem:[#allocation2 + $0x9] sm:$0xf]  ;;  %1014 = vmatprep.subr.bf16.mxu0 %v1104_v35 }
  0x1a   : > { %240 = vrot.lane.b32.xlu1 %v230_v18, %s1167_s5  ;;  %238 = vrot.lane.b32.xlu0 %v229_v19, %s1167_s5  ;;  %v231_v20 = vld [vmem:[#allocation2 + $0x19] sm:$0xf]  ;;  %v938_v21 = vld [vmem:[#allocation2 + $0x8] sm:$0xf]  ;;  %v939_v22 = vld [vmem:[#allocation2 + $0x10] sm:$0xf] }
  0x1b   : > { %v940_v23 = vld [vmem:[#allocation2 + $0x18] sm:$0xf]  ;;  %v221_v24 = vld [vmem:[#allocation2 + $0x10] sm:$0xf]  ;;  %v220_v25 = vld [vmem:[#allocation2 + $0x8] sm:$0xf]  ;;  %1033 = vmatpush3.bf16.msra.mxu1 %v1115_v56 }
  0x1c   : > { %226 = vst.msk [vmem:[#allocation3 + $0x28] sm:$0xf] %vm211_vm1, %v221_v24  ;;  %v222_v26 = vld [vmem:[#allocation2 + $0x18] sm:$0xf]  ;;  %v254_v27 = vld [vmem:[#allocation2 + $0xa] sm:$0xf]  ;;  %1015 = vmatpush3.bf16.msra.mxu0 %v1106_v38  ;;  %1034 = vmatprep.subr.bf16.mxu1 %v1122_v59 }
  0x1d   : > { %225 = vst.msk [vmem:[#allocation3 + $0x14] sm:$0xf] %vm211_vm1, %v220_v25  ;;  %227 = vst.msk [vmem:[#allocation3 + $0x3c] sm:$0xf] %vm211_vm1, %v222_v26  ;;  %v255_v28 = vld [vmem:[#allocation2 + $0x12] sm:$0xf]  ;;  %1016 = vmatprep.subr.bf16.mxu0 %v1108_v44 }
  0x1e   : > { %242 = vrot.lane.b32.xlu1 %v231_v20, %s1167_s5  ;;  %272 = vrot.lane.b32.xlu0 %v938_v21, %s1167_s5  ;;  %258 = vst.msk [vmem:[#allocation3 + $0x18] sm:$0xf] %vm211_vm1, %v254_v27  ;;  %259 = vst.msk [vmem:[#allocation3 + $0x2c] sm:$0xf] %vm211_vm1, %v255_v28  ;;  %v256_v31 = vld [vmem:[#allocation2 + $0x1a] sm:$0xf] }
  0x1f   : > { %v941_v32 = vld [vmem:[#allocation2 + $0x20] sm:$0xf]  ;;  %v946_v33 = vld [vmem:[#allocation2 + $0xa] sm:$0xf]  ;;  %260 = vst.msk [vmem:[#allocation3 + $0x40] sm:$0xf] %vm211_vm1, %v256_v31  ;;  %1035 = vmatpush3.bf16.msra.mxu1 %v1123_v60 }
  0x20   : > { %v942_v34 = vld [vmem:[#allocation2 + $0x9] sm:$0xf]  ;;  %v943_v36 = vld [vmem:[#allocation2 + $0x11] sm:$0xf]  ;;  %v948_v40 = vld [vmem:[#allocation2 + $0x1a] sm:$0xf]  ;;  %1017 = vmatpush3.bf16.msra.mxu0 %v1110_v48  ;;  %1036 = vmatprep.subr.bf16.mxu1 %v1125_v0 }
  0x21   : > { %292 = vst.msk [vmem:[#allocation3 + $0x8] sm:$0xf] %vm211_vm1, %v942_v34  ;;  %293 = vst.msk [vmem:[#allocation3 + $0x1c] sm:$0xf] %vm211_vm1, %v943_v36  ;;  %v947_v39 = vld [vmem:[#allocation2 + $0x12] sm:$0xf]  ;;  %1018 = vmatprep.subr.bf16.mxu0 %v1112_v51 }
  0x22   : > { %274 = vrot.lane.b32.xlu1 %v939_v22, %s1167_s5  ;;  %276 = vrot.lane.b32.xlu0 %v940_v23, %s1167_s5  ;;  %v944_v42 = vld [vmem:[#allocation2 + $0x19] sm:$0xf]  ;;  %v945_v43 = vld [vmem:[#allocation2 + $0x21] sm:$0xf]  ;;  %v954_v47 = vld [vmem:[#allocation2 + $0x11] sm:$0xf] }
  0x23   : > { %294 = vst.msk [vmem:[#allocation3 + $0x30] sm:$0xf] %vm211_vm1, %v944_v42  ;;  %295 = vst.msk [vmem:[#allocation3 + $0x44] sm:$0xf] %vm211_vm1, %v945_v43  ;;  %v949_v46 = vld [vmem:[#allocation2 + $0x22] sm:$0xf]  ;;  %1037 = vmatpush3.bf16.msra.mxu1 %v1126_v2 }
  0x24   : > { %v950_v50 = vld [vmem:[#allocation2 + $0x10] sm:$0xf]  ;;  %v955_v53 = vld [vmem:[#allocation2 + $0x19] sm:$0xf]  ;;  %v956_v54 = vld [vmem:[#allocation2 + $0x21] sm:$0xf]  ;;  %1019 = vmatpush3.bf16.msra.mxu0 %v1114_v55  ;;  %1038 = vmatprep.subr.bf16.mxu1 %v1128_v3 }
  0x25   : > { %327 = vst.msk [vmem:[#allocation3 + $0xc] sm:$0xf] %vm211_vm1, %v950_v50  ;;  %v951_v57 = vld [vmem:[#allocation2 + $0x18] sm:$0xf]  ;;  %v952_v58 = vld [vmem:[#allocation2 + $0x20] sm:$0xf]  ;;  %1053 = vmatprep.subr.bf16.mxu0 %v1166_v1 }
  0x26   : > { %278 = vrot.lane.b32.xlu1 %v941_v32, %s1167_s5  ;;  %304 = vrot.lane.b32.xlu0 %v946_v33, %s1167_s5  ;;  %328 = vst.msk [vmem:[#allocation3 + $0x20] sm:$0xf] %vm211_vm1, %v951_v57  ;;  %329 = vst.msk [vmem:[#allocation3 + $0x34] sm:$0xf] %vm211_vm1, %v952_v58  ;;  %v958_v63 = vld [vmem:[#allocation2 + $0x12] sm:$0xf] }
  0x27   : > { %359 = vst.msk [vmem:[#allocation3 + $0x10] sm:$0xf] %vm211_vm1, %v958_v63  ;;  %1039 = vmatpush3.bf16.msra.mxu1 %v1129_v4  ;;  %v959_v7 = vld [vmem:[#allocation2 + $0x1a] sm:$0xf]  ;;  %v960_v8 = vld [vmem:[#allocation2 + $0x22] sm:$0xf] }
  0x28   : > { %1040 = vmatprep.subr.bf16.mxu1 %v1131_v5  ;;  %360 = vst.msk [vmem:[#allocation3 + $0x24] sm:$0xf] %vm211_vm1, %v959_v7  ;;  %361 = vst.msk [vmem:[#allocation3 + $0x38] sm:$0xf] %vm211_vm1, %v960_v8  ;;  %v1127_v32 = vld [vmem:[%s1408_s1 + $0x108] sm:$0xff]   ;;  %v1130_v34 = vld [vmem:[%s1408_s1 + $0x110] sm:$0xff]  }
  0x2a   : > { %306 = vrot.lane.b32.xlu1 %v947_v39, %s1167_s5  ;;  %308 = vrot.lane.b32.xlu0 %v948_v40, %s1167_s5 }
  0x2b   : > { %1041 = vmatpush3.bf16.msra.mxu1 %v1132_v6 }
  0x2e   : > { %310 = vrot.lane.b32.xlu1 %v949_v46, %s1167_s5  ;;  %339 = vrot.lane.b32.xlu0 %v954_v47, %s1167_s5 }
  0x2f   : > { %v1140_v35 = vld [vmem:[#allocation3 + $0x10] ss:$20 sps:$4 sm:$0xff]   ;;  %v1141_v36 = vld [vmem:[#allocation3 + $0x38] ss:$20 sps:$4 sm:$0xff]  }
  0x30   : > { %v411_v42 = vpack.c.bf16 %v1141_v36, %v1140_v35 }
  0x32   : > { %341 = vrot.lane.b32.xlu1 %v955_v53, %s1167_s5  ;;  %343 = vrot.lane.b32.xlu0 %v956_v54, %s1167_s5 }
  0x36   : > { %345 = vrot.lane.b32.xlu1 %v957_v62, %s1167_s5 }
  0x81   : > { %v237_v10 = vpop.permute.xlu0 %236 }
  0x82   : > { %249 = vst.msk [vmem:[#allocation3] sm:$0xf] %vm248_vm2, %v237_v10 }
  0x8c   : > { %v241_v11 = vpop.permute.xlu1 %240  ;;  %v239_v12 = vpop.permute.xlu0 %238 }
  0x8d   : > { %251 = vst.msk [vmem:[#allocation3 + $0x28] sm:$0xf] %vm248_vm2, %v241_v11  ;;  %250 = vst.msk [vmem:[#allocation3 + $0x14] sm:$0xf] %vm248_vm2, %v239_v12 }
  0x90   : > { %v243_v13 = vpop.permute.xlu1 %242  ;;  %v273_v14 = vpop.permute.xlu0 %272 }
  0x91   : > { %252 = vst.msk [vmem:[#allocation3 + $0x3c] sm:$0xf] %vm248_vm2, %v243_v13  ;;  %284 = vst.msk [vmem:[#allocation3 + $0x4] sm:$0xf] %vm248_vm2, %v273_v14 }
  0x94   : > { %v275_v15 = vpop.permute.xlu1 %274  ;;  %v277_v16 = vpop.permute.xlu0 %276  ;;  %v1116_v21 = vld [vmem:[#allocation3] ss:$20 sps:$4 sm:$0xff]  }
  0x95   : > { %285 = vst.msk [vmem:[#allocation3 + $0x18] sm:$0xf] %vm248_vm2, %v275_v15  ;;  %286 = vst.msk [vmem:[#allocation3 + $0x2c] sm:$0xf] %vm248_vm2, %v277_v16 }
  0x98   : > { %v279_v17 = vpop.permute.xlu1 %278  ;;  %v305_v18 = vpop.permute.xlu0 %304  ;;  %v1119_v25 = vld [vmem:[#allocation3 + $0x28] ss:$20 sps:$4 sm:$0xff]  }
  0x99   : > { %287 = vst.msk [vmem:[#allocation3 + $0x40] sm:$0xf] %vm248_vm2, %v279_v17  ;;  %316 = vst.msk [vmem:[#allocation3 + $0x8] sm:$0xf] %vm248_vm2, %v305_v18  ;;  %v407_v28 = vpack.c.bf16 %v1119_v25, %v1116_v21 }
  0x9c   : > { %v307_v19 = vpop.permute.xlu1 %306  ;;  %v309_v20 = vpop.permute.xlu0 %308  ;;  %v1118_v22 = vld [vmem:[#allocation3 + $0x4] ss:$20 sps:$4 sm:$0xff]  }
  0x9d   : > { %317 = vst.msk [vmem:[#allocation3 + $0x1c] sm:$0xf] %vm248_vm2, %v307_v19  ;;  %318 = vst.msk [vmem:[#allocation3 + $0x30] sm:$0xf] %vm248_vm2, %v309_v20 }
  0xa0   : > { %v311_v23 = vpop.permute.xlu1 %310  ;;  %v340_v24 = vpop.permute.xlu0 %339  ;;  %v1121_v26 = vld [vmem:[#allocation3 + $0x2c] ss:$20 sps:$4 sm:$0xff]  }
  0xa1   : > { %319 = vst.msk [vmem:[#allocation3 + $0x44] sm:$0xf] %vm248_vm2, %v311_v23  ;;  %351 = vst.msk [vmem:[#allocation3 + $0xc] sm:$0xf] %vm248_vm2, %v340_v24  ;;  %v408_v27 = vpack.c.bf16 %v1121_v26, %v1118_v22 }
  0xa3   : > { %743 = vmatprep.mubr.bf16.mxu0 %v408_v27 }
  0xa4   : > { %v342_v30 = vpop.permute.xlu1 %341  ;;  %v344_v31 = vpop.permute.xlu0 %343  ;;  %744 = vmatmul.mubr.bf16.vlgmr.msra.gmra.mrb[0].mxu0 %v407_v28  ;;  %v1133_v38 = vld [vmem:[#allocation3 + $0x8] ss:$20 sps:$4 sm:$0xff]  }
  0xa5   : > { %352 = vst.msk [vmem:[#allocation3 + $0x20] sm:$0xf] %vm248_vm2, %v342_v30  ;;  %353 = vst.msk [vmem:[#allocation3 + $0x34] sm:$0xf] %vm248_vm2, %v344_v31  ;;  %1054 = vmatpush3.bf16.msra.mxu0 %v1124_v29  ;;  %1061 = vmatprep.mubr.msk.bf16.mxu0 %vm1168_vm3, %v1166_v1 }
  0xa6   : > { %1055 = vmatprep.subr.bf16.mxu0 %v1166_v1 }
  0xa8   : > { %v346_v33 = vpop.permute.xlu1 %345  ;;  %v1136_v40 = vld [vmem:[#allocation3 + $0x30] ss:$20 sps:$4 sm:$0xff]  }
  0xa9   : > { %354 = vst.msk [vmem:[#allocation3 + $0x48] sm:$0xf] %vm248_vm2, %v346_v33  ;;  %1056 = vmatpush3.bf16.msra.mxu0 %v1127_v32  ;;  %v409_v44 = vpack.c.bf16 %v1136_v40, %v1133_v38 }
  0xaa   : > { %1057 = vmatprep.subr.bf16.mxu0 %v1166_v1 }
  0xac   : > { %v1135_v39 = vld [vmem:[#allocation3 + $0xc] ss:$20 sps:$4 sm:$0xff]  }
  0xad   : > { %1058 = vmatpush3.bf16.msra.mxu0 %v1130_v34 }
  0xae   : > { %1059 = vmatprep.subr.bf16.mxu0 %v1166_v1  ;;  %v962_v1 = vld [vmem:[%s1409_s2] ss:$0 sm:$0xff] }
  0xb0   : > { %v1138_v41 = vld [vmem:[#allocation3 + $0x34] ss:$20 sps:$4 sm:$0xff]  }
  0xb1   : > { %v410_v43 = vpack.c.bf16 %v1138_v41, %v1135_v39  ;;  %1060 = vmatpush3.bf16.msra.mxu0 %v1139_v37 }
  0xb3   : > { %784 = vmatprep.mubr.bf16.mxu1 %v410_v43 }
  0xb4   : > { %785 = vmatmul.mubr.bf16.vlgmr.msra.gmra.mrb[0].mxu1 %v409_v44  ;;  %1062 = vmatmul.mubr.msk.bf16.vlgmr.msra.gmra.mrb[4].mxu0 %vm707_vm4, %v411_v42 }
 0x177   : > { %v1020_v45 = vpop.f32.mrb[0].mxu0 }
 0x178   : > { %v1021_v46 = vpop.f32.mrb[1].mxu0 }
 0x179   : > { %v1022_v47 = vadd.f32 %v1021_v46, %v1020_v45  ;;  %v1023_v48 = vpop.f32.mrb[2].mxu0 }
 0x17a   : > { %v1024_v49 = vpop.f32.mrb[3].mxu0 }
 0x17b   : > { %v1025_v50 = vadd.f32 %v1024_v49, %v1023_v48  ;;  %v746_v55 = vadd.f32 %v1022_v47, %v962_v1 }
 0x17d   : > { %v749_v61 = vadd.f32 %v1025_v50, %v962_v1 }
 0x187   : > { %v1042_v51 = vpop.f32.mrb[0].mxu1  ;;  %v827_v52 = vpop.f32.mrb[4].mxu0 }
 0x188   : > { %v1043_v53 = vpop.f32.mrb[1].mxu1  ;;  %v1063_v54 = vpop.f32.mrb[5].mxu0 }
 0x189   : > { %v1044_v56 = vadd.f32 %v1043_v53, %v1042_v51  ;;  %v1045_v57 = vpop.f32.mrb[2].mxu1  ;;  %v830_v58 = vpop.f32.mrb[6].mxu0 }
 0x18a   : > { %v1046_v59 = vpop.f32.mrb[3].mxu1  ;;  %v1064_v60 = vpop.f32.mrb[7].mxu0 }
 0x18b   : > { %v787_v62 = vadd.f32 %v1044_v56, %v746_v55  ;;  %v1047_v63 = vadd.f32 %v1046_v59, %v1045_v57 }
 0x18d   : > { %v828_v0 = vadd.f32 %v827_v52, %v787_v62  ;;  %v790_v2 = vadd.f32 %v1047_v63, %v749_v61 }
 0x18f   : > { %v834_v3 = vmax.f32 %v828_v0, 0.0  ;;  %v831_v4 = vadd.f32 %v830_v58, %v790_v2 }
 0x191   : > { %836 = vst [vmem:[%s192_s6] sm:$0xff] %v834_v3  ;;  %v835_v5 = vmax.f32 %v831_v4, 0.0 }
 0x193   : > { %837 = vst [vmem:[%s192_s6 + $0x8] sm:$0xff] %v835_v5 }
 0x194 PF: > { %s13_s14 = sadd.s32 1, %s1164_s14   ;;  %s1411_s12 = smov %s1160_s13 }
 0x195   : > { %p10_p5 = scmp.ge.s32.totalorder %s13_s14, 4   ;;  %s1412_s13 = smov %s1414_s15 }
 0x197   :  { %12 = sbr.rel (!%p10_p5) target bundleno = 2 (0x2), region = 70 }

// kernel: unet_forward.10
= control target key start
LH: loop header
LB: loop body
LE: loop exit
PB: predicated region body
PF: predicated region fallthrough
CT: control target
= control target key end

     0   :  { %s2753_s12 = smov 0   ;;  %s2755_s13 = smov 0   ;;  %s3934_s0 = inlined_call_operand.vmem [shape: f32[2,16,16,3], index: 0, kind: input, shape index: {}]   ;;  %s3935_s1 = inlined_call_operand.vmem [shape: bf16[27,32], index: 1, kind: input, shape index: {}]   ;;  %s3936_s2 = inlined_call_operand.vmem [shape: f32[1,32], index: 2, kind: input, shape index: {}]   ;;  %s3937_s3 = inlined_call_operand.vmem [shape: f32[2,256,32], index: 3, kind: output, shape index: {}]  }
   0x1   :  { %s2757_s14 = smov 0  }
   0x2 LB: > { %s25_s15 = sadd.s32 1, %s2717_s13  ;;  %p2385_p0 = scmp.ge.s32.totalorder %s2721_s14, 1  ;;  %s2721_s14 = sphi %s2757_s14, %s13_s14   ;;  %s2717_s13 = sphi %s2755_s13, %s3954_s13   ;;  %s2713_s12 = sphi %s2753_s12, %s3953_s12  }
   0x3   : > { %p27_p1 = scmp.ge.s32.totalorder %s25_s15, 2  ;;  %p151_p2 = scmp.lt.s32.totalorder %s2721_s14, 3 }
   0x5   : > { %s3956_s15 = smov (%p27_p1, %s25_s15), 0  ;;  %p152_p3 = pnand %p2385_p0, %p151_p2 }
   0x7   : > { %155 = sbr.rel (%p152_p3) target bundleno = 903 (0x387), region = 32 }
   0xe   : > { %vm199_vm0 = vcmask 23552   ;;  %p179_p4 = scmp.lt.s32.totalorder %s2713_s12, 1  ;;  %vm202_vm1 = vcmask 17408   ;;  %v2723_v0 = vmov 0.0   ;;  %s2724_s20 = smov 3   ;;  %vm548_vm2 = vcmask 48152  }
   0xf   : > { %200 = vst.msk [vmem:[#allocation2] sm:$0xff] %vm199_vm0, %v2723_v0  ;;  %201 = vst.msk [vmem:[#allocation2 + $0x8] sm:$0xff] %vm199_vm0, %v2723_v0  ;;  %s2725_s21 = smov 6   ;;  %s2726_s22 = smov 9   ;;  %vm741_vm3 = vcmask 72752   ;;  %vm937_vm4 = vcmask 97352  }
  0x10   : > { %204 = vst.msk [vmem:[#allocation2 + $0x18] sm:$0xff] %vm199_vm0, %v2723_v0  ;;  %205 = vst.msk [vmem:[#allocation2 + $0x20] sm:$0xff] %vm199_vm0, %v2723_v0  ;;  %s3958_s12 = smov (!%p179_p4, %s2713_s12), 1  ;;  %s2727_s23 = smov 12   ;;  %vm2057_vm5 = vcmask 1044480   ;;  %vm2058_vm6 = vcmask 1045504  }
  0x11   : > { %207 = vst.msk [vmem:[#allocation2 + $0x30] sm:$0xff] %vm199_vm0, %v2723_v0  ;;  %208 = vst.msk [vmem:[#allocation2 + $0x38] sm:$0xff] %vm199_vm0, %v2723_v0  ;;  %s2603_s16 = sshll.u32 %s3958_s12, 8  ;;  %s2728_s24 = smov 15   ;;  %vm1130_vm7 = vcmask 121952   ;;  %vm1323_vm8 = vcmask 146552  }
  0x12   : > { %210 = vst.msk [vmem:[#allocation2 + $0x48] sm:$0xff] %vm199_vm0, %v2723_v0  ;;  %211 = vst.msk [vmem:[#allocation2 + $0x50] sm:$0xff] %vm199_vm0, %v2723_v0  ;;  %s2839_s19 = scalar_lea.vmem %s3934_s0, %s2603_s16  ;;  %s2729_s25 = smov 18   ;;  %vm1519_vm9 = vcmask 171152   ;;  %vm1712_vm10 = vcmask 195752   ;;  %vm1905_vm11 = vcmask 220352  }
  0x13   : > { %213 = vst.msk [vmem:[#allocation2 + $0x60] sm:$0xff] %vm199_vm0, %v2723_v0  ;;  %214 = vst.msk [vmem:[#allocation2 + $0x68] sm:$0xff] %vm199_vm0, %v2723_v0  ;;  %v255_v1 = vld [vmem:[%s2839_s19] sm:$0xff]  ;;  %v256_v2 = vld [vmem:[%s2839_s19 + $0x8] sm:$0xff]  ;;  %s2730_s26 = smov 21   ;;  %s2731_s27 = smov 24  }
  0x14   : > { %216 = vst.msk [vmem:[#allocation2 + $0x78] sm:$0xff] %vm199_vm0, %v2723_v0  ;;  %217 = vst.msk [vmem:[#allocation2 + $0x80] sm:$0xff] %vm199_vm0, %v2723_v0  ;;  %v257_v3 = vld [vmem:[%s2839_s19 + $0x10] sm:$0xff]  ;;  %v258_v4 = vld [vmem:[%s2839_s19 + $0x18] sm:$0xff]  ;;  %vm2008_vm12 = vcmask 220160   ;;  %s3814_s9 = scalar_lea.vmem %s3937_s3, %s2603_s16  ;;  %vm2257_vm13 = vcmask 261120  }
  0x15   : > { %219 = vst.msk [vmem:[#allocation2 + $0x90] sm:$0xff] %vm199_vm0, %v2723_v0  ;;  %220 = vst.msk [vmem:[#allocation2 + $0x98] sm:$0xff] %vm199_vm0, %v2723_v0  ;;  %v259_v5 = vld [vmem:[%s2839_s19 + $0x20] sm:$0xff]  ;;  %v260_v6 = vld [vmem:[%s2839_s19 + $0x28] sm:$0xff] }
  0x16   : > { %222 = vst.msk [vmem:[#allocation2 + $0xa8] sm:$0xff] %vm199_vm0, %v2723_v0  ;;  %223 = vst.msk [vmem:[#allocation2 + $0xb0] sm:$0xff] %vm199_vm0, %v2723_v0  ;;  %v388_v7 = vld [vmem:[#allocation2 + $0x1] sm:$0xff]  ;;  %v261_v9 = vld [vmem:[%s2839_s19 + $0x30] sm:$0xff] }
  0x17   : > { %225 = vst.msk [vmem:[#allocation2 + $0xc0] sm:$0xff] %vm199_vm0, %v2723_v0  ;;  %226 = vst.msk [vmem:[#allocation2 + $0xc8] sm:$0xff] %vm199_vm0, %v2723_v0  ;;  %452 = vrot.lane.b32.xlu0 %v388_v7, %s2724_s20  ;;  %v262_v10 = vld [vmem:[%s2839_s19 + $0x38] sm:$0xff]  ;;  %v263_v11 = vld [vmem:[%s2839_s19 + $0x40] sm:$0xff] }
  0x18   : > { %228 = vst.msk [vmem:[#allocation2 + $0xd8] sm:$0xff] %vm199_vm0, %v2723_v0  ;;  %229 = vst.msk [vmem:[#allocation2 + $0xe0] sm:$0xff] %vm199_vm0, %v2723_v0  ;;  %v264_v12 = vld [vmem:[%s2839_s19 + $0x48] sm:$0xff]  ;;  %v265_v13 = vld [vmem:[%s2839_s19 + $0x50] sm:$0xff] }
  0x19   : > { %231 = vst.msk [vmem:[#allocation2 + $0xf0] sm:$0xff] %vm199_vm0, %v2723_v0  ;;  %232 = vst.msk [vmem:[#allocation2 + $0xf8] sm:$0xff] %vm199_vm0, %v2723_v0  ;;  %v266_v14 = vld [vmem:[%s2839_s19 + $0x58] sm:$0xff]  ;;  %v267_v15 = vld [vmem:[%s2839_s19 + $0x60] sm:$0xff] }
  0x1a   : > { %234 = vst.msk [vmem:[#allocation2 + $0x108] sm:$0xff] %vm199_vm0, %v2723_v0  ;;  %235 = vst.msk [vmem:[#allocation2 + $0x110] sm:$0xff] %vm199_vm0, %v2723_v0  ;;  %v268_v16 = vld [vmem:[%s2839_s19 + $0x68] sm:$0xff]  ;;  %v269_v17 = vld [vmem:[%s2839_s19 + $0x70] sm:$0xff] }
  0x1b   : > { %237 = vst.msk [vmem:[#allocation2 + $0x120] sm:$0xff] %vm199_vm0, %v2723_v0  ;;  %238 = vst.msk [vmem:[#allocation2 + $0x128] sm:$0xff] %vm199_vm0, %v2723_v0  ;;  %v270_v18 = vld [vmem:[%s2839_s19 + $0x78] sm:$0xff]  ;;  %v271_v19 = vld [vmem:[%s2839_s19 + $0x80] sm:$0xff] }
  0x1c   : > { %240 = vst.msk [vmem:[#allocation2 + $0x138] sm:$0xff] %vm199_vm0, %v2723_v0  ;;  %241 = vst.msk [vmem:[#allocation2 + $0x140] sm:$0xff] %vm199_vm0, %v2723_v0  ;;  %v272_v20 = vld [vmem:[%s2839_s19 + $0x88] sm:$0xff]  ;;  %v273_v21 = vld [vmem:[%s2839_s19 + $0x90] sm:$0xff] }
  0x1d   : > { %243 = vst.msk [vmem:[#allocation2 + $0x150] sm:$0xff] %vm199_vm0, %v2723_v0  ;;  %244 = vst.msk [vmem:[#allocation2 + $0x158] sm:$0xff] %vm199_vm0, %v2723_v0  ;;  %v274_v22 = vld [vmem:[%s2839_s19 + $0x98] sm:$0xff]  ;;  %v275_v23 = vld [vmem:[%s2839_s19 + $0xa0] sm:$0xff] }
  0x1e   : > { %246 = vst.msk [vmem:[#allocation2 + $0x168] sm:$0xff] %vm199_vm0, %v2723_v0  ;;  %247 = vst.msk [vmem:[#allocation2 + $0x170] sm:$0xff] %vm199_vm0, %v2723_v0  ;;  %v276_v24 = vld [vmem:[%s2839_s19 + $0xa8] sm:$0xff]  ;;  %v277_v28 = vld [vmem:[%s2839_s19 + $0xb0] sm:$0xff] }
  0x1f   : > { %249 = vst.msk [vmem:[#allocation2 + $0x180] sm:$0xff] %vm199_vm0, %v2723_v0  ;;  %250 = vst.msk [vmem:[#allocation2 + $0x188] sm:$0xff] %vm199_vm0, %v2723_v0  ;;  %v278_v29 = vld [vmem:[%s2839_s19 + $0xb8] sm:$0xff]  ;;  %v279_v33 = vld [vmem:[%s2839_s19 + $0xc0] sm:$0xff] }
  0x20   : > { %252 = vst.msk [vmem:[#allocation2 + $0x198] sm:$0xff] %vm199_vm0, %v2723_v0  ;;  %253 = vst.msk [vmem:[#allocation2 + $0x1a0] sm:$0xff] %vm199_vm0, %v2723_v0  ;;  %v280_v34 = vld [vmem:[%s2839_s19 + $0xc8] sm:$0xff]  ;;  %v281_v35 = vld [vmem:[%s2839_s19 + $0xd0] sm:$0xff] }
  0x21   : > { %203 = vst.msk [vmem:[#allocation2 + $0x10] sm:$0x3] %vm202_vm1, %v2723_v0  ;;  %206 = vst.msk [vmem:[#allocation2 + $0x28] sm:$0x3] %vm202_vm1, %v2723_v0  ;;  %v282_v36 = vld [vmem:[%s2839_s19 + $0xd8] sm:$0xff]  ;;  %v283_v37 = vld [vmem:[%s2839_s19 + $0xe0] sm:$0xff] }
  0x22   : > { %209 = vst.msk [vmem:[#allocation2 + $0x40] sm:$0x3] %vm202_vm1, %v2723_v0  ;;  %212 = vst.msk [vmem:[#allocation2 + $0x58] sm:$0x3] %vm202_vm1, %v2723_v0  ;;  %v284_v38 = vld [vmem:[%s2839_s19 + $0xe8] sm:$0xff]  ;;  %v323_v45 = vld [vmem:[#allocation2] sm:$0xff] }
  0x23   : > { %215 = vst.msk [vmem:[#allocation2 + $0x70] sm:$0x3] %vm202_vm1, %v2723_v0  ;;  %218 = vst.msk [vmem:[#allocation2 + $0x88] sm:$0x3] %vm202_vm1, %v2723_v0  ;;  %v324_v48 = vld [vmem:[#allocation2 + $0x8] sm:$0xff] }
  0x24   : > { %221 = vst.msk [vmem:[#allocation2 + $0xa0] sm:$0x3] %vm202_vm1, %v2723_v0  ;;  %224 = vst.msk [vmem:[#allocation2 + $0xb8] sm:$0x3] %vm202_vm1, %v2723_v0 }
  0x25   : > { %227 = vst.msk [vmem:[#allocation2 + $0xd0] sm:$0x3] %vm202_vm1, %v2723_v0  ;;  %230 = vst.msk [vmem:[#allocation2 + $0xe8] sm:$0x3] %vm202_vm1, %v2723_v0 }
  0x26   : > { %233 = vst.msk [vmem:[#allocation2 + $0x100] sm:$0x3] %vm202_vm1, %v2723_v0  ;;  %236 = vst.msk [vmem:[#allocation2 + $0x118] sm:$0x3] %vm202_vm1, %v2723_v0 }
  0x27   : > { %239 = vst.msk [vmem:[#allocation2 + $0x130] sm:$0x3] %vm202_vm1, %v2723_v0  ;;  %242 = vst.msk [vmem:[#allocation2 + $0x148] sm:$0x3] %vm202_vm1, %v2723_v0 }
  0x28   : > { %245 = vst.msk [vmem:[#allocation2 + $0x160] sm:$0x3] %vm202_vm1, %v2723_v0  ;;  %248 = vst.msk [vmem:[#allocation2 + $0x178] sm:$0x3] %vm202_vm1, %v2723_v0  ;;  %v389_v8 = vld [vmem:[#allocation2 + $0x9] sm:$0xff] }
  0x29   : > { %251 = vst.msk [vmem:[#allocation2 + $0x190] sm:$0x3] %vm202_vm1, %v2723_v0  ;;  %254 = vst.msk [vmem:[#allocation2 + $0x1a8] sm:$0x3] %vm202_vm1, %v2723_v0  ;;  %454 = vrot.lane.b32.xlu0 %v389_v8, %s2724_s20 }
  0x2a   : > { %288 = vst.msk [vmem:[#allocation2 + $0x19] sm:$0xff] %vm199_vm0, %v255_v1  ;;  %289 = vst.msk [vmem:[#allocation2 + $0x21] sm:$0xff] %vm199_vm0, %v256_v2 }
  0x2b   : > { %290 = vst.msk [vmem:[#allocation2 + $0x31] sm:$0xff] %vm199_vm0, %v257_v3  ;;  %291 = vst.msk [vmem:[#allocation2 + $0x39] sm:$0xff] %vm199_vm0, %v258_v4 }
  0x2c   : > { %292 = vst.msk [vmem:[#allocation2 + $0x49] sm:$0xff] %vm199_vm0, %v259_v5  ;;  %293 = vst.msk [vmem:[#allocation2 + $0x51] sm:$0xff] %vm199_vm0, %v260_v6 }
  0x2d   : > { %294 = vst.msk [vmem:[#allocation2 + $0x61] sm:$0xff] %vm199_vm0, %v261_v9  ;;  %295 = vst.msk [vmem:[#allocation2 + $0x69] sm:$0xff] %vm199_vm0, %v262_v10 }
  0x2e   : > { %296 = vst.msk [vmem:[#allocation2 + $0x79] sm:$0xff] %vm199_vm0, %v263_v11  ;;  %297 = vst.msk [vmem:[#allocation2 + $0x81] sm:$0xff] %vm199_vm0, %v264_v12 }
  0x2f   : > { %298 = vst.msk [vmem:[#allocation2 + $0x91] sm:$0xff] %vm199_vm0, %v265_v13  ;;  %299 = vst.msk [vmem:[#allocation2 + $0x99] sm:$0xff] %vm199_vm0, %v266_v14 }
  0x30   : > { %300 = vst.msk [vmem:[#allocation2 + $0xa9] sm:$0xff] %vm199_vm0, %v267_v15  ;;  %301 = vst.msk [vmem:[#allocation2 + $0xb1] sm:$0xff] %vm199_vm0, %v268_v16 }
  0x31   : > { %302 = vst.msk [vmem:[#allocation2 + $0xc1] sm:$0xff] %vm199_vm0, %v269_v17  ;;  %303 = vst.msk [vmem:[#allocation2 + $0xc9] sm:$0xff] %vm199_vm0, %v270_v18  ;;  %v2884_v25 = vld [vmem:[#allocation2 + $0x19] sm:$0xff]  ;;  %v2893_v27 = vld [vmem:[#allocation2 + $0x21] sm:$0xff] }
  0x32   : > { %304 = vst.msk [vmem:[#allocation2 + $0xd9] sm:$0xff] %vm199_vm0, %v271_v19  ;;  %305 = vst.msk [vmem:[#allocation2 + $0xe1] sm:$0xff] %vm199_vm0, %v272_v20  ;;  %v2886_v26 = vld [vmem:[#allocation2 + $0x31] sm:$0xff]  ;;  %456 = vrot.lane.b32.xlu1 %v2884_v25, %s2724_s20  ;;  %v2905_v31 = vld [vmem:[#allocation2 + $0x39] sm:$0xff] }
  0x33   : > { %306 = vst.msk [vmem:[#allocation2 + $0xf1] sm:$0xff] %vm199_vm0, %v273_v21  ;;  %307 = vst.msk [vmem:[#allocation2 + $0xf9] sm:$0xff] %vm199_vm0, %v274_v22  ;;  %460 = vrot.lane.b32.xlu0 %v2886_v26, %s2724_s20  ;;  %v2901_v30 = vld [vmem:[#allocation2 + $0x49] sm:$0xff]  ;;  %v2920_v39 = vld [vmem:[#allocation2 + $0x51] sm:$0xff] }
  0x34   : > { %308 = vst.msk [vmem:[#allocation2 + $0x109] sm:$0xff] %vm199_vm0, %v275_v23  ;;  %309 = vst.msk [vmem:[#allocation2 + $0x111] sm:$0xff] %vm199_vm0, %v276_v24  ;;  %v396_v32 = vld [vmem:[#allocation2 + $0x61] sm:$0xff]  ;;  %v397_v41 = vld [vmem:[#allocation2 + $0x69] sm:$0xff] }
  0x35   : > { %310 = vst.msk [vmem:[#allocation2 + $0x121] sm:$0xff] %vm199_vm0, %v277_v28  ;;  %311 = vst.msk [vmem:[#allocation2 + $0x129] sm:$0xff] %vm199_vm0, %v278_v29  ;;  %v398_v40 = vld [vmem:[#allocation2 + $0x79] sm:$0xff]  ;;  %v399_v43 = vld [vmem:[#allocation2 + $0x81] sm:$0xff] }
  0x36   : > { %458 = vrot.lane.b32.xlu1 %v2893_v27, %s2724_s20  ;;  %312 = vst.msk [vmem:[#allocation2 + $0x139] sm:$0xff] %vm199_vm0, %v279_v33  ;;  %313 = vst.msk [vmem:[#allocation2 + $0x141] sm:$0xff] %vm199_vm0, %v280_v34  ;;  %v400_v42 = vld [vmem:[#allocation2 + $0x91] sm:$0xff]  ;;  %v401_v47 = vld [vmem:[#allocation2 + $0x99] sm:$0xff] }
  0x37   : > { %464 = vrot.lane.b32.xlu0 %v2901_v30, %s2724_s20  ;;  %314 = vst.msk [vmem:[#allocation2 + $0x151] sm:$0xff] %vm199_vm0, %v281_v35  ;;  %315 = vst.msk [vmem:[#allocation2 + $0x159] sm:$0xff] %vm199_vm0, %v282_v36  ;;  %v402_v44 = vld [vmem:[#allocation2 + $0xa9] sm:$0xff]  ;;  %v2932_v46 = vld [vmem:[#allocation2 + $0x18] sm:$0xff] }
  0x38   : > { %316 = vst.msk [vmem:[#allocation2 + $0x169] sm:$0xff] %vm199_vm0, %v283_v37  ;;  %317 = vst.msk [vmem:[#allocation2 + $0x171] sm:$0xff] %vm199_vm0, %v284_v38  ;;  %v2939_v49 = vld [vmem:[#allocation2 + $0x20] sm:$0xff]  ;;  %v2943_v51 = vld [vmem:[#allocation2 + $0x30] sm:$0xff] }
  0x39   : > { %356 = vst.msk [vmem:[#allocation3] sm:$0xff] %vm199_vm0, %v323_v45  ;;  %358 = vst.msk [vmem:[#allocation3 + $0x10] sm:$0xff] %vm199_vm0, %v2932_v46  ;;  %v404_v50 = vld [vmem:[#allocation2 + $0xc1] sm:$0xff]  ;;  %v2945_v52 = vld [vmem:[#allocation2 + $0x38] sm:$0xff] }
  0x3a   : > { %462 = vrot.lane.b32.xlu1 %v2905_v31, %s2724_s20  ;;  %357 = vst.msk [vmem:[#allocation3 + $0x8] sm:$0xff] %vm199_vm0, %v324_v48  ;;  %359 = vst.msk [vmem:[#allocation3 + $0x18] sm:$0xff] %vm199_vm0, %v2939_v49  ;;  %v403_v53 = vld [vmem:[#allocation2 + $0xb1] sm:$0xff]  ;;  %v2952_v54 = vld [vmem:[#allocation2 + $0x48] sm:$0xff] }
  0x3b   : > { %468 = vrot.lane.b32.xlu0 %v396_v32, %s2724_s20  ;;  %360 = vst.msk [vmem:[#allocation3 + $0x20] sm:$0xff] %vm199_vm0, %v2943_v51  ;;  %361 = vst.msk [vmem:[#allocation3 + $0x28] sm:$0xff] %vm199_vm0, %v2945_v52  ;;  %v2954_v55 = vld [vmem:[#allocation2 + $0x50] sm:$0xff]  ;;  %v2956_v56 = vld [vmem:[#allocation2 + $0xd9] sm:$0xff] }
  0x3c   : > { %362 = vst.msk [vmem:[#allocation3 + $0x30] sm:$0xff] %vm199_vm0, %v2952_v54  ;;  %363 = vst.msk [vmem:[#allocation3 + $0x38] sm:$0xff] %vm199_vm0, %v2954_v55  ;;  %v2962_v57 = vld [vmem:[#allocation2 + $0x60] sm:$0xff]  ;;  %v2964_v58 = vld [vmem:[#allocation2 + $0x68] sm:$0xff] }
  0x3d   : > { %v2966_v59 = vld [vmem:[#allocation2 + $0x78] sm:$0xff]  ;;  %364 = vst.msk [vmem:[#allocation3 + $0x40] sm:$0xff] %vm199_vm0, %v2962_v57  ;;  %365 = vst.msk [vmem:[#allocation3 + $0x48] sm:$0xff] %vm199_vm0, %v2964_v58  ;;  %v2975_v60 = vld [vmem:[#allocation2 + $0x80] sm:$0xff] }
  0x3e   : > { %466 = vrot.lane.b32.xlu1 %v2920_v39, %s2724_s20  ;;  %366 = vst.msk [vmem:[#allocation3 + $0x50] sm:$0xff] %vm199_vm0, %v2966_v59  ;;  %v2977_v61 = vld [vmem:[#allocation2 + $0x90] sm:$0xff]  ;;  %v2979_v62 = vld [vmem:[#allocation2 + $0x98] sm:$0xff]  ;;  %367 = vst.msk [vmem:[#allocation3 + $0x58] sm:$0xff] %vm199_vm0, %v2975_v60 }
  0x3f   : > { %472 = vrot.lane.b32.xlu0 %v398_v40, %s2724_s20  ;;  %v405_v63 = vld [vmem:[#allocation2 + $0xc9] sm:$0xff]  ;;  %368 = vst.msk [vmem:[#allocation3 + $0x60] sm:$0xff] %vm199_vm0, %v2977_v61  ;;  %369 = vst.msk [vmem:[#allocation3 + $0x68] sm:$0xff] %vm199_vm0, %v2979_v62  ;;  %v2991_v2 = vld [vmem:[#allocation2 + $0xc0] sm:$0xff] }
  0x40   : > { %v2987_v0 = vld [vmem:[#allocation2 + $0xa8] sm:$0xff]  ;;  %v2989_v1 = vld [vmem:[#allocation2 + $0xb0] sm:$0xff]  ;;  %372 = vst.msk [vmem:[#allocation3 + $0x80] sm:$0xff] %vm199_vm0, %v2991_v2  ;;  %v3002_v4 = vld [vmem:[#allocation2 + $0xd8] sm:$0xff] }
  0x41   : > { %370 = vst.msk [vmem:[#allocation3 + $0x70] sm:$0xff] %vm199_vm0, %v2987_v0  ;;  %371 = vst.msk [vmem:[#allocation3 + $0x78] sm:$0xff] %vm199_vm0, %v2989_v1  ;;  %v3000_v3 = vld [vmem:[#allocation2 + $0xc8] sm:$0xff]  ;;  %v3004_v5 = vld [vmem:[#allocation2 + $0xe0] sm:$0xff] }
  0x42   : > { %470 = vrot.lane.b32.xlu1 %v397_v41, %s2724_s20  ;;  %373 = vst.msk [vmem:[#allocation3 + $0x88] sm:$0xff] %vm199_vm0, %v3000_v3  ;;  %374 = vst.msk [vmem:[#allocation3 + $0x90] sm:$0xff] %vm199_vm0, %v3002_v4  ;;  %v3012_v6 = vld [vmem:[#allocation2 + $0xf0] sm:$0xff]  ;;  %v3014_v7 = vld [vmem:[#allocation2 + $0xf8] sm:$0xff] }
  0x43   : > { %476 = vrot.lane.b32.xlu0 %v400_v42, %s2724_s20  ;;  %375 = vst.msk [vmem:[#allocation3 + $0x98] sm:$0xff] %vm199_vm0, %v3004_v5  ;;  %v3016_v8 = vld [vmem:[#allocation2 + $0x108] sm:$0xff]  ;;  %376 = vst.msk [vmem:[#allocation3 + $0xa0] sm:$0xff] %vm199_vm0, %v3012_v6  ;;  %v3026_v9 = vld [vmem:[#allocation2 + $0x110] sm:$0xff] }
  0x44   : > { %377 = vst.msk [vmem:[#allocation3 + $0xa8] sm:$0xff] %vm199_vm0, %v3014_v7  ;;  %378 = vst.msk [vmem:[#allocation3 + $0xb0] sm:$0xff] %vm199_vm0, %v3016_v8  ;;  %v3028_v10 = vld [vmem:[#allocation2 + $0xf1] sm:$0xff]  ;;  %v3033_v11 = vld [vmem:[#allocation2 + $0x120] sm:$0xff] }
  0x45   : > { %379 = vst.msk [vmem:[#allocation3 + $0xb8] sm:$0xff] %vm199_vm0, %v3026_v9  ;;  %v3035_v12 = vld [vmem:[#allocation2 + $0x128] sm:$0xff]  ;;  %380 = vst.msk [vmem:[#allocation3 + $0xc0] sm:$0xff] %vm199_vm0, %v3033_v11  ;;  %v3049_v15 = vld [vmem:[#allocation2 + $0x138] sm:$0xff] }
  0x46   : > { %474 = vrot.lane.b32.xlu1 %v399_v43, %s2724_s20  ;;  %v3037_v13 = vld [vmem:[#allocation2 + $0xe1] sm:$0xff]  ;;  %381 = vst.msk [vmem:[#allocation3 + $0xc8] sm:$0xff] %vm199_vm0, %v3035_v12  ;;  %v3045_v14 = vld [vmem:[#allocation2 + $0x109] sm:$0xff]  ;;  %v3053_v17 = vld [vmem:[#allocation2 + $0xf9] sm:$0xff] }
  0x47   : > { %480 = vrot.lane.b32.xlu0 %v402_v44, %s2724_s20  ;;  %v3051_v16 = vld [vmem:[#allocation2 + $0x140] sm:$0xff]  ;;  %382 = vst.msk [vmem:[#allocation3 + $0xd0] sm:$0xff] %vm199_vm0, %v3049_v15  ;;  %v3065_v19 = vld [vmem:[#allocation2 + $0x150] sm:$0xff]  ;;  %v3067_v20 = vld [vmem:[#allocation2 + $0x158] sm:$0xff] }
  0x48   : > { %383 = vst.msk [vmem:[#allocation3 + $0xd8] sm:$0xff] %vm199_vm0, %v3051_v16  ;;  %v3061_v18 = vld [vmem:[#allocation2 + $0x121] sm:$0xff]  ;;  %v3069_v21 = vld [vmem:[#allocation2 + $0x111] sm:$0xff]  ;;  %384 = vst.msk [vmem:[#allocation3 + $0xe0] sm:$0xff] %vm199_vm0, %v3065_v19 }
  0x49   : > { %385 = vst.msk [vmem:[#allocation3 + $0xe8] sm:$0xff] %vm199_vm0, %v3067_v20  ;;  %v414_v22 = vld [vmem:[#allocation2 + $0x139] sm:$0xff]  ;;  %v3079_v23 = vld [vmem:[#allocation2 + $0x168] sm:$0xff]  ;;  %v3081_v24 = vld [vmem:[#allocation2 + $0x170] sm:$0xff] }
  0x4a   : > { %478 = vrot.lane.b32.xlu1 %v401_v47, %s2724_s20  ;;  %v3083_v28 = vld [vmem:[#allocation2 + $0x129] sm:$0xff]  ;;  %386 = vst.msk [vmem:[#allocation3 + $0xf0] sm:$0xff] %vm199_vm0, %v3079_v23  ;;  %387 = vst.msk [vmem:[#allocation3 + $0xf8] sm:$0xff] %vm199_vm0, %v3081_v24  ;;  %v416_v29 = vld [vmem:[#allocation2 + $0x151] sm:$0xff] }
  0x4b   : > { %484 = vrot.lane.b32.xlu0 %v404_v50, %s2724_s20  ;;  %3943 = vst [vmem:[#allocation4_spill] sm:$0xff] %v3083_v28  ;;  %v415_v32 = vld [vmem:[#allocation2 + $0x141] sm:$0xff]  ;;  %v418_v33 = vld [vmem:[#allocation2 + $0x169] sm:$0xff]  ;;  %v286_v35 = vld [vmem:[%s2839_s19 + $0xf8] sm:$0xff] }
  0x4c   : > { %v285_v34 = vld [vmem:[%s2839_s19 + $0xf0] sm:$0xff]  ;;  %319 = vst.msk [vmem:[#allocation2 + $0x189] sm:$0xff] %vm199_vm0, %v286_v35  ;;  %v417_v36 = vld [vmem:[#allocation2 + $0x159] sm:$0xff]  ;;  %v581_v37 = vld [vmem:[#allocation2 + $0x2] sm:$0xff] }
  0x4d   : > { %318 = vst.msk [vmem:[#allocation2 + $0x181] sm:$0xff] %vm199_vm0, %v285_v34  ;;  %v419_v38 = vld [vmem:[#allocation2 + $0x171] sm:$0xff]  ;;  %v3101_v40 = vld [vmem:[#allocation2 + $0x1a] sm:$0xff]  ;;  %v3109_v43 = vld [vmem:[#allocation2 + $0x22] sm:$0xff] }
  0x4e   : > { %482 = vrot.lane.b32.xlu1 %v403_v53, %s2724_s20  ;;  %v582_v41 = vld [vmem:[#allocation2 + $0xa] sm:$0xff]  ;;  %v3106_v42 = vld [vmem:[#allocation2 + $0x32] sm:$0xff]  ;;  %v3117_v45 = vld [vmem:[#allocation2 + $0x3a] sm:$0xff] }
  0x4f   : > { %488 = vrot.lane.b32.xlu0 %v2956_v56, %s2724_s20  ;;  %v3113_v44 = vld [vmem:[#allocation2 + $0x4a] sm:$0xff]  ;;  %v3121_v47 = vld [vmem:[#allocation2 + $0x62] sm:$0xff]  ;;  %v3125_v48 = vld [vmem:[#allocation2 + $0x52] sm:$0xff] }
  0x50   : > { %3944 = vst [vmem:[#allocation5_spill] sm:$0xff] %v3121_v47  ;;  %v591_v50 = vld [vmem:[#allocation2 + $0x7a] sm:$0xff]  ;;  %v3131_v53 = vld [vmem:[#allocation2 + $0x6a] sm:$0xff]  ;;  %v596_v34 = vld [vmem:[#allocation2 + $0xb2] sm:$0xff] }
  0x51   : > { %3945 = vst [vmem:[#allocation6_spill] sm:$0xff] %v3131_v53  ;;  %v3141_v35 = vld [vmem:[#allocation2 + $0xda] sm:$0xff] }
  0x52   : > { %486 = vrot.lane.b32.xlu1 %v405_v63, %s2724_s20  ;;  %v593_v63 = vld [vmem:[#allocation2 + $0x92] sm:$0xff] }
  0x53   : > { %492 = vrot.lane.b32.xlu0 %v3028_v10, %s2724_s20 }
  0x56   : > { %490 = vrot.lane.b32.xlu1 %v3037_v13, %s2724_s20 }
  0x57   : > { %496 = vrot.lane.b32.xlu0 %v3045_v14, %s2724_s20 }
  0x5a   : > { %494 = vrot.lane.b32.xlu1 %v3053_v17, %s2724_s20 }
  0x5b   : > { %500 = vrot.lane.b32.xlu0 %v3061_v18, %s2724_s20 }
  0x5e   : > { %498 = vrot.lane.b32.xlu1 %v3069_v21, %s2724_s20 }
  0x5f   : > { %504 = vrot.lane.b32.xlu0 %v414_v22, %s2724_s20  ;;  %v592_v22 = vld [vmem:[#allocation2 + $0x82] sm:$0xff] }
  0x62   : > { %502 = vrot.lane.b32.xlu1 %v3083_v28, %s2724_s20 }
  0x63   : > { %508 = vrot.lane.b32.xlu0 %v416_v29, %s2724_s20  ;;  %v595_v29 = vld [vmem:[#allocation2 + $0xaa] sm:$0xff] }
  0x66   : > { %506 = vrot.lane.b32.xlu1 %v415_v32, %s2724_s20  ;;  %v594_v32 = vld [vmem:[#allocation2 + $0x9a] sm:$0xff] }
  0x67   : > { %512 = vrot.lane.b32.xlu0 %v418_v33, %s2724_s20  ;;  %v597_v33 = vld [vmem:[#allocation2 + $0xc2] sm:$0xff] }
  0x6a   : > { %510 = vrot.lane.b32.xlu1 %v417_v36, %s2724_s20  ;;  %v598_v36 = vld [vmem:[#allocation2 + $0xca] sm:$0xff] }
  0x6b   : > { %645 = vrot.lane.b32.xlu0 %v581_v37, %s2725_s21  ;;  %v3146_v37 = vld [vmem:[#allocation2 + $0xf2] sm:$0xff] }
  0x6e   : > { %514 = vrot.lane.b32.xlu1 %v419_v38, %s2724_s20  ;;  %v3149_v38 = vld [vmem:[#allocation2 + $0xe2] sm:$0xff] }
  0x6f   : > { %649 = vrot.lane.b32.xlu0 %v3101_v40, %s2725_s21 }
  0x72   : > { %647 = vrot.lane.b32.xlu1 %v582_v41, %s2725_s21  ;;  %v3153_v41 = vld [vmem:[#allocation2 + $0x10a] sm:$0xff] }
  0x73   : > { %653 = vrot.lane.b32.xlu0 %v3106_v42, %s2725_s21 }
  0x76   : > { %651 = vrot.lane.b32.xlu1 %v3109_v43, %s2725_s21 }
  0x77   : > { %657 = vrot.lane.b32.xlu0 %v3113_v44, %s2725_s21 }
  0x7a   : > { %655 = vrot.lane.b32.xlu1 %v3117_v45, %s2725_s21 }
  0x7b   : > { %661 = vrot.lane.b32.xlu0 %v3121_v47, %s2725_s21  ;;  %v611_v47 = vld [vmem:[#allocation2 + $0x16a] sm:$0xff] }
  0x7e   : > { %659 = vrot.lane.b32.xlu1 %v3125_v48, %s2725_s21 }
  0x7f   : > { %665 = vrot.lane.b32.xlu0 %v591_v50, %s2725_s21  ;;  %v3157_v50 = vld [vmem:[#allocation2 + $0xfa] sm:$0xff] }
  0x82   : > { %663 = vrot.lane.b32.xlu1 %v3131_v53, %s2725_s21  ;;  %v608_v53 = vld [vmem:[#allocation2 + $0x142] sm:$0xff] }
  0x83   : > { %669 = vrot.lane.b32.xlu0 %v593_v63, %s2725_s21  ;;  %v3161_v63 = vld [vmem:[#allocation2 + $0x122] sm:$0xff] }
  0x84   : > { %3946 = vst [vmem:[#allocation7_spill] sm:$0xff] %v3161_v63 }
  0x86   : > { %667 = vrot.lane.b32.xlu1 %v592_v22, %s2725_s21  ;;  %v3165_v22 = vld [vmem:[#allocation2 + $0x112] sm:$0xff] }
  0x87   : > { %673 = vrot.lane.b32.xlu0 %v595_v29, %s2725_s21  ;;  %v607_v29 = vld [vmem:[#allocation2 + $0x13a] sm:$0xff] }
  0x8a   : > { %671 = vrot.lane.b32.xlu1 %v594_v32, %s2725_s21  ;;  %v453_v32 = vpop.permute.xlu0 %452 }
  0x8b   : > { %677 = vrot.lane.b32.xlu0 %v597_v33, %s2725_s21  ;;  %v3171_v33 = vld [vmem:[#allocation2 + $0x12a] sm:$0xff]  ;;  %549 = vst.msk [vmem:[#allocation3] sm:$0xff] %vm548_vm2, %v453_v32  ;;  %v610_v32 = vld [vmem:[#allocation2 + $0x15a] sm:$0xff] }
  0x8c   : > { %3947 = vst [vmem:[#allocation8_spill] sm:$0xff] %v3171_v33 }
  0x8e   : > { %675 = vrot.lane.b32.xlu1 %v596_v34, %s2725_s21  ;;  %v609_v34 = vld [vmem:[#allocation2 + $0x152] sm:$0xff] }
  0x8f   : > { %681 = vrot.lane.b32.xlu0 %v3141_v35, %s2725_s21 }
  0x92   : > { %679 = vrot.lane.b32.xlu1 %v598_v36, %s2725_s21 }
  0x93   : > { %685 = vrot.lane.b32.xlu0 %v3146_v37, %s2725_s21 }
  0x96   : > { %683 = vrot.lane.b32.xlu1 %v3149_v38, %s2725_s21 }
  0x97   : > { %689 = vrot.lane.b32.xlu0 %v3153_v41, %s2725_s21 }
  0x9a   : > { %687 = vrot.lane.b32.xlu1 %v3157_v50, %s2725_s21 }
  0x9b   : > { %693 = vrot.lane.b32.xlu0 %v3161_v63, %s2725_s21  ;;  %v455_v36 = vpop.permute.xlu0 %454 }
  0x9c   : > { %550 = vst.msk [vmem:[#allocation3 + $0x8] sm:$0xff] %vm548_vm2, %v455_v36 }
  0x9e   : > { %691 = vrot.lane.b32.xlu1 %v3165_v22, %s2725_s21 }
  0x9f   : > { %697 = vrot.lane.b32.xlu0 %v607_v29, %s2725_s21 }
  0xa2   : > { %695 = vrot.lane.b32.xlu1 %v3171_v33, %s2725_s21  ;;  %v612_v33 = vld [vmem:[#allocation2 + $0x172] sm:$0xff] }
  0xa3   : > { %701 = vrot.lane.b32.xlu0 %v609_v34, %s2725_s21 }
  0xa4   : > { %v457_v63 = vpop.permute.xlu1 %456 }
  0xa5   : > { %551 = vst.msk [vmem:[#allocation3 + $0x10] sm:$0xff] %vm548_vm2, %v457_v63  ;;  %v461_v28 = vpop.permute.xlu0 %460 }
  0xa6   : > { %699 = vrot.lane.b32.xlu1 %v608_v53, %s2725_s21  ;;  %553 = vst.msk [vmem:[#allocation3 + $0x20] sm:$0xff] %vm548_vm2, %v461_v28 }
  0xa7   : > { %705 = vrot.lane.b32.xlu0 %v611_v47, %s2725_s21 }
  0xa8   : > { %v459_v29 = vpop.permute.xlu1 %458 }
  0xa9   : > { %552 = vst.msk [vmem:[#allocation3 + $0x18] sm:$0xff] %vm548_vm2, %v459_v29  ;;  %v465_v36 = vpop.permute.xlu0 %464 }
  0xaa   : > { %703 = vrot.lane.b32.xlu1 %v610_v32, %s2725_s21  ;;  %555 = vst.msk [vmem:[#allocation3 + $0x30] sm:$0xff] %vm548_vm2, %v465_v36 }
  0xab   : > { %841 = vrot.lane.b32.xlu0 %v2932_v46, %s2726_s22 }
  0xac   : > { %v463_v34 = vpop.permute.xlu1 %462 }
  0xad   : > { %554 = vst.msk [vmem:[#allocation3 + $0x28] sm:$0xff] %vm548_vm2, %v463_v34  ;;  %v469_v28 = vpop.permute.xlu0 %468 }
  0xae   : > { %707 = vrot.lane.b32.xlu1 %v612_v33, %s2725_s21  ;;  %557 = vst.msk [vmem:[#allocation3 + $0x40] sm:$0xff] %vm548_vm2, %v469_v28 }
  0xaf   : > { %845 = vrot.lane.b32.xlu0 %v2943_v51, %s2726_s22 }
  0xb0   : > { %v467_v47 = vpop.permute.xlu1 %466 }
  0xb1   : > { %556 = vst.msk [vmem:[#allocation3 + $0x38] sm:$0xff] %vm548_vm2, %v467_v47  ;;  %v473_v53 = vpop.permute.xlu0 %472 }
  0xb2   : > { %843 = vrot.lane.b32.xlu1 %v2939_v49, %s2726_s22  ;;  %559 = vst.msk [vmem:[#allocation3 + $0x50] sm:$0xff] %vm548_vm2, %v473_v53 }
  0xb3   : > { %849 = vrot.lane.b32.xlu0 %v2952_v54, %s2726_s22 }
  0xb4   : > { %v471_v46 = vpop.permute.xlu1 %470 }
  0xb5   : > { %558 = vst.msk [vmem:[#allocation3 + $0x48] sm:$0xff] %vm548_vm2, %v471_v46  ;;  %v477_v63 = vpop.permute.xlu0 %476 }
  0xb6   : > { %847 = vrot.lane.b32.xlu1 %v2945_v52, %s2726_s22  ;;  %561 = vst.msk [vmem:[#allocation3 + $0x60] sm:$0xff] %vm548_vm2, %v477_v63 }
  0xb7   : > { %853 = vrot.lane.b32.xlu0 %v2962_v57, %s2726_s22 }
  0xb8   : > { %v475_v33 = vpop.permute.xlu1 %474 }
  0xb9   : > { %560 = vst.msk [vmem:[#allocation3 + $0x58] sm:$0xff] %vm548_vm2, %v475_v33  ;;  %v481_v49 = vpop.permute.xlu0 %480 }
  0xba   : > { %851 = vrot.lane.b32.xlu1 %v2954_v55, %s2726_s22  ;;  %563 = vst.msk [vmem:[#allocation3 + $0x70] sm:$0xff] %vm548_vm2, %v481_v49 }
  0xbb   : > { %857 = vrot.lane.b32.xlu0 %v2966_v59, %s2726_s22 }
  0xbc   : > { %v479_v32 = vpop.permute.xlu1 %478 }
  0xbd   : > { %562 = vst.msk [vmem:[#allocation3 + $0x68] sm:$0xff] %vm548_vm2, %v479_v32  ;;  %v485_v29 = vpop.permute.xlu0 %484 }
  0xbe   : > { %855 = vrot.lane.b32.xlu1 %v2964_v58, %s2726_s22  ;;  %565 = vst.msk [vmem:[#allocation3 + $0x80] sm:$0xff] %vm548_vm2, %v485_v29 }
  0xbf   : > { %861 = vrot.lane.b32.xlu0 %v2977_v61, %s2726_s22 }
  0xc0   : > { %v483_v36 = vpop.permute.xlu1 %482 }
  0xc1   : > { %564 = vst.msk [vmem:[#allocation3 + $0x78] sm:$0xff] %vm548_vm2, %v483_v36  ;;  %v489_v34 = vpop.permute.xlu0 %488  ;;  %v2420_v36 = vld [vmem:[#allocation2 + $0x180] sm:$0xff] }
  0xc2   : > { %859 = vrot.lane.b32.xlu1 %v2975_v60, %s2726_s22  ;;  %567 = vst.msk [vmem:[#allocation3 + $0x90] sm:$0xff] %vm548_vm2, %v489_v34 }
  0xc3   : > { %865 = vrot.lane.b32.xlu0 %v2987_v0, %s2726_s22 }
  0xc4   : > { %v487_v28 = vpop.permute.xlu1 %486 }
  0xc5   : > { %566 = vst.msk [vmem:[#allocation3 + $0x88] sm:$0xff] %vm548_vm2, %v487_v28  ;;  %v493_v47 = vpop.permute.xlu0 %492 }
  0xc6   : > { %863 = vrot.lane.b32.xlu1 %v2979_v62, %s2726_s22  ;;  %569 = vst.msk [vmem:[#allocation3 + $0xa0] sm:$0xff] %vm548_vm2, %v493_v47 }
  0xc7   : > { %869 = vrot.lane.b32.xlu0 %v2991_v2, %s2726_s22 }
  0xc8   : > { %v491_v61 = vpop.permute.xlu1 %490 }
  0xc9   : > { %568 = vst.msk [vmem:[#allocation3 + $0x98] sm:$0xff] %vm548_vm2, %v491_v61  ;;  %v497_v53 = vpop.permute.xlu0 %496  ;;  %v2421_v61 = vld [vmem:[#allocation2 + $0x188] sm:$0xff] }
  0xca   : > { %867 = vrot.lane.b32.xlu1 %v2989_v1, %s2726_s22  ;;  %571 = vst.msk [vmem:[#allocation3 + $0xb0] sm:$0xff] %vm548_vm2, %v497_v53 }
  0xcb   : > { %873 = vrot.lane.b32.xlu0 %v3002_v4, %s2726_s22 }
  0xcc   : > { %v495_v0 = vpop.permute.xlu1 %494 }
  0xcd   : > { %570 = vst.msk [vmem:[#allocation3 + $0xa8] sm:$0xff] %vm548_vm2, %v495_v0  ;;  %v501_v62 = vpop.permute.xlu0 %500 }
  0xce   : > { %871 = vrot.lane.b32.xlu1 %v3000_v3, %s2726_s22  ;;  %573 = vst.msk [vmem:[#allocation3 + $0xc0] sm:$0xff] %vm548_vm2, %v501_v62 }
  0xcf   : > { %877 = vrot.lane.b32.xlu0 %v3012_v6, %s2726_s22 }
  0xd0   : > { %v499_v2 = vpop.permute.xlu1 %498 }
  0xd1   : > { %572 = vst.msk [vmem:[#allocation3 + $0xb8] sm:$0xff] %vm548_vm2, %v499_v2  ;;  %v505_v1 = vpop.permute.xlu0 %504 }
  0xd2   : > { %875 = vrot.lane.b32.xlu1 %v3004_v5, %s2726_s22  ;;  %575 = vst.msk [vmem:[#allocation3 + $0xd0] sm:$0xff] %vm548_vm2, %v505_v1 }
  0xd3   : > { %881 = vrot.lane.b32.xlu0 %v3016_v8, %s2726_s22 }
  0xd4   : > { %v503_v4 = vpop.permute.xlu1 %502 }
  0xd5   : > { %574 = vst.msk [vmem:[#allocation3 + $0xc8] sm:$0xff] %vm548_vm2, %v503_v4  ;;  %v509_v3 = vpop.permute.xlu0 %508 }
  0xd6   : > { %879 = vrot.lane.b32.xlu1 %v3014_v7, %s2726_s22  ;;  %577 = vst.msk [vmem:[#allocation3 + $0xe0] sm:$0xff] %vm548_vm2, %v509_v3 }
  0xd7   : > { %885 = vrot.lane.b32.xlu0 %v3033_v11, %s2726_s22 }
  0xd8   : > { %v507_v46 = vpop.permute.xlu1 %506 }
  0xd9   : > { %576 = vst.msk [vmem:[#allocation3 + $0xd8] sm:$0xff] %vm548_vm2, %v507_v46  ;;  %v513_v5 = vpop.permute.xlu0 %512 }
  0xda   : > { %883 = vrot.lane.b32.xlu1 %v3026_v9, %s2726_s22  ;;  %579 = vst.msk [vmem:[#allocation3 + $0xf0] sm:$0xff] %vm548_vm2, %v513_v5 }
  0xdb   : > { %889 = vrot.lane.b32.xlu0 %v3049_v15, %s2726_s22 }
  0xdc   : > { %v511_v63 = vpop.permute.xlu1 %510 }
  0xdd   : > { %578 = vst.msk [vmem:[#allocation3 + $0xe8] sm:$0xff] %vm548_vm2, %v511_v63  ;;  %v646_v33 = vpop.permute.xlu0 %645 }
  0xde   : > { %887 = vrot.lane.b32.xlu1 %v3035_v12, %s2726_s22  ;;  %742 = vst.msk [vmem:[#allocation3] sm:$0xff] %vm741_vm3, %v646_v33 }
  0xdf   : > { %893 = vrot.lane.b32.xlu0 %v3065_v19, %s2726_s22 }
  0xe0   : > { %v515_v49 = vpop.permute.xlu1 %514 }
  0xe1   : > { %580 = vst.msk [vmem:[#allocation3 + $0xf8] sm:$0xff] %vm548_vm2, %v515_v49  ;;  %v650_v32 = vpop.permute.xlu0 %649 }
  0xe2   : > { %891 = vrot.lane.b32.xlu1 %v3051_v16, %s2726_s22  ;;  %744 = vst.msk [vmem:[#allocation3 + $0x10] sm:$0xff] %vm741_vm3, %v650_v32 }
  0xe3   : > { %897 = vrot.lane.b32.xlu0 %v3079_v23, %s2726_s22 }
  0xe4   : > { %v648_v29 = vpop.permute.xlu1 %647 }
  0xe5   : > { %743 = vst.msk [vmem:[#allocation3 + $0x8] sm:$0xff] %vm741_vm3, %v648_v29  ;;  %v654_v34 = vpop.permute.xlu0 %653 }
  0xe6   : > { %895 = vrot.lane.b32.xlu1 %v3067_v20, %s2726_s22  ;;  %746 = vst.msk [vmem:[#allocation3 + $0x20] sm:$0xff] %vm741_vm3, %v654_v34 }
  0xe7   : > { %901 = vrot.lane.b32.xlu0 %v2420_v36, %s2726_s22 }
  0xe8   : > { %v652_v28 = vpop.permute.xlu1 %651 }
  0xe9   : > { %745 = vst.msk [vmem:[#allocation3 + $0x18] sm:$0xff] %vm741_vm3, %v652_v28  ;;  %v658_v47 = vpop.permute.xlu0 %657 }
  0xea   : > { %899 = vrot.lane.b32.xlu1 %v3081_v24, %s2726_s22  ;;  %748 = vst.msk [vmem:[#allocation3 + $0x30] sm:$0xff] %vm741_vm3, %v658_v47 }
  0xeb   : > { %1034 = vrot.lane.b32.xlu0 %v2884_v25, %s2727_s23 }
  0xec   : > { %v656_v53 = vpop.permute.xlu1 %655 }
  0xed   : > { %747 = vst.msk [vmem:[#allocation3 + $0x28] sm:$0xff] %vm741_vm3, %v656_v53  ;;  %v662_v0 = vpop.permute.xlu0 %661 }
  0xee   : > { %903 = vrot.lane.b32.xlu1 %v2421_v61, %s2726_s22  ;;  %750 = vst.msk [vmem:[#allocation3 + $0x40] sm:$0xff] %vm741_vm3, %v662_v0  ;;  %v2426_v0 = vld [vmem:[#allocation2 + $0x49] sm:$0xff] }
  0xef   : > { %1066 = vrot.lane.b32.xlu0 %v2956_v56, %s2727_s23 }
  0xf0   : > { %v660_v62 = vpop.permute.xlu1 %659 }
  0xf1   : > { %749 = vst.msk [vmem:[#allocation3 + $0x38] sm:$0xff] %vm741_vm3, %v660_v62  ;;  %v666_v2 = vpop.permute.xlu0 %665 }
  0xf2   : > { %1036 = vrot.lane.b32.xlu1 %v2893_v27, %s2727_s23  ;;  %752 = vst.msk [vmem:[#allocation3 + $0x50] sm:$0xff] %vm741_vm3, %v666_v2 }
  0xf3   : > { %1038 = vrot.lane.b32.xlu0 %v2886_v26, %s2727_s23 }
  0xf4   : > { %v664_v25 = vpop.permute.xlu1 %663 }
  0xf5   : > { %751 = vst.msk [vmem:[#allocation3 + $0x48] sm:$0xff] %vm741_vm3, %v664_v25  ;;  %v670_v1 = vpop.permute.xlu0 %669  ;;  %v2427_v25 = vld [vmem:[#allocation2 + $0x51] sm:$0xff] }
  0xf6   : > { %1068 = vrot.lane.b32.xlu1 %v3037_v13, %s2727_s23  ;;  %754 = vst.msk [vmem:[#allocation3 + $0x60] sm:$0xff] %vm741_vm3, %v670_v1 }
  0xf7   : > { %1070 = vrot.lane.b32.xlu0 %v3028_v10, %s2727_s23 }
  0xf8   : > { %v668_v56 = vpop.permute.xlu1 %667 }
  0xf9   : > { %753 = vst.msk [vmem:[#allocation3 + $0x58] sm:$0xff] %vm741_vm3, %v668_v56  ;;  %v674_v27 = vpop.permute.xlu0 %673  ;;  %v3413_v56 = vld [vmem:[#allocation2 + $0x61] sm:$0xff] }
  0xfa   : > { %1040 = vrot.lane.b32.xlu1 %v2905_v31, %s2727_s23  ;;  %756 = vst.msk [vmem:[#allocation3 + $0x70] sm:$0xff] %vm741_vm3, %v674_v27 }
  0xfb   : > { %1227 = vrot.lane.b32.xlu0 %v3101_v40, %s2728_s24 }
  0xfc   : > { %v672_v4 = vpop.permute.xlu1 %671 }
  0xfd   : > { %755 = vst.msk [vmem:[#allocation3 + $0x68] sm:$0xff] %vm741_vm3, %v672_v4  ;;  %v678_v13 = vpop.permute.xlu0 %677 }
  0xfe   : > { %1072 = vrot.lane.b32.xlu1 %v3053_v17, %s2727_s23  ;;  %758 = vst.msk [vmem:[#allocation3 + $0x80] sm:$0xff] %vm741_vm3, %v678_v13 }
  0xff   : > { %1259 = vrot.lane.b32.xlu0 %v3141_v35, %s2728_s24 }
 0x100   : > { %v676_v3 = vpop.permute.xlu1 %675 }
 0x101   : > { %757 = vst.msk [vmem:[#allocation3 + $0x78] sm:$0xff] %vm741_vm3, %v676_v3  ;;  %v682_v46 = vpop.permute.xlu0 %681 }
 0x102   : > { %1229 = vrot.lane.b32.xlu1 %v3109_v43, %s2728_s24  ;;  %760 = vst.msk [vmem:[#allocation3 + $0x90] sm:$0xff] %vm741_vm3, %v682_v46 }
 0x103   : > { %1231 = vrot.lane.b32.xlu0 %v3106_v42, %s2728_s24 }
 0x104   : > { %v680_v40 = vpop.permute.xlu1 %679 }
 0x105   : > { %759 = vst.msk [vmem:[#allocation3 + $0x88] sm:$0xff] %vm741_vm3, %v680_v40  ;;  %v686_v5 = vpop.permute.xlu0 %685 }
 0x106   : > { %1261 = vrot.lane.b32.xlu1 %v3149_v38, %s2728_s24  ;;  %762 = vst.msk [vmem:[#allocation3 + $0xa0] sm:$0xff] %vm741_vm3, %v686_v5 }
 0x107   : > { %1263 = vrot.lane.b32.xlu0 %v3146_v37, %s2728_s24 }
 0x108   : > { %v684_v35 = vpop.permute.xlu1 %683 }
 0x109   : > { %761 = vst.msk [vmem:[#allocation3 + $0x98] sm:$0xff] %vm741_vm3, %v684_v35  ;;  %v690_v43 = vpop.permute.xlu0 %689 }
 0x10a   : > { %1233 = vrot.lane.b32.xlu1 %v3117_v45, %s2728_s24  ;;  %764 = vst.msk [vmem:[#allocation3 + $0xb0] sm:$0xff] %vm741_vm3, %v690_v43  ;;  %v3949_v43 = vld [vmem:[#allocation5_spill] sm:$0xff] }
 0x10b   : > { %1423 = vrot.lane.b32.xlu0 %v2943_v51, %s2729_s25 }
 0x10c   : > { %v688_v63 = vpop.permute.xlu1 %687 }
 0x10d   : > { %763 = vst.msk [vmem:[#allocation3 + $0xa8] sm:$0xff] %vm741_vm3, %v688_v63  ;;  %v694_v38 = vpop.permute.xlu0 %693 }
 0x10e   : > { %1265 = vrot.lane.b32.xlu1 %v3157_v50, %s2728_s24  ;;  %766 = vst.msk [vmem:[#allocation3 + $0xc0] sm:$0xff] %vm741_vm3, %v694_v38  ;;  %v3950_v38 = vld [vmem:[#allocation7_spill] sm:$0xff] }
 0x10f   : > { %1455 = vrot.lane.b32.xlu0 %v3012_v6, %s2729_s25 }
 0x110   : > { %v692_v33 = vpop.permute.xlu1 %691 }
 0x111   : > { %765 = vst.msk [vmem:[#allocation3 + $0xb8] sm:$0xff] %vm741_vm3, %v692_v33  ;;  %v698_v49 = vpop.permute.xlu0 %697 }
 0x112   : > { %1425 = vrot.lane.b32.xlu1 %v2945_v52, %s2729_s25  ;;  %768 = vst.msk [vmem:[#allocation3 + $0xd0] sm:$0xff] %vm741_vm3, %v698_v49 }
 0x113   : > { %1427 = vrot.lane.b32.xlu0 %v2952_v54, %s2729_s25 }
 0x114   : > { %v696_v51 = vpop.permute.xlu1 %695 }
 0x115   : > { %767 = vst.msk [vmem:[#allocation3 + $0xc8] sm:$0xff] %vm741_vm3, %v696_v51  ;;  %v702_v32 = vpop.permute.xlu0 %701 }
 0x116   : > { %1457 = vrot.lane.b32.xlu1 %v3014_v7, %s2729_s25  ;;  %770 = vst.msk [vmem:[#allocation3 + $0xe0] sm:$0xff] %vm741_vm3, %v702_v32 }
 0x117   : > { %1459 = vrot.lane.b32.xlu0 %v3016_v8, %s2729_s25 }
 0x118   : > { %v700_v6 = vpop.permute.xlu1 %699 }
 0x119   : > { %769 = vst.msk [vmem:[#allocation3 + $0xd8] sm:$0xff] %vm741_vm3, %v700_v6  ;;  %v706_v52 = vpop.permute.xlu0 %705 }
 0x11a   : > { %1429 = vrot.lane.b32.xlu1 %v2954_v55, %s2729_s25  ;;  %772 = vst.msk [vmem:[#allocation3 + $0xf0] sm:$0xff] %vm741_vm3, %v706_v52 }
 0x11b   : > { %1616 = vrot.lane.b32.xlu0 %v2886_v26, %s2730_s26 }
 0x11c   : > { %v704_v54 = vpop.permute.xlu1 %703 }
 0x11d   : > { %771 = vst.msk [vmem:[#allocation3 + $0xe8] sm:$0xff] %vm741_vm3, %v704_v54  ;;  %v842_v7 = vpop.permute.xlu0 %841 }
 0x11e   : > { %1461 = vrot.lane.b32.xlu1 %v3026_v9, %s2729_s25  ;;  %938 = vst.msk [vmem:[#allocation3] sm:$0xff] %vm937_vm4, %v842_v7 }
 0x11f   : > { %1648 = vrot.lane.b32.xlu0 %v3028_v10, %s2730_s26 }
 0x120   : > { %v708_v8 = vpop.permute.xlu1 %707 }
 0x121   : > { %773 = vst.msk [vmem:[#allocation3 + $0xf8] sm:$0xff] %vm741_vm3, %v708_v8  ;;  %v846_v55 = vpop.permute.xlu0 %845  ;;  %v2539_v8 = vld [vmem:[#allocation2 + $0x129] sm:$0xff] }
 0x122   : > { %1618 = vrot.lane.b32.xlu1 %v2905_v31, %s2730_s26  ;;  %940 = vst.msk [vmem:[#allocation3 + $0x10] sm:$0xff] %vm937_vm4, %v846_v55 }
 0x123   : > { %1620 = vrot.lane.b32.xlu0 %v2901_v30, %s2730_s26 }
 0x124   : > { %v844_v26 = vpop.permute.xlu1 %843 }
 0x125   : > { %939 = vst.msk [vmem:[#allocation3 + $0x8] sm:$0xff] %vm937_vm4, %v844_v26  ;;  %v850_v9 = vpop.permute.xlu0 %849 }
 0x126   : > { %1650 = vrot.lane.b32.xlu1 %v3053_v17, %s2730_s26  ;;  %942 = vst.msk [vmem:[#allocation3 + $0x20] sm:$0xff] %vm937_vm4, %v850_v9  ;;  %v2697_v17 = vld [vmem:[%s3935_s1] sm:$0xff]  }
 0x127   : > { %1652 = vrot.lane.b32.xlu0 %v3045_v14, %s2730_s26  ;;  %2623 = vmatprep.subr.bf16.mxu0 %v2697_v17  ;;  %v2525_v9 = vld [vmem:[#allocation2 + $0x81] sm:$0xff] }
 0x128   : > { %v848_v10 = vpop.permute.xlu1 %847  ;;  %2659 = vmatprep.subr.bf16.mxu1 %v2697_v17  ;;  %2624 = vmatpush3.bf16.msra.mxu0 %v2697_v17 }
 0x129   : > { %941 = vst.msk [vmem:[#allocation3 + $0x18] sm:$0xff] %vm937_vm4, %v848_v10  ;;  %v854_v31 = vpop.permute.xlu0 %853  ;;  %2661 = vmatpush3.bf16.msra.mxu1 %v2697_v17  ;;  %v2541_v17 = vld [vmem:[#allocation2 + $0x141] sm:$0xff] }
 0x12a   : > { %1622 = vrot.lane.b32.xlu1 %v2920_v39, %s2730_s26  ;;  %944 = vst.msk [vmem:[#allocation3 + $0x30] sm:$0xff] %vm937_vm4, %v854_v31  ;;  %v2698_v39 = vld [vmem:[%s3935_s1 + $0x8] sm:$0x3f]  }
 0x12b   : > { %1809 = vrot.lane.b32.xlu0 %v3106_v42, %s2731_s27  ;;  %v2732_v42 = vmov 65535   ;;  %v2554_v31 = vld [vmem:[#allocation2 + $0x62] sm:$0xff] }
 0x12c   : > { %v852_v30 = vpop.permute.xlu1 %851  ;;  %v2059_v36 = vsel %vm2057_vm5, 4294967295, %v2732_v42 }
 0x12d   : > { %943 = vst.msk [vmem:[#allocation3 + $0x28] sm:$0xff] %vm937_vm4, %v852_v30  ;;  %v858_v29 = vpop.permute.xlu0 %857  ;;  %v2060_v28 = vsel %vm2058_vm6, %v2059_v36, 0  ;;  %v2555_v36 = vld [vmem:[#allocation2 + $0x6a] sm:$0xff] }
 0x12e   : > { %1654 = vrot.lane.b32.xlu1 %v3069_v21, %s2730_s26  ;;  %946 = vst.msk [vmem:[#allocation3 + $0x40] sm:$0xff] %vm937_vm4, %v858_v29  ;;  %v2062_v47 = vand.u32 %v2698_v39, %v2060_v28  ;;  %v2570_v39 = vld [vmem:[#allocation2 + $0x122] sm:$0xff]  ;;  %v2556_v28 = vld [vmem:[#allocation2 + $0x7a] sm:$0xff] }
 0x12f   : > { %1841 = vrot.lane.b32.xlu0 %v3146_v37, %s2731_s27 }
 0x130   : > { %v856_v34 = vpop.permute.xlu1 %855  ;;  %2625 = vmatprep.subr.bf16.mxu0 %v2062_v47  ;;  %2660 = vmatprep.subr.bf16.mxu1 %v2062_v47 }
 0x131   : > { %945 = vst.msk [vmem:[#allocation3 + $0x38] sm:$0xff] %vm937_vm4, %v856_v34  ;;  %v862_v61 = vpop.permute.xlu0 %861  ;;  %2626 = vmatpush3.bf16.msra.mxu0 %v2062_v47  ;;  %2662 = vmatpush3.bf16.msra.mxu1 %v2062_v47 }
 0x132   : > { %1811 = vrot.lane.b32.xlu1 %v3117_v45, %s2731_s27  ;;  %948 = vst.msk [vmem:[#allocation3 + $0x50] sm:$0xff] %vm937_vm4, %v862_v61  ;;  %v2571_v61 = vld [vmem:[#allocation2 + $0x12a] sm:$0xff] }
 0x133   : > { %1813 = vrot.lane.b32.xlu0 %v3113_v44, %s2731_s27 }
 0x134   : > { %v860_v53 = vpop.permute.xlu1 %859 }
 0x135   : > { %947 = vst.msk [vmem:[#allocation3 + $0x48] sm:$0xff] %vm937_vm4, %v860_v53  ;;  %v866_v37 = vpop.permute.xlu0 %865 }
 0x136   : > { %1843 = vrot.lane.b32.xlu1 %v3157_v50, %s2731_s27  ;;  %950 = vst.msk [vmem:[#allocation3 + $0x60] sm:$0xff] %vm937_vm4, %v866_v37  ;;  %v2572_v37 = vld [vmem:[#allocation2 + $0x13a] sm:$0xff] }
 0x137   : > { %1845 = vrot.lane.b32.xlu0 %v3153_v41, %s2731_s27 }
 0x138   : > { %v864_v45 = vpop.permute.xlu1 %863 }
 0x139   : > { %949 = vst.msk [vmem:[#allocation3 + $0x58] sm:$0xff] %vm937_vm4, %v864_v45  ;;  %v870_v62 = vpop.permute.xlu0 %869 }
 0x13a   : > { %1815 = vrot.lane.b32.xlu1 %v3125_v48, %s2731_s27  ;;  %952 = vst.msk [vmem:[#allocation3 + $0x70] sm:$0xff] %vm937_vm4, %v870_v62 }
 0x13b   : > { %1042 = vrot.lane.b32.xlu0 %v2426_v0, %s2727_s23  ;;  %v2557_v0 = vld [vmem:[#allocation2 + $0x82] sm:$0xff] }
 0x13c   : > { %v868_v2 = vpop.permute.xlu1 %867 }
 0x13d   : > { %951 = vst.msk [vmem:[#allocation3 + $0x68] sm:$0xff] %vm937_vm4, %v868_v2  ;;  %v874_v50 = vpop.permute.xlu0 %873 }
 0x13e   : > { %1847 = vrot.lane.b32.xlu1 %v3165_v22, %s2731_s27  ;;  %954 = vst.msk [vmem:[#allocation3 + $0x80] sm:$0xff] %vm937_vm4, %v874_v50  ;;  %v2573_v50 = vld [vmem:[#allocation2 + $0x142] sm:$0xff] }
 0x13f   : > { %1074 = vrot.lane.b32.xlu0 %v3045_v14, %s2727_s23  ;;  %v3422_v14 = vld [vmem:[#allocation2 + $0x69] sm:$0xff] }
 0x140   : > { %v872_v1 = vpop.permute.xlu1 %871 }
 0x141   : > { %953 = vst.msk [vmem:[#allocation3 + $0x78] sm:$0xff] %vm937_vm4, %v872_v1  ;;  %v878_v27 = vpop.permute.xlu0 %877 }
 0x142   : > { %1044 = vrot.lane.b32.xlu1 %v2427_v25, %s2727_s23  ;;  %956 = vst.msk [vmem:[#allocation3 + $0x90] sm:$0xff] %vm937_vm4, %v878_v27  ;;  %v3520_v27 = vld [vmem:[#allocation2 + $0x91] sm:$0xff] }
 0x143   : > { %1046 = vrot.lane.b32.xlu0 %v3413_v56, %s2727_s23 }
 0x144   : > { %v876_v4 = vpop.permute.xlu1 %875 }
 0x145   : > { %955 = vst.msk [vmem:[#allocation3 + $0x88] sm:$0xff] %vm937_vm4, %v876_v4  ;;  %v882_v13 = vpop.permute.xlu0 %881 }
 0x146   : > { %1076 = vrot.lane.b32.xlu1 %v3069_v21, %s2727_s23  ;;  %958 = vst.msk [vmem:[#allocation3 + $0xa0] sm:$0xff] %vm937_vm4, %v882_v13  ;;  %v3948_v21 = vld [vmem:[#allocation4_spill] sm:$0xff] }
 0x147   : > { %1078 = vrot.lane.b32.xlu0 %v3061_v18, %s2727_s23 }
 0x148   : > { %v880_v3 = vpop.permute.xlu1 %879 }
 0x149   : > { %957 = vst.msk [vmem:[#allocation3 + $0x98] sm:$0xff] %vm937_vm4, %v880_v3  ;;  %v886_v46 = vpop.permute.xlu0 %885 }
 0x14a   : > { %1048 = vrot.lane.b32.xlu1 %v3422_v14, %s2727_s23  ;;  %960 = vst.msk [vmem:[#allocation3 + $0xb0] sm:$0xff] %vm937_vm4, %v886_v46  ;;  %v3530_v46 = vld [vmem:[#allocation2 + $0x99] sm:$0xff] }
 0x14b   : > { %1235 = vrot.lane.b32.xlu0 %v3113_v44, %s2728_s24 }
 0x14c   : > { %v884_v40 = vpop.permute.xlu1 %883 }
 0x14d   : > { %959 = vst.msk [vmem:[#allocation3 + $0xa8] sm:$0xff] %vm937_vm4, %v884_v40  ;;  %v890_v5 = vpop.permute.xlu0 %889 }
 0x14e   : > { %1080 = vrot.lane.b32.xlu1 %v3948_v21, %s2727_s23  ;;  %962 = vst.msk [vmem:[#allocation3 + $0xc0] sm:$0xff] %vm937_vm4, %v890_v5  ;;  %v3538_v5 = vld [vmem:[#allocation2 + $0x159] sm:$0xff] }
 0x14f   : > { %1267 = vrot.lane.b32.xlu0 %v3153_v41, %s2728_s24 }
 0x150   : > { %v888_v18 = vpop.permute.xlu1 %887 }
 0x151   : > { %961 = vst.msk [vmem:[#allocation3 + $0xb8] sm:$0xff] %vm937_vm4, %v888_v18  ;;  %v894_v35 = vpop.permute.xlu0 %893 }
 0x152   : > { %1237 = vrot.lane.b32.xlu1 %v3125_v48, %s2728_s24  ;;  %964 = vst.msk [vmem:[#allocation3 + $0xd0] sm:$0xff] %vm937_vm4, %v894_v35  ;;  %v3951_v48 = vld [vmem:[#allocation6_spill] sm:$0xff] }
 0x153   : > { %1239 = vrot.lane.b32.xlu0 %v3949_v43, %s2728_s24  ;;  %v3548_v43 = vld [vmem:[#allocation2 + $0x92] sm:$0xff] }
 0x154   : > { %v892_v44 = vpop.permute.xlu1 %891 }
 0x155   : > { %963 = vst.msk [vmem:[#allocation3 + $0xc8] sm:$0xff] %vm937_vm4, %v892_v44  ;;  %v898_v63 = vpop.permute.xlu0 %897 }
 0x156   : > { %1269 = vrot.lane.b32.xlu1 %v3165_v22, %s2728_s24  ;;  %966 = vst.msk [vmem:[#allocation3 + $0xe0] sm:$0xff] %vm937_vm4, %v898_v63  ;;  %v3952_v22 = vld [vmem:[#allocation8_spill] sm:$0xff] }
 0x157   : > { %1271 = vrot.lane.b32.xlu0 %v3950_v38, %s2728_s24  ;;  %v3555_v38 = vld [vmem:[#allocation2 + $0x152] sm:$0xff] }
 0x158   : > { %v896_v41 = vpop.permute.xlu1 %895 }
 0x159   : > { %965 = vst.msk [vmem:[#allocation3 + $0xd8] sm:$0xff] %vm937_vm4, %v896_v41  ;;  %v902_v33 = vpop.permute.xlu0 %901 }
 0x15a   : > { %1241 = vrot.lane.b32.xlu1 %v3951_v48, %s2728_s24  ;;  %968 = vst.msk [vmem:[#allocation3 + $0xf0] sm:$0xff] %vm937_vm4, %v902_v33  ;;  %v3558_v33 = vld [vmem:[#allocation2 + $0x9a] sm:$0xff] }
 0x15b   : > { %1431 = vrot.lane.b32.xlu0 %v2962_v57, %s2729_s25 }
 0x15c   : > { %v900_v49 = vpop.permute.xlu1 %899 }
 0x15d   : > { %967 = vst.msk [vmem:[#allocation3 + $0xe8] sm:$0xff] %vm937_vm4, %v900_v49  ;;  %v1035_v51 = vpop.permute.xlu0 %1034 }
 0x15e   : > { %1273 = vrot.lane.b32.xlu1 %v3952_v22, %s2728_s24  ;;  %1131 = vst.msk [vmem:[#allocation3] sm:$0xff] %vm1130_vm7, %v1035_v51  ;;  %v2494_v22 = vld [vmem:[#allocation2 + $0x90] sm:$0xff] }
 0x15f   : > { %1463 = vrot.lane.b32.xlu0 %v3033_v11, %s2729_s25 }
 0x160   : > { %v904_v32 = vpop.permute.xlu1 %903 }
 0x161   : > { %969 = vst.msk [vmem:[#allocation3 + $0xf8] sm:$0xff] %vm937_vm4, %v904_v32  ;;  %v1067_v6 = vpop.permute.xlu0 %1066 }
 0x162   : > { %1433 = vrot.lane.b32.xlu1 %v2964_v58, %s2729_s25  ;;  %1147 = vst.msk [vmem:[#allocation3 + $0x80] sm:$0xff] %vm1130_vm7, %v1067_v6  ;;  %v3566_v6 = vld [vmem:[#allocation2 + $0x15a] sm:$0xff] }
 0x163   : > { %1435 = vrot.lane.b32.xlu0 %v2966_v59, %s2729_s25 }
 0x164   : > { %v1037_v57 = vpop.permute.xlu1 %1036 }
 0x165   : > { %1132 = vst.msk [vmem:[#allocation3 + $0x8] sm:$0xff] %vm1130_vm7, %v1037_v57  ;;  %v1039_v52 = vpop.permute.xlu0 %1038 }
 0x166   : > { %1465 = vrot.lane.b32.xlu1 %v3035_v12, %s2729_s25  ;;  %1133 = vst.msk [vmem:[#allocation3 + $0x10] sm:$0xff] %vm1130_vm7, %v1039_v52  ;;  %v2538_v12 = vld [vmem:[#allocation2 + $0x121] sm:$0xff] }
 0x167   : > { %1467 = vrot.lane.b32.xlu0 %v3049_v15, %s2729_s25 }
 0x168   : > { %v1069_v11 = vpop.permute.xlu1 %1068 }
 0x169   : > { %1148 = vst.msk [vmem:[#allocation3 + $0x88] sm:$0xff] %vm1130_vm7, %v1069_v11  ;;  %v1071_v58 = vpop.permute.xlu0 %1070 }
 0x16a   : > { %1437 = vrot.lane.b32.xlu1 %v2975_v60, %s2729_s25  ;;  %1149 = vst.msk [vmem:[#allocation3 + $0x90] sm:$0xff] %vm1130_vm7, %v1071_v58  ;;  %v2524_v60 = vld [vmem:[#allocation2 + $0x79] sm:$0xff] }
 0x16b   : > { %1624 = vrot.lane.b32.xlu0 %v3413_v56, %s2730_s26 }
 0x16c   : > { %v1041_v59 = vpop.permute.xlu1 %1040 }
 0x16d   : > { %1134 = vst.msk [vmem:[#allocation3 + $0x18] sm:$0xff] %vm1130_vm7, %v1041_v59  ;;  %v1228_v15 = vpop.permute.xlu0 %1227 }
 0x16e   : > { %1469 = vrot.lane.b32.xlu1 %v3051_v16, %s2729_s25  ;;  %1324 = vst.msk [vmem:[#allocation3] sm:$0xff] %vm1323_vm8, %v1228_v15  ;;  %v2540_v16 = vld [vmem:[#allocation2 + $0x139] sm:$0xff] }
 0x16f   : > { %1656 = vrot.lane.b32.xlu0 %v2538_v12, %s2730_s26  ;;  %v2495_v12 = vld [vmem:[#allocation2 + $0x98] sm:$0xff] }
 0x170   : > { %v1073_v54 = vpop.permute.xlu1 %1072 }
 0x171   : > { %1150 = vst.msk [vmem:[#allocation3 + $0x98] sm:$0xff] %vm1130_vm7, %v1073_v54  ;;  %v1260_v7 = vpop.permute.xlu0 %1259 }
 0x172   : > { %1626 = vrot.lane.b32.xlu1 %v3422_v14, %s2730_s26  ;;  %1340 = vst.msk [vmem:[#allocation3 + $0x80] sm:$0xff] %vm1323_vm8, %v1260_v7  ;;  %v3527_v14 = vld [vmem:[#allocation2 + $0x151] sm:$0xff]  ;;  %v2496_v7 = vld [vmem:[#allocation2 + $0xa8] sm:$0xff] }
 0x173   : > { %1628 = vrot.lane.b32.xlu0 %v2524_v60, %s2730_s26 }
 0x174   : > { %v1230_v55 = vpop.permute.xlu1 %1229 }
 0x175   : > { %1325 = vst.msk [vmem:[#allocation3 + $0x8] sm:$0xff] %vm1323_vm8, %v1230_v55  ;;  %v1232_v26 = vpop.permute.xlu0 %1231 }
 0x176   : > { %1658 = vrot.lane.b32.xlu1 %v2539_v8, %s2730_s26  ;;  %1326 = vst.msk [vmem:[#allocation3 + $0x10] sm:$0xff] %vm1323_vm8, %v1232_v26 }
 0x177   : > { %1660 = vrot.lane.b32.xlu0 %v2540_v16, %s2730_s26 }
 0x178   : > { %v1262_v10 = vpop.permute.xlu1 %1261 }
 0x179   : > { %1341 = vst.msk [vmem:[#allocation3 + $0x88] sm:$0xff] %vm1323_vm8, %v1262_v10  ;;  %v1264_v30 = vpop.permute.xlu0 %1263 }
 0x17a   : > { %1630 = vrot.lane.b32.xlu1 %v2525_v9, %s2730_s26  ;;  %1342 = vst.msk [vmem:[#allocation3 + $0x90] sm:$0xff] %vm1323_vm8, %v1264_v30 }
 0x17b   : > { %1817 = vrot.lane.b32.xlu0 %v2554_v31, %s2731_s27  ;;  %v2497_v31 = vld [vmem:[#allocation2 + $0xb0] sm:$0xff] }
 0x17c   : > { %v1234_v29 = vpop.permute.xlu1 %1233 }
 0x17d   : > { %1327 = vst.msk [vmem:[#allocation3 + $0x18] sm:$0xff] %vm1323_vm8, %v1234_v29  ;;  %v1424_v42 = vpop.permute.xlu0 %1423 }
 0x17e   : > { %1662 = vrot.lane.b32.xlu1 %v2541_v17, %s2730_s26  ;;  %1520 = vst.msk [vmem:[#allocation3] sm:$0xff] %vm1519_vm9, %v1424_v42 }
 0x17f   : > { %1849 = vrot.lane.b32.xlu0 %v2570_v39, %s2731_s27 }
 0x180   : > { %v1266_v34 = vpop.permute.xlu1 %1265 }
 0x181   : > { %1343 = vst.msk [vmem:[#allocation3 + $0x98] sm:$0xff] %vm1323_vm8, %v1266_v34  ;;  %v1456_v47 = vpop.permute.xlu0 %1455 }
 0x182   : > { %1819 = vrot.lane.b32.xlu1 %v2555_v36, %s2731_s27  ;;  %1536 = vst.msk [vmem:[#allocation3 + $0x80] sm:$0xff] %vm1519_vm9, %v1456_v47  ;;  %v2528_v36 = vld [vmem:[#allocation2 + $0xa9] sm:$0xff] }
 0x183   : > { %1821 = vrot.lane.b32.xlu0 %v2556_v28, %s2731_s27 }
 0x184   : > { %v1426_v53 = vpop.permute.xlu1 %1425 }
 0x185   : > { %1521 = vst.msk [vmem:[#allocation3 + $0x8] sm:$0xff] %vm1519_vm9, %v1426_v53  ;;  %v1428_v45 = vpop.permute.xlu0 %1427 }
 0x186   : > { %1851 = vrot.lane.b32.xlu1 %v2571_v61, %s2731_s27  ;;  %1522 = vst.msk [vmem:[#allocation3 + $0x10] sm:$0xff] %vm1519_vm9, %v1428_v45  ;;  %v2529_v61 = vld [vmem:[#allocation2 + $0xb1] sm:$0xff] }
 0x187   : > { %1853 = vrot.lane.b32.xlu0 %v2572_v37, %s2731_s27  ;;  %v2545_v45 = vld [vmem:[#allocation2 + $0x171] sm:$0xff] }
 0x188   : > { %v1458_v62 = vpop.permute.xlu1 %1457 }
 0x189   : > { %1537 = vst.msk [vmem:[#allocation3 + $0x88] sm:$0xff] %vm1519_vm9, %v1458_v62  ;;  %v1460_v2 = vpop.permute.xlu0 %1459 }
 0x18a   : > { %1823 = vrot.lane.b32.xlu1 %v2557_v0, %s2731_s27  ;;  %1538 = vst.msk [vmem:[#allocation3 + $0x90] sm:$0xff] %vm1519_vm9, %v1460_v2 }
 0x18b   : > { %1050 = vrot.lane.b32.xlu0 %v2524_v60, %s2727_s23 }
 0x18c   : > { %v1430_v25 = vpop.permute.xlu1 %1429 }
 0x18d   : > { %1523 = vst.msk [vmem:[#allocation3 + $0x18] sm:$0xff] %vm1519_vm9, %v1430_v25  ;;  %v1617_v1 = vpop.permute.xlu0 %1616 }
 0x18e   : > { %1855 = vrot.lane.b32.xlu1 %v2573_v50, %s2731_s27  ;;  %1713 = vst.msk [vmem:[#allocation3] sm:$0xff] %vm1712_vm10, %v1617_v1 }
 0x18f   : > { %1082 = vrot.lane.b32.xlu0 %v2540_v16, %s2727_s23 }
 0x190   : > { %v1462_v56 = vpop.permute.xlu1 %1461 }
 0x191   : > { %1539 = vst.msk [vmem:[#allocation3 + $0x98] sm:$0xff] %vm1519_vm9, %v1462_v56  ;;  %v1649_v4 = vpop.permute.xlu0 %1648  ;;  %v2576_v56 = vld [vmem:[#allocation2 + $0x16a] sm:$0xff] }
 0x192   : > { %1052 = vrot.lane.b32.xlu1 %v2525_v9, %s2727_s23  ;;  %1729 = vst.msk [vmem:[#allocation3 + $0x80] sm:$0xff] %vm1712_vm10, %v1649_v4  ;;  %v2561_v4 = vld [vmem:[#allocation2 + $0xb2] sm:$0xff] }
 0x193   : > { %1054 = vrot.lane.b32.xlu0 %v3520_v27, %s2727_s23 }
 0x194   : > { %v1619_v13 = vpop.permute.xlu1 %1618 }
 0x195   : > { %1714 = vst.msk [vmem:[#allocation3 + $0x8] sm:$0xff] %vm1712_vm10, %v1619_v13  ;;  %v1621_v3 = vpop.permute.xlu0 %1620 }
 0x196   : > { %1084 = vrot.lane.b32.xlu1 %v2541_v17, %s2727_s23  ;;  %1715 = vst.msk [vmem:[#allocation3 + $0x10] sm:$0xff] %vm1712_vm10, %v1621_v3  ;;  %v2577_v3 = vld [vmem:[#allocation2 + $0x172] sm:$0xff] }
 0x197   : > { %1086 = vrot.lane.b32.xlu0 %v3527_v14, %s2727_s23 }
 0x198   : > { %v1651_v40 = vpop.permute.xlu1 %1650 }
 0x199   : > { %1730 = vst.msk [vmem:[#allocation3 + $0x88] sm:$0xff] %vm1712_vm10, %v1651_v40  ;;  %v1653_v21 = vpop.permute.xlu0 %1652 }
 0x19a   : > { %1056 = vrot.lane.b32.xlu1 %v3530_v46, %s2727_s23  ;;  %1731 = vst.msk [vmem:[#allocation3 + $0x90] sm:$0xff] %vm1712_vm10, %v1653_v21 }
 0x19b   : > { %1243 = vrot.lane.b32.xlu0 %v2556_v28, %s2728_s24 }
 0x19c   : > { %v1623_v18 = vpop.permute.xlu1 %1622 }
 0x19d   : > { %1716 = vst.msk [vmem:[#allocation3 + $0x18] sm:$0xff] %vm1712_vm10, %v1623_v18  ;;  %v1810_v35 = vpop.permute.xlu0 %1809 }
 0x19e   : > { %1088 = vrot.lane.b32.xlu1 %v3538_v5, %s2727_s23  ;;  %1906 = vst.msk [vmem:[#allocation3] sm:$0xff] %vm1905_vm11, %v1810_v35 }
 0x19f   : > { %1275 = vrot.lane.b32.xlu0 %v2572_v37, %s2728_s24 }
 0x1a0   : > { %v1655_v44 = vpop.permute.xlu1 %1654 }
 0x1a1   : > { %1732 = vst.msk [vmem:[#allocation3 + $0x98] sm:$0xff] %vm1712_vm10, %v1655_v44  ;;  %v1842_v63 = vpop.permute.xlu0 %1841  ;;  %v3647_v44 = vld [vmem:[#allocation2 + $0x181] sm:$0xff] }
 0x1a2   : > { %1245 = vrot.lane.b32.xlu1 %v2557_v0, %s2728_s24  ;;  %1922 = vst.msk [vmem:[#allocation3 + $0x80] sm:$0xff] %vm1905_vm11, %v1842_v63  ;;  %v3650_v63 = vld [vmem:[#allocation2 + $0xc9] sm:$0xff] }
 0x1a3   : > { %1247 = vrot.lane.b32.xlu0 %v3548_v43, %s2728_s24 }
 0x1a4   : > { %v1812_v41 = vpop.permute.xlu1 %1811 }
 0x1a5   : > { %1907 = vst.msk [vmem:[#allocation3 + $0x8] sm:$0xff] %vm1905_vm11, %v1812_v41  ;;  %v1814_v48 = vpop.permute.xlu0 %1813  ;;  %v1938_v51 = vld [vmem:[#allocation3] sm:$0xff] }
 0x1a6   : > { %1277 = vrot.lane.b32.xlu1 %v2573_v50, %s2728_s24  ;;  %1908 = vst.msk [vmem:[#allocation3 + $0x10] sm:$0xff] %vm1905_vm11, %v1814_v48  ;;  %v2560_v50 = vld [vmem:[#allocation2 + $0xaa] sm:$0xff] }
 0x1a7   : > { %1279 = vrot.lane.b32.xlu0 %v3555_v38, %s2728_s24  ;;  %v3658_v48 = vld [vmem:[#allocation2 + $0x189] sm:$0xff] }
 0x1a8   : > { %v1844_v49 = vpop.permute.xlu1 %1843 }
 0x1a9   : > { %1923 = vst.msk [vmem:[#allocation3 + $0x88] sm:$0xff] %vm1905_vm11, %v1844_v49  ;;  %v1846_v32 = vpop.permute.xlu0 %1845  ;;  %v1954_v58 = vld [vmem:[#allocation3 + $0x80] sm:$0xff] }
 0x1aa   : > { %1249 = vrot.lane.b32.xlu1 %v3558_v33, %s2728_s24  ;;  %1924 = vst.msk [vmem:[#allocation3 + $0x90] sm:$0xff] %vm1905_vm11, %v1846_v32 }
 0x1ab   : > { %1439 = vrot.lane.b32.xlu0 %v2494_v22, %s2729_s25 }
 0x1ac   : > { %v1816_v57 = vpop.permute.xlu1 %1815  ;;  %v1939_v52 = vld [vmem:[#allocation3 + $0x8] sm:$0xff] }
 0x1ad   : > { %1909 = vst.msk [vmem:[#allocation3 + $0x18] sm:$0xff] %vm1905_vm11, %v1816_v57  ;;  %v1970_v11 = vpack.c.bf16 %v1939_v52, %v1938_v51  ;;  %v1043_v59 = vpop.permute.xlu0 %1042  ;;  %v1940_v8 = vld [vmem:[#allocation3 + $0x10] sm:$0xff] }
 0x1ae   : > { %1281 = vrot.lane.b32.xlu1 %v3566_v6, %s2728_s24  ;;  %1135 = vst.msk [vmem:[#allocation3 + $0x20] sm:$0xff] %vm1130_vm7, %v1043_v59  ;;  %v3668_v51 = vld [vmem:[#allocation2 + $0xc2] sm:$0xff] }
 0x1af   : > { %2627 = vmatprep.mubr.msk.bf16.mxu0 %vm2008_vm12, %v1970_v11  ;;  %1471 = vrot.lane.b32.xlu0 %v3065_v19, %s2729_s25  ;;  %v3675_v57 = vld [vmem:[#allocation2 + $0x182] sm:$0xff]  ;;  %v3678_v11 = vld [vmem:[#allocation2 + $0xca] sm:$0xff] }
 0x1b0   : > { %v1848_v15 = vpop.permute.xlu1 %1847  ;;  %v1955_v54 = vld [vmem:[#allocation3 + $0x88] sm:$0xff]  ;;  %v2498_v59 = vld [vmem:[#allocation2 + $0xc0] sm:$0xff] }
 0x1b1   : > { %1925 = vst.msk [vmem:[#allocation3 + $0x98] sm:$0xff] %vm1905_vm11, %v1848_v15  ;;  %v1978_v60 = vpack.c.bf16 %v1955_v54, %v1954_v58  ;;  %v1075_v55 = vpop.permute.xlu0 %1074  ;;  %v1956_v19 = vld [vmem:[#allocation3 + $0x90] sm:$0xff]  ;;  %v3686_v54 = vld [vmem:[#allocation2 + $0x18a] sm:$0xff] }
 0x1b2   : > { %1441 = vrot.lane.b32.xlu1 %v2495_v12, %s2729_s25  ;;  %1151 = vst.msk [vmem:[#allocation3 + $0xa0] sm:$0xff] %vm1130_vm7, %v1075_v55  ;;  %v2514_v55 = vld [vmem:[#allocation2 + $0x180] sm:$0xff] }
 0x1b3   : > { %2643 = vmatprep.mubr.msk.bf16.mxu1 %vm2008_vm12, %v1978_v60  ;;  %1443 = vrot.lane.b32.xlu0 %v2496_v7, %s2729_s25 }
 0x1b4   : > { %v1045_v16 = vpop.permute.xlu1 %1044  ;;  %v1941_v26 = vld [vmem:[#allocation3 + $0x18] sm:$0xff] }
 0x1b5   : > { %1136 = vst.msk [vmem:[#allocation3 + $0x28] sm:$0xff] %vm1130_vm7, %v1045_v16  ;;  %v1971_v9 = vpack.c.bf16 %v1941_v26, %v1940_v8  ;;  %v1047_v10 = vpop.permute.xlu0 %1046 }
 0x1b6   : > { %1473 = vrot.lane.b32.xlu1 %v3067_v20, %s2729_s25  ;;  %1137 = vst.msk [vmem:[#allocation3 + $0x30] sm:$0xff] %vm1130_vm7, %v1047_v10 }
 0x1b7   : > { %2628 = vmatmul.mubr.msk.bf16.vlgmr.msra.gmra.mrb[0].mxu0 %vm2008_vm12, %v1971_v9  ;;  %1475 = vrot.lane.b32.xlu0 %v3079_v23, %s2729_s25  ;;  %v2499_v9 = vld [vmem:[#allocation2 + $0xc8] sm:$0xff] }
 0x1b8   : > { %v1077_v30 = vpop.permute.xlu1 %1076  ;;  %v1957_v17 = vld [vmem:[#allocation3 + $0x98] sm:$0xff] }
 0x1b9   : > { %1152 = vst.msk [vmem:[#allocation3 + $0xa8] sm:$0xff] %vm1130_vm7, %v1077_v30  ;;  %v1979_v29 = vpack.c.bf16 %v1957_v17, %v1956_v19  ;;  %v1079_v39 = vpop.permute.xlu0 %1078  ;;  %v2500_v30 = vld [vmem:[#allocation2 + $0xd8] sm:$0xff] }
 0x1ba   : > { %1445 = vrot.lane.b32.xlu1 %v2497_v31, %s2729_s25  ;;  %1153 = vst.msk [vmem:[#allocation3 + $0xb0] sm:$0xff] %vm1130_vm7, %v1079_v39  ;;  %v2515_v39 = vld [vmem:[#allocation2 + $0x188] sm:$0xff] }
 0x1bb   : > { %2644 = vmatmul.mubr.msk.bf16.vlgmr.msra.gmra.mrb[0].mxu1 %vm2008_vm12, %v1979_v29  ;;  %1632 = vrot.lane.b32.xlu0 %v3520_v27, %s2730_s26 }
 0x1bc   : > { %v1049_v20 = vpop.permute.xlu1 %1048 }
 0x1bd   : > { %1138 = vst.msk [vmem:[#allocation3 + $0x38] sm:$0xff] %vm1130_vm7, %v1049_v20  ;;  %v1236_v23 = vpop.permute.xlu0 %1235 }
 0x1be   : > { %1477 = vrot.lane.b32.xlu1 %v3081_v24, %s2729_s25  ;;  %1328 = vst.msk [vmem:[#allocation3 + $0x20] sm:$0xff] %vm1323_vm8, %v1236_v23  ;;  %v2544_v24 = vld [vmem:[#allocation2 + $0x169] sm:$0xff] }
 0x1bf   : > { %1664 = vrot.lane.b32.xlu0 %v3527_v14, %s2730_s26 }
 0x1c0   : > { %v1081_v42 = vpop.permute.xlu1 %1080 }
 0x1c1   : > { %1154 = vst.msk [vmem:[#allocation3 + $0xb8] sm:$0xff] %vm1130_vm7, %v1081_v42  ;;  %v1268_v34 = vpop.permute.xlu0 %1267 }
 0x1c2   : > { %1634 = vrot.lane.b32.xlu1 %v3530_v46, %s2730_s26  ;;  %1344 = vst.msk [vmem:[#allocation3 + $0xa0] sm:$0xff] %vm1323_vm8, %v1268_v34 }
 0x1c3   : > { %1636 = vrot.lane.b32.xlu0 %v2528_v36, %s2730_s26 }
 0x1c4   : > { %v1238_v28 = vpop.permute.xlu1 %1237 }
 0x1c5   : > { %1329 = vst.msk [vmem:[#allocation3 + $0x28] sm:$0xff] %vm1323_vm8, %v1238_v28  ;;  %v1240_v47 = vpop.permute.xlu0 %1239 }
 0x1c6   : > { %1666 = vrot.lane.b32.xlu1 %v3538_v5, %s2730_s26  ;;  %1330 = vst.msk [vmem:[#allocation3 + $0x30] sm:$0xff] %vm1323_vm8, %v1240_v47  ;;  %v3640_v5 = vld [vmem:[#allocation2 + $0xc1] sm:$0xff] }
 0x1c7   : > { %1668 = vrot.lane.b32.xlu0 %v2544_v24, %s2730_s26 }
 0x1c8   : > { %v1270_v53 = vpop.permute.xlu1 %1269 }
 0x1c9   : > { %1345 = vst.msk [vmem:[#allocation3 + $0xa8] sm:$0xff] %vm1323_vm8, %v1270_v53  ;;  %v1272_v37 = vpop.permute.xlu0 %1271 }
 0x1ca   : > { %1638 = vrot.lane.b32.xlu1 %v2529_v61, %s2730_s26  ;;  %1346 = vst.msk [vmem:[#allocation3 + $0xb0] sm:$0xff] %vm1323_vm8, %v1272_v37 }
 0x1cb   : > { %1825 = vrot.lane.b32.xlu0 %v3548_v43, %s2731_s27 }
 0x1cc   : > { %v1242_v0 = vpop.permute.xlu1 %1241 }
 0x1cd   : > { %1331 = vst.msk [vmem:[#allocation3 + $0x38] sm:$0xff] %vm1323_vm8, %v1242_v0  ;;  %v1432_v62 = vpop.permute.xlu0 %1431 }
 0x1ce   : > { %1670 = vrot.lane.b32.xlu1 %v2545_v45, %s2730_s26  ;;  %1524 = vst.msk [vmem:[#allocation3 + $0x20] sm:$0xff] %vm1519_vm9, %v1432_v62 }
 0x1cf   : > { %1857 = vrot.lane.b32.xlu0 %v3555_v38, %s2731_s27 }
 0x1d0   : > { %v1274_v2 = vpop.permute.xlu1 %1273 }
 0x1d1   : > { %1347 = vst.msk [vmem:[#allocation3 + $0xb8] sm:$0xff] %vm1323_vm8, %v1274_v2  ;;  %v1464_v25 = vpop.permute.xlu0 %1463 }
 0x1d2   : > { %1827 = vrot.lane.b32.xlu1 %v3558_v33, %s2731_s27  ;;  %1540 = vst.msk [vmem:[#allocation3 + $0xa0] sm:$0xff] %vm1519_vm9, %v1464_v25 }
 0x1d3   : > { %1829 = vrot.lane.b32.xlu0 %v2560_v50, %s2731_s27 }
 0x1d4   : > { %v1434_v1 = vpop.permute.xlu1 %1433 }
 0x1d5   : > { %1525 = vst.msk [vmem:[#allocation3 + $0x28] sm:$0xff] %vm1519_vm9, %v1434_v1  ;;  %v1436_v27 = vpop.permute.xlu0 %1435 }
 0x1d6   : > { %1859 = vrot.lane.b32.xlu1 %v3566_v6, %s2731_s27  ;;  %1526 = vst.msk [vmem:[#allocation3 + $0x30] sm:$0xff] %vm1519_vm9, %v1436_v27 }
 0x1d7   : > { %1861 = vrot.lane.b32.xlu0 %v2576_v56, %s2731_s27 }
 0x1d8   : > { %v1466_v13 = vpop.permute.xlu1 %1465 }
 0x1d9   : > { %1541 = vst.msk [vmem:[#allocation3 + $0xa8] sm:$0xff] %vm1519_vm9, %v1466_v13  ;;  %v1468_v14 = vpop.permute.xlu0 %1467 }
 0x1da   : > { %1831 = vrot.lane.b32.xlu1 %v2561_v4, %s2731_s27  ;;  %1542 = vst.msk [vmem:[#allocation3 + $0xb0] sm:$0xff] %vm1519_vm9, %v1468_v14 }
 0x1db   : > { %1058 = vrot.lane.b32.xlu0 %v2528_v36, %s2727_s23  ;;  %v2516_v36 = vld [vmem:[#allocation2 + $0x198] sm:$0xff] }
 0x1dc   : > { %v1438_v46 = vpop.permute.xlu1 %1437 }
 0x1dd   : > { %1527 = vst.msk [vmem:[#allocation3 + $0x38] sm:$0xff] %vm1519_vm9, %v1438_v46  ;;  %v1625_v40 = vpop.permute.xlu0 %1624 }
 0x1de   : > { %1863 = vrot.lane.b32.xlu1 %v2577_v3, %s2731_s27  ;;  %1717 = vst.msk [vmem:[#allocation3 + $0x20] sm:$0xff] %vm1712_vm10, %v1625_v40 }
 0x1df   : > { %1090 = vrot.lane.b32.xlu0 %v2544_v24, %s2727_s23  ;;  %v2501_v24 = vld [vmem:[#allocation2 + $0xe0] sm:$0xff] }
 0x1e0   : > { %v1470_v21 = vpop.permute.xlu1 %1469 }
 0x1e1   : > { %1543 = vst.msk [vmem:[#allocation3 + $0xb8] sm:$0xff] %vm1519_vm9, %v1470_v21  ;;  %v1657_v18 = vpop.permute.xlu0 %1656 }
 0x1e2   : > { %1060 = vrot.lane.b32.xlu1 %v2529_v61, %s2727_s23  ;;  %1733 = vst.msk [vmem:[#allocation3 + $0xa0] sm:$0xff] %vm1712_vm10, %v1657_v18 }
 0x1e3   : > { %1062 = vrot.lane.b32.xlu0 %v3640_v5, %s2727_s23 }
 0x1e4   : > { %v1627_v35 = vpop.permute.xlu1 %1626 }
 0x1e5   : > { %1718 = vst.msk [vmem:[#allocation3 + $0x28] sm:$0xff] %vm1712_vm10, %v1627_v35  ;;  %v1629_v43 = vpop.permute.xlu0 %1628 }
 0x1e6   : > { %1092 = vrot.lane.b32.xlu1 %v2545_v45, %s2727_s23  ;;  %1719 = vst.msk [vmem:[#allocation3 + $0x30] sm:$0xff] %vm1712_vm10, %v1629_v43  ;;  %v2517_v45 = vld [vmem:[#allocation2 + $0x1a0] sm:$0xff] }
 0x1e7   : > { %1094 = vrot.lane.b32.xlu0 %v3647_v44, %s2727_s23 }
 0x1e8   : > { %v1659_v41 = vpop.permute.xlu1 %1658 }
 0x1e9   : > { %1734 = vst.msk [vmem:[#allocation3 + $0xa8] sm:$0xff] %vm1712_vm10, %v1659_v41  ;;  %v1661_v38 = vpop.permute.xlu0 %1660 }
 0x1ea   : > { %1064 = vrot.lane.b32.xlu1 %v3650_v63, %s2727_s23  ;;  %1735 = vst.msk [vmem:[#allocation3 + $0xb0] sm:$0xff] %vm1712_vm10, %v1661_v38 }
 0x1eb   : > { %1251 = vrot.lane.b32.xlu0 %v2560_v50, %s2728_s24  ;;  %v2532_v50 = vld [vmem:[#allocation2 + $0xd9] sm:$0xff] }
 0x1ec   : > { %v1631_v33 = vpop.permute.xlu1 %1630 }
 0x1ed   : > { %1720 = vst.msk [vmem:[#allocation3 + $0x38] sm:$0xff] %vm1712_vm10, %v1631_v33  ;;  %v1818_v49 = vpop.permute.xlu0 %1817 }
 0x1ee   : > { %1096 = vrot.lane.b32.xlu1 %v3658_v48, %s2727_s23  ;;  %1910 = vst.msk [vmem:[#allocation3 + $0x20] sm:$0xff] %vm1905_vm11, %v1818_v49 }
 0x1ef   : > { %1283 = vrot.lane.b32.xlu0 %v2576_v56, %s2728_s24  ;;  %v2548_v56 = vld [vmem:[#allocation2 + $0x199] sm:$0xff] }
 0x1f0   : > { %v1663_v22 = vpop.permute.xlu1 %1662 }
 0x1f1   : > { %1736 = vst.msk [vmem:[#allocation3 + $0xb8] sm:$0xff] %vm1712_vm10, %v1663_v22  ;;  %v1850_v32 = vpop.permute.xlu0 %1849 }
 0x1f2   : > { %1253 = vrot.lane.b32.xlu1 %v2561_v4, %s2728_s24  ;;  %1926 = vst.msk [vmem:[#allocation3 + $0xa0] sm:$0xff] %vm1905_vm11, %v1850_v32  ;;  %v2533_v4 = vld [vmem:[#allocation2 + $0xe1] sm:$0xff] }
 0x1f3   : > { %1255 = vrot.lane.b32.xlu0 %v3668_v51, %s2728_s24 }
 0x1f4   : > { %v1820_v6 = vpop.permute.xlu1 %1819 }
 0x1f5   : > { %1911 = vst.msk [vmem:[#allocation3 + $0x28] sm:$0xff] %vm1905_vm11, %v1820_v6  ;;  %v1822_v52 = vpop.permute.xlu0 %1821  ;;  %v1942_v12 = vld [vmem:[#allocation3 + $0x20] sm:$0xff] }
 0x1f6   : > { %1285 = vrot.lane.b32.xlu1 %v2577_v3, %s2728_s24  ;;  %1912 = vst.msk [vmem:[#allocation3 + $0x30] sm:$0xff] %vm1905_vm11, %v1822_v52  ;;  %v2549_v3 = vld [vmem:[#allocation2 + $0x1a1] sm:$0xff] }
 0x1f7   : > { %1287 = vrot.lane.b32.xlu0 %v3675_v57, %s2728_s24 }
 0x1f8   : > { %v1852_v58 = vpop.permute.xlu1 %1851 }
 0x1f9   : > { %1927 = vst.msk [vmem:[#allocation3 + $0xa8] sm:$0xff] %vm1905_vm11, %v1852_v58  ;;  %v1854_v15 = vpop.permute.xlu0 %1853  ;;  %v1958_v16 = vld [vmem:[#allocation3 + $0xa0] sm:$0xff] }
 0x1fa   : > { %1257 = vrot.lane.b32.xlu1 %v3678_v11, %s2728_s24  ;;  %1928 = vst.msk [vmem:[#allocation3 + $0xb0] sm:$0xff] %vm1905_vm11, %v1854_v15 }
 0x1fb   : > { %1447 = vrot.lane.b32.xlu0 %v2498_v59, %s2729_s25 }
 0x1fc   : > { %v1824_v60 = vpop.permute.xlu1 %1823  ;;  %v1943_v7 = vld [vmem:[#allocation3 + $0x28] sm:$0xff] }
 0x1fd   : > { %1913 = vst.msk [vmem:[#allocation3 + $0x38] sm:$0xff] %vm1905_vm11, %v1824_v60  ;;  %v1972_v8 = vpack.c.bf16 %v1943_v7, %v1942_v12  ;;  %v1051_v26 = vpop.permute.xlu0 %1050  ;;  %v1944_v17 = vld [vmem:[#allocation3 + $0x30] sm:$0xff] }
 0x1fe   : > { %1289 = vrot.lane.b32.xlu1 %v3686_v54, %s2728_s24  ;;  %1139 = vst.msk [vmem:[#allocation3 + $0x40] sm:$0xff] %vm1130_vm7, %v1051_v26 }
 0x1ff   : > { %2631 = vmatprep.mubr.msk.bf16.mxu0 %vm2008_vm12, %v1972_v8  ;;  %1479 = vrot.lane.b32.xlu0 %v2514_v55, %s2729_s25 }
 0x200   : > { %v1856_v19 = vpop.permute.xlu1 %1855  ;;  %v1959_v10 = vld [vmem:[#allocation3 + $0xa8] sm:$0xff] }
 0x201   : > { %1929 = vst.msk [vmem:[#allocation3 + $0xb8] sm:$0xff] %vm1905_vm11, %v1856_v19  ;;  %v1980_v31 = vpack.c.bf16 %v1959_v10, %v1958_v16  ;;  %v1083_v29 = vpop.permute.xlu0 %1082  ;;  %v1960_v34 = vld [vmem:[#allocation3 + $0xb0] sm:$0xff] }
 0x202   : > { %1449 = vrot.lane.b32.xlu1 %v2499_v9, %s2729_s25  ;;  %1155 = vst.msk [vmem:[#allocation3 + $0xc0] sm:$0xff] %vm1130_vm7, %v1083_v29 }
 0x203   : > { %2647 = vmatprep.mubr.msk.bf16.mxu1 %vm2008_vm12, %v1980_v31  ;;  %1451 = vrot.lane.b32.xlu0 %v2500_v30, %s2729_s25 }
 0x204   : > { %v1053_v20 = vpop.permute.xlu1 %1052  ;;  %v1945_v23 = vld [vmem:[#allocation3 + $0x38] sm:$0xff] }
 0x205   : > { %1140 = vst.msk [vmem:[#allocation3 + $0x48] sm:$0xff] %vm1130_vm7, %v1053_v20  ;;  %v1973_v42 = vpack.c.bf16 %v1945_v23, %v1944_v17  ;;  %v1055_v28 = vpop.permute.xlu0 %1054 }
 0x206   : > { %1481 = vrot.lane.b32.xlu1 %v2515_v39, %s2729_s25  ;;  %1141 = vst.msk [vmem:[#allocation3 + $0x50] sm:$0xff] %vm1130_vm7, %v1055_v28 }
 0x207   : > { %2632 = vmatmul.mubr.msk.bf16.gmra.mrb[4].mxu0 %vm2008_vm12, %v1973_v42  ;;  %1483 = vrot.lane.b32.xlu0 %v2516_v36, %s2729_s25 }
 0x208   : > { %v1085_v47 = vpop.permute.xlu1 %1084  ;;  %v1961_v61 = vld [vmem:[#allocation3 + $0xb8] sm:$0xff] }
 0x209   : > { %1156 = vst.msk [vmem:[#allocation3 + $0xc8] sm:$0xff] %vm1130_vm7, %v1085_v47  ;;  %v1981_v53 = vpack.c.bf16 %v1961_v61, %v1960_v34  ;;  %v1087_v37 = vpop.permute.xlu0 %1086 }
 0x20a   : > { %1453 = vrot.lane.b32.xlu1 %v2501_v24, %s2729_s25  ;;  %1157 = vst.msk [vmem:[#allocation3 + $0xd0] sm:$0xff] %vm1130_vm7, %v1087_v37 }
 0x20b   : > { %2648 = vmatmul.mubr.msk.bf16.gmra.mrb[4].mxu1 %vm2008_vm12, %v1981_v53  ;;  %1640 = vrot.lane.b32.xlu0 %v3640_v5, %s2730_s26  ;;  %v2564_v5 = vld [vmem:[#allocation2 + $0xda] sm:$0xff] }
 0x20c   : > { %v1057_v0 = vpop.permute.xlu1 %1056 }
 0x20d   : > { %1142 = vst.msk [vmem:[#allocation3 + $0x58] sm:$0xff] %vm1130_vm7, %v1057_v0  ;;  %v1244_v62 = vpop.permute.xlu0 %1243 }
 0x20e   : > { %1485 = vrot.lane.b32.xlu1 %v2517_v45, %s2729_s25  ;;  %1332 = vst.msk [vmem:[#allocation3 + $0x40] sm:$0xff] %vm1323_vm8, %v1244_v62 }
 0x20f   : > { %1672 = vrot.lane.b32.xlu0 %v3647_v44, %s2730_s26  ;;  %v2580_v44 = vld [vmem:[#allocation2 + $0x19a] sm:$0xff] }
 0x210   : > { %v1089_v2 = vpop.permute.xlu1 %1088 }
 0x211   : > { %1158 = vst.msk [vmem:[#allocation3 + $0xd8] sm:$0xff] %vm1130_vm7, %v1089_v2  ;;  %v1276_v25 = vpop.permute.xlu0 %1275 }
 0x212   : > { %1642 = vrot.lane.b32.xlu1 %v3650_v63, %s2730_s26  ;;  %1348 = vst.msk [vmem:[#allocation3 + $0xc0] sm:$0xff] %vm1323_vm8, %v1276_v25  ;;  %v2565_v63 = vld [vmem:[#allocation2 + $0xe2] sm:$0xff] }
 0x213   : > { %1644 = vrot.lane.b32.xlu0 %v2532_v50, %s2730_s26 }
 0x214   : > { %v1246_v1 = vpop.permute.xlu1 %1245 }
 0x215   : > { %1333 = vst.msk [vmem:[#allocation3 + $0x48] sm:$0xff] %vm1323_vm8, %v1246_v1  ;;  %v1248_v27 = vpop.permute.xlu0 %1247 }
 0x216   : > { %1674 = vrot.lane.b32.xlu1 %v3658_v48, %s2730_s26  ;;  %1334 = vst.msk [vmem:[#allocation3 + $0x50] sm:$0xff] %vm1323_vm8, %v1248_v27  ;;  %v2581_v48 = vld [vmem:[#allocation2 + $0x1a2] sm:$0xff] }
 0x217   : > { %1676 = vrot.lane.b32.xlu0 %v2548_v56, %s2730_s26 }
 0x218   : > { %v1278_v13 = vpop.permute.xlu1 %1277 }
 0x219   : > { %1349 = vst.msk [vmem:[#allocation3 + $0xc8] sm:$0xff] %vm1323_vm8, %v1278_v13  ;;  %v1280_v14 = vpop.permute.xlu0 %1279 }
 0x21a   : > { %1646 = vrot.lane.b32.xlu1 %v2533_v4, %s2730_s26  ;;  %1350 = vst.msk [vmem:[#allocation3 + $0xd0] sm:$0xff] %vm1323_vm8, %v1280_v14 }
 0x21b   : > { %1833 = vrot.lane.b32.xlu0 %v3668_v51, %s2731_s27 }
 0x21c   : > { %v1250_v46 = vpop.permute.xlu1 %1249 }
 0x21d   : > { %1335 = vst.msk [vmem:[#allocation3 + $0x58] sm:$0xff] %vm1323_vm8, %v1250_v46  ;;  %v1440_v40 = vpop.permute.xlu0 %1439 }
 0x21e   : > { %1678 = vrot.lane.b32.xlu1 %v2549_v3, %s2730_s26  ;;  %1528 = vst.msk [vmem:[#allocation3 + $0x40] sm:$0xff] %vm1519_vm9, %v1440_v40 }
 0x21f   : > { %1865 = vrot.lane.b32.xlu0 %v3675_v57, %s2731_s27 }
 0x220   : > { %v1282_v21 = vpop.permute.xlu1 %1281 }
 0x221   : > { %1351 = vst.msk [vmem:[#allocation3 + $0xd8] sm:$0xff] %vm1323_vm8, %v1282_v21  ;;  %v1472_v18 = vpop.permute.xlu0 %1471 }
 0x222   : > { %1835 = vrot.lane.b32.xlu1 %v3678_v11, %s2731_s27  ;;  %1544 = vst.msk [vmem:[#allocation3 + $0xc0] sm:$0xff] %vm1519_vm9, %v1472_v18 }
 0x223   : > { %1837 = vrot.lane.b32.xlu0 %v2564_v5, %s2731_s27 }
 0x224   : > { %v1442_v35 = vpop.permute.xlu1 %1441 }
 0x225   : > { %1529 = vst.msk [vmem:[#allocation3 + $0x48] sm:$0xff] %vm1519_vm9, %v1442_v35  ;;  %v1444_v43 = vpop.permute.xlu0 %1443 }
 0x226   : > { %1867 = vrot.lane.b32.xlu1 %v3686_v54, %s2731_s27  ;;  %1530 = vst.msk [vmem:[#allocation3 + $0x50] sm:$0xff] %vm1519_vm9, %v1444_v43  ;;  %v3804_v43 = vld [vmem:[%s3936_s2] ss:$0 sm:$0xff] }
 0x227   : > { %1869 = vrot.lane.b32.xlu0 %v2580_v44, %s2731_s27 }
 0x228   : > { %v1474_v41 = vpop.permute.xlu1 %1473 }
 0x229   : > { %1545 = vst.msk [vmem:[#allocation3 + $0xc8] sm:$0xff] %vm1519_vm9, %v1474_v41  ;;  %v1476_v38 = vpop.permute.xlu0 %1475 }
 0x22a   : > { %1839 = vrot.lane.b32.xlu1 %v2565_v63, %s2731_s27  ;;  %1546 = vst.msk [vmem:[#allocation3 + $0xd0] sm:$0xff] %vm1519_vm9, %v1476_v38 }
 0x22c   : > { %v1446_v33 = vpop.permute.xlu1 %1445 }
 0x22d   : > { %1531 = vst.msk [vmem:[#allocation3 + $0x58] sm:$0xff] %vm1519_vm9, %v1446_v33  ;;  %v1633_v49 = vpop.permute.xlu0 %1632 }
 0x22e   : > { %1871 = vrot.lane.b32.xlu1 %v2581_v48, %s2731_s27  ;;  %1721 = vst.msk [vmem:[#allocation3 + $0x40] sm:$0xff] %vm1712_vm10, %v1633_v49 }
 0x230   : > { %v1478_v22 = vpop.permute.xlu1 %1477 }
 0x231   : > { %1547 = vst.msk [vmem:[#allocation3 + $0xd8] sm:$0xff] %vm1519_vm9, %v1478_v22  ;;  %v1665_v51 = vpop.permute.xlu0 %1664 }
 0x232   : > { %1737 = vst.msk [vmem:[#allocation3 + $0xc0] sm:$0xff] %vm1712_vm10, %v1665_v51 }
 0x234   : > { %v1635_v32 = vpop.permute.xlu1 %1634 }
 0x235   : > { %1722 = vst.msk [vmem:[#allocation3 + $0x48] sm:$0xff] %vm1712_vm10, %v1635_v32  ;;  %v1637_v6 = vpop.permute.xlu0 %1636 }
 0x236   : > { %1723 = vst.msk [vmem:[#allocation3 + $0x50] sm:$0xff] %vm1712_vm10, %v1637_v6 }
 0x238   : > { %v1667_v57 = vpop.permute.xlu1 %1666 }
 0x239   : > { %1738 = vst.msk [vmem:[#allocation3 + $0xc8] sm:$0xff] %vm1712_vm10, %v1667_v57  ;;  %v1669_v52 = vpop.permute.xlu0 %1668 }
 0x23a   : > { %1739 = vst.msk [vmem:[#allocation3 + $0xd0] sm:$0xff] %vm1712_vm10, %v1669_v52 }
 0x23c   : > { %v1639_v11 = vpop.permute.xlu1 %1638 }
 0x23d   : > { %1724 = vst.msk [vmem:[#allocation3 + $0x58] sm:$0xff] %vm1712_vm10, %v1639_v11  ;;  %v1826_v58 = vpop.permute.xlu0 %1825 }
 0x23e   : > { %1914 = vst.msk [vmem:[#allocation3 + $0x40] sm:$0xff] %vm1905_vm11, %v1826_v58 }
 0x240   : > { %v1671_v59 = vpop.permute.xlu1 %1670 }
 0x241   : > { %1740 = vst.msk [vmem:[#allocation3 + $0xd8] sm:$0xff] %vm1712_vm10, %v1671_v59  ;;  %v1858_v12 = vpop.permute.xlu0 %1857 }
 0x242   : > { %1930 = vst.msk [vmem:[#allocation3 + $0xc0] sm:$0xff] %vm1905_vm11, %v1858_v12 }
 0x244   : > { %v1828_v15 = vpop.permute.xlu1 %1827 }
 0x245   : > { %1915 = vst.msk [vmem:[#allocation3 + $0x48] sm:$0xff] %vm1905_vm11, %v1828_v15  ;;  %v1830_v54 = vpop.permute.xlu0 %1829  ;;  %v1946_v7 = vld [vmem:[#allocation3 + $0x40] sm:$0xff] }
 0x246   : > { %1916 = vst.msk [vmem:[#allocation3 + $0x50] sm:$0xff] %vm1905_vm11, %v1830_v54 }
 0x248   : > { %v1860_v60 = vpop.permute.xlu1 %1859 }
 0x249   : > { %1931 = vst.msk [vmem:[#allocation3 + $0xc8] sm:$0xff] %vm1905_vm11, %v1860_v60  ;;  %v1862_v8 = vpop.permute.xlu0 %1861  ;;  %v1962_v9 = vld [vmem:[#allocation3 + $0xc0] sm:$0xff] }
 0x24a   : > { %1932 = vst.msk [vmem:[#allocation3 + $0xd0] sm:$0xff] %vm1905_vm11, %v1862_v8 }
 0x24c   : > { %v1832_v55 = vpop.permute.xlu1 %1831  ;;  %v1947_v16 = vld [vmem:[#allocation3 + $0x48] sm:$0xff] }
 0x24d   : > { %1917 = vst.msk [vmem:[#allocation3 + $0x58] sm:$0xff] %vm1905_vm11, %v1832_v55  ;;  %v1974_v26 = vpack.c.bf16 %v1947_v16, %v1946_v7  ;;  %v1059_v19 = vpop.permute.xlu0 %1058  ;;  %v1948_v17 = vld [vmem:[#allocation3 + $0x50] sm:$0xff] }
 0x24e   : > { %1143 = vst.msk [vmem:[#allocation3 + $0x60] sm:$0xff] %vm1130_vm7, %v1059_v19 }
 0x24f   : > { %2635 = vmatprep.mubr.msk.bf16.mxu0 %vm2008_vm12, %v1974_v26 }
 0x250   : > { %v1864_v10 = vpop.permute.xlu1 %1863  ;;  %v1963_v31 = vld [vmem:[#allocation3 + $0xc8] sm:$0xff] }
 0x251   : > { %1933 = vst.msk [vmem:[#allocation3 + $0xd8] sm:$0xff] %vm1905_vm11, %v1864_v10  ;;  %v1982_v30 = vpack.c.bf16 %v1963_v31, %v1962_v9  ;;  %v1091_v29 = vpop.permute.xlu0 %1090  ;;  %v1964_v42 = vld [vmem:[#allocation3 + $0xd0] sm:$0xff] }
 0x252   : > { %1159 = vst.msk [vmem:[#allocation3 + $0xe0] sm:$0xff] %vm1130_vm7, %v1091_v29 }
 0x253   : > { %2651 = vmatprep.mubr.msk.bf16.mxu1 %vm2008_vm12, %v1982_v30 }
 0x254   : > { %v1061_v39 = vpop.permute.xlu1 %1060  ;;  %v1949_v20 = vld [vmem:[#allocation3 + $0x58] sm:$0xff] }
 0x255   : > { %1144 = vst.msk [vmem:[#allocation3 + $0x68] sm:$0xff] %vm1130_vm7, %v1061_v39  ;;  %v1975_v23 = vpack.c.bf16 %v1949_v20, %v1948_v17  ;;  %v1063_v36 = vpop.permute.xlu0 %1062 }
 0x256   : > { %1145 = vst.msk [vmem:[#allocation3 + $0x70] sm:$0xff] %vm1130_vm7, %v1063_v36 }
 0x257   : > { %2636 = vmatmul.mubr.msk.bf16.gmra.mrb[8].mxu0 %vm2008_vm12, %v1975_v23 }
 0x258   : > { %v1093_v34 = vpop.permute.xlu1 %1092  ;;  %v1965_v28 = vld [vmem:[#allocation3 + $0xd8] sm:$0xff] }
 0x259   : > { %1160 = vst.msk [vmem:[#allocation3 + $0xe8] sm:$0xff] %vm1130_vm7, %v1093_v34  ;;  %v1983_v24 = vpack.c.bf16 %v1965_v28, %v1964_v42  ;;  %v1095_v47 = vpop.permute.xlu0 %1094 }
 0x25a   : > { %1161 = vst.msk [vmem:[#allocation3 + $0xf0] sm:$0xff] %vm1130_vm7, %v1095_v47 }
 0x25b   : > { %2652 = vmatmul.mubr.msk.bf16.gmra.mrb[8].mxu1 %vm2008_vm12, %v1983_v24 }
 0x25c   : > { %v1065_v61 = vpop.permute.xlu1 %1064 }
 0x25d   : > { %1146 = vst.msk [vmem:[#allocation3 + $0x78] sm:$0xff] %vm1130_vm7, %v1065_v61  ;;  %v1252_v53 = vpop.permute.xlu0 %1251 }
 0x25e   : > { %1336 = vst.msk [vmem:[#allocation3 + $0x60] sm:$0xff] %vm1323_vm8, %v1252_v53 }
 0x260   : > { %v1097_v37 = vpop.permute.xlu1 %1096 }
 0x261   : > { %1162 = vst.msk [vmem:[#allocation3 + $0xf8] sm:$0xff] %vm1130_vm7, %v1097_v37  ;;  %v1284_v45 = vpop.permute.xlu0 %1283 }
 0x262   : > { %1352 = vst.msk [vmem:[#allocation3 + $0xe0] sm:$0xff] %vm1323_vm8, %v1284_v45 }
 0x264   : > { %v1254_v0 = vpop.permute.xlu1 %1253 }
 0x265   : > { %1337 = vst.msk [vmem:[#allocation3 + $0x68] sm:$0xff] %vm1323_vm8, %v1254_v0  ;;  %v1256_v62 = vpop.permute.xlu0 %1255 }
 0x266   : > { %1338 = vst.msk [vmem:[#allocation3 + $0x70] sm:$0xff] %vm1323_vm8, %v1256_v62 }
 0x268   : > { %v1286_v2 = vpop.permute.xlu1 %1285 }
 0x269   : > { %1353 = vst.msk [vmem:[#allocation3 + $0xe8] sm:$0xff] %vm1323_vm8, %v1286_v2  ;;  %v1288_v50 = vpop.permute.xlu0 %1287 }
 0x26a   : > { %1354 = vst.msk [vmem:[#allocation3 + $0xf0] sm:$0xff] %vm1323_vm8, %v1288_v50 }
 0x26c   : > { %v1258_v25 = vpop.permute.xlu1 %1257 }
 0x26d   : > { %1339 = vst.msk [vmem:[#allocation3 + $0x78] sm:$0xff] %vm1323_vm8, %v1258_v25  ;;  %v1448_v1 = vpop.permute.xlu0 %1447 }
 0x26e   : > { %1532 = vst.msk [vmem:[#allocation3 + $0x60] sm:$0xff] %vm1519_vm9, %v1448_v1 }
 0x270   : > { %v1290_v56 = vpop.permute.xlu1 %1289 }
 0x271   : > { %1355 = vst.msk [vmem:[#allocation3 + $0xf8] sm:$0xff] %vm1323_vm8, %v1290_v56  ;;  %v1480_v27 = vpop.permute.xlu0 %1479 }
 0x272   : > { %1548 = vst.msk [vmem:[#allocation3 + $0xe0] sm:$0xff] %vm1519_vm9, %v1480_v27 }
 0x274   : > { %v1450_v4 = vpop.permute.xlu1 %1449 }
 0x275   : > { %1533 = vst.msk [vmem:[#allocation3 + $0x68] sm:$0xff] %vm1519_vm9, %v1450_v4  ;;  %v1452_v13 = vpop.permute.xlu0 %1451 }
 0x276   : > { %1534 = vst.msk [vmem:[#allocation3 + $0x70] sm:$0xff] %vm1519_vm9, %v1452_v13 }
 0x278   : > { %v1482_v14 = vpop.permute.xlu1 %1481 }
 0x279   : > { %1549 = vst.msk [vmem:[#allocation3 + $0xe8] sm:$0xff] %vm1519_vm9, %v1482_v14  ;;  %v1484_v3 = vpop.permute.xlu0 %1483 }
 0x27a   : > { %1550 = vst.msk [vmem:[#allocation3 + $0xf0] sm:$0xff] %vm1519_vm9, %v1484_v3 }
 0x27c   : > { %v1454_v46 = vpop.permute.xlu1 %1453 }
 0x27d   : > { %1535 = vst.msk [vmem:[#allocation3 + $0x78] sm:$0xff] %vm1519_vm9, %v1454_v46  ;;  %v1641_v40 = vpop.permute.xlu0 %1640 }
 0x27e   : > { %1725 = vst.msk [vmem:[#allocation3 + $0x60] sm:$0xff] %vm1712_vm10, %v1641_v40 }
 0x280   : > { %v1486_v21 = vpop.permute.xlu1 %1485 }
 0x281   : > { %1551 = vst.msk [vmem:[#allocation3 + $0xf8] sm:$0xff] %vm1519_vm9, %v1486_v21  ;;  %v1673_v5 = vpop.permute.xlu0 %1672 }
 0x282   : > { %1741 = vst.msk [vmem:[#allocation3 + $0xe0] sm:$0xff] %vm1712_vm10, %v1673_v5 }
 0x284   : > { %v1643_v18 = vpop.permute.xlu1 %1642 }
 0x285   : > { %1726 = vst.msk [vmem:[#allocation3 + $0x68] sm:$0xff] %vm1712_vm10, %v1643_v18  ;;  %v1645_v35 = vpop.permute.xlu0 %1644 }
 0x286   : > { %1727 = vst.msk [vmem:[#allocation3 + $0x70] sm:$0xff] %vm1712_vm10, %v1645_v35 }
 0x288   : > { %v1675_v44 = vpop.permute.xlu1 %1674 }
 0x289   : > { %1742 = vst.msk [vmem:[#allocation3 + $0xe8] sm:$0xff] %vm1712_vm10, %v1675_v44  ;;  %v1677_v41 = vpop.permute.xlu0 %1676 }
 0x28a   : > { %v2629_v63 = vpop.f32.mrb[0].mxu0  ;;  %1743 = vst.msk [vmem:[#allocation3 + $0xf0] sm:$0xff] %vm1712_vm10, %v1677_v41 }
 0x28b   : > { %v2107_v38 = vadd.f32 %v2629_v63, %v3804_v43  ;;  %v2098_v48 = vpop.f32.mrb[1].mxu0 }
 0x28c   : > { %v2099_v33 = vadd.f32 %v3804_v43, %v2098_v48  ;;  %v1647_v49 = vpop.permute.xlu1 %1646  ;;  %v2630_v22 = vpop.f32.mrb[2].mxu0 }
 0x28d   : > { %v2227_v51 = vmax.f32 %v2107_v38, 0.0  ;;  %1728 = vst.msk [vmem:[#allocation3 + $0x78] sm:$0xff] %vm1712_vm10, %v1647_v49  ;;  %v2110_v32 = vadd.f32 %v2630_v22, %v3804_v43  ;;  %v2101_v6 = vpop.f32.mrb[3].mxu0  ;;  %v1834_v58 = vpop.permute.xlu0 %1833 }
 0x28e   : > { %v2225_v57 = vmax.f32 %v2099_v33, 0.0  ;;  %v2102_v52 = vadd.f32 %v3804_v43, %v2101_v6  ;;  %v2645_v11 = vpop.f32.mrb[0].mxu1  ;;  %1918 = vst.msk [vmem:[#allocation3 + $0x60] sm:$0xff] %vm1905_vm11, %v1834_v58 }
 0x28f   : > { %2260 = vst.msk [vmem:[%s3814_s9 + $0x10] sm:$0xff] %vm2257_vm13, %v2227_v51  ;;  %v2228_v59 = vmax.f32 %v2110_v32, 0.0  ;;  %v2171_v12 = vadd.f32 %v2645_v11, %v3804_v43  ;;  %v2162_v15 = vpop.f32.mrb[1].mxu1 }
 0x290   : > { %2258 = vst.msk [vmem:[%s3814_s9] sm:$0xff] %vm2257_vm13, %v2225_v57  ;;  %v2226_v54 = vmax.f32 %v2102_v52, 0.0  ;;  %v2163_v60 = vadd.f32 %v3804_v43, %v2162_v15  ;;  %v2646_v7 = vpop.f32.mrb[2].mxu1  ;;  %v1679_v8 = vpop.permute.xlu1 %1678 }
 0x291   : > { %2261 = vst.msk [vmem:[%s3814_s9 + $0x18] sm:$0xff] %vm2257_vm13, %v2228_v59  ;;  %v2243_v55 = vmax.f32 %v2171_v12, 0.0  ;;  %v2174_v16 = vadd.f32 %v2646_v7, %v3804_v43  ;;  %v2165_v26 = vpop.f32.mrb[3].mxu1  ;;  %v1866_v10 = vpop.permute.xlu0 %1865 }
 0x292   : > { %1744 = vst.msk [vmem:[#allocation3 + $0xf8] sm:$0xff] %vm1712_vm10, %v1679_v8  ;;  %v2241_v9 = vmax.f32 %v2163_v60, 0.0  ;;  %v2166_v19 = vadd.f32 %v3804_v43, %v2165_v26 }
 0x293   : > { %2259 = vst.msk [vmem:[%s3814_s9 + $0x8] sm:$0xff] %vm2257_vm13, %v2226_v54  ;;  %2276 = vst.msk [vmem:[%s3814_s9 + $0x90] sm:$0xff] %vm2257_vm13, %v2243_v55  ;;  %v2244_v31 = vmax.f32 %v2174_v16, 0.0 }
 0x294   : > { %1934 = vst.msk [vmem:[#allocation3 + $0xe0] sm:$0xff] %vm1905_vm11, %v1866_v10  ;;  %v2242_v30 = vmax.f32 %v2166_v19, 0.0  ;;  %v1836_v17 = vpop.permute.xlu1 %1835 }
 0x295   : > { %2274 = vst.msk [vmem:[%s3814_s9 + $0x80] sm:$0xff] %vm2257_vm13, %v2241_v9  ;;  %2277 = vst.msk [vmem:[%s3814_s9 + $0x98] sm:$0xff] %vm2257_vm13, %v2244_v31  ;;  %v1838_v29 = vpop.permute.xlu0 %1837  ;;  %v1950_v20 = vld [vmem:[#allocation3 + $0x60] sm:$0xff] }
 0x296   : > { %1919 = vst.msk [vmem:[#allocation3 + $0x68] sm:$0xff] %vm1905_vm11, %v1836_v17  ;;  %1920 = vst.msk [vmem:[#allocation3 + $0x70] sm:$0xff] %vm1905_vm11, %v1838_v29 }
 0x297   : > { %2275 = vst.msk [vmem:[%s3814_s9 + $0x88] sm:$0xff] %vm2257_vm13, %v2242_v30 }
 0x298   : > { %v1868_v39 = vpop.permute.xlu1 %1867 }
 0x299   : > { %1935 = vst.msk [vmem:[#allocation3 + $0xe8] sm:$0xff] %vm1905_vm11, %v1868_v39  ;;  %v1870_v23 = vpop.permute.xlu0 %1869 }
 0x29a   : > { %1936 = vst.msk [vmem:[#allocation3 + $0xf0] sm:$0xff] %vm1905_vm11, %v1870_v23 }
 0x29b   : > { %v1966_v28 = vld [vmem:[#allocation3 + $0xe0] sm:$0xff] }
 0x29c   : > { %v1840_v42 = vpop.permute.xlu1 %1839 }
 0x29d   : > { %v1951_v36 = vld [vmem:[#allocation3 + $0x68] sm:$0xff]  ;;  %1921 = vst.msk [vmem:[#allocation3 + $0x78] sm:$0xff] %vm1905_vm11, %v1840_v42  ;;  %v1952_v53 = vld [vmem:[#allocation3 + $0x70] sm:$0xff] }
 0x29e   : > { %v1976_v34 = vpack.c.bf16 %v1951_v36, %v1950_v20 }
 0x2a0   : > { %2639 = vmatprep.mubr.msk.bf16.mxu0 %vm2008_vm12, %v1976_v34  ;;  %v1872_v24 = vpop.permute.xlu1 %1871  ;;  %v1967_v47 = vld [vmem:[#allocation3 + $0xe8] sm:$0xff] }
 0x2a1   : > { %1937 = vst.msk [vmem:[#allocation3 + $0xf8] sm:$0xff] %vm1905_vm11, %v1872_v24  ;;  %v1984_v61 = vpack.c.bf16 %v1967_v47, %v1966_v28  ;;  %v1968_v0 = vld [vmem:[#allocation3 + $0xf0] sm:$0xff] }
 0x2a3   : > { %2655 = vmatprep.mubr.msk.bf16.mxu1 %vm2008_vm12, %v1984_v61 }
 0x2a4   : > { %v1953_v37 = vld [vmem:[#allocation3 + $0x78] sm:$0xff] }
 0x2a5   : > { %v1977_v45 = vpack.c.bf16 %v1953_v37, %v1952_v53 }
 0x2a7   : > { %2640 = vmatmul.mubr.msk.bf16.gmra.mrb[12].mxu0 %vm2008_vm12, %v1977_v45 }
 0x2a8   : > { %v1969_v62 = vld [vmem:[#allocation3 + $0xf8] sm:$0xff] }
 0x2a9   : > { %v1985_v2 = vpack.c.bf16 %v1969_v62, %v1968_v0 }
 0x2ab   : > { %2656 = vmatmul.mubr.msk.bf16.gmra.mrb[12].mxu1 %vm2008_vm12, %v1985_v2 }
 0x2da   : > { %v2633_v50 = vpop.f32.mrb[4].mxu0 }
 0x2db   : > { %v2123_v25 = vadd.f32 %v2633_v50, %v3804_v43  ;;  %v2114_v1 = vpop.f32.mrb[5].mxu0 }
 0x2dc   : > { %v2115_v56 = vadd.f32 %v3804_v43, %v2114_v1  ;;  %v2634_v27 = vpop.f32.mrb[6].mxu0 }
 0x2dd   : > { %v2231_v4 = vmax.f32 %v2123_v25, 0.0  ;;  %v2126_v13 = vadd.f32 %v2634_v27, %v3804_v43  ;;  %v2117_v14 = vpop.f32.mrb[7].mxu0 }
 0x2de   : > { %v2229_v3 = vmax.f32 %v2115_v56, 0.0  ;;  %v2118_v46 = vadd.f32 %v3804_v43, %v2117_v14  ;;  %v2649_v40 = vpop.f32.mrb[4].mxu1 }
 0x2df   : > { %2264 = vst.msk [vmem:[%s3814_s9 + $0x30] sm:$0xff] %vm2257_vm13, %v2231_v4  ;;  %v2232_v21 = vmax.f32 %v2126_v13, 0.0  ;;  %v2187_v5 = vadd.f32 %v2649_v40, %v3804_v43  ;;  %v2178_v18 = vpop.f32.mrb[5].mxu1 }
 0x2e0   : > { %2262 = vst.msk [vmem:[%s3814_s9 + $0x20] sm:$0xff] %vm2257_vm13, %v2229_v3  ;;  %v2230_v35 = vmax.f32 %v2118_v46, 0.0  ;;  %v2179_v44 = vadd.f32 %v3804_v43, %v2178_v18  ;;  %v2650_v63 = vpop.f32.mrb[6].mxu1 }
 0x2e1   : > { %2265 = vst.msk [vmem:[%s3814_s9 + $0x38] sm:$0xff] %vm2257_vm13, %v2232_v21  ;;  %v2247_v41 = vmax.f32 %v2187_v5, 0.0  ;;  %v2190_v38 = vadd.f32 %v2650_v63, %v3804_v43  ;;  %v2181_v48 = vpop.f32.mrb[7].mxu1 }
 0x2e2   : > { %2263 = vst.msk [vmem:[%s3814_s9 + $0x28] sm:$0xff] %vm2257_vm13, %v2230_v35  ;;  %v2245_v33 = vmax.f32 %v2179_v44, 0.0  ;;  %v2182_v49 = vadd.f32 %v3804_v43, %v2181_v48 }
 0x2e3   : > { %2280 = vst.msk [vmem:[%s3814_s9 + $0xb0] sm:$0xff] %vm2257_vm13, %v2247_v41  ;;  %v2248_v22 = vmax.f32 %v2190_v38, 0.0 }
 0x2e4   : > { %2278 = vst.msk [vmem:[%s3814_s9 + $0xa0] sm:$0xff] %vm2257_vm13, %v2245_v33  ;;  %v2246_v51 = vmax.f32 %v2182_v49, 0.0 }
 0x2e5   : > { %2281 = vst.msk [vmem:[%s3814_s9 + $0xb8] sm:$0xff] %vm2257_vm13, %v2248_v22 }
 0x2e6   : > { %2279 = vst.msk [vmem:[%s3814_s9 + $0xa8] sm:$0xff] %vm2257_vm13, %v2246_v51 }
 0x32a   : > { %v2637_v32 = vpop.f32.mrb[8].mxu0 }
 0x32b   : > { %v2139_v6 = vadd.f32 %v2637_v32, %v3804_v43  ;;  %v2130_v57 = vpop.f32.mrb[9].mxu0 }
 0x32c   : > { %v2131_v52 = vadd.f32 %v3804_v43, %v2130_v57  ;;  %v2638_v11 = vpop.f32.mrb[10].mxu0 }
 0x32d   : > { %v2235_v58 = vmax.f32 %v2139_v6, 0.0  ;;  %v2142_v59 = vadd.f32 %v2638_v11, %v3804_v43  ;;  %v2133_v12 = vpop.f32.mrb[11].mxu0 }
 0x32e   : > { %v2233_v15 = vmax.f32 %v2131_v52, 0.0  ;;  %v2134_v54 = vadd.f32 %v3804_v43, %v2133_v12  ;;  %v2653_v60 = vpop.f32.mrb[8].mxu1 }
 0x32f   : > { %2268 = vst.msk [vmem:[%s3814_s9 + $0x50] sm:$0xff] %vm2257_vm13, %v2235_v58  ;;  %v2236_v7 = vmax.f32 %v2142_v59, 0.0  ;;  %v2203_v8 = vadd.f32 %v2653_v60, %v3804_v43  ;;  %v2194_v55 = vpop.f32.mrb[9].mxu1 }
 0x330   : > { %2266 = vst.msk [vmem:[%s3814_s9 + $0x40] sm:$0xff] %vm2257_vm13, %v2233_v15  ;;  %v2234_v16 = vmax.f32 %v2134_v54, 0.0  ;;  %v2195_v26 = vadd.f32 %v3804_v43, %v2194_v55  ;;  %v2654_v9 = vpop.f32.mrb[10].mxu1 }
 0x331   : > { %2269 = vst.msk [vmem:[%s3814_s9 + $0x58] sm:$0xff] %vm2257_vm13, %v2236_v7  ;;  %v2251_v19 = vmax.f32 %v2203_v8, 0.0  ;;  %v2206_v10 = vadd.f32 %v2654_v9, %v3804_v43  ;;  %v2197_v31 = vpop.f32.mrb[11].mxu1 }
 0x332   : > { %2267 = vst.msk [vmem:[%s3814_s9 + $0x48] sm:$0xff] %vm2257_vm13, %v2234_v16  ;;  %v2249_v30 = vmax.f32 %v2195_v26, 0.0  ;;  %v2198_v17 = vadd.f32 %v3804_v43, %v2197_v31 }
 0x333   : > { %2284 = vst.msk [vmem:[%s3814_s9 + $0xd0] sm:$0xff] %vm2257_vm13, %v2251_v19  ;;  %v2252_v29 = vmax.f32 %v2206_v10, 0.0 }
 0x334   : > { %2282 = vst.msk [vmem:[%s3814_s9 + $0xc0] sm:$0xff] %vm2257_vm13, %v2249_v30  ;;  %v2250_v39 = vmax.f32 %v2198_v17, 0.0 }
 0x335   : > { %2285 = vst.msk [vmem:[%s3814_s9 + $0xd8] sm:$0xff] %vm2257_vm13, %v2252_v29 }
 0x336   : > { %2283 = vst.msk [vmem:[%s3814_s9 + $0xc8] sm:$0xff] %vm2257_vm13, %v2250_v39 }
 0x37a   : > { %v2641_v20 = vpop.f32.mrb[12].mxu0 }
 0x37b   : > { %v2155_v23 = vadd.f32 %v2641_v20, %v3804_v43  ;;  %v2146_v42 = vpop.f32.mrb[13].mxu0 }
 0x37c   : > { %v2147_v36 = vadd.f32 %v3804_v43, %v2146_v42  ;;  %v2642_v34 = vpop.f32.mrb[14].mxu0 }
 0x37d   : > { %v2239_v28 = vmax.f32 %v2155_v23, 0.0  ;;  %v2158_v24 = vadd.f32 %v2642_v34, %v3804_v43  ;;  %v2149_v47 = vpop.f32.mrb[15].mxu0 }
 0x37e   : > { %v2237_v61 = vmax.f32 %v2147_v36, 0.0  ;;  %v2150_v53 = vadd.f32 %v3804_v43, %v2149_v47  ;;  %v2657_v37 = vpop.f32.mrb[12].mxu1 }
 0x37f   : > { %2272 = vst.msk [vmem:[%s3814_s9 + $0x70] sm:$0xff] %vm2257_vm13, %v2239_v28  ;;  %v2240_v45 = vmax.f32 %v2158_v24, 0.0  ;;  %v2219_v0 = vadd.f32 %v2657_v37, %v3804_v43  ;;  %v2210_v62 = vpop.f32.mrb[13].mxu1 }
 0x380   : > { %2270 = vst.msk [vmem:[%s3814_s9 + $0x60] sm:$0xff] %vm2257_vm13, %v2237_v61  ;;  %v2238_v2 = vmax.f32 %v2150_v53, 0.0  ;;  %v2211_v50 = vadd.f32 %v3804_v43, %v2210_v62  ;;  %v2658_v25 = vpop.f32.mrb[14].mxu1 }
 0x381   : > { %2273 = vst.msk [vmem:[%s3814_s9 + $0x78] sm:$0xff] %vm2257_vm13, %v2240_v45  ;;  %v2255_v1 = vmax.f32 %v2219_v0, 0.0  ;;  %v2222_v56 = vadd.f32 %v2658_v25, %v3804_v43  ;;  %v2213_v27 = vpop.f32.mrb[15].mxu1 }
 0x382   : > { %2271 = vst.msk [vmem:[%s3814_s9 + $0x68] sm:$0xff] %vm2257_vm13, %v2238_v2  ;;  %v2253_v4 = vmax.f32 %v2211_v50, 0.0  ;;  %v2214_v13 = vadd.f32 %v3804_v43, %v2213_v27 }
 0x383   : > { %2288 = vst.msk [vmem:[%s3814_s9 + $0xf0] sm:$0xff] %vm2257_vm13, %v2255_v1  ;;  %v2256_v14 = vmax.f32 %v2222_v56, 0.0 }
 0x384   : > { %2286 = vst.msk [vmem:[%s3814_s9 + $0xe0] sm:$0xff] %vm2257_vm13, %v2253_v4  ;;  %v2254_v3 = vmax.f32 %v2214_v13, 0.0 }
 0x385   : > { %2289 = vst.msk [vmem:[%s3814_s9 + $0xf8] sm:$0xff] %vm2257_vm13, %v2256_v14 }
 0x386   : > { %2287 = vst.msk [vmem:[%s3814_s9 + $0xe8] sm:$0xff] %vm2257_vm13, %v2254_v3 }
 0x387 PF: > { %s13_s14 = sadd.s32 1, %s2721_s14   ;;  %s3953_s12 = smov %s2717_s13 }
 0x388   : > { %p10_p5 = scmp.ge.s32.totalorder %s13_s14, 4   ;;  %s3954_s13 = smov %s3956_s15 }
 0x38a   :  { %12 = sbr.rel (!%p10_p5) target bundleno = 2 (0x2), region = 70 }

// kernel: unet_forward.16
= control target key start
LH: loop header
LB: loop body
LE: loop exit
PB: predicated region body
PF: predicated region fallthrough
CT: control target
= control target key end

     0   :  { %s353_s9 = smov 0   ;;  %s377_s0 = inlined_call_operand.vmem [shape: f32[8,4,64], index: 0, kind: input, shape index: {}]   ;;  %s378_s1 = inlined_call_operand.vmem [shape: f32[8,2,4,128], index: 1, kind: input, shape index: {}]   ;;  %s379_s2 = inlined_call_operand.vmem [shape: f32[8,2,4,128], index: 2, kind: output, shape index: {}]  }
   0x1 LB: > { %s295_s10 = sadd.s32 4294967295, %s335_s9   ;;  %p299_p0 = scmp.ge.s32.totalorder %s335_s9, 1  ;;  %s335_s9 = sphi %s353_s9, %s12_s9  }
   0x2   : > { %p125_p1 = scmp.lt.s32.totalorder %s335_s9, 3 }
   0x4   : > { %p126_p2 = pnand %p299_p0, %p125_p1 }
   0x5   : > { %s300_s11 = sshll.u32 (!%p126_p2), %s295_s10, 2  ;;  %s337_s16 = smov (!%p126_p2), 64   ;;  %vm194_vm0 = vcmask (!%p126_p2), 523264  }
   0x6   : > { %129 = sbr.rel (%p126_p2) target bundleno = 141 (0x8d), region = 28  ;;  %p155_p3 = scmp.lt.s32.totalorder (!%p126_p2), %s300_s11, 7 }
   0xd   : > { %s381_s11 = smov (!%p155_p3, %s300_s11), 7 }
   0xe   : > { %s301_s12 = sshll.u32 %s381_s11, 2  ;;  %s318_s17 = sshll.u32 %s381_s11, 3 }
   0xf   : > { %s158_s15 = scalar_lea.vmem %s377_s0, %s301_s12  ;;  %s165_s20 = scalar_lea.vmem %s378_s1, %s318_s17 }
  0x10   : > { %v174_v0 = vld [vmem:[%s158_s15] sm:$0xf]  ;;  %v176_v1 = vld [vmem:[%s158_s15 + $0x8] sm:$0xf]  ;;  %v175_v2 = vld [vmem:[%s158_s15 + $0x4] sm:$0xf]  ;;  %s172_s23 = scalar_lea.vmem %s379_s2, %s318_s17 }
  0x11   : > { %182 = vrot.lane.b32.xlu0 %v174_v0, %s337_s16  ;;  %186 = vrot.lane.b32.xlu1 %v176_v1, %s337_s16  ;;  %v177_v3 = vld [vmem:[%s158_s15 + $0xc] sm:$0xf]  ;;  %v199_v4 = vld [vmem:[%s165_s20] sm:$0xf] }
  0x12   : > { %v308_v5 = vld [vmem:[%s165_s20 + $0x4] sm:$0xf]  ;;  %v200_v11 = vld [vmem:[%s165_s20 + $0x8] sm:$0xf]  ;;  %v309_v12 = vld [vmem:[%s165_s20 + $0xc] sm:$0xf] }
  0x13   : > { %v202_v13 = vld [vmem:[%s165_s20 + $0x18] sm:$0xf]  ;;  %v311_v14 = vld [vmem:[%s165_s20 + $0x1c] sm:$0xf]  ;;  %v201_v15 = vld [vmem:[%s165_s20 + $0x10] sm:$0xf] }
  0x14   : > { %v310_v16 = vld [vmem:[%s165_s20 + $0x14] sm:$0xf] }
  0x15   : > { %184 = vrot.lane.b32.xlu0 %v175_v2, %s337_s16  ;;  %188 = vrot.lane.b32.xlu1 %v177_v3, %s337_s16 }
  0x83   : > { %v183_v6 = vpop.permute.xlu0 %182  ;;  %v187_v7 = vpop.permute.xlu1 %186 }
  0x84   : > { %v195_v8 = vsel %vm194_vm0, %v174_v0, %v183_v6  ;;  %v197_v17 = vsel %vm194_vm0, %v176_v1, %v187_v7 }
  0x85   : > { %v203_v9 = vadd.f32 %v199_v4, %v195_v8  ;;  %v216_v10 = vadd.f32 %v308_v5, %v195_v8  ;;  %v205_v26 = vadd.f32 %v201_v15, %v197_v17  ;;  %v218_v27 = vadd.f32 %v310_v16, %v197_v17 }
  0x87   : > { %207 = vst [vmem:[%s172_s23] sm:$0xf] %v203_v9  ;;  %312 = vst [vmem:[%s172_s23 + $0x4] sm:$0xf] %v216_v10  ;;  %v185_v18 = vpop.permute.xlu0 %184  ;;  %v189_v19 = vpop.permute.xlu1 %188 }
  0x88   : > { %v196_v20 = vsel %vm194_vm0, %v175_v2, %v185_v18  ;;  %v198_v21 = vsel %vm194_vm0, %v177_v3, %v189_v19  ;;  %209 = vst [vmem:[%s172_s23 + $0x10] sm:$0xf] %v205_v26  ;;  %314 = vst [vmem:[%s172_s23 + $0x14] sm:$0xf] %v218_v27 }
  0x89   : > { %v204_v22 = vadd.f32 %v200_v11, %v196_v20  ;;  %v217_v23 = vadd.f32 %v309_v12, %v196_v20  ;;  %v206_v24 = vadd.f32 %v202_v13, %v198_v21  ;;  %v219_v25 = vadd.f32 %v311_v14, %v198_v21 }
  0x8b   : > { %208 = vst [vmem:[%s172_s23 + $0x8] sm:$0xf] %v204_v22  ;;  %313 = vst [vmem:[%s172_s23 + $0xc] sm:$0xf] %v217_v23 }
  0x8c   : > { %210 = vst [vmem:[%s172_s23 + $0x18] sm:$0xf] %v206_v24  ;;  %315 = vst [vmem:[%s172_s23 + $0x1c] sm:$0xf] %v219_v25 }
  0x8d PF: > { %s12_s9 = sadd.s32 1, %s335_s9  }
  0x8e   : > { %p9_p4 = scmp.ge.s32.totalorder %s12_s9, 4  }
  0x90   :  { %11 = sbr.rel (!%p9_p4) target bundleno = 1 (0x1), region = 63 }

// kernel: unet_forward.15
= control target key start
LH: loop header
LB: loop body
LE: loop exit
PB: predicated region body
PF: predicated region fallthrough
CT: control target
= control target key end

     0   :  { %s1661_s12 = smov 0   ;;  %s1663_s13 = smov 0   ;;  %s1939_s0 = inlined_call_operand.vmem [shape: f32[2,4,4,128], index: 0, kind: input, shape index: {}]   ;;  %s1940_s1 = inlined_call_operand.vmem [shape: bf16[1152,64], index: 1, kind: input, shape index: {}]   ;;  %s1941_s2 = inlined_call_operand.vmem [shape: f32[1,64], index: 2, kind: input, shape index: {}]   ;;  %s1942_s3 = inlined_call_operand.vmem [shape: f32[2,16,64], index: 3, kind: output, shape index: {}]  }
   0x1   :  { %s1665_s14 = smov 0  }
   0x2 LB: > { %s25_s15 = sadd.s32 1, %s1633_s13  ;;  %p1268_p0 = scmp.ge.s32.totalorder %s1637_s14, 1  ;;  %s1637_s14 = sphi %s1665_s14, %s13_s14   ;;  %s1633_s13 = sphi %s1663_s13, %s1944_s13   ;;  %s1629_s12 = sphi %s1661_s12, %s1943_s12  }
   0x3   : > { %p27_p1 = scmp.ge.s32.totalorder %s25_s15, 2  ;;  %p151_p2 = scmp.lt.s32.totalorder %s1637_s14, 3 }
   0x5   : > { %s1946_s15 = smov (%p27_p1, %s25_s15), 0  ;;  %p152_p3 = pnand %p1268_p0, %p151_p2 }
   0x6   : > { %v1517_v0 = vld [vmem:[%s1940_s1 + $0x40] sm:$0xff] (!%p152_p3)   ;;  %v1639_v3 = vmov (!%p152_p3), 0.0   ;;  %v1521_v5 = vld [vmem:[%s1940_s1 + $0x48] sm:$0xff] (!%p152_p3)   ;;  %v1525_v9 = vld [vmem:[%s1940_s1 + $0x50] sm:$0xff] (!%p152_p3)   ;;  %p179_p4 = scmp.lt.s32.totalorder (!%p152_p3), %s1629_s12, 1  ;;  %vm1640_vm0 = vmmov (!%p152_p3), 0  }
   0x7   : > { %155 = sbr.rel (%p152_p3) target bundleno = 323 (0x143), region = 32  ;;  %v1518_v1 = vld [vmem:[%s1940_s1] sm:$0xff] (!%p152_p3)   ;;  %1374 = vmatprep.subr.bf16.mxu0 (!%p152_p3), %v1517_v0  ;;  %199 = vst [vmem:[#allocation2] sm:$0x3f] (!%p152_p3), %v1639_v3  ;;  %200 = vst [vmem:[#allocation2 + $0x8] sm:$0x3f] (!%p152_p3), %v1639_v3 }
   0x8   : > { %v1519_v2 = vld [vmem:[%s1940_s1 + $0xc0] sm:$0xff] (!%p152_p3)   ;;  %201 = vst [vmem:[#allocation2 + $0x10] sm:$0x3f] (!%p152_p3), %v1639_v3  ;;  %202 = vst [vmem:[#allocation2 + $0x18] sm:$0x3f] (!%p152_p3), %v1639_v3  ;;  %1375 = vmatpush3.bf16.msra.mxu0 (!%p152_p3), %v1518_v1  ;;  %v1522_v6 = vld [vmem:[%s1940_s1 + $0x8] sm:$0xff] (!%p152_p3)  }
   0x9   : > { %203 = vst [vmem:[#allocation2 + $0x20] sm:$0x3f] (!%p152_p3), %v1639_v3  ;;  %204 = vst [vmem:[#allocation2 + $0x28] sm:$0x3f] (!%p152_p3), %v1639_v3  ;;  %v1520_v4 = vld [vmem:[%s1940_s1 + $0x80] sm:$0xff] (!%p152_p3)   ;;  %1396 = vmatprep.subr.bf16.mxu1 (!%p152_p3), %v1519_v2  ;;  %1376 = vmatprep.subr.bf16.mxu0 (!%p152_p3), %v1521_v5  ;;  %v1523_v7 = vld [vmem:[%s1940_s1 + $0xc8] sm:$0xff] (!%p152_p3)  }
   0xa   : > { %1397 = vmatpush3.bf16.msra.mxu1 (!%p152_p3), %v1520_v4  ;;  %v1524_v8 = vld [vmem:[%s1940_s1 + $0x88] sm:$0xff] (!%p152_p3)   ;;  %v1526_v10 = vld [vmem:[%s1940_s1 + $0x10] sm:$0xff] (!%p152_p3)   ;;  %v1529_v13 = vld [vmem:[%s1940_s1 + $0x58] sm:$0xff] (!%p152_p3)   ;;  %vm1170_vm1 = vcmask (!%p152_p3), 523264  }
   0xb   : > { %1398 = vmatprep.subr.bf16.mxu1 (!%p152_p3), %v1523_v7  ;;  %v1527_v11 = vld [vmem:[%s1940_s1 + $0xd0] sm:$0xff] (!%p152_p3)   ;;  %v1530_v14 = vld [vmem:[%s1940_s1 + $0x18] sm:$0xff] (!%p152_p3)   ;;  %v1533_v17 = vld [vmem:[%s1940_s1 + $0x60] sm:$0xff] (!%p152_p3)  }
   0xc   : > { %1377 = vmatpush3.bf16.msra.mxu0 (!%p152_p3), %v1522_v6  ;;  %v1528_v12 = vld [vmem:[%s1940_s1 + $0x90] sm:$0xff] (!%p152_p3)   ;;  %v1531_v15 = vld [vmem:[%s1940_s1 + $0xd8] sm:$0xff] (!%p152_p3)   ;;  %v1534_v18 = vld [vmem:[%s1940_s1 + $0x20] sm:$0xff] (!%p152_p3)  }
   0xd   : > { %1378 = vmatprep.subr.bf16.mxu0 (!%p152_p3), %v1525_v9  ;;  %v1532_v16 = vld [vmem:[%s1940_s1 + $0x98] sm:$0xff] (!%p152_p3)   ;;  %v1535_v19 = vld [vmem:[%s1940_s1 + $0xe0] sm:$0xff] (!%p152_p3)   ;;  %v1537_v21 = vld [vmem:[%s1940_s1 + $0x68] sm:$0xff] (!%p152_p3)  }
   0xe   : > { %1399 = vmatpush3.bf16.msra.mxu1 %v1524_v8  ;;  %v1536_v20 = vld [vmem:[%s1940_s1 + $0xa0] sm:$0xff]   ;;  %v1538_v22 = vld [vmem:[%s1940_s1 + $0x28] sm:$0xff]   ;;  %s1948_s12 = smov (!%p179_p4, %s1629_s12), 1  ;;  %v1541_v25 = vld [vmem:[%s1940_s1 + $0x70] sm:$0xff]  }
   0xf   : > { %1400 = vmatprep.subr.bf16.mxu1 %v1527_v11  ;;  %v1539_v23 = vld [vmem:[%s1940_s1 + $0xe8] sm:$0xff]   ;;  %v1542_v26 = vld [vmem:[%s1940_s1 + $0x30] sm:$0xff]   ;;  %s1372_s22 = sshll.u32 %s1948_s12, 4  ;;  %v1545_v29 = vld [vmem:[%s1940_s1 + $0x78] sm:$0xff]  }
  0x10   : > { %1379 = vmatpush3.bf16.msra.mxu0 %v1526_v10  ;;  %v1540_v24 = vld [vmem:[%s1940_s1 + $0xa8] sm:$0xff]   ;;  %v1543_v27 = vld [vmem:[%s1940_s1 + $0xf0] sm:$0xff]   ;;  %s183_s4 = scalar_lea.vmem %s1939_s0, %s1372_s22  ;;  %v1546_v30 = vld [vmem:[%s1940_s1 + $0x38] sm:$0xff]   ;;  %s192_s7 = scalar_lea.vmem %s1942_s3, %s1372_s22 }
  0x11   : > { %1380 = vmatprep.subr.bf16.mxu0 %v1529_v13  ;;  %v1544_v28 = vld [vmem:[%s1940_s1 + $0xb0] sm:$0xff]   ;;  %v1547_v31 = vld [vmem:[%s1940_s1 + $0xf8] sm:$0xff]   ;;  %v205_v32 = vld [vmem:[%s183_s4] sm:$0xf] }
  0x12   : > { %1401 = vmatpush3.bf16.msra.mxu1 %v1528_v12  ;;  %v206_v33 = vld [vmem:[%s183_s4 + $0x4] sm:$0xf]  ;;  %v207_v34 = vld [vmem:[%s183_s4 + $0x8] sm:$0xf]  ;;  %210 = vst [vmem:[#allocation2 + $0x9] sm:$0xf] %v205_v32 }
  0x13   : > { %1402 = vmatprep.subr.bf16.mxu1 %v1531_v15  ;;  %211 = vst [vmem:[#allocation2 + $0x11] sm:$0xf] %v206_v33  ;;  %212 = vst [vmem:[#allocation2 + $0x19] sm:$0xf] %v207_v34  ;;  %v217_v35 = vld [vmem:[#allocation2] sm:$0xf] }
  0x14   : > { %1381 = vmatpush3.bf16.msra.mxu0 %v1530_v14  ;;  %v225_v36 = vld [vmem:[#allocation2 + $0x1] sm:$0xf]  ;;  %221 = vst [vmem:[#allocation3] sm:$0xf] %v217_v35  ;;  %v1554_v37 = vld [vmem:[%s1940_s1 + $0xb8] sm:$0xff]   ;;  %v1565_v4 = vld [vmem:[%s1940_s1 + $0x148] sm:$0xff]  }
  0x15   : > { %1382 = vmatprep.subr.bf16.mxu0 %v1533_v17  ;;  %229 = vst [vmem:[#allocation3 + $0x4] sm:$0xf] %v225_v36  ;;  %v1555_v38 = vld [vmem:[%s1940_s1 + $0x140] sm:$0xff]   ;;  %v208_v39 = vld [vmem:[%s183_s4 + $0xc] sm:$0xf]  ;;  %v1569_v10 = vld [vmem:[%s1940_s1 + $0x150] sm:$0xff]  }
  0x16   : > { %1403 = vmatpush3.bf16.msra.mxu1 %v1532_v16  ;;  %213 = vst [vmem:[#allocation2 + $0x21] sm:$0xf] %v208_v39  ;;  %v233_v40 = vld [vmem:[#allocation2 + $0x2] sm:$0xf]  ;;  %v1566_v7 = vld [vmem:[%s1940_s1 + $0x108] sm:$0xff]   ;;  %v1570_v11 = vld [vmem:[%s1940_s1 + $0x110] sm:$0xff]  }
  0x17   : > { %1404 = vmatprep.subr.bf16.mxu1 %v1535_v19  ;;  %237 = vst [vmem:[#allocation3 + $0x8] sm:$0xf] %v233_v40  ;;  %v1563_v41 = vld [vmem:[%s1940_s1 + $0x1c0] sm:$0xff]   ;;  %v1567_v8 = vld [vmem:[%s1940_s1 + $0x1c8] sm:$0xff]   ;;  %v1571_v12 = vld [vmem:[%s1940_s1 + $0x1d0] sm:$0xff]  }
  0x18   : > { %1383 = vmatpush3.bf16.msra.mxu0 %v1534_v18  ;;  %v1562_v59 = vld [vmem:[%s1940_s1 + $0x100] sm:$0xff]   ;;  %v1568_v9 = vld [vmem:[%s1940_s1 + $0x188] sm:$0xff]   ;;  %v1572_v13 = vld [vmem:[%s1940_s1 + $0x190] sm:$0xff]  }
  0x19   : > { %1384 = vmatprep.subr.bf16.mxu0 %v1537_v21  ;;  %v218_v42 = vld [vmem:[#allocation2 + $0x8] sm:$0xf]  ;;  %v1564_v2 = vld [vmem:[%s1940_s1 + $0x180] sm:$0xff]   ;;  %v1573_v14 = vld [vmem:[%s1940_s1 + $0x158] sm:$0xff]  }
  0x1a   : > { %1405 = vmatpush3.bf16.msra.mxu1 %v1536_v20  ;;  %v219_v43 = vld [vmem:[#allocation2 + $0x10] sm:$0xf]  ;;  %v220_v44 = vld [vmem:[#allocation2 + $0x18] sm:$0xf]  ;;  %222 = vst [vmem:[#allocation3 + $0x24] sm:$0xf] %v218_v42 }
  0x1b   : > { %1406 = vmatprep.subr.bf16.mxu1 %v1539_v23  ;;  %223 = vst [vmem:[#allocation3 + $0x48] sm:$0xf] %v219_v43  ;;  %224 = vst [vmem:[#allocation3 + $0x6c] sm:$0xf] %v220_v44  ;;  %v226_v45 = vld [vmem:[#allocation2 + $0x9] sm:$0xf] }
  0x1c   : > { %1385 = vmatpush3.bf16.msra.mxu0 %v1538_v22  ;;  %v227_v46 = vld [vmem:[#allocation2 + $0x11] sm:$0xf]  ;;  %v228_v47 = vld [vmem:[#allocation2 + $0x19] sm:$0xf]  ;;  %230 = vst [vmem:[#allocation3 + $0x28] sm:$0xf] %v226_v45 }
  0x1d   : > { %1386 = vmatprep.subr.bf16.mxu0 %v1541_v25  ;;  %231 = vst [vmem:[#allocation3 + $0x4c] sm:$0xf] %v227_v46  ;;  %232 = vst [vmem:[#allocation3 + $0x70] sm:$0xf] %v228_v47  ;;  %v234_v48 = vld [vmem:[#allocation2 + $0xa] sm:$0xf] }
  0x1e   : > { %1407 = vmatpush3.bf16.msra.mxu1 %v1540_v24  ;;  %v235_v49 = vld [vmem:[#allocation2 + $0x12] sm:$0xf]  ;;  %v236_v50 = vld [vmem:[#allocation2 + $0x1a] sm:$0xf]  ;;  %238 = vst [vmem:[#allocation3 + $0x2c] sm:$0xf] %v234_v48 }
  0x1f   : > { %1408 = vmatprep.subr.bf16.mxu1 %v1543_v27  ;;  %239 = vst [vmem:[#allocation3 + $0x50] sm:$0xf] %v235_v49  ;;  %v1273_v51 = vld [vmem:[#allocation2 + $0x8] sm:$0xf]  ;;  %v1274_v52 = vld [vmem:[#allocation2 + $0x10] sm:$0xf] }
  0x20   : > { %1387 = vmatpush3.bf16.msra.mxu0 %v1542_v26  ;;  %240 = vst [vmem:[#allocation3 + $0x74] sm:$0xf] %v236_v50  ;;  %v1275_v53 = vld [vmem:[#allocation2 + $0x18] sm:$0xf]  ;;  %v1276_v54 = vld [vmem:[#allocation2 + $0x20] sm:$0xf] }
  0x21   : > { %1388 = vmatprep.subr.bf16.mxu0 %v1545_v29  ;;  %248 = vst [vmem:[#allocation3 + $0xc] sm:$0xf] %v1273_v51  ;;  %249 = vst [vmem:[#allocation3 + $0x30] sm:$0xf] %v1274_v52  ;;  %v1548_v55 = vld [vmem:[#allocation3] ss:$36 sps:$4 sm:$0xff]  }
  0x22   : > { %1409 = vmatpush3.bf16.msra.mxu1 %v1544_v28  ;;  %250 = vst [vmem:[#allocation3 + $0x54] sm:$0xf] %v1275_v53  ;;  %251 = vst [vmem:[#allocation3 + $0x78] sm:$0xf] %v1276_v54  ;;  %v1551_v57 = vld [vmem:[#allocation3 + $0x48] ss:$36 sps:$4 sm:$0xff]  }
  0x23   : > { %1410 = vmatprep.subr.bf16.mxu1 %v1547_v31  ;;  %v1550_v56 = vld [vmem:[#allocation3 + $0x4] ss:$36 sps:$4 sm:$0xff]   ;;  %v371_v60 = vpack.c.bf16 %v1551_v57, %v1548_v55  ;;  %v1577_v18 = vld [vmem:[%s1940_s1 + $0x160] sm:$0xff]   ;;  %v1581_v22 = vld [vmem:[%s1940_s1 + $0x168] sm:$0xff]  }
  0x24   : > { %1389 = vmatpush3.bf16.msra.mxu0 %v1546_v30  ;;  %v1553_v58 = vld [vmem:[#allocation3 + $0x4c] ss:$36 sps:$4 sm:$0xff]   ;;  %v1582_v23 = vld [vmem:[%s1940_s1 + $0x128] sm:$0xff]   ;;  %v1585_v26 = vld [vmem:[%s1940_s1 + $0x170] sm:$0xff]  }
  0x25   : > { %1418 = vmatprep.subr.bf16.mxu0 %v1555_v38  ;;  %v1556_v61 = vld [vmem:[#allocation3 + $0x8] ss:$36 sps:$4 sm:$0xff]   ;;  %v372_v62 = vpack.c.bf16 %v1553_v58, %v1550_v56  ;;  %v1578_v19 = vld [vmem:[%s1940_s1 + $0x120] sm:$0xff]   ;;  %v1583_v24 = vld [vmem:[%s1940_s1 + $0x1e8] sm:$0xff]  }
  0x26   : > { %1411 = vmatpush3.bf16.msra.mxu1 %v1554_v37  ;;  %v1574_v15 = vld [vmem:[%s1940_s1 + $0x118] sm:$0xff]   ;;  %v1579_v20 = vld [vmem:[%s1940_s1 + $0x1e0] sm:$0xff]   ;;  %v1584_v25 = vld [vmem:[%s1940_s1 + $0x1a8] sm:$0xff]  }
  0x27   : > { %1440 = vmatprep.subr.bf16.mxu1 %v1563_v41  ;;  %v1559_v0 = vld [vmem:[#allocation3 + $0x50] ss:$36 sps:$4 sm:$0xff]   ;;  %995 = vmatprep.mubr.bf16.mxu0 %v372_v62  ;;  %v1575_v16 = vld [vmem:[%s1940_s1 + $0x1d8] sm:$0xff]   ;;  %v1586_v27 = vld [vmem:[%s1940_s1 + $0x130] sm:$0xff]  }
  0x28   : > { %v1558_v63 = vld [vmem:[#allocation3 + $0xc] ss:$36 sps:$4 sm:$0xff]   ;;  %v373_v6 = vpack.c.bf16 %v1559_v0, %v1556_v61  ;;  %996 = vmatmul.mubr.bf16.vlgmr.msra.gmra.mrb[0].mxu0 %v371_v60  ;;  %v1587_v28 = vld [vmem:[%s1940_s1 + $0x1f0] sm:$0xff]   ;;  %v1277_v30 = vld [vmem:[#allocation2 + $0x9] sm:$0xf] }
  0x29   : > { %v1561_v1 = vld [vmem:[#allocation3 + $0x54] ss:$36 sps:$4 sm:$0xff]   ;;  %1419 = vmatpush3.bf16.msra.mxu0 %v1562_v59  ;;  %v1576_v17 = vld [vmem:[%s1940_s1 + $0x198] sm:$0xff]   ;;  %v1278_v31 = vld [vmem:[#allocation2 + $0x11] sm:$0xf] }
  0x2a   : > { %v374_v5 = vpack.c.bf16 %v1561_v1, %v1558_v63  ;;  %1420 = vmatprep.subr.bf16.mxu0 %v1565_v4  ;;  %v1580_v21 = vld [vmem:[%s1940_s1 + $0x1a0] sm:$0xff]   ;;  %v1589_v29 = vld [vmem:[%s1940_s1 + $0x178] sm:$0xff]   ;;  %v1588_v33 = vld [vmem:[%s1940_s1 + $0x1b0] sm:$0xff]   ;;  %256 = vst [vmem:[#allocation3 + $0x10] sm:$0xf] %v1277_v30 }
  0x2b   : > { %v1279_v32 = vld [vmem:[#allocation2 + $0x19] sm:$0xf]  ;;  %v1280_v34 = vld [vmem:[#allocation2 + $0x21] sm:$0xf]  ;;  %257 = vst [vmem:[#allocation3 + $0x34] sm:$0xf] %v1278_v31 }
  0x2c   : > { %1036 = vmatprep.mubr.bf16.mxu1 %v374_v5  ;;  %258 = vst [vmem:[#allocation3 + $0x58] sm:$0xf] %v1279_v32  ;;  %v1281_v35 = vld [vmem:[#allocation2 + $0xa] sm:$0xf]  ;;  %v1282_v36 = vld [vmem:[#allocation2 + $0x12] sm:$0xf] }
  0x2d   : > { %1037 = vmatmul.mubr.bf16.vlgmr.msra.gmra.mrb[0].mxu1 %v373_v6  ;;  %1421 = vmatpush3.bf16.msra.mxu0 %v1566_v7  ;;  %259 = vst [vmem:[#allocation3 + $0x7c] sm:$0xf] %v1280_v34  ;;  %v1283_v37 = vld [vmem:[#allocation2 + $0x1a] sm:$0xf]  ;;  %v1284_v38 = vld [vmem:[#allocation2 + $0x22] sm:$0xf] }
  0x2e   : > { %1441 = vmatpush3.bf16.msra.mxu1 %v1564_v2  ;;  %1422 = vmatprep.subr.bf16.mxu0 %v1569_v10  ;;  %264 = vst [vmem:[#allocation3 + $0x14] sm:$0xf] %v1281_v35  ;;  %265 = vst [vmem:[#allocation3 + $0x38] sm:$0xf] %v1282_v36  ;;  %v1590_v39 = vld [vmem:[%s1940_s1 + $0x138] sm:$0xff]   ;;  %v1605_v54 = vld [vmem:[%s1940_s1 + $0x200] sm:$0xff]  }
  0x2f   : > { %1442 = vmatprep.subr.bf16.mxu1 %v1567_v8  ;;  %v1591_v40 = vld [vmem:[%s1940_s1 + $0x1f8] sm:$0xff]   ;;  %266 = vst [vmem:[#allocation3 + $0x5c] sm:$0xf] %v1283_v37  ;;  %267 = vst [vmem:[#allocation3 + $0x80] sm:$0xf] %v1284_v38  ;;  %v1606_v63 = vld [vmem:[%s1940_s1 + $0x208] sm:$0xff]  }
  0x30   : > { %v1285_v41 = vld [vmem:[#allocation2 + $0x10] sm:$0xf]  ;;  %v1286_v42 = vld [vmem:[#allocation2 + $0x18] sm:$0xf]  ;;  %v1287_v43 = vld [vmem:[#allocation2 + $0x20] sm:$0xf] }
  0x31   : > { %1423 = vmatpush3.bf16.msra.mxu0 %v1570_v11  ;;  %v1288_v44 = vld [vmem:[#allocation2 + $0x28] sm:$0xf]  ;;  %275 = vst [vmem:[#allocation3 + $0x18] sm:$0xf] %v1285_v41  ;;  %276 = vst [vmem:[#allocation3 + $0x3c] sm:$0xf] %v1286_v42 }
  0x32   : > { %1443 = vmatpush3.bf16.msra.mxu1 %v1568_v9  ;;  %1424 = vmatprep.subr.bf16.mxu0 %v1573_v14  ;;  %277 = vst [vmem:[#allocation3 + $0x60] sm:$0xf] %v1287_v43  ;;  %278 = vst [vmem:[#allocation3 + $0x84] sm:$0xf] %v1288_v44  ;;  %v1289_v45 = vld [vmem:[#allocation2 + $0x11] sm:$0xf] }
  0x33   : > { %1444 = vmatprep.subr.bf16.mxu1 %v1571_v12  ;;  %v1290_v46 = vld [vmem:[#allocation2 + $0x19] sm:$0xf]  ;;  %v1291_v47 = vld [vmem:[#allocation2 + $0x21] sm:$0xf]  ;;  %v1292_v48 = vld [vmem:[#allocation2 + $0x29] sm:$0xf] }
  0x34   : > { %283 = vst [vmem:[#allocation3 + $0x1c] sm:$0xf] %v1289_v45  ;;  %284 = vst [vmem:[#allocation3 + $0x40] sm:$0xf] %v1290_v46  ;;  %v1598_v49 = vld [vmem:[%s1940_s1 + $0x1b8] sm:$0xff]   ;;  %v1607_v5 = vld [vmem:[%s1940_s1 + $0x210] sm:$0xff]  }
  0x35   : > { %1425 = vmatpush3.bf16.msra.mxu0 %v1574_v15  ;;  %285 = vst [vmem:[#allocation3 + $0x64] sm:$0xf] %v1291_v47  ;;  %286 = vst [vmem:[#allocation3 + $0x88] sm:$0xf] %v1292_v48  ;;  %v1592_v50 = vld [vmem:[#allocation3 + $0x10] ss:$36 sps:$4 sm:$0xff]  }
  0x36   : > { %1445 = vmatpush3.bf16.msra.mxu1 %v1572_v13  ;;  %1426 = vmatprep.subr.bf16.mxu0 %v1577_v18  ;;  %v1594_v51 = vld [vmem:[#allocation3 + $0x14] ss:$36 sps:$4 sm:$0xff]   ;;  %v1597_v53 = vld [vmem:[#allocation3 + $0x5c] ss:$36 sps:$4 sm:$0xff]   ;;  %v1294_v1 = vld [vmem:[#allocation2 + $0x1a] sm:$0xf] }
  0x37   : > { %1446 = vmatprep.subr.bf16.mxu1 %v1575_v16  ;;  %v1595_v52 = vld [vmem:[#allocation3 + $0x58] ss:$36 sps:$4 sm:$0xff]   ;;  %v376_v55 = vpack.c.bf16 %v1597_v53, %v1594_v51  ;;  %v1293_v0 = vld [vmem:[#allocation2 + $0x12] sm:$0xf]  ;;  %v1295_v2 = vld [vmem:[#allocation2 + $0x22] sm:$0xf] }
  0x38   : > { %v375_v56 = vpack.c.bf16 %v1595_v52, %v1592_v50  ;;  %v1599_v57 = vld [vmem:[#allocation3 + $0x18] ss:$36 sps:$4 sm:$0xff]   ;;  %291 = vst [vmem:[#allocation3 + $0x20] sm:$0xf] %v1293_v0  ;;  %292 = vst [vmem:[#allocation3 + $0x44] sm:$0xf] %v1294_v1 }
  0x39   : > { %1427 = vmatpush3.bf16.msra.mxu0 %v1578_v19  ;;  %1077 = vmatprep.mubr.bf16.mxu0 %v376_v55  ;;  %v1602_v59 = vld [vmem:[#allocation3 + $0x60] ss:$36 sps:$4 sm:$0xff]   ;;  %v1296_v4 = vld [vmem:[#allocation2 + $0x2a] sm:$0xf]  ;;  %293 = vst [vmem:[#allocation3 + $0x68] sm:$0xf] %v1295_v2 }
  0x3a   : > { %1447 = vmatpush3.bf16.msra.mxu1 %v1576_v17  ;;  %1428 = vmatprep.subr.bf16.mxu0 %v1581_v22  ;;  %v377_v62 = vpack.c.bf16 %v1602_v59, %v1599_v57  ;;  %294 = vst [vmem:[#allocation3 + $0x8c] sm:$0xf] %v1296_v4  ;;  %v1608_v6 = vld [vmem:[%s1940_s1 + $0x218] sm:$0xff]   ;;  %v1609_v7 = vld [vmem:[%s1940_s1 + $0x220] sm:$0xff]   ;;  %v1610_v8 = vld [vmem:[%s1940_s1 + $0x228] sm:$0xff]  }
  0x3b   : > { %1448 = vmatprep.subr.bf16.mxu1 %v1579_v20  ;;  %v1601_v58 = vld [vmem:[#allocation3 + $0x1c] ss:$36 sps:$4 sm:$0xff]   ;;  %v1612_v12 = vld [vmem:[%s1940_s1 + $0x238] sm:$0xff]   ;;  %v1297_v15 = vld [vmem:[%s1941_s2] ss:$0 sm:$0xff] }
  0x3c   : > { %v1604_v60 = vld [vmem:[#allocation3 + $0x64] ss:$36 sps:$4 sm:$0xff]  }
  0x3d   : > { %1429 = vmatpush3.bf16.msra.mxu0 %v1582_v23  ;;  %v378_v61 = vpack.c.bf16 %v1604_v60, %v1601_v58  ;;  %v1611_v9 = vld [vmem:[%s1940_s1 + $0x230] sm:$0xff]  }
  0x3e   : > { %1449 = vmatpush3.bf16.msra.mxu1 %v1580_v21  ;;  %1430 = vmatprep.subr.bf16.mxu0 %v1585_v26 }
  0x3f   : > { %1450 = vmatprep.subr.bf16.mxu1 %v1583_v24  ;;  %1118 = vmatprep.mubr.bf16.mxu1 %v378_v61  ;;  %v1613_v10 = vld [vmem:[#allocation3 + $0x20] ss:$36 sps:$4 sm:$0xff]  }
  0x41   : > { %1431 = vmatpush3.bf16.msra.mxu0 %v1586_v27  ;;  %v1614_v11 = vld [vmem:[#allocation3 + $0x68] ss:$36 sps:$4 sm:$0xff]  }
  0x42   : > { %1451 = vmatpush3.bf16.msra.mxu1 %v1584_v25  ;;  %1432 = vmatprep.subr.bf16.mxu0 %v1589_v29  ;;  %v379_v13 = vpack.c.bf16 %v1614_v11, %v1613_v10 }
  0x43   : > { %1452 = vmatprep.subr.bf16.mxu1 %v1587_v28 }
  0x45   : > { %1433 = vmatpush3.bf16.msra.mxu0 %v1590_v39 }
  0x46   : > { %1453 = vmatpush3.bf16.msra.mxu1 %v1588_v33  ;;  %1471 = vmatprep.subr.bf16.mxu0 %v1639_v3 }
  0x47   : > { %1454 = vmatprep.subr.bf16.mxu1 %v1591_v40 }
  0x48   : > { %1078 = vmatmul.mubr.bf16.vlgmr.msra.gmra.mrb[4].mxu0 %v375_v56 }
  0x49   : > { %1472 = vmatpush3.bf16.msra.mxu0 %v1605_v54  ;;  %1487 = vmatprep.mubr.msk.bf16.mxu0 %vm1640_vm0, %v1639_v3 }
  0x4a   : > { %1455 = vmatpush3.bf16.msra.mxu1 %v1598_v49  ;;  %1473 = vmatprep.subr.bf16.mxu0 %v1639_v3 }
  0x4d   : > { %1119 = vmatmul.mubr.bf16.vlgmr.msra.gmra.mrb[4].mxu1 %v377_v62  ;;  %1474 = vmatpush3.bf16.msra.mxu0 %v1606_v63 }
  0x4e   : > { %1475 = vmatprep.subr.bf16.mxu0 %v1639_v3 }
  0x51   : > { %1476 = vmatpush3.bf16.msra.mxu0 %v1607_v5 }
  0x52   : > { %1477 = vmatprep.subr.bf16.mxu0 %v1639_v3 }
  0x55   : > { %1478 = vmatpush3.bf16.msra.mxu0 %v1608_v6 }
  0x56   : > { %1479 = vmatprep.subr.bf16.mxu0 %v1639_v3 }
  0x59   : > { %1480 = vmatpush3.bf16.msra.mxu0 %v1609_v7 }
  0x5a   : > { %1481 = vmatprep.subr.bf16.mxu0 %v1639_v3 }
  0x5d   : > { %1482 = vmatpush3.bf16.msra.mxu0 %v1610_v8 }
  0x5e   : > { %1483 = vmatprep.subr.bf16.mxu0 %v1639_v3 }
  0x61   : > { %1484 = vmatpush3.bf16.msra.mxu0 %v1611_v9 }
  0x62   : > { %1485 = vmatprep.subr.bf16.mxu0 %v1639_v3 }
  0x65   : > { %1486 = vmatpush3.bf16.msra.mxu0 %v1612_v12 }
  0x68   : > { %1488 = vmatmul.mubr.bf16.vlgmr.msra.gmra.mrb[8].mxu0 %v379_v13 }
  0xfb   : > { %v1390_v14 = vpop.f32.mrb[0].mxu0 }
  0xfc   : > { %v1391_v16 = vpop.f32.mrb[1].mxu0 }
  0xfd   : > { %v1392_v17 = vadd.f32 %v1391_v16, %v1390_v14  ;;  %v1393_v18 = vpop.f32.mrb[2].mxu0 }
  0xfe   : > { %v1394_v20 = vpop.f32.mrb[3].mxu0 }
  0xff   : > { %v998_v22 = vadd.f32 %v1392_v17, %v1297_v15  ;;  %v1395_v23 = vadd.f32 %v1394_v20, %v1393_v18 }
 0x100   : > { %v1412_v19 = vpop.f32.mrb[0].mxu1 }
 0x101   : > { %v1413_v21 = vpop.f32.mrb[1].mxu1  ;;  %v1001_v3 = vadd.f32 %v1395_v23, %v1297_v15 }
 0x102   : > { %v1414_v24 = vadd.f32 %v1413_v21, %v1412_v19  ;;  %v1415_v25 = vpop.f32.mrb[2].mxu1 }
 0x103   : > { %v1416_v26 = vpop.f32.mrb[3].mxu1 }
 0x104   : > { %v1039_v27 = vadd.f32 %v1414_v24, %v998_v22  ;;  %v1417_v28 = vadd.f32 %v1416_v26, %v1415_v25 }
 0x106   : > { %v1042_v29 = vadd.f32 %v1417_v28, %v1001_v3 }
 0x11b   : > { %v1434_v30 = vpop.f32.mrb[4].mxu0 }
 0x11c   : > { %v1435_v31 = vpop.f32.mrb[5].mxu0 }
 0x11d   : > { %v1436_v32 = vadd.f32 %v1435_v31, %v1434_v30  ;;  %v1437_v33 = vpop.f32.mrb[6].mxu0 }
 0x11e   : > { %v1438_v34 = vpop.f32.mrb[7].mxu0 }
 0x11f   : > { %v1080_v35 = vadd.f32 %v1436_v32, %v1039_v27  ;;  %v1439_v37 = vadd.f32 %v1438_v34, %v1437_v33 }
 0x120   : > { %v1456_v36 = vpop.f32.mrb[4].mxu1 }
 0x121   : > { %v1457_v38 = vpop.f32.mrb[5].mxu1  ;;  %v1083_v39 = vadd.f32 %v1439_v37, %v1042_v29 }
 0x122   : > { %v1458_v40 = vadd.f32 %v1457_v38, %v1456_v36  ;;  %v1459_v41 = vpop.f32.mrb[6].mxu1 }
 0x123   : > { %v1460_v42 = vpop.f32.mrb[7].mxu1 }
 0x124   : > { %v1461_v43 = vadd.f32 %v1460_v42, %v1459_v41  ;;  %v1121_v44 = vadd.f32 %v1458_v40, %v1080_v35 }
 0x126   : > { %v1124_v45 = vadd.f32 %v1461_v43, %v1083_v39 }
 0x13b   : > { %v1161_v46 = vpop.f32.mrb[8].mxu0 }
 0x13c   : > { %v1162_v47 = vadd.f32 %v1161_v46, %v1121_v44  ;;  %v1489_v48 = vpop.f32.mrb[9].mxu0 }
 0x13d   : > { %v1164_v49 = vpop.f32.mrb[10].mxu0 }
 0x13e   : > { %v1168_v50 = vmax.f32 %v1162_v47, 0.0  ;;  %v1165_v51 = vadd.f32 %v1164_v49, %v1124_v45  ;;  %v1490_v52 = vpop.f32.mrb[11].mxu0 }
 0x140   : > { %1171 = vst.msk [vmem:[%s192_s7] sm:$0xff] %vm1170_vm1, %v1168_v50  ;;  %v1169_v53 = vmax.f32 %v1165_v51, 0.0 }
 0x142   : > { %1172 = vst.msk [vmem:[%s192_s7 + $0x8] sm:$0xff] %vm1170_vm1, %v1169_v53 }
 0x143 PF: > { %s13_s14 = sadd.s32 1, %s1637_s14   ;;  %s1943_s12 = smov %s1633_s13 }
 0x144   : > { %p10_p5 = scmp.ge.s32.totalorder %s13_s14, 4   ;;  %s1944_s13 = smov %s1946_s15 }
 0x146   :  { %12 = sbr.rel (!%p10_p5) target bundleno = 2 (0x2), region = 70 }

// kernel: unet_forward.18
= control target key start
LH: loop header
LB: loop body
LE: loop exit
PB: predicated region body
PF: predicated region fallthrough
CT: control target
= control target key end

     0   :  { %s410_s9 = smov 0   ;;  %s502_s0 = inlined_call_operand.vmem [shape: f32[16,8,32], index: 0, kind: input, shape index: {}]   ;;  %s503_s1 = inlined_call_operand.vmem [shape: f32[16,2,8,64], index: 1, kind: input, shape index: {}]   ;;  %s504_s2 = inlined_call_operand.vmem [shape: f32[16,2,8,64], index: 2, kind: output, shape index: {}]  }
   0x1 LB: > { %s344_s10 = sadd.s32 4294967295, %s392_s9   ;;  %p348_p0 = scmp.ge.s32.totalorder %s392_s9, 1  ;;  %s392_s9 = sphi %s410_s9, %s12_s9  }
   0x2   : > { %p125_p1 = scmp.lt.s32.totalorder %s392_s9, 3 }
   0x4   : > { %p126_p2 = pnand %p348_p0, %p125_p1 }
   0x5   : > { %s349_s11 = sshll.u32 (!%p126_p2), %s344_s10, 3  ;;  %s394_s16 = smov (!%p126_p2), 32   ;;  %vm214_vm0 = vcmask (!%p126_p2), 261120   ;;  %vm239_vm1 = vcmask (!%p126_p2), 523264  }
   0x6   : > { %129 = sbr.rel (%p126_p2) target bundleno = 149 (0x95), region = 28  ;;  %p155_p3 = scmp.lt.s32.totalorder (!%p126_p2), %s349_s11, 15 }
   0xd   : > { %s506_s11 = smov (!%p155_p3, %s349_s11), 15 }
   0xe   : > { %s350_s12 = sshll.u32 %s506_s11, 3  ;;  %s375_s17 = sshll.u32 %s506_s11, 4 }
   0xf   : > { %s158_s15 = scalar_lea.vmem %s502_s0, %s350_s12  ;;  %s434_s20 = scalar_lea.vmem %s503_s1, %s375_s17 }
  0x10   : > { %v176_v0 = vld [vmem:[%s158_s15 + $0x10] sm:$0xff]  ;;  %v174_v1 = vld [vmem:[%s158_s15] sm:$0xff]  ;;  %v177_v2 = vld [vmem:[%s158_s15 + $0x18] sm:$0xff]  ;;  %s443_s23 = scalar_lea.vmem %s504_s2, %s375_s17 }
  0x11   : > { %194 = vrot.lane.b32.xlu1 %v176_v0, %s394_s16  ;;  %190 = vrot.lane.b32.xlu0 %v174_v1, %s394_s16  ;;  %v175_v3 = vld [vmem:[%s158_s15 + $0x8] sm:$0xff]  ;;  %v178_v5 = vld [vmem:[%s158_s15 + $0x20] sm:$0xff] }
  0x12   : > { %v179_v4 = vld [vmem:[%s158_s15 + $0x28] sm:$0xff]  ;;  %v424_v6 = vld [vmem:[%s158_s15 + $0x38] sm:$0xff]  ;;  %v426_v7 = vld [vmem:[%s158_s15 + $0x30] sm:$0xff] }
  0x13   : > { %v225_v8 = vld [vmem:[%s434_s20 + $0x20] sm:$0xff]  ;;  %v359_v9 = vld [vmem:[%s434_s20 + $0x28] sm:$0xff]  ;;  %v226_v20 = vld [vmem:[%s434_s20 + $0x30] sm:$0xff] }
  0x14   : > { %v223_v10 = vld [vmem:[%s434_s20] sm:$0xff]  ;;  %v357_v11 = vld [vmem:[%s434_s20 + $0x8] sm:$0xff]  ;;  %v360_v21 = vld [vmem:[%s434_s20 + $0x38] sm:$0xff] }
  0x15   : > { %196 = vrot.lane.b32.xlu1 %v177_v2, %s394_s16  ;;  %192 = vrot.lane.b32.xlu0 %v175_v3, %s394_s16  ;;  %v224_v22 = vld [vmem:[%s434_s20 + $0x10] sm:$0xff]  ;;  %v358_v23 = vld [vmem:[%s434_s20 + $0x18] sm:$0xff] }
  0x16   : > { %v228_v32 = vld [vmem:[%s434_s20 + $0x50] sm:$0xff]  ;;  %v362_v33 = vld [vmem:[%s434_s20 + $0x58] sm:$0xff]  ;;  %v227_v34 = vld [vmem:[%s434_s20 + $0x40] sm:$0xff] }
  0x17   : > { %v361_v35 = vld [vmem:[%s434_s20 + $0x48] sm:$0xff]  ;;  %v230_v44 = vld [vmem:[%s434_s20 + $0x70] sm:$0xff]  ;;  %v364_v45 = vld [vmem:[%s434_s20 + $0x78] sm:$0xff] }
  0x18   : > { %v229_v46 = vld [vmem:[%s434_s20 + $0x60] sm:$0xff]  ;;  %v363_v47 = vld [vmem:[%s434_s20 + $0x68] sm:$0xff] }
  0x19   : > { %200 = vrot.lane.b32.xlu1 %v179_v4, %s394_s16  ;;  %198 = vrot.lane.b32.xlu0 %v178_v5, %s394_s16 }
  0x1d   : > { %204 = vrot.lane.b32.xlu1 %v424_v6, %s394_s16  ;;  %202 = vrot.lane.b32.xlu0 %v426_v7, %s394_s16 }
  0x83   : > { %v195_v12 = vpop.permute.xlu1 %194  ;;  %v191_v13 = vpop.permute.xlu0 %190 }
  0x84   : > { %v217_v14 = vsel %vm214_vm0, %v176_v0, %v195_v12  ;;  %v215_v15 = vsel %vm214_vm0, %v174_v1, %v191_v13 }
  0x85   : > { %v233_v16 = vadd.f32 %v225_v8, %v217_v14  ;;  %v259_v17 = vadd.f32 %v359_v9, %v217_v14  ;;  %v231_v18 = vadd.f32 %v223_v10, %v215_v15  ;;  %v257_v19 = vadd.f32 %v357_v11, %v215_v15 }
  0x87   : > { %242 = vst.msk [vmem:[%s443_s23 + $0x20] sm:$0xff] %vm239_vm1, %v233_v16  ;;  %367 = vst.msk [vmem:[%s443_s23 + $0x28] sm:$0xff] %vm239_vm1, %v259_v17  ;;  %v197_v24 = vpop.permute.xlu1 %196  ;;  %v193_v25 = vpop.permute.xlu0 %192 }
  0x88   : > { %240 = vst.msk [vmem:[%s443_s23] sm:$0xff] %vm239_vm1, %v231_v18  ;;  %365 = vst.msk [vmem:[%s443_s23 + $0x8] sm:$0xff] %vm239_vm1, %v257_v19  ;;  %v218_v26 = vsel %vm214_vm0, %v177_v2, %v197_v24  ;;  %v216_v27 = vsel %vm214_vm0, %v175_v3, %v193_v25 }
  0x89   : > { %v234_v28 = vadd.f32 %v226_v20, %v218_v26  ;;  %v260_v29 = vadd.f32 %v360_v21, %v218_v26  ;;  %v232_v30 = vadd.f32 %v224_v22, %v216_v27  ;;  %v258_v31 = vadd.f32 %v358_v23, %v216_v27 }
  0x8b   : > { %243 = vst.msk [vmem:[%s443_s23 + $0x30] sm:$0xff] %vm239_vm1, %v234_v28  ;;  %368 = vst.msk [vmem:[%s443_s23 + $0x38] sm:$0xff] %vm239_vm1, %v260_v29  ;;  %v201_v36 = vpop.permute.xlu1 %200  ;;  %v199_v37 = vpop.permute.xlu0 %198 }
  0x8c   : > { %241 = vst.msk [vmem:[%s443_s23 + $0x10] sm:$0xff] %vm239_vm1, %v232_v30  ;;  %366 = vst.msk [vmem:[%s443_s23 + $0x18] sm:$0xff] %vm239_vm1, %v258_v31  ;;  %v220_v38 = vsel %vm214_vm0, %v179_v4, %v201_v36  ;;  %v219_v39 = vsel %vm214_vm0, %v178_v5, %v199_v37 }
  0x8d   : > { %v236_v40 = vadd.f32 %v228_v32, %v220_v38  ;;  %v262_v41 = vadd.f32 %v362_v33, %v220_v38  ;;  %v235_v42 = vadd.f32 %v227_v34, %v219_v39  ;;  %v261_v43 = vadd.f32 %v361_v35, %v219_v39 }
  0x8f   : > { %245 = vst.msk [vmem:[%s443_s23 + $0x50] sm:$0xff] %vm239_vm1, %v236_v40  ;;  %370 = vst.msk [vmem:[%s443_s23 + $0x58] sm:$0xff] %vm239_vm1, %v262_v41  ;;  %v205_v48 = vpop.permute.xlu1 %204  ;;  %v203_v49 = vpop.permute.xlu0 %202 }
  0x90   : > { %244 = vst.msk [vmem:[%s443_s23 + $0x40] sm:$0xff] %vm239_vm1, %v235_v42  ;;  %369 = vst.msk [vmem:[%s443_s23 + $0x48] sm:$0xff] %vm239_vm1, %v261_v43  ;;  %v222_v50 = vsel %vm214_vm0, %v424_v6, %v205_v48  ;;  %v221_v51 = vsel %vm214_vm0, %v426_v7, %v203_v49 }
  0x91   : > { %v238_v52 = vadd.f32 %v230_v44, %v222_v50  ;;  %v264_v53 = vadd.f32 %v364_v45, %v222_v50  ;;  %v237_v54 = vadd.f32 %v229_v46, %v221_v51  ;;  %v263_v55 = vadd.f32 %v363_v47, %v221_v51 }
  0x93   : > { %247 = vst.msk [vmem:[%s443_s23 + $0x70] sm:$0xff] %vm239_vm1, %v238_v52  ;;  %372 = vst.msk [vmem:[%s443_s23 + $0x78] sm:$0xff] %vm239_vm1, %v264_v53 }
  0x94   : > { %246 = vst.msk [vmem:[%s443_s23 + $0x60] sm:$0xff] %vm239_vm1, %v237_v54  ;;  %371 = vst.msk [vmem:[%s443_s23 + $0x68] sm:$0xff] %vm239_vm1, %v263_v55 }
  0x95 PF: > { %s12_s9 = sadd.s32 1, %s392_s9  }
  0x96   : > { %p9_p4 = scmp.ge.s32.totalorder %s12_s9, 4  }
  0x98   :  { %11 = sbr.rel (!%p9_p4) target bundleno = 1 (0x1), region = 63 }

// kernel: unet_forward.17
= control target key start
LH: loop header
LB: loop body
LE: loop exit
PB: predicated region body
PF: predicated region fallthrough
CT: control target
= control target key end

     0   :  { %s1513_s12 = smov 0   ;;  %s1515_s13 = smov 0   ;;  %s1927_s0 = inlined_call_operand.vmem [shape: f32[2,8,8,64], index: 0, kind: input, shape index: {}]   ;;  %s1928_s1 = inlined_call_operand.vmem [shape: bf16[576,32], index: 1, kind: input, shape index: {}]   ;;  %s1929_s2 = inlined_call_operand.vmem [shape: f32[1,32], index: 2, kind: input, shape index: {}]   ;;  %s1930_s3 = inlined_call_operand.vmem [shape: f32[2,64,32], index: 3, kind: output, shape index: {}]  }
   0x1   :  { %s1517_s14 = smov 0  }
   0x2 LB: > { %s25_s15 = sadd.s32 1, %s1485_s13  ;;  %p1195_p0 = scmp.ge.s32.totalorder %s1489_s14, 1  ;;  %s1489_s14 = sphi %s1517_s14, %s13_s14   ;;  %s1485_s13 = sphi %s1515_s13, %s1932_s13   ;;  %s1481_s12 = sphi %s1513_s12, %s1931_s12  }
   0x3   : > { %p27_p1 = scmp.ge.s32.totalorder %s25_s15, 2  ;;  %p151_p2 = scmp.lt.s32.totalorder %s1489_s14, 3 }
   0x5   : > { %s1934_s15 = smov (%p27_p1, %s25_s15), 0  ;;  %p152_p3 = pnand %p1195_p0, %p151_p2 }
   0x6   : > { %vm199_vm0 = vcmask (!%p152_p3), 523264   ;;  %vm201_vm1 = vcmask (!%p152_p3), 517120   ;;  %p179_p4 = scmp.lt.s32.totalorder (!%p152_p3), %s1481_s12, 1  ;;  %v1431_v0 = vld [vmem:[%s1928_s1 + $0x40] sm:$0xff] (!%p152_p3)   ;;  %v1491_v1 = vmov (!%p152_p3), 0.0   ;;  %v1433_v3 = vld [vmem:[%s1928_s1 + $0x48] sm:$0xff] (!%p152_p3)  }
   0x7   : > { %155 = sbr.rel (%p152_p3) target bundleno = 439 (0x1b7), region = 32  ;;  %200 = vst.msk [vmem:[#allocation2] sm:$0xff] (!%p152_p3), %vm199_vm0, %v1491_v1  ;;  %203 = vst.msk [vmem:[#allocation2 + $0x10] sm:$0xff] (!%p152_p3), %vm199_vm0, %v1491_v1  ;;  %1293 = vmatprep.subr.bf16.mxu0 (!%p152_p3), %v1431_v0  ;;  %v1432_v2 = vld [vmem:[%s1928_s1] sm:$0xff] (!%p152_p3)   ;;  %v1435_v5 = vld [vmem:[%s1928_s1 + $0x8] sm:$0xff] (!%p152_p3)   ;;  %s1492_s30 = smov (!%p152_p3), 64  }
   0x8   : > { %202 = vst.msk [vmem:[#allocation2 + $0x8] sm:$0x3] (!%p152_p3), %vm201_vm1, %v1491_v1  ;;  %204 = vst.msk [vmem:[#allocation2 + $0x18] sm:$0x3] (!%p152_p3), %vm201_vm1, %v1491_v1  ;;  %1294 = vmatpush3.bf16.msra.mxu0 (!%p152_p3), %v1432_v2  ;;  %v1434_v4 = vld [vmem:[%s1928_s1 + $0xc0] sm:$0xff] (!%p152_p3)   ;;  %v1437_v16 = vld [vmem:[%s1928_s1 + $0x50] sm:$0xff] (!%p152_p3)  }
   0x9   : > { %205 = vst.msk [vmem:[#allocation2 + $0x20] sm:$0xff] (!%p152_p3), %vm199_vm0, %v1491_v1  ;;  %207 = vst.msk [vmem:[#allocation2 + $0x30] sm:$0xff] (!%p152_p3), %vm199_vm0, %v1491_v1  ;;  %1295 = vmatprep.subr.bf16.mxu0 (!%p152_p3), %v1433_v3  ;;  %1333 = vmatprep.subr.bf16.mxu1 (!%p152_p3), %v1434_v4  ;;  %v1436_v15 = vld [vmem:[%s1928_s1 + $0x80] sm:$0xff] (!%p152_p3)   ;;  %v1438_v17 = vld [vmem:[%s1928_s1 + $0xc8] sm:$0xff] (!%p152_p3)   ;;  %vm298_vm2 = vcmask (!%p152_p3), 1048064   ;;  %vm1091_vm3 = vcmask (!%p152_p3), 261120  }
   0xa   : > { %206 = vst.msk [vmem:[#allocation2 + $0x28] sm:$0x3] (!%p152_p3), %vm201_vm1, %v1491_v1  ;;  %208 = vst.msk [vmem:[#allocation2 + $0x38] sm:$0x3] (!%p152_p3), %vm201_vm1, %v1491_v1  ;;  %1334 = vmatpush3.bf16.msra.mxu1 (!%p152_p3), %v1436_v15  ;;  %v1439_v18 = vld [vmem:[%s1928_s1 + $0x10] sm:$0xff] (!%p152_p3)   ;;  %v1440_v19 = vld [vmem:[%s1928_s1 + $0x88] sm:$0xff] (!%p152_p3)  }
   0xb   : > { %209 = vst.msk [vmem:[#allocation2 + $0x40] sm:$0xff] (!%p152_p3), %vm199_vm0, %v1491_v1  ;;  %211 = vst.msk [vmem:[#allocation2 + $0x50] sm:$0xff] (!%p152_p3), %vm199_vm0, %v1491_v1  ;;  %1335 = vmatprep.subr.bf16.mxu1 (!%p152_p3), %v1438_v17  ;;  %v1441_v45 = vld [vmem:[%s1928_s1 + $0x58] sm:$0xff] (!%p152_p3)   ;;  %v1442_v47 = vld [vmem:[%s1928_s1 + $0xd0] sm:$0xff] (!%p152_p3)  }
   0xc   : > { %210 = vst.msk [vmem:[#allocation2 + $0x48] sm:$0x3] (!%p152_p3), %vm201_vm1, %v1491_v1  ;;  %212 = vst.msk [vmem:[#allocation2 + $0x58] sm:$0x3] (!%p152_p3), %vm201_vm1, %v1491_v1  ;;  %1296 = vmatpush3.bf16.msra.mxu0 (!%p152_p3), %v1435_v5  ;;  %v1443_v48 = vld [vmem:[%s1928_s1 + $0x18] sm:$0xff] (!%p152_p3)   ;;  %v1444_v49 = vld [vmem:[%s1928_s1 + $0x90] sm:$0xff] (!%p152_p3)  }
   0xd   : > { %213 = vst.msk [vmem:[#allocation2 + $0x60] sm:$0xff] (!%p152_p3), %vm199_vm0, %v1491_v1  ;;  %215 = vst.msk [vmem:[#allocation2 + $0x70] sm:$0xff] (!%p152_p3), %vm199_vm0, %v1491_v1  ;;  %1297 = vmatprep.subr.bf16.mxu0 (!%p152_p3), %v1437_v16  ;;  %v1445_v50 = vld [vmem:[%s1928_s1 + $0x60] sm:$0xff] (!%p152_p3)   ;;  %v1446_v51 = vld [vmem:[%s1928_s1 + $0xd8] sm:$0xff] (!%p152_p3)  }
   0xe   : > { %214 = vst.msk [vmem:[#allocation2 + $0x68] sm:$0x3] %vm201_vm1, %v1491_v1  ;;  %216 = vst.msk [vmem:[#allocation2 + $0x78] sm:$0x3] %vm201_vm1, %v1491_v1  ;;  %s1936_s12 = smov (!%p179_p4, %s1481_s12), 1  ;;  %1336 = vmatpush3.bf16.msra.mxu1 %v1440_v19  ;;  %v241_v44 = vld [vmem:[#allocation2] sm:$0xff] }
   0xf   : > { %217 = vst.msk [vmem:[#allocation2 + $0x80] sm:$0xff] %vm199_vm0, %v1491_v1  ;;  %219 = vst.msk [vmem:[#allocation2 + $0x90] sm:$0xff] %vm199_vm0, %v1491_v1  ;;  %s1291_s22 = sshll.u32 %s1936_s12, 6  ;;  %v258_v12 = vld [vmem:[#allocation2 + $0x1] sm:$0xff]  ;;  %1337 = vmatprep.subr.bf16.mxu1 %v1442_v47  ;;  %v1448_v53 = vld [vmem:[%s1928_s1 + $0x98] sm:$0xff]  }
  0x10   : > { %218 = vst.msk [vmem:[#allocation2 + $0x88] sm:$0x3] %vm201_vm1, %v1491_v1  ;;  %220 = vst.msk [vmem:[#allocation2 + $0x98] sm:$0x3] %vm201_vm1, %v1491_v1  ;;  %s183_s27 = scalar_lea.vmem %s1927_s0, %s1291_s22  ;;  %274 = vrot.lane.b32.xlu0 %v258_v12, %s1492_s30  ;;  %1298 = vmatpush3.bf16.msra.mxu0 %v1439_v18  ;;  %v307_v46 = vld [vmem:[#allocation2 + $0x2] sm:$0xff]  ;;  %v1453_v58 = vld [vmem:[%s1928_s1 + $0x70] sm:$0xff]   ;;  %s1900_s6 = scalar_lea.vmem %s1930_s3, %s1291_s22 }
  0x11   : > { %v222_v6 = vld [vmem:[%s183_s27 + $0x8] sm:$0xff]  ;;  %v221_v7 = vld [vmem:[%s183_s27] sm:$0xff]  ;;  %v223_v8 = vld [vmem:[%s183_s27 + $0x10] sm:$0xff]  ;;  %250 = vst.msk [vmem:[#allocation3] sm:$0xff] %vm199_vm0, %v241_v44  ;;  %1299 = vmatprep.subr.bf16.mxu0 %v1441_v45 }
  0x12   : > { %231 = vst.msk [vmem:[#allocation2 + $0x21] sm:$0xff] %vm199_vm0, %v222_v6  ;;  %230 = vst.msk [vmem:[#allocation2 + $0x11] sm:$0xff] %vm199_vm0, %v221_v7  ;;  %v224_v9 = vld [vmem:[%s183_s27 + $0x18] sm:$0xff]  ;;  %v225_v10 = vld [vmem:[%s183_s27 + $0x20] sm:$0xff]  ;;  %1338 = vmatpush3.bf16.msra.mxu1 %v1444_v49 }
  0x13   : > { %232 = vst.msk [vmem:[#allocation2 + $0x31] sm:$0xff] %vm199_vm0, %v223_v8  ;;  %v226_v11 = vld [vmem:[%s183_s27 + $0x28] sm:$0xff]  ;;  %233 = vst.msk [vmem:[#allocation2 + $0x41] sm:$0xff] %vm199_vm0, %v224_v9  ;;  %v227_v13 = vld [vmem:[%s183_s27 + $0x30] sm:$0xff]  ;;  %1339 = vmatprep.subr.bf16.mxu1 %v1446_v51 }
  0x14   : > { %234 = vst.msk [vmem:[#allocation2 + $0x51] sm:$0xff] %vm199_vm0, %v225_v10  ;;  %235 = vst.msk [vmem:[#allocation2 + $0x61] sm:$0xff] %vm199_vm0, %v226_v11  ;;  %v228_v14 = vld [vmem:[%s183_s27 + $0x38] sm:$0xff]  ;;  %1300 = vmatpush3.bf16.msra.mxu0 %v1443_v48  ;;  %v1447_v52 = vld [vmem:[%s1928_s1 + $0x20] sm:$0xff]  }
  0x15   : > { %236 = vst.msk [vmem:[#allocation2 + $0x71] sm:$0xff] %vm199_vm0, %v227_v13  ;;  %237 = vst.msk [vmem:[#allocation2 + $0x81] sm:$0xff] %vm199_vm0, %v228_v14  ;;  %1301 = vmatprep.subr.bf16.mxu0 %v1445_v50  ;;  %v1449_v54 = vld [vmem:[%s1928_s1 + $0x68] sm:$0xff]   ;;  %v1450_v55 = vld [vmem:[%s1928_s1 + $0xe0] sm:$0xff]  }
  0x16   : > { %315 = vst.msk [vmem:[#allocation3 + $0x8] sm:$0xff] %vm199_vm0, %v307_v46  ;;  %1340 = vmatpush3.bf16.msra.mxu1 %v1448_v53  ;;  %v1451_v56 = vld [vmem:[%s1928_s1 + $0x28] sm:$0xff]   ;;  %v1452_v57 = vld [vmem:[%s1928_s1 + $0xa0] sm:$0xff]   ;;  %v1455_v60 = vld [vmem:[%s1928_s1 + $0x30] sm:$0xff]  }
  0x17   : > { %1341 = vmatprep.subr.bf16.mxu1 %v1450_v55  ;;  %v1454_v59 = vld [vmem:[%s1928_s1 + $0xe8] sm:$0xff]   ;;  %v1457_v62 = vld [vmem:[%s1928_s1 + $0x78] sm:$0xff]   ;;  %v1458_v63 = vld [vmem:[%s1928_s1 + $0xf0] sm:$0xff]  }
  0x18   : > { %1302 = vmatpush3.bf16.msra.mxu0 %v1447_v52  ;;  %v1456_v61 = vld [vmem:[%s1928_s1 + $0xa8] sm:$0xff]   ;;  %v1459_v0 = vld [vmem:[%s1928_s1 + $0x38] sm:$0xff]   ;;  %v1460_v1 = vld [vmem:[%s1928_s1 + $0xb0] sm:$0xff]  }
  0x19   : > { %v1604_v20 = vld [vmem:[#allocation2 + $0x21] sm:$0xff]  ;;  %v1200_v21 = vld [vmem:[#allocation2 + $0x10] sm:$0xff]  ;;  %1303 = vmatprep.subr.bf16.mxu0 %v1449_v54  ;;  %v1461_v2 = vld [vmem:[%s1928_s1 + $0xf8] sm:$0xff]  }
  0x1a   : > { %v1606_v22 = vld [vmem:[#allocation2 + $0x31] sm:$0xff]  ;;  %473 = vrot.lane.b32.xlu1 %v1604_v20, %s1492_s30  ;;  %342 = vrot.lane.b32.xlu0 %v1200_v21, %s1492_s30  ;;  %v1201_v23 = vld [vmem:[#allocation2 + $0x20] sm:$0xff]  ;;  %251 = vst.msk [vmem:[#allocation3 + $0x28] sm:$0xff] %vm199_vm0, %v1200_v21  ;;  %383 = vst.msk [vmem:[#allocation3 + $0x38] sm:$0xff] %vm199_vm0, %v1604_v20 }
  0x1b   : > { %v259_v24 = vld [vmem:[#allocation2 + $0x11] sm:$0xff]  ;;  %384 = vst.msk [vmem:[#allocation3 + $0x60] sm:$0xff] %vm199_vm0, %v1606_v22  ;;  %v1616_v26 = vld [vmem:[#allocation2 + $0x22] sm:$0xff]  ;;  %449 = vst.msk [vmem:[#allocation3 + $0x18] sm:$0xff] %vm199_vm0, %v1201_v23  ;;  %1342 = vmatpush3.bf16.msra.mxu1 %v1452_v57 }
  0x1c   : > { %v1216_v25 = vld [vmem:[#allocation2 + $0x12] sm:$0xff]  ;;  %v1620_v28 = vld [vmem:[#allocation2 + $0x40] sm:$0xff]  ;;  %382 = vst.msk [vmem:[#allocation3 + $0x10] sm:$0xff] %vm199_vm0, %v259_v24  ;;  %252 = vst.msk [vmem:[#allocation3 + $0x50] sm:$0xff] %vm199_vm0, %v1201_v23  ;;  %1304 = vmatpush3.bf16.msra.mxu0 %v1451_v56  ;;  %1343 = vmatprep.subr.bf16.mxu1 %v1454_v59 }
  0x1d   : > { %v1618_v27 = vld [vmem:[#allocation2 + $0x30] sm:$0xff]  ;;  %316 = vst.msk [vmem:[#allocation3 + $0x30] sm:$0xff] %vm199_vm0, %v1216_v25  ;;  %v1626_v29 = vld [vmem:[#allocation2 + $0x41] sm:$0xff]  ;;  %317 = vst.msk [vmem:[#allocation3 + $0x58] sm:$0xff] %vm199_vm0, %v1616_v26  ;;  %1305 = vmatprep.subr.bf16.mxu0 %v1453_v58 }
  0x1e   : > { %v1628_v30 = vld [vmem:[#allocation2 + $0x51] sm:$0xff]  ;;  %450 = vst.msk [vmem:[#allocation3 + $0x40] sm:$0xff] %vm199_vm0, %v1618_v27  ;;  %451 = vst.msk [vmem:[#allocation3 + $0x68] sm:$0xff] %vm199_vm0, %v1620_v28  ;;  %v1644_v32 = vld [vmem:[#allocation2 + $0x42] sm:$0xff]  ;;  %475 = vrot.lane.b32.xlu1 %v1606_v22, %s1492_s30  ;;  %344 = vrot.lane.b32.xlu0 %v1201_v23, %s1492_s30 }
  0x1f   : > { %v1630_v31 = vld [vmem:[#allocation2 + $0x32] sm:$0xff]  ;;  %253 = vst.msk [vmem:[#allocation3 + $0x78] sm:$0xff] %vm199_vm0, %v1618_v27  ;;  %254 = vst.msk [vmem:[#allocation3 + $0xa0] sm:$0xff] %vm199_vm0, %v1620_v28  ;;  %v1648_v34 = vld [vmem:[#allocation2 + $0x60] sm:$0xff]  ;;  %1344 = vmatpush3.bf16.msra.mxu1 %v1456_v61 }
  0x20   : > { %513 = vst.msk [vmem:[#allocation3 + $0x20] sm:$0xff] %vm199_vm0, %v1616_v26  ;;  %v1646_v33 = vld [vmem:[#allocation2 + $0x50] sm:$0xff]  ;;  %318 = vst.msk [vmem:[#allocation3 + $0x80] sm:$0xff] %vm199_vm0, %v1630_v31  ;;  %v1661_v35 = vld [vmem:[#allocation2 + $0x61] sm:$0xff]  ;;  %1306 = vmatpush3.bf16.msra.mxu0 %v1455_v60  ;;  %1345 = vmatprep.subr.bf16.mxu1 %v1458_v63 }
  0x21   : > { %385 = vst.msk [vmem:[#allocation3 + $0x88] sm:$0xff] %vm199_vm0, %v1626_v29  ;;  %386 = vst.msk [vmem:[#allocation3 + $0xb0] sm:$0xff] %vm199_vm0, %v1628_v30  ;;  %v1663_v36 = vld [vmem:[#allocation2 + $0x71] sm:$0xff]  ;;  %v1679_v38 = vld [vmem:[#allocation2 + $0x62] sm:$0xff]  ;;  %1307 = vmatprep.subr.bf16.mxu0 %v1457_v62 }
  0x22   : > { %514 = vst.msk [vmem:[#allocation3 + $0x48] sm:$0xff] %vm199_vm0, %v1630_v31  ;;  %v1665_v37 = vld [vmem:[#allocation2 + $0x52] sm:$0xff]  ;;  %452 = vst.msk [vmem:[#allocation3 + $0x90] sm:$0xff] %vm199_vm0, %v1646_v33  ;;  %v1683_v40 = vld [vmem:[#allocation2 + $0x80] sm:$0xff]  ;;  %276 = vrot.lane.b32.xlu1 %v259_v24, %s1492_s30  ;;  %406 = vrot.lane.b32.xlu0 %v1216_v25, %s1492_s30 }
  0x23   : > { %319 = vst.msk [vmem:[#allocation3 + $0xa8] sm:$0xff] %vm199_vm0, %v1644_v32  ;;  %453 = vst.msk [vmem:[#allocation3 + $0xb8] sm:$0xff] %vm199_vm0, %v1648_v34  ;;  %v1681_v39 = vld [vmem:[#allocation2 + $0x70] sm:$0xff]  ;;  %v1693_v41 = vld [vmem:[#allocation2 + $0x81] sm:$0xff]  ;;  %1346 = vmatpush3.bf16.msra.mxu1 %v1460_v1 }
  0x24   : > { %255 = vst.msk [vmem:[#allocation3 + $0xc8] sm:$0xff] %vm199_vm0, %v1646_v33  ;;  %256 = vst.msk [vmem:[#allocation3 + $0xf0] sm:$0xff] %vm199_vm0, %v1648_v34  ;;  %v1695_v42 = vld [vmem:[#allocation2 + $0x72] sm:$0xff]  ;;  %v1697_v43 = vld [vmem:[#allocation2 + $0x82] sm:$0xff]  ;;  %1308 = vmatpush3.bf16.msra.mxu0 %v1459_v0  ;;  %1347 = vmatprep.subr.bf16.mxu1 %v1461_v2 }
  0x25   : > { %515 = vst.msk [vmem:[#allocation3 + $0x70] sm:$0xff] %vm199_vm0, %v1644_v32  ;;  %320 = vst.msk [vmem:[#allocation3 + $0xd0] sm:$0xff] %vm199_vm0, %v1665_v37  ;;  %v1462_v3 = vld [vmem:[%s1928_s1 + $0xb8] sm:$0xff]   ;;  %v1814_v4 = vld [vmem:[%s1928_s1 + $0x100] sm:$0xff]  }
  0x26   : > { %387 = vst.msk [vmem:[#allocation3 + $0xd8] sm:$0xff] %vm199_vm0, %v1661_v35  ;;  %388 = vst.msk [vmem:[#allocation3 + $0x100] sm:$0xff] %vm199_vm0, %v1663_v36  ;;  %408 = vrot.lane.b32.xlu1 %v1616_v26, %s1492_s30  ;;  %346 = vrot.lane.b32.xlu0 %v1618_v27, %s1492_s30  ;;  %v1231_v5 = vld [vmem:[#allocation2 + $0x90] sm:$0xff] }
  0x27   : > { %516 = vst.msk [vmem:[#allocation3 + $0x98] sm:$0xff] %vm199_vm0, %v1665_v37  ;;  %454 = vst.msk [vmem:[#allocation3 + $0xe0] sm:$0xff] %vm199_vm0, %v1681_v39  ;;  %1381 = vmatprep.subr.bf16.mxu0 %v1814_v4  ;;  %1348 = vmatpush3.bf16.msra.mxu1 %v1462_v3  ;;  %v1239_v6 = vld [vmem:[#allocation2 + $0x91] sm:$0xff] }
  0x28   : > { %321 = vst.msk [vmem:[#allocation3 + $0xf8] sm:$0xff] %vm199_vm0, %v1679_v38  ;;  %455 = vst.msk [vmem:[#allocation3 + $0x108] sm:$0xff] %vm199_vm0, %v1683_v40  ;;  %1397 = vmatprep.subr.bf16.mxu1 %v1814_v4  ;;  %v1247_v7 = vld [vmem:[#allocation2 + $0x92] sm:$0xff] }
  0x29   : > { %257 = vst.msk [vmem:[#allocation3 + $0x118] sm:$0xff] %vm199_vm0, %v1681_v39  ;;  %517 = vst.msk [vmem:[#allocation3 + $0xc0] sm:$0xff] %vm199_vm0, %v1679_v38 }
  0x2a   : > { %322 = vst.msk [vmem:[#allocation3 + $0x120] sm:$0xff] %vm199_vm0, %v1695_v42  ;;  %389 = vst.msk [vmem:[#allocation3 + $0x128] sm:$0xff] %vm199_vm0, %v1693_v41  ;;  %348 = vrot.lane.b32.xlu1 %v1620_v28, %s1492_s30  ;;  %477 = vrot.lane.b32.xlu0 %v1626_v29, %s1492_s30  ;;  %v1464_v28 = vld [vmem:[%s1928_s1 + $0x108] sm:$0xff]  }
  0x2b   : > { %518 = vst.msk [vmem:[#allocation3 + $0xe8] sm:$0xff] %vm199_vm0, %v1695_v42  ;;  %519 = vst.msk [vmem:[#allocation3 + $0x110] sm:$0xff] %vm199_vm0, %v1697_v43 }
  0x2c   : > { %456 = vst.msk [vmem:[#allocation3 + $0x130] sm:$0xff] %vm199_vm0, %v1231_v5  ;;  %520 = vst.msk [vmem:[#allocation3 + $0x138] sm:$0xff] %vm199_vm0, %v1247_v7 }
  0x2e   : > { %479 = vrot.lane.b32.xlu1 %v1628_v30, %s1492_s30  ;;  %278 = vrot.lane.b32.xlu0 %v1604_v20, %s1492_s30 }
  0x32   : > { %280 = vrot.lane.b32.xlu1 %v1606_v22, %s1492_s30  ;;  %410 = vrot.lane.b32.xlu0 %v1630_v31, %s1492_s30 }
  0x36   : > { %412 = vrot.lane.b32.xlu1 %v1644_v32, %s1492_s30  ;;  %350 = vrot.lane.b32.xlu0 %v1646_v33, %s1492_s30 }
  0x3a   : > { %352 = vrot.lane.b32.xlu1 %v1648_v34, %s1492_s30  ;;  %481 = vrot.lane.b32.xlu0 %v1661_v35, %s1492_s30  ;;  %v1465_v34 = vld [vmem:[%s1928_s1 + $0x110] sm:$0xff]  }
  0x3e   : > { %483 = vrot.lane.b32.xlu1 %v1663_v36, %s1492_s30  ;;  %282 = vrot.lane.b32.xlu0 %v1626_v29, %s1492_s30 }
  0x42   : > { %284 = vrot.lane.b32.xlu1 %v1628_v30, %s1492_s30  ;;  %414 = vrot.lane.b32.xlu0 %v1665_v37, %s1492_s30 }
  0x46   : > { %416 = vrot.lane.b32.xlu1 %v1679_v38, %s1492_s30  ;;  %354 = vrot.lane.b32.xlu0 %v1681_v39, %s1492_s30 }
  0x4a   : > { %356 = vrot.lane.b32.xlu1 %v1683_v40, %s1492_s30  ;;  %485 = vrot.lane.b32.xlu0 %v1693_v41, %s1492_s30  ;;  %v1466_v40 = vld [vmem:[%s1928_s1 + $0x118] sm:$0xff]  }
  0x4e   : > { %487 = vrot.lane.b32.xlu1 %v1239_v6, %s1492_s30  ;;  %286 = vrot.lane.b32.xlu0 %v1661_v35, %s1492_s30 }
  0x52   : > { %288 = vrot.lane.b32.xlu1 %v1663_v36, %s1492_s30  ;;  %418 = vrot.lane.b32.xlu0 %v1695_v42, %s1492_s30 }
  0x56   : > { %420 = vrot.lane.b32.xlu1 %v1697_v43, %s1492_s30 }
  0x82   : > { %v275_v8 = vpop.permute.xlu0 %274 }
  0x83   : > { %299 = vst.msk [vmem:[#allocation3] sm:$0xff] %vm298_vm2, %v275_v8 }
  0x8a   : > { %v521_v24 = vld [vmem:[#allocation3] sm:$0xff] }
  0x8c   : > { %v474_v9 = vpop.permute.xlu1 %473  ;;  %v343_v10 = vpop.permute.xlu0 %342 }
  0x8d   : > { %497 = vst.msk [vmem:[#allocation3 + $0x18] sm:$0xff] %vm298_vm2, %v474_v9  ;;  %366 = vst.msk [vmem:[#allocation3 + $0x8] sm:$0xff] %vm298_vm2, %v343_v10 }
  0x90   : > { %v476_v11 = vpop.permute.xlu1 %475  ;;  %v345_v12 = vpop.permute.xlu0 %344 }
  0x91   : > { %498 = vst.msk [vmem:[#allocation3 + $0x40] sm:$0xff] %vm298_vm2, %v476_v11  ;;  %367 = vst.msk [vmem:[#allocation3 + $0x30] sm:$0xff] %vm298_vm2, %v345_v12 }
  0x94   : > { %v277_v13 = vpop.permute.xlu1 %276  ;;  %v407_v14 = vpop.permute.xlu0 %406  ;;  %v522_v15 = vld [vmem:[#allocation3 + $0x8] sm:$0xff]  ;;  %v524_v18 = vld [vmem:[#allocation3 + $0x18] sm:$0xff] }
  0x95   : > { %300 = vst.msk [vmem:[#allocation3 + $0x28] sm:$0xff] %vm298_vm2, %v277_v13  ;;  %430 = vst.msk [vmem:[#allocation3 + $0x10] sm:$0xff] %vm298_vm2, %v407_v14 }
  0x98   : > { %v409_v16 = vpop.permute.xlu1 %408  ;;  %v527_v17 = vld [vmem:[#allocation3 + $0x30] sm:$0xff]  ;;  %v529_v19 = vld [vmem:[#allocation3 + $0x40] sm:$0xff]  ;;  %v347_v20 = vpop.permute.xlu0 %346 }
  0x99   : > { %431 = vst.msk [vmem:[#allocation3 + $0x38] sm:$0xff] %vm298_vm2, %v409_v16  ;;  %v562_v21 = vpack.c.bf16 %v527_v17, %v522_v15  ;;  %v564_v22 = vpack.c.bf16 %v529_v19, %v524_v18  ;;  %368 = vst.msk [vmem:[#allocation3 + $0x58] sm:$0xff] %vm298_vm2, %v347_v20 }
  0x9b   : > { %920 = vmatprep.mubr.bf16.mxu0 %v562_v21  ;;  %985 = vmatprep.mubr.bf16.mxu1 %v564_v22  ;;  %v525_v21 = vld [vmem:[#allocation3 + $0x20] sm:$0xff]  ;;  %v530_v22 = vld [vmem:[#allocation3 + $0x48] sm:$0xff] }
  0x9c   : > { %v349_v23 = vpop.permute.xlu1 %348  ;;  %v526_v25 = vld [vmem:[#allocation3 + $0x28] sm:$0xff]  ;;  %v478_v26 = vpop.permute.xlu0 %477  ;;  %v523_v29 = vld [vmem:[#allocation3 + $0x10] sm:$0xff] }
  0x9d   : > { %369 = vst.msk [vmem:[#allocation3 + $0x80] sm:$0xff] %vm298_vm2, %v349_v23  ;;  %v561_v27 = vpack.c.bf16 %v526_v25, %v521_v24  ;;  %499 = vst.msk [vmem:[#allocation3 + $0x68] sm:$0xff] %vm298_vm2, %v478_v26  ;;  %v565_v25 = vpack.c.bf16 %v530_v22, %v525_v21 }
  0x9f   : > { %921 = vmatmul.mubr.bf16.vlgmr.msra.gmra.mrb[0].mxu0 %v561_v27  ;;  %v545_v27 = vld [vmem:[#allocation3 + $0xc0] sm:$0xff] }
  0xa0   : > { %v480_v30 = vpop.permute.xlu1 %479  ;;  %v528_v31 = vld [vmem:[#allocation3 + $0x38] sm:$0xff]  ;;  %v279_v32 = vpop.permute.xlu0 %278  ;;  %1382 = vmatpush3.bf16.msra.mxu0 %v1814_v4 }
  0xa1   : > { %500 = vst.msk [vmem:[#allocation3 + $0x90] sm:$0xff] %vm298_vm2, %v480_v30  ;;  %v563_v33 = vpack.c.bf16 %v528_v31, %v523_v29  ;;  %301 = vst.msk [vmem:[#allocation3 + $0x50] sm:$0xff] %vm298_vm2, %v279_v32  ;;  %1383 = vmatprep.subr.bf16.mxu0 %v1464_v28  ;;  %v532_v35 = vld [vmem:[#allocation3 + $0x58] sm:$0xff]  ;;  %v535_v31 = vld [vmem:[#allocation3 + $0x70] sm:$0xff] }
  0xa2   : > { %v540_v32 = vld [vmem:[#allocation3 + $0x98] sm:$0xff] }
  0xa3   : > { %986 = vmatmul.mubr.bf16.vlgmr.msra.gmra.mrb[0].mxu1 %v563_v33 }
  0xa4   : > { %v281_v36 = vpop.permute.xlu1 %280  ;;  %v537_v37 = vld [vmem:[#allocation3 + $0x80] sm:$0xff]  ;;  %v411_v38 = vpop.permute.xlu0 %410  ;;  %1401 = vmatpush3.bf16.msra.mxu1 %v1814_v4  ;;  %1384 = vmatpush3.bf16.msra.mxu0 %v1464_v28  ;;  %v534_v41 = vld [vmem:[#allocation3 + $0x68] sm:$0xff] }
  0xa5   : > { %302 = vst.msk [vmem:[#allocation3 + $0x78] sm:$0xff] %vm298_vm2, %v281_v36  ;;  %v567_v39 = vpack.c.bf16 %v537_v37, %v532_v35  ;;  %432 = vst.msk [vmem:[#allocation3 + $0x60] sm:$0xff] %vm298_vm2, %v411_v38  ;;  %1398 = vmatprep.subr.bf16.mxu1 %v1464_v28  ;;  %1385 = vmatprep.subr.bf16.mxu0 %v1465_v34  ;;  %v570_v35 = vpack.c.bf16 %v540_v32, %v535_v31  ;;  %v555_v36 = vld [vmem:[#allocation3 + $0x110] sm:$0xff]  ;;  %v560_v37 = vld [vmem:[#allocation3 + $0x138] sm:$0xff] }
  0xa6   : > { %v580_v38 = vpack.c.bf16 %v560_v37, %v555_v36 }
  0xa7   : > { %928 = vmatprep.mubr.bf16.mxu0 %v567_v39 }
  0xa8   : > { %v413_v42 = vpop.permute.xlu1 %412  ;;  %v539_v43 = vld [vmem:[#allocation3 + $0x90] sm:$0xff]  ;;  %v351_v44 = vpop.permute.xlu0 %350  ;;  %1402 = vmatpush3.bf16.msra.mxu1 %v1464_v28  ;;  %1386 = vmatpush3.bf16.msra.mxu0 %v1465_v34  ;;  %v550_v28 = vld [vmem:[#allocation3 + $0xe8] sm:$0xff] }
  0xa9   : > { %433 = vst.msk [vmem:[#allocation3 + $0x88] sm:$0xff] %vm298_vm2, %v413_v42  ;;  %v569_v45 = vpack.c.bf16 %v539_v43, %v534_v41  ;;  %370 = vst.msk [vmem:[#allocation3 + $0xa8] sm:$0xff] %vm298_vm2, %v351_v44  ;;  %1399 = vmatprep.subr.bf16.mxu1 %v1465_v34  ;;  %1387 = vmatprep.subr.bf16.mxu0 %v1466_v40  ;;  %v531_v46 = vld [vmem:[#allocation3 + $0x50] sm:$0xff]  ;;  %v575_v33 = vpack.c.bf16 %v550_v28, %v545_v27  ;;  %v1248_v43 = vld [vmem:[%s1929_s2] ss:$0 sm:$0xff] }
  0xab   : > { %993 = vmatprep.mubr.bf16.mxu1 %v569_v45 }
  0xac   : > { %v353_v47 = vpop.permute.xlu1 %352  ;;  %v536_v48 = vld [vmem:[#allocation3 + $0x78] sm:$0xff]  ;;  %v482_v49 = vpop.permute.xlu0 %481  ;;  %1403 = vmatpush3.bf16.msra.mxu1 %v1465_v34  ;;  %1388 = vmatpush3.bf16.msra.mxu0 %v1466_v40  ;;  %v533_v51 = vld [vmem:[#allocation3 + $0x60] sm:$0xff] }
  0xad   : > { %371 = vst.msk [vmem:[#allocation3 + $0xd0] sm:$0xff] %vm298_vm2, %v353_v47  ;;  %v566_v50 = vpack.c.bf16 %v536_v48, %v531_v46  ;;  %501 = vst.msk [vmem:[#allocation3 + $0xb8] sm:$0xff] %vm298_vm2, %v482_v49  ;;  %1400 = vmatprep.subr.bf16.mxu1 %v1466_v40 }
  0xaf   : > { %929 = vmatmul.mubr.bf16.gmra.mrb[4].mxu0 %v566_v50 }
  0xb0   : > { %v484_v52 = vpop.permute.xlu1 %483  ;;  %v538_v53 = vld [vmem:[#allocation3 + $0x88] sm:$0xff]  ;;  %v283_v54 = vpop.permute.xlu0 %282  ;;  %1404 = vmatpush3.bf16.msra.mxu1 %v1466_v40 }
  0xb1   : > { %502 = vst.msk [vmem:[#allocation3 + $0xe0] sm:$0xff] %vm298_vm2, %v484_v52  ;;  %v568_v55 = vpack.c.bf16 %v538_v53, %v533_v51  ;;  %303 = vst.msk [vmem:[#allocation3 + $0xa0] sm:$0xff] %vm298_vm2, %v283_v54  ;;  %v542_v56 = vld [vmem:[#allocation3 + $0xa8] sm:$0xff] }
  0xb3   : > { %994 = vmatmul.mubr.bf16.gmra.mrb[4].mxu1 %v568_v55 }
  0xb4   : > { %v285_v57 = vpop.permute.xlu1 %284  ;;  %v547_v58 = vld [vmem:[#allocation3 + $0xd0] sm:$0xff]  ;;  %v415_v59 = vpop.permute.xlu0 %414  ;;  %v544_v61 = vld [vmem:[#allocation3 + $0xb8] sm:$0xff] }
  0xb5   : > { %304 = vst.msk [vmem:[#allocation3 + $0xc8] sm:$0xff] %vm298_vm2, %v285_v57  ;;  %v572_v60 = vpack.c.bf16 %v547_v58, %v542_v56  ;;  %434 = vst.msk [vmem:[#allocation3 + $0xb0] sm:$0xff] %vm298_vm2, %v415_v59 }
  0xb7   : > { %936 = vmatprep.mubr.bf16.mxu0 %v572_v60 }
  0xb8   : > { %v417_v62 = vpop.permute.xlu1 %416  ;;  %v549_v63 = vld [vmem:[#allocation3 + $0xe0] sm:$0xff]  ;;  %v355_v0 = vpop.permute.xlu0 %354 }
  0xb9   : > { %435 = vst.msk [vmem:[#allocation3 + $0xd8] sm:$0xff] %vm298_vm2, %v417_v62  ;;  %v574_v1 = vpack.c.bf16 %v549_v63, %v544_v61  ;;  %372 = vst.msk [vmem:[#allocation3 + $0xf8] sm:$0xff] %vm298_vm2, %v355_v0  ;;  %v541_v2 = vld [vmem:[#allocation3 + $0xa0] sm:$0xff] }
  0xbb   : > { %1001 = vmatprep.mubr.bf16.mxu1 %v574_v1 }
  0xbc   : > { %v357_v3 = vpop.permute.xlu1 %356  ;;  %v546_v4 = vld [vmem:[#allocation3 + $0xc8] sm:$0xff]  ;;  %v486_v5 = vpop.permute.xlu0 %485  ;;  %v543_v7 = vld [vmem:[#allocation3 + $0xb0] sm:$0xff] }
  0xbd   : > { %373 = vst.msk [vmem:[#allocation3 + $0x120] sm:$0xff] %vm298_vm2, %v357_v3  ;;  %v571_v6 = vpack.c.bf16 %v546_v4, %v541_v2  ;;  %503 = vst.msk [vmem:[#allocation3 + $0x108] sm:$0xff] %vm298_vm2, %v486_v5 }
  0xbf   : > { %937 = vmatmul.mubr.bf16.gmra.mrb[8].mxu0 %v571_v6 }
  0xc0   : > { %v488_v8 = vpop.permute.xlu1 %487  ;;  %v548_v9 = vld [vmem:[#allocation3 + $0xd8] sm:$0xff]  ;;  %v287_v10 = vpop.permute.xlu0 %286 }
  0xc1   : > { %504 = vst.msk [vmem:[#allocation3 + $0x130] sm:$0xff] %vm298_vm2, %v488_v8  ;;  %v573_v11 = vpack.c.bf16 %v548_v9, %v543_v7  ;;  %305 = vst.msk [vmem:[#allocation3 + $0xf0] sm:$0xff] %vm298_vm2, %v287_v10  ;;  %v552_v12 = vld [vmem:[#allocation3 + $0xf8] sm:$0xff] }
  0xc3   : > { %1002 = vmatmul.mubr.bf16.gmra.mrb[8].mxu1 %v573_v11 }
  0xc4   : > { %v289_v13 = vpop.permute.xlu1 %288  ;;  %v557_v14 = vld [vmem:[#allocation3 + $0x120] sm:$0xff]  ;;  %v419_v15 = vpop.permute.xlu0 %418  ;;  %v554_v17 = vld [vmem:[#allocation3 + $0x108] sm:$0xff] }
  0xc5   : > { %306 = vst.msk [vmem:[#allocation3 + $0x118] sm:$0xff] %vm298_vm2, %v289_v13  ;;  %v577_v16 = vpack.c.bf16 %v557_v14, %v552_v12  ;;  %436 = vst.msk [vmem:[#allocation3 + $0x100] sm:$0xff] %vm298_vm2, %v419_v15 }
  0xc7   : > { %944 = vmatprep.mubr.bf16.mxu0 %v577_v16 }
  0xc8   : > { %v421_v18 = vpop.permute.xlu1 %420  ;;  %v559_v19 = vld [vmem:[#allocation3 + $0x130] sm:$0xff] }
  0xc9   : > { %437 = vst.msk [vmem:[#allocation3 + $0x128] sm:$0xff] %vm298_vm2, %v421_v18  ;;  %v579_v20 = vpack.c.bf16 %v559_v19, %v554_v17  ;;  %v551_v23 = vld [vmem:[#allocation3 + $0xf0] sm:$0xff] }
  0xcb   : > { %1009 = vmatprep.mubr.bf16.mxu1 %v579_v20 }
  0xcc   : > { %v556_v24 = vld [vmem:[#allocation3 + $0x118] sm:$0xff]  ;;  %v553_v29 = vld [vmem:[#allocation3 + $0x100] sm:$0xff] }
  0xcd   : > { %v576_v26 = vpack.c.bf16 %v556_v24, %v551_v23 }
  0xcf   : > { %945 = vmatmul.mubr.bf16.gmra.mrb[12].mxu0 %v576_v26 }
  0xd0   : > { %v558_v30 = vld [vmem:[#allocation3 + $0x128] sm:$0xff]  ;;  %1389 = vmatprep.mubr.msk.bf16.mxu0 %vm199_vm0, %v565_v25 }
  0xd1   : > { %v578_v34 = vpack.c.bf16 %v558_v30, %v553_v29 }
  0xd3   : > { %1010 = vmatmul.mubr.bf16.gmra.mrb[12].mxu1 %v578_v34 }
  0xd4   : > { %1393 = vmatprep.mubr.msk.bf16.mxu1 %vm199_vm0, %v575_v33 }
  0xd7   : > { %1390 = vmatmul.mubr.msk.bf16.vlgmr.msra.gmra.mrb[16].mxu0 %vm199_vm0, %v570_v35 }
  0xdb   : > { %1394 = vmatmul.mubr.msk.bf16.vlgmr.msra.gmra.mrb[16].mxu1 %vm199_vm0, %v580_v38 }
 0x172   : > { %v1309_v39 = vpop.f32.mrb[0].mxu0 }
 0x173   : > { %v1310_v40 = vpop.f32.mrb[1].mxu0 }
 0x174   : > { %v1311_v41 = vadd.f32 %v1310_v40, %v1309_v39  ;;  %v1312_v42 = vpop.f32.mrb[2].mxu0 }
 0x175   : > { %v1313_v44 = vpop.f32.mrb[3].mxu0 }
 0x176   : > { %v1314_v45 = vadd.f32 %v1313_v44, %v1312_v42  ;;  %v1349_v46 = vpop.f32.mrb[0].mxu1  ;;  %v923_v48 = vadd.f32 %v1311_v41, %v1248_v43 }
 0x177   : > { %v1350_v47 = vpop.f32.mrb[1].mxu1 }
 0x178   : > { %v1351_v49 = vadd.f32 %v1350_v47, %v1349_v46  ;;  %v1352_v50 = vpop.f32.mrb[2].mxu1  ;;  %v926_v52 = vadd.f32 %v1314_v45, %v1248_v43 }
 0x179   : > { %v1353_v51 = vpop.f32.mrb[3].mxu1 }
 0x17a   : > { %v1354_v53 = vadd.f32 %v1353_v51, %v1352_v50  ;;  %v988_v54 = vadd.f32 %v1351_v49, %v923_v48 }
 0x17c   : > { %v991_v55 = vadd.f32 %v1354_v53, %v926_v52 }
 0x182   : > { %v1315_v56 = vpop.f32.mrb[4].mxu0 }
 0x183   : > { %v1316_v57 = vpop.f32.mrb[5].mxu0 }
 0x184   : > { %v1317_v58 = vadd.f32 %v1316_v57, %v1315_v56  ;;  %v1318_v59 = vpop.f32.mrb[6].mxu0 }
 0x185   : > { %v1319_v60 = vpop.f32.mrb[7].mxu0 }
 0x186   : > { %v1320_v61 = vadd.f32 %v1319_v60, %v1318_v59  ;;  %v1355_v62 = vpop.f32.mrb[4].mxu1  ;;  %v931_v0 = vadd.f32 %v1317_v58, %v1248_v43 }
 0x187   : > { %v1356_v63 = vpop.f32.mrb[5].mxu1 }
 0x188   : > { %v1357_v1 = vadd.f32 %v1356_v63, %v1355_v62  ;;  %v1358_v2 = vpop.f32.mrb[6].mxu1  ;;  %v934_v4 = vadd.f32 %v1320_v61, %v1248_v43 }
 0x189   : > { %v1359_v3 = vpop.f32.mrb[7].mxu1 }
 0x18a   : > { %v1360_v5 = vadd.f32 %v1359_v3, %v1358_v2  ;;  %v996_v6 = vadd.f32 %v1357_v1, %v931_v0 }
 0x18c   : > { %v999_v7 = vadd.f32 %v1360_v5, %v934_v4 }
 0x192   : > { %v1321_v8 = vpop.f32.mrb[8].mxu0 }
 0x193   : > { %v1322_v9 = vpop.f32.mrb[9].mxu0 }
 0x194   : > { %v1323_v10 = vadd.f32 %v1322_v9, %v1321_v8  ;;  %v1324_v11 = vpop.f32.mrb[10].mxu0 }
 0x195   : > { %v1325_v12 = vpop.f32.mrb[11].mxu0 }
 0x196   : > { %v1326_v13 = vadd.f32 %v1325_v12, %v1324_v11  ;;  %v1361_v14 = vpop.f32.mrb[8].mxu1  ;;  %v939_v16 = vadd.f32 %v1323_v10, %v1248_v43 }
 0x197   : > { %v1362_v15 = vpop.f32.mrb[9].mxu1 }
 0x198   : > { %v1363_v17 = vadd.f32 %v1362_v15, %v1361_v14  ;;  %v1364_v18 = vpop.f32.mrb[10].mxu1  ;;  %v942_v20 = vadd.f32 %v1326_v13, %v1248_v43 }
 0x199   : > { %v1365_v19 = vpop.f32.mrb[11].mxu1 }
 0x19a   : > { %v1366_v21 = vadd.f32 %v1365_v19, %v1364_v18  ;;  %v1004_v22 = vadd.f32 %v1363_v17, %v939_v16 }
 0x19c   : > { %v1007_v23 = vadd.f32 %v1366_v21, %v942_v20 }
 0x1a2   : > { %v1327_v24 = vpop.f32.mrb[12].mxu0 }
 0x1a3   : > { %v1328_v25 = vpop.f32.mrb[13].mxu0 }
 0x1a4   : > { %v1329_v26 = vadd.f32 %v1328_v25, %v1327_v24  ;;  %v1330_v27 = vpop.f32.mrb[14].mxu0 }
 0x1a5   : > { %v1331_v28 = vpop.f32.mrb[15].mxu0 }
 0x1a6   : > { %v1332_v29 = vadd.f32 %v1331_v28, %v1330_v27  ;;  %v1367_v30 = vpop.f32.mrb[12].mxu1  ;;  %v947_v32 = vadd.f32 %v1329_v26, %v1248_v43 }
 0x1a7   : > { %v1368_v31 = vpop.f32.mrb[13].mxu1 }
 0x1a8   : > { %v1369_v33 = vadd.f32 %v1368_v31, %v1367_v30  ;;  %v1370_v34 = vpop.f32.mrb[14].mxu1  ;;  %v950_v36 = vadd.f32 %v1332_v29, %v1248_v43 }
 0x1a9   : > { %v1371_v35 = vpop.f32.mrb[15].mxu1 }
 0x1aa   : > { %v1372_v37 = vadd.f32 %v1371_v35, %v1370_v34  ;;  %v1391_v38 = vpop.f32.mrb[16].mxu0  ;;  %v1012_v39 = vadd.f32 %v1369_v33, %v947_v32 }
 0x1ab   : > { %v1061_v40 = vadd.f32 %v1391_v38, %v996_v6  ;;  %v1052_v41 = vpop.f32.mrb[17].mxu0 }
 0x1ac   : > { %v1053_v42 = vadd.f32 %v1052_v41, %v988_v54  ;;  %v1392_v44 = vpop.f32.mrb[18].mxu0  ;;  %v1015_v45 = vadd.f32 %v1372_v37, %v950_v36 }
 0x1ad   : > { %v1085_v46 = vmax.f32 %v1061_v40, 0.0  ;;  %v1064_v43 = vadd.f32 %v1392_v44, %v999_v7  ;;  %v1055_v47 = vpop.f32.mrb[19].mxu0 }
 0x1ae   : > { %v1083_v48 = vmax.f32 %v1053_v42, 0.0  ;;  %v1056_v49 = vadd.f32 %v1055_v47, %v991_v55  ;;  %v1395_v50 = vpop.f32.mrb[16].mxu1 }
 0x1af   : > { %1094 = vst.msk [vmem:[%s1900_s6 + $0x10] sm:$0xff] %vm1091_vm3, %v1085_v46  ;;  %v1086_v51 = vmax.f32 %v1064_v43, 0.0  ;;  %v1077_v52 = vadd.f32 %v1395_v50, %v1012_v39  ;;  %v1068_v53 = vpop.f32.mrb[17].mxu1 }
 0x1b0   : > { %1092 = vst.msk [vmem:[%s1900_s6] sm:$0xff] %vm1091_vm3, %v1083_v48  ;;  %v1084_v54 = vmax.f32 %v1056_v49, 0.0  ;;  %v1069_v56 = vadd.f32 %v1068_v53, %v1004_v22  ;;  %v1396_v57 = vpop.f32.mrb[18].mxu1 }
 0x1b1   : > { %1095 = vst.msk [vmem:[%s1900_s6 + $0x18] sm:$0xff] %vm1091_vm3, %v1086_v51  ;;  %v1089_v58 = vmax.f32 %v1077_v52, 0.0  ;;  %v1080_v59 = vadd.f32 %v1396_v57, %v1015_v45  ;;  %v1071_v55 = vpop.f32.mrb[19].mxu1 }
 0x1b2   : > { %1093 = vst.msk [vmem:[%s1900_s6 + $0x8] sm:$0xff] %vm1091_vm3, %v1084_v54  ;;  %v1087_v60 = vmax.f32 %v1069_v56, 0.0  ;;  %v1072_v61 = vadd.f32 %v1071_v55, %v1007_v23 }
 0x1b3   : > { %1098 = vst.msk [vmem:[%s1900_s6 + $0x30] sm:$0xff] %vm1091_vm3, %v1089_v58  ;;  %v1090_v62 = vmax.f32 %v1080_v59, 0.0 }
 0x1b4   : > { %1096 = vst.msk [vmem:[%s1900_s6 + $0x20] sm:$0xff] %vm1091_vm3, %v1087_v60  ;;  %v1088_v63 = vmax.f32 %v1072_v61, 0.0 }
 0x1b5   : > { %1099 = vst.msk [vmem:[%s1900_s6 + $0x38] sm:$0xff] %vm1091_vm3, %v1090_v62 }
 0x1b6   : > { %1097 = vst.msk [vmem:[%s1900_s6 + $0x28] sm:$0xff] %vm1091_vm3, %v1088_v63 }
 0x1b7 PF: > { %s13_s14 = sadd.s32 1, %s1489_s14   ;;  %s1931_s12 = smov %s1485_s13 }
 0x1b8   : > { %p10_p5 = scmp.ge.s32.totalorder %s13_s14, 4   ;;  %s1932_s13 = smov %s1934_s15 }
 0x1ba   :  { %12 = sbr.rel (!%p10_p5) target bundleno = 2 (0x2), region = 70 }

// kernel: unet_forward.19
= control target key start
LH: loop header
LB: loop body
LE: loop exit
PB: predicated region body
PF: predicated region fallthrough
CT: control target
= control target key end

     0   :  { %s3078_s12 = smov 0   ;;  %s3080_s13 = smov 0   ;;  %s4383_s0 = inlined_call_operand.vmem [shape: f32[2,16,16,32], index: 0, kind: input, shape index: {}]   ;;  %s4384_s1 = inlined_call_operand.vmem [shape: bf16[288,3], index: 1, kind: input, shape index: {}]   ;;  %s4385_s2 = inlined_call_operand.vmem [shape: f32[1,3], index: 2, kind: input, shape index: {}]   ;;  %s4386_s3 = inlined_call_operand.vmem [shape: f32[2,256,3], index: 3, kind: output, shape index: {}]  }
   0x1   :  { %s3082_s14 = smov 0  }
   0x2 LB: > { %s25_s15 = sadd.s32 1, %s3048_s13  ;;  %p2502_p0 = scmp.ge.s32.totalorder %s3052_s14, 1  ;;  %s3052_s14 = sphi %s3082_s14, %s13_s14   ;;  %s3048_s13 = sphi %s3080_s13, %s4388_s13   ;;  %s3044_s12 = sphi %s3078_s12, %s4387_s12  }
   0x3   : > { %p27_p1 = scmp.ge.s32.totalorder %s25_s15, 2  ;;  %p151_p2 = scmp.lt.s32.totalorder %s3052_s14, 3 }
   0x5   : > { %s4390_s15 = smov (%p27_p1, %s25_s15), 0  ;;  %p152_p3 = pnand %p2502_p0, %p151_p2 }
   0x6   : > { %vm199_vm0 = vcmask (!%p152_p3), 261120   ;;  %vm202_vm1 = vcmask (!%p152_p3), 254976   ;;  %v2948_v0 = vld [vmem:[%s4384_s1 + $0x40] sm:$0xff] (!%p152_p3)   ;;  %v3054_v1 = vmov (!%p152_p3), 0.0   ;;  %p179_p4 = scmp.lt.s32.totalorder (!%p152_p3), %s3044_s12, 1  ;;  %v2950_v3 = vld [vmem:[%s4384_s1 + $0x48] sm:$0xff] (!%p152_p3)  }
   0x7   : > { %155 = sbr.rel (%p152_p3) target bundleno = 776 (0x308), region = 32  ;;  %200 = vst.msk [vmem:[#allocation2] sm:$0xff] (!%p152_p3), %vm199_vm0, %v3054_v1  ;;  %201 = vst.msk [vmem:[#allocation2 + $0x8] sm:$0xff] (!%p152_p3), %vm199_vm0, %v3054_v1  ;;  %2738 = vmatprep.subr.bf16.mxu0 (!%p152_p3), %v2948_v0  ;;  %v2949_v2 = vld [vmem:[%s4384_s1] sm:$0xff] (!%p152_p3)   ;;  %2904 = vmatprep.subr.bf16.mxu1 (!%p152_p3), %v2948_v0  ;;  %v2951_v4 = vld [vmem:[%s4384_s1 + $0x8] sm:$0xff] (!%p152_p3)   ;;  %s3055_s30 = smov (!%p152_p3), 32  }
   0x8   : > { %204 = vst.msk [vmem:[#allocation2 + $0x18] sm:$0xff] (!%p152_p3), %vm199_vm0, %v3054_v1  ;;  %205 = vst.msk [vmem:[#allocation2 + $0x20] sm:$0xff] (!%p152_p3), %vm199_vm0, %v3054_v1  ;;  %2739 = vmatpush3.bf16.msra.mxu0 (!%p152_p3), %v2949_v2  ;;  %2912 = vmatpush3.bf16.msra.mxu1 (!%p152_p3), %v2949_v2  ;;  %v2952_v5 = vld [vmem:[%s4384_s1 + $0x50] sm:$0xff] (!%p152_p3)   ;;  %s3056_s4 = smov (!%p152_p3), 64   ;;  %s3057_s7 = smov (!%p152_p3), 96   ;;  %v2954_v52 = vld [vmem:[%s4384_s1 + $0x58] sm:$0xff] (!%p152_p3)  }
   0x9   : > { %207 = vst.msk [vmem:[#allocation2 + $0x30] sm:$0xff] (!%p152_p3), %vm199_vm0, %v3054_v1  ;;  %208 = vst.msk [vmem:[#allocation2 + $0x38] sm:$0xff] (!%p152_p3), %vm199_vm0, %v3054_v1  ;;  %2740 = vmatprep.subr.bf16.mxu0 (!%p152_p3), %v2950_v3  ;;  %2905 = vmatprep.subr.bf16.mxu1 (!%p152_p3), %v2950_v3  ;;  %v2953_v28 = vld [vmem:[%s4384_s1 + $0x10] sm:$0xff] (!%p152_p3)   ;;  %v2955_v54 = vld [vmem:[%s4384_s1 + $0x18] sm:$0xff] (!%p152_p3)   ;;  %vm548_vm2 = vcmask (!%p152_p3), 523520   ;;  %vm741_vm3 = vcmask (!%p152_p3), 785920  }
   0xa   : > { %210 = vst.msk [vmem:[#allocation2 + $0x48] sm:$0xff] (!%p152_p3), %vm199_vm0, %v3054_v1  ;;  %211 = vst.msk [vmem:[#allocation2 + $0x50] sm:$0xff] (!%p152_p3), %vm199_vm0, %v3054_v1  ;;  %v2956_v58 = vld [vmem:[%s4384_s1 + $0x60] sm:$0xff] (!%p152_p3)   ;;  %v2958_v60 = vld [vmem:[%s4384_s1 + $0x68] sm:$0xff] (!%p152_p3)   ;;  %vm937_vm4 = vcmask (!%p152_p3), 1048320   ;;  %vm2374_vm5 = vcmask (!%p152_p3), 23552  }
   0xb   : > { %213 = vst.msk [vmem:[#allocation2 + $0x60] sm:$0xff] (!%p152_p3), %vm199_vm0, %v3054_v1  ;;  %214 = vst.msk [vmem:[#allocation2 + $0x68] sm:$0xff] (!%p152_p3), %vm199_vm0, %v3054_v1  ;;  %v2957_v59 = vld [vmem:[%s4384_s1 + $0x20] sm:$0xff] (!%p152_p3)   ;;  %v2959_v63 = vld [vmem:[%s4384_s1 + $0x28] sm:$0xff] (!%p152_p3)  }
   0xc   : > { %216 = vst.msk [vmem:[#allocation2 + $0x78] sm:$0xff] (!%p152_p3), %vm199_vm0, %v3054_v1  ;;  %217 = vst.msk [vmem:[#allocation2 + $0x80] sm:$0xff] (!%p152_p3), %vm199_vm0, %v3054_v1  ;;  %2741 = vmatpush3.bf16.msra.mxu0 (!%p152_p3), %v2951_v4  ;;  %2913 = vmatpush3.bf16.msra.mxu1 (!%p152_p3), %v2951_v4  ;;  %v2960_v0 = vld [vmem:[%s4384_s1 + $0x70] sm:$0xff] (!%p152_p3)  }
   0xd   : > { %219 = vst.msk [vmem:[#allocation2 + $0x90] sm:$0xff] (!%p152_p3), %vm199_vm0, %v3054_v1  ;;  %220 = vst.msk [vmem:[#allocation2 + $0x98] sm:$0xff] (!%p152_p3), %vm199_vm0, %v3054_v1  ;;  %2742 = vmatprep.subr.bf16.mxu0 (!%p152_p3), %v2952_v5  ;;  %2906 = vmatprep.subr.bf16.mxu1 (!%p152_p3), %v2952_v5  ;;  %v2961_v4 = vld [vmem:[%s4384_s1 + $0x30] sm:$0xff] (!%p152_p3)  }
   0xe   : > { %222 = vst.msk [vmem:[#allocation2 + $0xa8] sm:$0xff] %vm199_vm0, %v3054_v1  ;;  %223 = vst.msk [vmem:[#allocation2 + $0xb0] sm:$0xff] %vm199_vm0, %v3054_v1  ;;  %s4392_s12 = smov (!%p179_p4, %s3044_s12), 1  ;;  %v388_v9 = vld [vmem:[#allocation2 + $0x1] sm:$0xff] }
   0xf   : > { %225 = vst.msk [vmem:[#allocation2 + $0xc0] sm:$0xff] %vm199_vm0, %v3054_v1  ;;  %226 = vst.msk [vmem:[#allocation2 + $0xc8] sm:$0xff] %vm199_vm0, %v3054_v1  ;;  %s2736_s22 = sshll.u32 %s4392_s12, 8  ;;  %v581_v10 = vld [vmem:[#allocation2 + $0x2] sm:$0xff]  ;;  %452 = vrot.lane.b32.xlu1 %v388_v9, %s3055_s30 }
  0x10   : > { %228 = vst.msk [vmem:[#allocation2 + $0xd8] sm:$0xff] %vm199_vm0, %v3054_v1  ;;  %229 = vst.msk [vmem:[#allocation2 + $0xe0] sm:$0xff] %vm199_vm0, %v3054_v1  ;;  %s3174_s27 = scalar_lea.vmem %s4383_s0, %s2736_s22  ;;  %645 = vrot.lane.b32.xlu0 %v581_v10, %s3056_s4  ;;  %v323_v26 = vld [vmem:[#allocation2] sm:$0xff]  ;;  %v324_v27 = vld [vmem:[#allocation2 + $0x8] sm:$0xff]  ;;  %2743 = vmatpush3.bf16.msra.mxu0 %v2953_v28  ;;  %s4240_s18 = scalar_lea.vmem %s4386_s3, %s2736_s22 }
  0x11   : > { %231 = vst.msk [vmem:[#allocation2 + $0xf0] sm:$0xff] %vm199_vm0, %v3054_v1  ;;  %232 = vst.msk [vmem:[#allocation2 + $0xf8] sm:$0xff] %vm199_vm0, %v3054_v1  ;;  %v255_v6 = vld [vmem:[%s3174_s27] sm:$0xff]  ;;  %v256_v7 = vld [vmem:[%s3174_s27 + $0x8] sm:$0xff]  ;;  %2914 = vmatpush3.bf16.msra.mxu1 %v2953_v28  ;;  %2744 = vmatprep.subr.bf16.mxu0 %v2954_v52 }
  0x12   : > { %234 = vst.msk [vmem:[#allocation2 + $0x108] sm:$0xff] %vm199_vm0, %v3054_v1  ;;  %235 = vst.msk [vmem:[#allocation2 + $0x110] sm:$0xff] %vm199_vm0, %v3054_v1  ;;  %v257_v8 = vld [vmem:[%s3174_s27 + $0x10] sm:$0xff]  ;;  %v258_v12 = vld [vmem:[%s3174_s27 + $0x18] sm:$0xff]  ;;  %2907 = vmatprep.subr.bf16.mxu1 %v2954_v52 }
  0x13   : > { %237 = vst.msk [vmem:[#allocation2 + $0x120] sm:$0xff] %vm199_vm0, %v3054_v1  ;;  %238 = vst.msk [vmem:[#allocation2 + $0x128] sm:$0xff] %vm199_vm0, %v3054_v1  ;;  %v280_v13 = vld [vmem:[%s3174_s27 + $0xc8] sm:$0xff]  ;;  %v279_v14 = vld [vmem:[%s3174_s27 + $0xc0] sm:$0xff] }
  0x14   : > { %240 = vst.msk [vmem:[#allocation2 + $0x138] sm:$0xff] %vm199_vm0, %v3054_v1  ;;  %241 = vst.msk [vmem:[#allocation2 + $0x140] sm:$0xff] %vm199_vm0, %v3054_v1  ;;  %v278_v15 = vld [vmem:[%s3174_s27 + $0xb8] sm:$0xff]  ;;  %v277_v16 = vld [vmem:[%s3174_s27 + $0xb0] sm:$0xff]  ;;  %2745 = vmatpush3.bf16.msra.mxu0 %v2955_v54 }
  0x15   : > { %243 = vst.msk [vmem:[#allocation2 + $0x150] sm:$0xff] %vm199_vm0, %v3054_v1  ;;  %244 = vst.msk [vmem:[#allocation2 + $0x158] sm:$0xff] %vm199_vm0, %v3054_v1  ;;  %v281_v17 = vld [vmem:[%s3174_s27 + $0xd0] sm:$0xff]  ;;  %v282_v18 = vld [vmem:[%s3174_s27 + $0xd8] sm:$0xff]  ;;  %2746 = vmatprep.subr.bf16.mxu0 %v2956_v58  ;;  %2915 = vmatpush3.bf16.msra.mxu1 %v2955_v54 }
  0x16   : > { %246 = vst.msk [vmem:[#allocation2 + $0x168] sm:$0xff] %vm199_vm0, %v3054_v1  ;;  %247 = vst.msk [vmem:[#allocation2 + $0x170] sm:$0xff] %vm199_vm0, %v3054_v1  ;;  %v259_v19 = vld [vmem:[%s3174_s27 + $0x20] sm:$0xff]  ;;  %v260_v21 = vld [vmem:[%s3174_s27 + $0x28] sm:$0xff]  ;;  %2908 = vmatprep.subr.bf16.mxu1 %v2956_v58 }
  0x17   : > { %249 = vst.msk [vmem:[#allocation2 + $0x180] sm:$0xff] %vm199_vm0, %v3054_v1  ;;  %250 = vst.msk [vmem:[#allocation2 + $0x188] sm:$0xff] %vm199_vm0, %v3054_v1  ;;  %v283_v22 = vld [vmem:[%s3174_s27 + $0xe0] sm:$0xff]  ;;  %v284_v23 = vld [vmem:[%s3174_s27 + $0xe8] sm:$0xff] }
  0x18   : > { %252 = vst.msk [vmem:[#allocation2 + $0x198] sm:$0xff] %vm199_vm0, %v3054_v1  ;;  %253 = vst.msk [vmem:[#allocation2 + $0x1a0] sm:$0xff] %vm199_vm0, %v3054_v1  ;;  %v261_v24 = vld [vmem:[%s3174_s27 + $0x30] sm:$0xff]  ;;  %v262_v25 = vld [vmem:[%s3174_s27 + $0x38] sm:$0xff]  ;;  %2747 = vmatpush3.bf16.msra.mxu0 %v2957_v59 }
  0x19   : > { %203 = vst.msk [vmem:[#allocation2 + $0x10] sm:$0x3] %vm202_vm1, %v3054_v1  ;;  %206 = vst.msk [vmem:[#allocation2 + $0x28] sm:$0x3] %vm202_vm1, %v3054_v1  ;;  %v285_v55 = vld [vmem:[%s3174_s27 + $0xf0] sm:$0xff]  ;;  %v286_v56 = vld [vmem:[%s3174_s27 + $0xf8] sm:$0xff]  ;;  %2748 = vmatprep.subr.bf16.mxu0 %v2958_v60  ;;  %2916 = vmatpush3.bf16.msra.mxu1 %v2957_v59 }
  0x1a   : > { %209 = vst.msk [vmem:[#allocation2 + $0x40] sm:$0x3] %vm202_vm1, %v3054_v1  ;;  %212 = vst.msk [vmem:[#allocation2 + $0x58] sm:$0x3] %vm202_vm1, %v3054_v1  ;;  %2909 = vmatprep.subr.bf16.mxu1 %v2958_v60  ;;  %v263_v9 = vld [vmem:[%s3174_s27 + $0x40] sm:$0xff]  ;;  %v264_v10 = vld [vmem:[%s3174_s27 + $0x48] sm:$0xff] }
  0x1b   : > { %215 = vst.msk [vmem:[#allocation2 + $0x70] sm:$0x3] %vm202_vm1, %v3054_v1  ;;  %218 = vst.msk [vmem:[#allocation2 + $0x88] sm:$0x3] %vm202_vm1, %v3054_v1  ;;  %v270_v54 = vld [vmem:[%s3174_s27 + $0x78] sm:$0xff] }
  0x1c   : > { %221 = vst.msk [vmem:[#allocation2 + $0xa0] sm:$0x3] %vm202_vm1, %v3054_v1  ;;  %224 = vst.msk [vmem:[#allocation2 + $0xb8] sm:$0x3] %vm202_vm1, %v3054_v1  ;;  %2749 = vmatpush3.bf16.msra.mxu0 %v2959_v63 }
  0x1d   : > { %227 = vst.msk [vmem:[#allocation2 + $0xd0] sm:$0x3] %vm202_vm1, %v3054_v1  ;;  %230 = vst.msk [vmem:[#allocation2 + $0xe8] sm:$0x3] %vm202_vm1, %v3054_v1  ;;  %2750 = vmatprep.subr.bf16.mxu0 %v2960_v0  ;;  %2917 = vmatpush3.bf16.msra.mxu1 %v2959_v63 }
  0x1e   : > { %233 = vst.msk [vmem:[#allocation2 + $0x100] sm:$0x3] %vm202_vm1, %v3054_v1  ;;  %236 = vst.msk [vmem:[#allocation2 + $0x118] sm:$0x3] %vm202_vm1, %v3054_v1  ;;  %2910 = vmatprep.subr.bf16.mxu1 %v2960_v0 }
  0x1f   : > { %239 = vst.msk [vmem:[#allocation2 + $0x130] sm:$0x3] %vm202_vm1, %v3054_v1  ;;  %242 = vst.msk [vmem:[#allocation2 + $0x148] sm:$0x3] %vm202_vm1, %v3054_v1 }
  0x20   : > { %245 = vst.msk [vmem:[#allocation2 + $0x160] sm:$0x3] %vm202_vm1, %v3054_v1  ;;  %248 = vst.msk [vmem:[#allocation2 + $0x178] sm:$0x3] %vm202_vm1, %v3054_v1  ;;  %v389_v11 = vld [vmem:[#allocation2 + $0x9] sm:$0xff]  ;;  %2751 = vmatpush3.bf16.msra.mxu0 %v2961_v4 }
  0x21   : > { %251 = vst.msk [vmem:[#allocation2 + $0x190] sm:$0x3] %vm202_vm1, %v3054_v1  ;;  %254 = vst.msk [vmem:[#allocation2 + $0x1a8] sm:$0x3] %vm202_vm1, %v3054_v1  ;;  %v582_v20 = vld [vmem:[#allocation2 + $0xa] sm:$0xff]  ;;  %454 = vrot.lane.b32.xlu1 %v389_v11, %s3055_s30  ;;  %2918 = vmatpush3.bf16.msra.mxu1 %v2961_v4 }
  0x22   : > { %288 = vst.msk [vmem:[#allocation2 + $0x19] sm:$0xff] %vm199_vm0, %v255_v6  ;;  %289 = vst.msk [vmem:[#allocation2 + $0x21] sm:$0xff] %vm199_vm0, %v256_v7 }
  0x23   : > { %290 = vst.msk [vmem:[#allocation2 + $0x31] sm:$0xff] %vm199_vm0, %v257_v8  ;;  %291 = vst.msk [vmem:[#allocation2 + $0x39] sm:$0xff] %vm199_vm0, %v258_v12  ;;  %v2962_v8 = vld [vmem:[%s4384_s1 + $0x78] sm:$0xff]  }
  0x24   : > { %313 = vst.msk [vmem:[#allocation2 + $0x141] sm:$0xff] %vm199_vm0, %v280_v13  ;;  %312 = vst.msk [vmem:[#allocation2 + $0x139] sm:$0xff] %vm199_vm0, %v279_v14  ;;  %v2963_v12 = vld [vmem:[%s4384_s1 + $0x38] sm:$0xff]   ;;  %2752 = vmatprep.subr.bf16.mxu0 %v2962_v8  ;;  %2911 = vmatprep.subr.bf16.mxu1 %v2962_v8 }
  0x25   : > { %311 = vst.msk [vmem:[#allocation2 + $0x129] sm:$0xff] %vm199_vm0, %v278_v15  ;;  %310 = vst.msk [vmem:[#allocation2 + $0x121] sm:$0xff] %vm199_vm0, %v277_v16  ;;  %647 = vrot.lane.b32.xlu1 %v582_v20, %s3056_s4  ;;  %2753 = vmatpush3.bf16.msra.mxu0 %v2963_v12 }
  0x26   : > { %314 = vst.msk [vmem:[#allocation2 + $0x151] sm:$0xff] %vm199_vm0, %v281_v17  ;;  %315 = vst.msk [vmem:[#allocation2 + $0x159] sm:$0xff] %vm199_vm0, %v282_v18  ;;  %2919 = vmatpush3.bf16.msra.mxu1 %v2963_v12  ;;  %v271_v12 = vld [vmem:[%s3174_s27 + $0x80] sm:$0xff] }
  0x27   : > { %292 = vst.msk [vmem:[#allocation2 + $0x49] sm:$0xff] %vm199_vm0, %v259_v19  ;;  %293 = vst.msk [vmem:[#allocation2 + $0x51] sm:$0xff] %vm199_vm0, %v260_v21  ;;  %v265_v21 = vld [vmem:[%s3174_s27 + $0x50] sm:$0xff] }
  0x28   : > { %316 = vst.msk [vmem:[#allocation2 + $0x169] sm:$0xff] %vm199_vm0, %v283_v22  ;;  %317 = vst.msk [vmem:[#allocation2 + $0x171] sm:$0xff] %vm199_vm0, %v284_v23  ;;  %v266_v22 = vld [vmem:[%s3174_s27 + $0x58] sm:$0xff] }
  0x29   : > { %294 = vst.msk [vmem:[#allocation2 + $0x61] sm:$0xff] %vm199_vm0, %v261_v24  ;;  %295 = vst.msk [vmem:[#allocation2 + $0x69] sm:$0xff] %vm199_vm0, %v262_v25  ;;  %v3218_v29 = vld [vmem:[#allocation2 + $0x1a] sm:$0xff]  ;;  %v3230_v34 = vld [vmem:[#allocation2 + $0x22] sm:$0xff] }
  0x2a   : > { %356 = vst.msk [vmem:[#allocation3] sm:$0xff] %vm199_vm0, %v323_v26  ;;  %v3220_v30 = vld [vmem:[#allocation2 + $0x30] sm:$0xff]  ;;  %357 = vst.msk [vmem:[#allocation3 + $0x18] sm:$0xff] %vm199_vm0, %v324_v27  ;;  %1098 = vrot.lane.b32.xlu0 %v3218_v29, %s3055_s30  ;;  %v2508_v32 = vld [vmem:[#allocation2 + $0x20] sm:$0xff] }
  0x2b   : > { %v3225_v31 = vld [vmem:[#allocation2 + $0x31] sm:$0xff]  ;;  %360 = vst.msk [vmem:[#allocation3 + $0x60] sm:$0xff] %vm199_vm0, %v3220_v30  ;;  %v3234_v36 = vld [vmem:[#allocation2 + $0x39] sm:$0xff]  ;;  %359 = vst.msk [vmem:[#allocation3 + $0x48] sm:$0xff] %vm199_vm0, %v2508_v32 }
  0x2c   : > { %v2507_v33 = vld [vmem:[#allocation2 + $0x18] sm:$0xff]  ;;  %1004 = vst.msk [vmem:[#allocation3 + $0x38] sm:$0xff] %vm199_vm0, %v3225_v31  ;;  %1005 = vst.msk [vmem:[#allocation3 + $0x50] sm:$0xff] %vm199_vm0, %v3234_v36  ;;  %v3252_v39 = vld [vmem:[#allocation2 + $0x140] sm:$0xff] }
  0x2d   : > { %v3232_v35 = vld [vmem:[#allocation2 + $0x38] sm:$0xff]  ;;  %358 = vst.msk [vmem:[#allocation3 + $0x30] sm:$0xff] %vm199_vm0, %v2507_v33  ;;  %v3260_v41 = vld [vmem:[#allocation2 + $0x21] sm:$0xff]  ;;  %383 = vst.msk [vmem:[#allocation3 + $0x288] sm:$0xff] %vm199_vm0, %v3252_v39 }
  0x2e   : > { %361 = vst.msk [vmem:[#allocation3 + $0x78] sm:$0xff] %vm199_vm0, %v3232_v35  ;;  %1100 = vrot.lane.b32.xlu0 %v3230_v34, %s3055_s30  ;;  %v3246_v37 = vld [vmem:[#allocation2 + $0x159] sm:$0xff]  ;;  %v3248_v38 = vld [vmem:[#allocation2 + $0x151] sm:$0xff]  ;;  %1295 = vrot.lane.b32.xlu1 %v3232_v35, %s3056_s4  ;;  %1003 = vst.msk [vmem:[#allocation3 + $0x20] sm:$0xff] %vm199_vm0, %v3260_v41 }
  0x2f   : > { %v3254_v40 = vld [vmem:[#allocation2 + $0x138] sm:$0xff]  ;;  %1029 = vst.msk [vmem:[#allocation3 + $0x290] sm:$0xff] %vm199_vm0, %v3246_v37  ;;  %1028 = vst.msk [vmem:[#allocation3 + $0x278] sm:$0xff] %vm199_vm0, %v3248_v38  ;;  %v3276_v44 = vld [vmem:[#allocation2 + $0x49] sm:$0xff] }
  0x30   : > { %v3262_v42 = vld [vmem:[#allocation2 + $0x19] sm:$0xff]  ;;  %382 = vst.msk [vmem:[#allocation3 + $0x270] sm:$0xff] %vm199_vm0, %v3254_v40  ;;  %v3268_v43 = vld [vmem:[#allocation2 + $0x51] sm:$0xff]  ;;  %v3282_v45 = vld [vmem:[#allocation2 + $0x141] sm:$0xff] }
  0x31   : > { %1002 = vst.msk [vmem:[#allocation3 + $0x8] sm:$0xff] %vm199_vm0, %v3262_v42  ;;  %1007 = vst.msk [vmem:[#allocation3 + $0x80] sm:$0xff] %vm199_vm0, %v3268_v43  ;;  %v3284_v46 = vld [vmem:[#allocation2 + $0x139] sm:$0xff]  ;;  %v3288_v47 = vld [vmem:[#allocation2 + $0x171] sm:$0xff] }
  0x32   : > { %1293 = vrot.lane.b32.xlu0 %v3220_v30, %s3056_s4  ;;  %1487 = vrot.lane.b32.xlu1 %v3234_v36, %s3057_s7  ;;  %1006 = vst.msk [vmem:[#allocation3 + $0x68] sm:$0xff] %vm199_vm0, %v3276_v44  ;;  %v3290_v48 = vld [vmem:[#allocation2 + $0x169] sm:$0xff]  ;;  %1027 = vst.msk [vmem:[#allocation3 + $0x260] sm:$0xff] %vm199_vm0, %v3282_v45  ;;  %v3304_v50 = vld [vmem:[#allocation2 + $0x61] sm:$0xff] }
  0x33   : > { %1026 = vst.msk [vmem:[#allocation3 + $0x248] sm:$0xff] %vm199_vm0, %v3284_v46  ;;  %1031 = vst.msk [vmem:[#allocation3 + $0x2c0] sm:$0xff] %vm199_vm0, %v3288_v47  ;;  %v3302_v49 = vld [vmem:[#allocation2 + $0x69] sm:$0xff]  ;;  %v3316_v53 = vld [vmem:[#allocation2 + $0x13a] sm:$0xff] }
  0x34   : > { %1030 = vst.msk [vmem:[#allocation3 + $0x2a8] sm:$0xff] %vm199_vm0, %v3290_v48  ;;  %v3307_v51 = vld [vmem:[#allocation2 + $0x142] sm:$0xff]  ;;  %1009 = vst.msk [vmem:[#allocation3 + $0xb0] sm:$0xff] %vm199_vm0, %v3302_v49  ;;  %v3339_v62 = vld [vmem:[#allocation2 + $0x158] sm:$0xff] }
  0x35   : > { %1008 = vst.msk [vmem:[#allocation3 + $0x98] sm:$0xff] %vm199_vm0, %v3304_v50  ;;  %v413_v57 = vld [vmem:[#allocation2 + $0x129] sm:$0xff]  ;;  %318 = vst.msk [vmem:[#allocation2 + $0x181] sm:$0xff] %vm199_vm0, %v285_v55  ;;  %v412_v61 = vld [vmem:[#allocation2 + $0x121] sm:$0xff] }
  0x36   : > { %1485 = vrot.lane.b32.xlu0 %v3225_v31, %s3057_s7  ;;  %843 = vrot.lane.b32.xlu1 %v2508_v32, %s3057_s7  ;;  %319 = vst.msk [vmem:[#allocation2 + $0x189] sm:$0xff] %vm199_vm0, %v286_v56  ;;  %v3348_v1 = vld [vmem:[#allocation2 + $0x150] sm:$0xff]  ;;  %v348_v5 = vld [vmem:[#allocation2 + $0x128] sm:$0xff]  ;;  %v347_v6 = vld [vmem:[#allocation2 + $0x120] sm:$0xff] }
  0x37   : > { %v606_v7 = vld [vmem:[#allocation2 + $0x12a] sm:$0xff]  ;;  %381 = vst.msk [vmem:[#allocation3 + $0x258] sm:$0xff] %vm199_vm0, %v348_v5  ;;  %380 = vst.msk [vmem:[#allocation3 + $0x240] sm:$0xff] %vm199_vm0, %v347_v6  ;;  %v605_v11 = vld [vmem:[#allocation2 + $0x122] sm:$0xff] }
  0x38   : > { %296 = vst.msk [vmem:[#allocation2 + $0x79] sm:$0xff] %vm199_vm0, %v263_v9  ;;  %297 = vst.msk [vmem:[#allocation2 + $0x81] sm:$0xff] %vm199_vm0, %v264_v10  ;;  %v3394_v15 = vld [vmem:[#allocation2 + $0x3a] sm:$0xff]  ;;  %v3400_v16 = vld [vmem:[#allocation2 + $0x32] sm:$0xff] }
  0x39   : > { %v3406_v17 = vld [vmem:[#allocation2 + $0x50] sm:$0xff]  ;;  %v3412_v18 = vld [vmem:[#allocation2 + $0x48] sm:$0xff]  ;;  %298 = vst.msk [vmem:[#allocation2 + $0x91] sm:$0xff] %vm199_vm0, %v265_v21  ;;  %299 = vst.msk [vmem:[#allocation2 + $0x99] sm:$0xff] %vm199_vm0, %v266_v22 }
  0x3a   : > { %841 = vrot.lane.b32.xlu0 %v2507_v33, %s3057_s7  ;;  %1148 = vrot.lane.b32.xlu1 %v3307_v51, %s3055_s30  ;;  %v3438_v23 = vld [vmem:[#allocation2 + $0x15a] sm:$0xff]  ;;  %v3444_v24 = vld [vmem:[#allocation2 + $0x152] sm:$0xff]  ;;  %v3456_v26 = vld [vmem:[#allocation2 + $0x168] sm:$0xff]  ;;  %303 = vst.msk [vmem:[#allocation2 + $0xc9] sm:$0xff] %vm199_vm0, %v270_v54 }
  0x3b   : > { %v3450_v25 = vld [vmem:[#allocation2 + $0x170] sm:$0xff]  ;;  %v267_v32 = vld [vmem:[%s3174_s27 + $0x60] sm:$0xff]  ;;  %v268_v33 = vld [vmem:[%s3174_s27 + $0x68] sm:$0xff]  ;;  %304 = vst.msk [vmem:[#allocation2 + $0xd9] sm:$0xff] %vm199_vm0, %v271_v12 }
  0x3c   : > { %v3353_v3 = vld [vmem:[#allocation2 + $0x181] sm:$0xff]  ;;  %300 = vst.msk [vmem:[#allocation2 + $0xa9] sm:$0xff] %vm199_vm0, %v267_v32  ;;  %301 = vst.msk [vmem:[#allocation2 + $0xb1] sm:$0xff] %vm199_vm0, %v268_v33  ;;  %v3546_v55 = vld [vmem:[#allocation2 + $0x172] sm:$0xff] }
  0x3d   : > { %v3350_v2 = vld [vmem:[#allocation2 + $0x189] sm:$0xff]  ;;  %1032 = vst.msk [vmem:[#allocation3 + $0x2d8] sm:$0xff] %vm199_vm0, %v3353_v3  ;;  %v3569_v63 = vld [vmem:[#allocation2 + $0x180] sm:$0xff] }
  0x3e   : > { %1146 = vrot.lane.b32.xlu0 %v3316_v53, %s3055_s30  ;;  %502 = vrot.lane.b32.xlu1 %v413_v57, %s3055_s30  ;;  %1033 = vst.msk [vmem:[#allocation3 + $0x2f0] sm:$0xff] %vm199_vm0, %v3350_v2  ;;  %v3553_v57 = vld [vmem:[#allocation2 + $0x16a] sm:$0xff] }
  0x3f   : > { %v3382_v13 = vld [vmem:[#allocation2 + $0x79] sm:$0xff]  ;;  %v3384_v14 = vld [vmem:[#allocation2 + $0x81] sm:$0xff]  ;;  %v330_v6 = vld [vmem:[#allocation2 + $0x50] sm:$0xff] }
  0x40   : > { %1010 = vst.msk [vmem:[#allocation3 + $0xc8] sm:$0xff] %vm199_vm0, %v3382_v13  ;;  %1011 = vst.msk [vmem:[#allocation3 + $0xe0] sm:$0xff] %vm199_vm0, %v3384_v14  ;;  %v3422_v19 = vld [vmem:[#allocation2 + $0x82] sm:$0xff]  ;;  %v3424_v20 = vld [vmem:[#allocation2 + $0x7a] sm:$0xff] }
  0x41   : > { %1651 = vst.msk [vmem:[#allocation3 + $0xa0] sm:$0xff] %vm199_vm0, %v3424_v20  ;;  %1652 = vst.msk [vmem:[#allocation3 + $0xb8] sm:$0xff] %vm199_vm0, %v3422_v19  ;;  %v3458_v27 = vld [vmem:[#allocation2 + $0x99] sm:$0xff]  ;;  %v3460_v28 = vld [vmem:[#allocation2 + $0x91] sm:$0xff] }
  0x42   : > { %500 = vrot.lane.b32.xlu0 %v412_v61, %s3055_s30  ;;  %1343 = vrot.lane.b32.xlu1 %v3339_v62, %s3056_s4  ;;  %1013 = vst.msk [vmem:[#allocation3 + $0x110] sm:$0xff] %vm199_vm0, %v3458_v27  ;;  %1012 = vst.msk [vmem:[#allocation3 + $0xf8] sm:$0xff] %vm199_vm0, %v3460_v28  ;;  %v3561_v61 = vld [vmem:[#allocation2 + $0x188] sm:$0xff]  ;;  %v3640_v54 = vld [vmem:[#allocation2 + $0xd9] sm:$0xff] }
  0x43   : > { %v3530_v52 = vld [vmem:[#allocation2 + $0xaa] sm:$0xff]  ;;  %363 = vst.msk [vmem:[#allocation3 + $0xa8] sm:$0xff] %vm199_vm0, %v330_v6  ;;  %1018 = vst.msk [vmem:[#allocation3 + $0x188] sm:$0xff] %vm199_vm0, %v3640_v54 }
  0x44   : > { %1655 = vst.msk [vmem:[#allocation3 + $0x100] sm:$0xff] %vm199_vm0, %v3530_v52  ;;  %v3594_v10 = vld [vmem:[#allocation2 + $0xca] sm:$0xff] }
  0x45   : > { %1658 = vst.msk [vmem:[#allocation3 + $0x148] sm:$0xff] %vm199_vm0, %v3594_v10 }
  0x46   : > { %1341 = vrot.lane.b32.xlu0 %v3348_v1, %s3056_s4  ;;  %695 = vrot.lane.b32.xlu1 %v606_v7, %s3056_s4  ;;  %v329_v7 = vld [vmem:[#allocation2 + $0x48] sm:$0xff] }
  0x47   : > { %362 = vst.msk [vmem:[#allocation3 + $0x90] sm:$0xff] %vm199_vm0, %v329_v7  ;;  %v2602_v7 = vld [vmem:[#allocation2 + $0x18a] sm:$0xff] }
  0x4a   : > { %693 = vrot.lane.b32.xlu0 %v605_v11, %s3056_s4  ;;  %1535 = vrot.lane.b32.xlu1 %v3246_v37, %s3057_s7 }
  0x4e   : > { %1533 = vrot.lane.b32.xlu0 %v3248_v38, %s3057_s7  ;;  %891 = vrot.lane.b32.xlu1 %v3252_v39, %s3057_s7  ;;  %v3502_v39 = vld [vmem:[#allocation2 + $0x68] sm:$0xff] }
  0x52   : > { %889 = vrot.lane.b32.xlu0 %v3254_v40, %s3057_s7  ;;  %1104 = vrot.lane.b32.xlu1 %v3394_v15, %s3055_s30  ;;  %v3508_v40 = vld [vmem:[#allocation2 + $0x60] sm:$0xff] }
  0x56   : > { %1102 = vrot.lane.b32.xlu0 %v3400_v16, %s3055_s30  ;;  %458 = vrot.lane.b32.xlu1 %v3260_v41, %s3055_s30  ;;  %v3510_v41 = vld [vmem:[#allocation2 + $0xb1] sm:$0xff] }
  0x57   : > { %1015 = vst.msk [vmem:[#allocation3 + $0x140] sm:$0xff] %vm199_vm0, %v3510_v41 }
  0x5a   : > { %456 = vrot.lane.b32.xlu0 %v3262_v42, %s3055_s30  ;;  %1299 = vrot.lane.b32.xlu1 %v3406_v17, %s3056_s4  ;;  %v3512_v42 = vld [vmem:[#allocation2 + $0xa9] sm:$0xff] }
  0x5b   : > { %1014 = vst.msk [vmem:[#allocation3 + $0x128] sm:$0xff] %vm199_vm0, %v3512_v42 }
  0x5e   : > { %1297 = vrot.lane.b32.xlu0 %v3412_v18, %s3056_s4  ;;  %651 = vrot.lane.b32.xlu1 %v3230_v34, %s3056_s4  ;;  %v3490_v34 = vld [vmem:[#allocation2 + $0x52] sm:$0xff] }
  0x62   : > { %649 = vrot.lane.b32.xlu0 %v3218_v29, %s3056_s4  ;;  %1491 = vrot.lane.b32.xlu1 %v3268_v43, %s3057_s7  ;;  %v3474_v29 = vld [vmem:[#allocation2 + $0x9a] sm:$0xff] }
  0x63   : > { %1654 = vst.msk [vmem:[#allocation3 + $0xe8] sm:$0xff] %vm199_vm0, %v3474_v29 }
  0x66   : > { %1489 = vrot.lane.b32.xlu0 %v3276_v44, %s3057_s7  ;;  %847 = vrot.lane.b32.xlu1 %v3232_v35, %s3057_s7  ;;  %v3496_v35 = vld [vmem:[#allocation2 + $0x4a] sm:$0xff] }
  0x6a   : > { %845 = vrot.lane.b32.xlu0 %v3220_v30, %s3057_s7  ;;  %1152 = vrot.lane.b32.xlu1 %v3438_v23, %s3055_s30  ;;  %v3476_v30 = vld [vmem:[#allocation2 + $0x92] sm:$0xff] }
  0x6b   : > { %1653 = vst.msk [vmem:[#allocation3 + $0xd0] sm:$0xff] %vm199_vm0, %v3476_v30 }
  0x6e   : > { %1150 = vrot.lane.b32.xlu0 %v3444_v24, %s3055_s30  ;;  %506 = vrot.lane.b32.xlu1 %v3282_v45, %s3055_s30 }
  0x72   : > { %504 = vrot.lane.b32.xlu0 %v3284_v46, %s3055_s30  ;;  %1347 = vrot.lane.b32.xlu1 %v3450_v25, %s3056_s4 }
  0x76   : > { %1345 = vrot.lane.b32.xlu0 %v3456_v26, %s3056_s4  ;;  %699 = vrot.lane.b32.xlu1 %v3307_v51, %s3056_s4  ;;  %v3528_v51 = vld [vmem:[#allocation2 + $0xb2] sm:$0xff] }
  0x77   : > { %1656 = vst.msk [vmem:[#allocation3 + $0x118] sm:$0xff] %vm199_vm0, %v3528_v51 }
  0x7a   : > { %697 = vrot.lane.b32.xlu0 %v3316_v53, %s3056_s4  ;;  %1539 = vrot.lane.b32.xlu1 %v3288_v47, %s3057_s7  ;;  %v269_v53 = vld [vmem:[%s3174_s27 + $0x70] sm:$0xff] }
  0x7b   : > { %302 = vst.msk [vmem:[#allocation2 + $0xc1] sm:$0xff] %vm199_vm0, %v269_v53 }
  0x7e   : > { %1537 = vrot.lane.b32.xlu0 %v3290_v48, %s3057_s7  ;;  %895 = vrot.lane.b32.xlu1 %v3339_v62, %s3057_s7 }
  0x81   : > { %v453_v45 = vpop.permute.xlu1 %452 }
  0x82   : > { %893 = vrot.lane.b32.xlu0 %v3348_v1, %s3057_s7  ;;  %1108 = vrot.lane.b32.xlu1 %v3490_v34, %s3055_s30  ;;  %v646_v46 = vpop.permute.xlu0 %645  ;;  %549 = vst.msk [vmem:[#allocation3] sm:$0xff] %vm548_vm2, %v453_v45  ;;  %v3572_v1 = vld [vmem:[#allocation2 + $0xc9] sm:$0xff]  ;;  %v3574_v4 = vld [vmem:[#allocation2 + $0xc1] sm:$0xff]  ;;  %v3635_v45 = vld [vmem:[#allocation2 + $0x78] sm:$0xff] }
  0x83   : > { %742 = vst.msk [vmem:[#allocation3] sm:$0xff] %vm741_vm3, %v646_v46  ;;  %v3596_v11 = vld [vmem:[#allocation2 + $0xc2] sm:$0xff] }
  0x84   : > { %1017 = vst.msk [vmem:[#allocation3 + $0x170] sm:$0xff] %vm199_vm0, %v3572_v1  ;;  %1016 = vst.msk [vmem:[#allocation3 + $0x158] sm:$0xff] %vm199_vm0, %v3574_v4 }
  0x85   : > { %1657 = vst.msk [vmem:[#allocation3 + $0x130] sm:$0xff] %vm199_vm0, %v3596_v11 }
  0x86   : > { %1106 = vrot.lane.b32.xlu0 %v3496_v35, %s3055_s30  ;;  %462 = vrot.lane.b32.xlu1 %v3234_v36, %s3055_s30  ;;  %v351_v36 = vld [vmem:[#allocation2 + $0x150] sm:$0xff] }
  0x87   : > { %384 = vst.msk [vmem:[#allocation3 + $0x2a0] sm:$0xff] %vm199_vm0, %v351_v36 }
  0x8a   : > { %460 = vrot.lane.b32.xlu0 %v3225_v31, %s3055_s30  ;;  %1303 = vrot.lane.b32.xlu1 %v3502_v39, %s3056_s4  ;;  %v352_v31 = vld [vmem:[#allocation2 + $0x158] sm:$0xff] }
  0x8b   : > { %385 = vst.msk [vmem:[#allocation3 + $0x2b8] sm:$0xff] %vm199_vm0, %v352_v31  ;;  %v3627_v31 = vld [vmem:[#allocation2 + $0x80] sm:$0xff] }
  0x8e   : > { %1301 = vrot.lane.b32.xlu0 %v3508_v40, %s3056_s4  ;;  %655 = vrot.lane.b32.xlu1 %v3394_v15, %s3056_s4  ;;  %v272_v15 = vld [vmem:[%s3174_s27 + $0x88] sm:$0xff] }
  0x8f   : > { %305 = vst.msk [vmem:[#allocation2 + $0xe1] sm:$0xff] %vm199_vm0, %v272_v15 }
  0x92   : > { %653 = vrot.lane.b32.xlu0 %v3400_v16, %s3056_s4  ;;  %1495 = vrot.lane.b32.xlu1 %v3302_v49, %s3057_s7 }
  0x93   : > { %v455_v56 = vpop.permute.xlu1 %454 }
  0x94   : > { %550 = vst.msk [vmem:[#allocation3 + $0x18] sm:$0xff] %vm548_vm2, %v455_v56 }
  0x96   : > { %1493 = vrot.lane.b32.xlu0 %v3304_v50, %s3057_s7  ;;  %851 = vrot.lane.b32.xlu1 %v3406_v17, %s3057_s7  ;;  %v3611_v17 = vld [vmem:[#allocation2 + $0x6a] sm:$0xff]  ;;  %v3638_v53 = vld [vmem:[#allocation2 + $0xe1] sm:$0xff] }
  0x97   : > { %v648_v59 = vpop.permute.xlu1 %647  ;;  %1019 = vst.msk [vmem:[#allocation3 + $0x1a0] sm:$0xff] %vm199_vm0, %v3638_v53 }
  0x98   : > { %743 = vst.msk [vmem:[#allocation3 + $0x18] sm:$0xff] %vm741_vm3, %v648_v59  ;;  %v353_v59 = vld [vmem:[#allocation2 + $0x168] sm:$0xff] }
  0x99   : > { %386 = vst.msk [vmem:[#allocation3 + $0x2d0] sm:$0xff] %vm199_vm0, %v353_v59 }
  0x9a   : > { %849 = vrot.lane.b32.xlu0 %v3412_v18, %s3057_s7  ;;  %1156 = vrot.lane.b32.xlu1 %v3546_v55, %s3055_s30 }
  0x9c   : > { %v1099_v58 = vpop.permute.xlu0 %1098 }
  0x9d   : > { %1194 = vst.msk [vmem:[#allocation3 + $0x8] sm:$0xff] %vm548_vm2, %v1099_v58  ;;  %v354_v58 = vld [vmem:[#allocation2 + $0x170] sm:$0xff] }
  0x9e   : > { %1154 = vrot.lane.b32.xlu0 %v3553_v57, %s3055_s30  ;;  %510 = vrot.lane.b32.xlu1 %v3246_v37, %s3055_s30  ;;  %387 = vst.msk [vmem:[#allocation3 + $0x2e8] sm:$0xff] %vm199_vm0, %v354_v58  ;;  %v2669_v58 = vld [vmem:[#allocation2 + $0x4a] sm:$0xff] }
  0x9f   : > { %1647 = vst.msk [vmem:[#allocation3 + $0x40] sm:$0xff] %vm199_vm0, %v2669_v58 }
  0xa0   : > { %v1101_v60 = vpop.permute.xlu0 %1100  ;;  %v1296_v62 = vpop.permute.xlu1 %1295 }
  0xa1   : > { %1195 = vst.msk [vmem:[#allocation3 + $0x20] sm:$0xff] %vm548_vm2, %v1101_v60 }
  0xa2   : > { %508 = vrot.lane.b32.xlu0 %v3248_v38, %s3055_s30  ;;  %1390 = vst.msk [vmem:[#allocation3 + $0x20] sm:$0xff] %vm741_vm3, %v1296_v62  ;;  %1351 = vrot.lane.b32.xlu1 %v3561_v61, %s3056_s4  ;;  %v3660_v62 = vld [vmem:[#allocation2 + $0xe2] sm:$0xff] }
  0xa3   : > { %1660 = vst.msk [vmem:[#allocation3 + $0x178] sm:$0xff] %vm199_vm0, %v3660_v62 }
  0xa4   : > { %v1294_v0 = vpop.permute.xlu0 %1293  ;;  %v1488_v37 = vpop.permute.xlu1 %1487 }
  0xa5   : > { %1389 = vst.msk [vmem:[#allocation3 + $0x8] sm:$0xff] %vm741_vm3, %v1294_v0  ;;  %v3662_v0 = vld [vmem:[#allocation2 + $0xda] sm:$0xff] }
  0xa6   : > { %1349 = vrot.lane.b32.xlu0 %v3569_v63, %s3056_s4  ;;  %1582 = vst.msk [vmem:[#allocation3 + $0x20] sm:$0xff] %vm937_vm4, %v1488_v37  ;;  %703 = vrot.lane.b32.xlu1 %v3438_v23, %s3056_s4  ;;  %v3619_v23 = vld [vmem:[#allocation2 + $0x62] sm:$0xff]  ;;  %v273_v37 = vld [vmem:[%s3174_s27 + $0x90] sm:$0xff] }
  0xa7   : > { %1659 = vst.msk [vmem:[#allocation3 + $0x160] sm:$0xff] %vm199_vm0, %v3662_v0  ;;  %306 = vst.msk [vmem:[#allocation2 + $0xf1] sm:$0xff] %vm199_vm0, %v273_v37  ;;  %v2964_v37 = vld [vmem:[%s4384_s1 + $0x80] sm:$0xff]  }
  0xa8   : > { %v1486_v38 = vpop.permute.xlu0 %1485  ;;  %v844_v5 = vpop.permute.xlu1 %843  ;;  %2868 = vmatprep.subr.bf16.mxu1 %v2964_v37 }
  0xa9   : > { %1581 = vst.msk [vmem:[#allocation3 + $0x8] sm:$0xff] %vm937_vm4, %v1486_v38  ;;  %939 = vst.msk [vmem:[#allocation3 + $0x18] sm:$0xff] %vm937_vm4, %v844_v5  ;;  %v274_v38 = vld [vmem:[%s3174_s27 + $0x98] sm:$0xff] }
  0xaa   : > { %701 = vrot.lane.b32.xlu0 %v3444_v24, %s3056_s4  ;;  %1543 = vrot.lane.b32.xlu1 %v3350_v2, %s3057_s7  ;;  %307 = vst.msk [vmem:[#allocation2 + $0xf9] sm:$0xff] %vm199_vm0, %v274_v38  ;;  %v275_v38 = vld [vmem:[%s3174_s27 + $0xa0] sm:$0xff] }
  0xab   : > { %308 = vst.msk [vmem:[#allocation2 + $0x109] sm:$0xff] %vm199_vm0, %v275_v38 }
  0xac   : > { %v842_v8 = vpop.permute.xlu0 %841  ;;  %v1149_v9 = vpop.permute.xlu1 %1148 }
  0xad   : > { %938 = vst.msk [vmem:[#allocation3] sm:$0xff] %vm937_vm4, %v842_v8  ;;  %v1681_v2 = vld [vmem:[#allocation3 + $0x20] sm:$0xff] }
  0xae   : > { %1541 = vrot.lane.b32.xlu0 %v3353_v3, %s3057_s7  ;;  %1219 = vst.msk [vmem:[#allocation3 + $0x260] sm:$0xff] %vm548_vm2, %v1149_v9  ;;  %899 = vrot.lane.b32.xlu1 %v3450_v25, %s3057_s7 }
  0xb0   : > { %v1147_v16 = vpop.permute.xlu0 %1146  ;;  %v1678_v3 = vld [vmem:[#allocation3 + $0x8] sm:$0xff]  ;;  %v503_v21 = vpop.permute.xlu1 %502  ;;  %v1680_v22 = vld [vmem:[#allocation3 + $0x18] sm:$0xff] }
  0xb1   : > { %1218 = vst.msk [vmem:[#allocation3 + $0x248] sm:$0xff] %vm548_vm2, %v1147_v16  ;;  %v1774_v18 = vpack.c.bf16 %v1681_v2, %v1678_v3  ;;  %574 = vst.msk [vmem:[#allocation3 + $0x258] sm:$0xff] %vm548_vm2, %v503_v21 }
  0xb2   : > { %897 = vrot.lane.b32.xlu0 %v3456_v26, %s3057_s7  ;;  %1112 = vrot.lane.b32.xlu1 %v3611_v17, %s3055_s30 }
  0xb3   : > { %2052 = vmatprep.mubr.bf16.mxu0 %v1774_v18  ;;  %v2634_v18 = vld [vmem:[#allocation2 + $0x1a0] sm:$0xff] }
  0xb4   : > { %v501_v24 = vpop.permute.xlu0 %500  ;;  %v1677_v25 = vld [vmem:[#allocation3] sm:$0xff]  ;;  %v1344_v33 = vpop.permute.xlu1 %1343 }
  0xb5   : > { %573 = vst.msk [vmem:[#allocation3 + $0x240] sm:$0xff] %vm548_vm2, %v501_v24  ;;  %v1773_v32 = vpack.c.bf16 %v1680_v22, %v1677_v25  ;;  %v2633_v22 = vld [vmem:[#allocation2 + $0x198] sm:$0xff] }
  0xb6   : > { %1110 = vrot.lane.b32.xlu0 %v3619_v23, %s3055_s30  ;;  %1414 = vst.msk [vmem:[#allocation3 + $0x260] sm:$0xff] %vm741_vm3, %v1344_v33  ;;  %466 = vrot.lane.b32.xlu1 %v3268_v43, %s3055_s30  ;;  %v2666_v33 = vld [vmem:[#allocation2 + $0x1a1] sm:$0xff] }
  0xb7   : > { %2053 = vmatmul.mubr.bf16.vlgmr.msra.gmra.mrb[0].mxu0 %v1773_v32  ;;  %v3693_v32 = vld [vmem:[#allocation2 + $0xf9] sm:$0xff] }
  0xb8   : > { %v1342_v26 = vpop.permute.xlu0 %1341  ;;  %v696_v36 = vpop.permute.xlu1 %695  ;;  %1021 = vst.msk [vmem:[#allocation3 + $0x1d0] sm:$0xff] %vm199_vm0, %v3693_v32 }
  0xb9   : > { %1413 = vst.msk [vmem:[#allocation3 + $0x248] sm:$0xff] %vm741_vm3, %v1342_v26  ;;  %767 = vst.msk [vmem:[#allocation3 + $0x258] sm:$0xff] %vm741_vm3, %v696_v36  ;;  %v2665_v36 = vld [vmem:[#allocation2 + $0x199] sm:$0xff] }
  0xba   : > { %464 = vrot.lane.b32.xlu0 %v3276_v44, %s3055_s30  ;;  %1307 = vrot.lane.b32.xlu1 %v3627_v31, %s3056_s4 }
  0xbc   : > { %v694_v46 = vpop.permute.xlu0 %693  ;;  %v1536_v43 = vpop.permute.xlu1 %1535 }
  0xbd   : > { %766 = vst.msk [vmem:[#allocation3 + $0x240] sm:$0xff] %vm741_vm3, %v694_v46  ;;  %v332_v46 = vld [vmem:[#allocation2 + $0x68] sm:$0xff] }
  0xbe   : > { %1305 = vrot.lane.b32.xlu0 %v3635_v45, %s3056_s4  ;;  %1606 = vst.msk [vmem:[#allocation3 + $0x260] sm:$0xff] %vm937_vm4, %v1536_v43  ;;  %659 = vrot.lane.b32.xlu1 %v3490_v34, %s3056_s4  ;;  %v331_v43 = vld [vmem:[#allocation2 + $0x60] sm:$0xff] }
  0xbf   : > { %365 = vst.msk [vmem:[#allocation3 + $0xd8] sm:$0xff] %vm199_vm0, %v332_v46  ;;  %364 = vst.msk [vmem:[#allocation3 + $0xc0] sm:$0xff] %vm199_vm0, %v331_v43  ;;  %v334_v46 = vld [vmem:[#allocation2 + $0x80] sm:$0xff]  ;;  %v333_v43 = vld [vmem:[#allocation2 + $0x78] sm:$0xff] }
  0xc0   : > { %v1534_v44 = vpop.permute.xlu0 %1533  ;;  %v892_v56 = vpop.permute.xlu1 %891  ;;  %367 = vst.msk [vmem:[#allocation3 + $0x108] sm:$0xff] %vm199_vm0, %v334_v46  ;;  %366 = vst.msk [vmem:[#allocation3 + $0xf0] sm:$0xff] %vm199_vm0, %v333_v43  ;;  %v2694_v46 = vld [vmem:[#allocation2 + $0x172] sm:$0xff] }
  0xc1   : > { %1605 = vst.msk [vmem:[#allocation3 + $0x248] sm:$0xff] %vm937_vm4, %v1534_v44  ;;  %963 = vst.msk [vmem:[#allocation3 + $0x258] sm:$0xff] %vm937_vm4, %v892_v56  ;;  %v2667_v44 = vld [vmem:[#allocation2 + $0x32] sm:$0xff] }
  0xc2   : > { %657 = vrot.lane.b32.xlu0 %v3496_v35, %s3056_s4  ;;  %1499 = vrot.lane.b32.xlu1 %v3384_v14, %s3057_s7  ;;  %1645 = vst.msk [vmem:[#allocation3 + $0x10] sm:$0xff] %vm199_vm0, %v2667_v44  ;;  %1672 = vst.msk [vmem:[#allocation3 + $0x298] sm:$0xff] %vm199_vm0, %v2694_v46 }
  0xc4   : > { %v890_v60 = vpop.permute.xlu0 %889  ;;  %v1105_v34 = vpop.permute.xlu1 %1104 }
  0xc5   : > { %962 = vst.msk [vmem:[#allocation3 + $0x240] sm:$0xff] %vm937_vm4, %v890_v60  ;;  %v1753_v35 = vld [vmem:[#allocation3 + $0x260] sm:$0xff] }
  0xc6   : > { %1497 = vrot.lane.b32.xlu0 %v3382_v13, %s3057_s7  ;;  %1197 = vst.msk [vmem:[#allocation3 + $0x50] sm:$0xff] %vm548_vm2, %v1105_v34  ;;  %855 = vrot.lane.b32.xlu1 %v3502_v39, %s3057_s7  ;;  %v2601_v39 = vld [vmem:[#allocation2 + $0x182] sm:$0xff]  ;;  %v3714_v34 = vld [vmem:[#allocation2 + $0xfa] sm:$0xff] }
  0xc7   : > { %1662 = vst.msk [vmem:[#allocation3 + $0x1a8] sm:$0xff] %vm199_vm0, %v3714_v34 }
  0xc8   : > { %v1103_v5 = vpop.permute.xlu0 %1102  ;;  %v1750_v6 = vld [vmem:[#allocation3 + $0x248] sm:$0xff]  ;;  %v459_v9 = vpop.permute.xlu1 %458  ;;  %v1752_v2 = vld [vmem:[#allocation3 + $0x258] sm:$0xff] }
  0xc9   : > { %1196 = vst.msk [vmem:[#allocation3 + $0x38] sm:$0xff] %vm548_vm2, %v1103_v5  ;;  %v1810_v8 = vpack.c.bf16 %v1753_v35, %v1750_v6  ;;  %552 = vst.msk [vmem:[#allocation3 + $0x48] sm:$0xff] %vm548_vm2, %v459_v9  ;;  %v3716_v35 = vld [vmem:[#allocation2 + $0xf2] sm:$0xff]  ;;  %v276_v5 = vld [vmem:[%s3174_s27 + $0xa8] sm:$0xff] }
  0xca   : > { %853 = vrot.lane.b32.xlu0 %v3508_v40, %s3057_s7  ;;  %1160 = vrot.lane.b32.xlu1 %v2602_v7, %s3055_s30  ;;  %1661 = vst.msk [vmem:[#allocation3 + $0x190] sm:$0xff] %vm199_vm0, %v3716_v35  ;;  %309 = vst.msk [vmem:[#allocation2 + $0x111] sm:$0xff] %vm199_vm0, %v276_v5 }
  0xcb   : > { %2148 = vmatprep.mubr.bf16.mxu1 %v1810_v8 }
  0xcc   : > { %v457_v12 = vpop.permute.xlu0 %456  ;;  %v1749_v15 = vld [vmem:[#allocation3 + $0x240] sm:$0xff]  ;;  %v1300_v3 = vpop.permute.xlu1 %1299 }
  0xcd   : > { %551 = vst.msk [vmem:[#allocation3 + $0x30] sm:$0xff] %vm548_vm2, %v457_v12  ;;  %v1809_v16 = vpack.c.bf16 %v1752_v2, %v1749_v15  ;;  %v2965_v2 = vld [vmem:[%s4384_s1 + $0x88] sm:$0xff]  }
  0xce   : > { %1158 = vrot.lane.b32.xlu0 %v2601_v39, %s3055_s30  ;;  %1392 = vst.msk [vmem:[#allocation3 + $0x50] sm:$0xff] %vm741_vm3, %v1300_v3  ;;  %514 = vrot.lane.b32.xlu1 %v3288_v47, %s3055_s30  ;;  %v3695_v47 = vld [vmem:[#allocation2 + $0xf1] sm:$0xff]  ;;  %v2671_v39 = vld [vmem:[#allocation2 + $0x62] sm:$0xff] }
  0xcf   : > { %2149 = vmatmul.mubr.bf16.vlgmr.msra.gmra.mrb[0].mxu1 %v1809_v16  ;;  %1020 = vst.msk [vmem:[#allocation3 + $0x1b8] sm:$0xff] %vm199_vm0, %v3695_v47  ;;  %v2672_v12 = vld [vmem:[#allocation2 + $0x6a] sm:$0xff]  ;;  %1649 = vst.msk [vmem:[#allocation3 + $0x70] sm:$0xff] %vm199_vm0, %v2671_v39 }
  0xd0   : > { %v1298_v40 = vpop.permute.xlu0 %1297  ;;  %v652_v21 = vpop.permute.xlu1 %651  ;;  %2869 = vmatpush3.bf16.msra.mxu1 %v2964_v37  ;;  %1650 = vst.msk [vmem:[#allocation3 + $0x88] sm:$0xff] %vm199_vm0, %v2672_v12  ;;  %v3836_v12 = vld [vmem:[#allocation2 + $0x129] sm:$0xff] }
  0xd1   : > { %1391 = vst.msk [vmem:[#allocation3 + $0x38] sm:$0xff] %vm741_vm3, %v1298_v40  ;;  %745 = vst.msk [vmem:[#allocation3 + $0x48] sm:$0xff] %vm741_vm3, %v652_v21  ;;  %2870 = vmatprep.subr.bf16.mxu1 %v2965_v2  ;;  %v3751_v40 = vld [vmem:[#allocation2 + $0x110] sm:$0xff] }
  0xd2   : > { %512 = vrot.lane.b32.xlu0 %v3290_v48, %s3055_s30  ;;  %1355 = vrot.lane.b32.xlu1 %v2634_v18, %s3056_s4  ;;  %v3753_v18 = vld [vmem:[#allocation2 + $0x108] sm:$0xff]  ;;  %379 = vst.msk [vmem:[#allocation3 + $0x228] sm:$0xff] %vm199_vm0, %v3751_v40  ;;  %1025 = vst.msk [vmem:[#allocation3 + $0x230] sm:$0xff] %vm199_vm0, %v3836_v12 }
  0xd3   : > { %378 = vst.msk [vmem:[#allocation3 + $0x210] sm:$0xff] %vm199_vm0, %v3753_v18 }
  0xd4   : > { %v650_v24 = vpop.permute.xlu0 %649  ;;  %v1492_v25 = vpop.permute.xlu1 %1491  ;;  %2871 = vmatpush3.bf16.msra.mxu1 %v2965_v2  ;;  %v3829_v2 = vld [vmem:[#allocation2 + $0x12a] sm:$0xff] }
  0xd5   : > { %744 = vst.msk [vmem:[#allocation3 + $0x30] sm:$0xff] %vm741_vm3, %v650_v24 }
  0xd6   : > { %1353 = vrot.lane.b32.xlu0 %v2633_v22, %s3056_s4  ;;  %1584 = vst.msk [vmem:[#allocation3 + $0x50] sm:$0xff] %vm937_vm4, %v1492_v25  ;;  %707 = vrot.lane.b32.xlu1 %v3546_v55, %s3056_s4  ;;  %v2668_v55 = vld [vmem:[#allocation2 + $0x3a] sm:$0xff] }
  0xd7   : > { %1646 = vst.msk [vmem:[#allocation3 + $0x28] sm:$0xff] %vm199_vm0, %v2668_v55  ;;  %v3761_v22 = vld [vmem:[#allocation2 + $0x98] sm:$0xff]  ;;  %v3796_v55 = vld [vmem:[#allocation2 + $0x10a] sm:$0xff]  ;;  %1666 = vst.msk [vmem:[#allocation3 + $0x208] sm:$0xff] %vm199_vm0, %v3829_v2 }
  0xd8   : > { %v1490_v48 = vpop.permute.xlu0 %1489  ;;  %v848_v26 = vpop.permute.xlu1 %847  ;;  %1663 = vst.msk [vmem:[#allocation3 + $0x1c0] sm:$0xff] %vm199_vm0, %v3796_v55 }
  0xd9   : > { %1583 = vst.msk [vmem:[#allocation3 + $0x38] sm:$0xff] %vm937_vm4, %v1490_v48  ;;  %941 = vst.msk [vmem:[#allocation3 + $0x48] sm:$0xff] %vm937_vm4, %v848_v26  ;;  %v3774_v26 = vld [vmem:[#allocation2 + $0x109] sm:$0xff] }
  0xda   : > { %705 = vrot.lane.b32.xlu0 %v3553_v57, %s3056_s4  ;;  %1547 = vrot.lane.b32.xlu1 %v2666_v33, %s3057_s7  ;;  %v2670_v57 = vld [vmem:[#allocation2 + $0x52] sm:$0xff]  ;;  %1022 = vst.msk [vmem:[#allocation3 + $0x1e8] sm:$0xff] %vm199_vm0, %v3774_v26 }
  0xdb   : > { %1648 = vst.msk [vmem:[#allocation3 + $0x58] sm:$0xff] %vm199_vm0, %v2670_v57  ;;  %v3772_v33 = vld [vmem:[#allocation2 + $0x111] sm:$0xff] }
  0xdc   : > { %v846_v56 = vpop.permute.xlu0 %845  ;;  %v1153_v59 = vpop.permute.xlu1 %1152  ;;  %1023 = vst.msk [vmem:[#allocation3 + $0x200] sm:$0xff] %vm199_vm0, %v3772_v33 }
  0xdd   : > { %940 = vst.msk [vmem:[#allocation3 + $0x30] sm:$0xff] %vm937_vm4, %v846_v56  ;;  %v1687_v60 = vld [vmem:[#allocation3 + $0x50] sm:$0xff]  ;;  %v3794_v56 = vld [vmem:[#allocation2 + $0x112] sm:$0xff] }
  0xde   : > { %1545 = vrot.lane.b32.xlu0 %v2665_v36, %s3057_s7  ;;  %1221 = vst.msk [vmem:[#allocation3 + $0x290] sm:$0xff] %vm548_vm2, %v1153_v59  ;;  %903 = vrot.lane.b32.xlu1 %v3561_v61, %s3057_s7 }
  0xdf   : > { %1664 = vst.msk [vmem:[#allocation3 + $0x1d8] sm:$0xff] %vm199_vm0, %v3794_v56 }
  0xe0   : > { %v1151_v6 = vpop.permute.xlu0 %1150  ;;  %v1684_v7 = vld [vmem:[#allocation3 + $0x38] sm:$0xff]  ;;  %v507_v9 = vpop.permute.xlu1 %506  ;;  %v1686_v61 = vld [vmem:[#allocation3 + $0x48] sm:$0xff] }
  0xe1   : > { %1220 = vst.msk [vmem:[#allocation3 + $0x278] sm:$0xff] %vm548_vm2, %v1151_v6  ;;  %v1777_v8 = vpack.c.bf16 %v1687_v60, %v1684_v7  ;;  %576 = vst.msk [vmem:[#allocation3 + $0x288] sm:$0xff] %vm548_vm2, %v507_v9  ;;  %v3819_v7 = vld [vmem:[#allocation2 + $0xb0] sm:$0xff]  ;;  %v3827_v9 = vld [vmem:[#allocation2 + $0xa8] sm:$0xff] }
  0xe2   : > { %901 = vrot.lane.b32.xlu0 %v3569_v63, %s3057_s7  ;;  %1116 = vrot.lane.b32.xlu1 %v3422_v19, %s3055_s30 }
  0xe3   : > { %2060 = vmatprep.mubr.bf16.mxu0 %v1777_v8 }
  0xe4   : > { %v505_v15 = vpop.permute.xlu0 %504  ;;  %v1683_v16 = vld [vmem:[#allocation3 + $0x30] sm:$0xff]  ;;  %v1348_v63 = vpop.permute.xlu1 %1347 }
  0xe5   : > { %575 = vst.msk [vmem:[#allocation3 + $0x270] sm:$0xff] %vm548_vm2, %v505_v15  ;;  %v1776_v3 = vpack.c.bf16 %v1686_v61, %v1683_v16  ;;  %v2689_v15 = vld [vmem:[#allocation2 + $0x13a] sm:$0xff]  ;;  %v2690_v16 = vld [vmem:[#allocation2 + $0x142] sm:$0xff] }
  0xe6   : > { %1114 = vrot.lane.b32.xlu0 %v3424_v20, %s3055_s30  ;;  %1416 = vst.msk [vmem:[#allocation3 + $0x290] sm:$0xff] %vm741_vm3, %v1348_v63  ;;  %470 = vrot.lane.b32.xlu1 %v3302_v49, %s3055_s30  ;;  %v3769_v49 = vld [vmem:[#allocation2 + $0x90] sm:$0xff] }
  0xe7   : > { %2061 = vmatmul.mubr.bf16.gmra.mrb[4].mxu0 %v1776_v3  ;;  %1667 = vst.msk [vmem:[#allocation3 + $0x220] sm:$0xff] %vm199_vm0, %v2689_v15  ;;  %1668 = vst.msk [vmem:[#allocation3 + $0x238] sm:$0xff] %vm199_vm0, %v2690_v16  ;;  %v338_v15 = vld [vmem:[#allocation2 + $0xb0] sm:$0xff]  ;;  %v337_v16 = vld [vmem:[#allocation2 + $0xa8] sm:$0xff] }
  0xe8   : > { %v1346_v21 = vpop.permute.xlu0 %1345  ;;  %v700_v24 = vpop.permute.xlu1 %699  ;;  %371 = vst.msk [vmem:[#allocation3 + $0x168] sm:$0xff] %vm199_vm0, %v338_v15  ;;  %370 = vst.msk [vmem:[#allocation3 + $0x150] sm:$0xff] %vm199_vm0, %v337_v16  ;;  %v342_v15 = vld [vmem:[#allocation2 + $0xe0] sm:$0xff]  ;;  %v341_v16 = vld [vmem:[#allocation2 + $0xd8] sm:$0xff] }
  0xe9   : > { %1415 = vst.msk [vmem:[#allocation3 + $0x278] sm:$0xff] %vm741_vm3, %v1346_v21  ;;  %769 = vst.msk [vmem:[#allocation3 + $0x288] sm:$0xff] %vm741_vm3, %v700_v24  ;;  %v336_v21 = vld [vmem:[#allocation2 + $0x98] sm:$0xff]  ;;  %v335_v24 = vld [vmem:[#allocation2 + $0x90] sm:$0xff] }
  0xea   : > { %468 = vrot.lane.b32.xlu0 %v3304_v50, %s3055_s30  ;;  %1311 = vrot.lane.b32.xlu1 %v3761_v22, %s3056_s4  ;;  %369 = vst.msk [vmem:[#allocation3 + $0x138] sm:$0xff] %vm199_vm0, %v336_v21  ;;  %368 = vst.msk [vmem:[#allocation3 + $0x120] sm:$0xff] %vm199_vm0, %v335_v24 }
  0xeb   : > { %375 = vst.msk [vmem:[#allocation3 + $0x1c8] sm:$0xff] %vm199_vm0, %v342_v15  ;;  %374 = vst.msk [vmem:[#allocation3 + $0x1b0] sm:$0xff] %vm199_vm0, %v341_v16 }
  0xec   : > { %v698_v25 = vpop.permute.xlu0 %697  ;;  %v1540_v48 = vpop.permute.xlu1 %1539 }
  0xed   : > { %768 = vst.msk [vmem:[#allocation3 + $0x270] sm:$0xff] %vm741_vm3, %v698_v25 }
  0xee   : > { %1309 = vrot.lane.b32.xlu0 %v3769_v49, %s3056_s4  ;;  %1608 = vst.msk [vmem:[#allocation3 + $0x290] sm:$0xff] %vm937_vm4, %v1540_v48  ;;  %663 = vrot.lane.b32.xlu1 %v3611_v17, %s3056_s4  ;;  %v2692_v48 = vld [vmem:[#allocation2 + $0x15a] sm:$0xff] }
  0xef   : > { %1670 = vst.msk [vmem:[#allocation3 + $0x268] sm:$0xff] %vm199_vm0, %v2692_v48 }
  0xf0   : > { %v1538_v50 = vpop.permute.xlu0 %1537  ;;  %v896_v36 = vpop.permute.xlu1 %895 }
  0xf1   : > { %1607 = vst.msk [vmem:[#allocation3 + $0x278] sm:$0xff] %vm937_vm4, %v1538_v50  ;;  %965 = vst.msk [vmem:[#allocation3 + $0x288] sm:$0xff] %vm937_vm4, %v896_v36 }
  0xf2   : > { %661 = vrot.lane.b32.xlu0 %v3619_v23, %s3056_s4  ;;  %1503 = vrot.lane.b32.xlu1 %v3458_v27, %s3057_s7 }
  0xf4   : > { %v894_v44 = vpop.permute.xlu0 %893  ;;  %v1109_v17 = vpop.permute.xlu1 %1108 }
  0xf5   : > { %964 = vst.msk [vmem:[#allocation3 + $0x270] sm:$0xff] %vm937_vm4, %v894_v44  ;;  %v1759_v23 = vld [vmem:[#allocation3 + $0x290] sm:$0xff] }
  0xf6   : > { %1501 = vrot.lane.b32.xlu0 %v3460_v28, %s3057_s7  ;;  %1199 = vst.msk [vmem:[#allocation3 + $0x80] sm:$0xff] %vm548_vm2, %v1109_v17  ;;  %859 = vrot.lane.b32.xlu1 %v3627_v31, %s3057_s7 }
  0xf8   : > { %v1107_v58 = vpop.permute.xlu0 %1106  ;;  %v1756_v57 = vld [vmem:[#allocation3 + $0x278] sm:$0xff]  ;;  %v463_v60 = vpop.permute.xlu1 %462  ;;  %v1758_v37 = vld [vmem:[#allocation3 + $0x288] sm:$0xff] }
  0xf9   : > { %1198 = vst.msk [vmem:[#allocation3 + $0x68] sm:$0xff] %vm548_vm2, %v1107_v58  ;;  %v1813_v59 = vpack.c.bf16 %v1759_v23, %v1756_v57  ;;  %554 = vst.msk [vmem:[#allocation3 + $0x78] sm:$0xff] %vm548_vm2, %v463_v60  ;;  %v2695_v57 = vld [vmem:[#allocation2 + $0x182] sm:$0xff] }
  0xfa   : > { %857 = vrot.lane.b32.xlu0 %v3635_v45, %s3057_s7  ;;  %1120 = vrot.lane.b32.xlu1 %v3474_v29, %s3055_s30  ;;  %1673 = vst.msk [vmem:[#allocation3 + $0x2b0] sm:$0xff] %vm199_vm0, %v2695_v57 }
  0xfb   : > { %2156 = vmatprep.mubr.bf16.mxu1 %v1813_v59 }
  0xfc   : > { %v461_v38 = vpop.permute.xlu0 %460  ;;  %v1755_v5 = vld [vmem:[#allocation3 + $0x270] sm:$0xff]  ;;  %v1304_v6 = vpop.permute.xlu1 %1303 }
  0xfd   : > { %553 = vst.msk [vmem:[#allocation3 + $0x60] sm:$0xff] %vm548_vm2, %v461_v38  ;;  %v1812_v31 = vpack.c.bf16 %v1758_v37, %v1755_v5  ;;  %v2698_v5 = vld [vmem:[#allocation2 + $0x1a2] sm:$0xff] }
  0xfe   : > { %1118 = vrot.lane.b32.xlu0 %v3476_v30, %s3055_s30  ;;  %1394 = vst.msk [vmem:[#allocation3 + $0x80] sm:$0xff] %vm741_vm3, %v1304_v6  ;;  %474 = vrot.lane.b32.xlu1 %v3384_v14, %s3055_s30  ;;  %v3831_v14 = vld [vmem:[#allocation2 + $0x122] sm:$0xff] }
  0xff   : > { %2157 = vmatmul.mubr.bf16.gmra.mrb[4].mxu1 %v1812_v31  ;;  %1665 = vst.msk [vmem:[#allocation3 + $0x1f0] sm:$0xff] %vm199_vm0, %v3831_v14  ;;  %1676 = vst.msk [vmem:[#allocation3 + $0x2f8] sm:$0xff] %vm199_vm0, %v2698_v5  ;;  %v3887_v6 = vld [vmem:[#allocation2 + $0xc8] sm:$0xff] }
 0x100   : > { %v1302_v45 = vpop.permute.xlu0 %1301  ;;  %v656_v8 = vpop.permute.xlu1 %655 }
 0x101   : > { %1393 = vst.msk [vmem:[#allocation3 + $0x68] sm:$0xff] %vm741_vm3, %v1302_v45  ;;  %747 = vst.msk [vmem:[#allocation3 + $0x78] sm:$0xff] %vm741_vm3, %v656_v8  ;;  %v3895_v8 = vld [vmem:[#allocation2 + $0xc0] sm:$0xff] }
 0x102   : > { %472 = vrot.lane.b32.xlu0 %v3382_v13, %s3055_s30  ;;  %1315 = vrot.lane.b32.xlu1 %v3819_v7, %s3056_s4  ;;  %v3838_v13 = vld [vmem:[#allocation2 + $0x121] sm:$0xff] }
 0x103   : > { %1024 = vst.msk [vmem:[#allocation3 + $0x218] sm:$0xff] %vm199_vm0, %v3838_v13 }
 0x104   : > { %v654_v61 = vpop.permute.xlu0 %653  ;;  %v1496_v39 = vpop.permute.xlu1 %1495 }
 0x105   : > { %746 = vst.msk [vmem:[#allocation3 + $0x60] sm:$0xff] %vm741_vm3, %v654_v61 }
 0x106   : > { %1313 = vrot.lane.b32.xlu0 %v3827_v9, %s3056_s4  ;;  %1586 = vst.msk [vmem:[#allocation3 + $0x80] sm:$0xff] %vm937_vm4, %v1496_v39  ;;  %667 = vrot.lane.b32.xlu1 %v3422_v19, %s3056_s4  ;;  %v2691_v19 = vld [vmem:[#allocation2 + $0x152] sm:$0xff] }
 0x107   : > { %1669 = vst.msk [vmem:[#allocation3 + $0x250] sm:$0xff] %vm199_vm0, %v2691_v19 }
 0x108   : > { %v1494_v3 = vpop.permute.xlu0 %1493  ;;  %v852_v63 = vpop.permute.xlu1 %851 }
 0x109   : > { %1585 = vst.msk [vmem:[#allocation3 + $0x68] sm:$0xff] %vm937_vm4, %v1494_v3  ;;  %943 = vst.msk [vmem:[#allocation3 + $0x78] sm:$0xff] %vm937_vm4, %v852_v63 }
 0x10a   : > { %665 = vrot.lane.b32.xlu0 %v3424_v20, %s3056_s4  ;;  %1507 = vrot.lane.b32.xlu1 %v3510_v41, %s3057_s7  ;;  %v2693_v20 = vld [vmem:[#allocation2 + $0x16a] sm:$0xff] }
 0x10b   : > { %1671 = vst.msk [vmem:[#allocation3 + $0x280] sm:$0xff] %vm199_vm0, %v2693_v20 }
 0x10c   : > { %v850_v25 = vpop.permute.xlu0 %849  ;;  %v1157_v50 = vpop.permute.xlu1 %1156 }
 0x10d   : > { %942 = vst.msk [vmem:[#allocation3 + $0x60] sm:$0xff] %vm937_vm4, %v850_v25  ;;  %v1693_v36 = vld [vmem:[#allocation3 + $0x80] sm:$0xff] }
 0x10e   : > { %1505 = vrot.lane.b32.xlu0 %v3512_v42, %s3057_s7  ;;  %1223 = vst.msk [vmem:[#allocation3 + $0x2c0] sm:$0xff] %vm548_vm2, %v1157_v50  ;;  %863 = vrot.lane.b32.xlu1 %v3761_v22, %s3057_s7  ;;  %v2696_v22 = vld [vmem:[#allocation2 + $0x18a] sm:$0xff] }
 0x10f   : > { %1674 = vst.msk [vmem:[#allocation3 + $0x2c8] sm:$0xff] %vm199_vm0, %v2696_v22 }
 0x110   : > { %v1155_v43 = vpop.permute.xlu0 %1154  ;;  %v1690_v44 = vld [vmem:[#allocation3 + $0x68] sm:$0xff]  ;;  %v511_v23 = vpop.permute.xlu1 %510  ;;  %v1692_v58 = vld [vmem:[#allocation3 + $0x78] sm:$0xff] }
 0x111   : > { %1222 = vst.msk [vmem:[#allocation3 + $0x2a8] sm:$0xff] %vm548_vm2, %v1155_v43  ;;  %v1780_v17 = vpack.c.bf16 %v1693_v36, %v1690_v44  ;;  %578 = vst.msk [vmem:[#allocation3 + $0x2b8] sm:$0xff] %vm548_vm2, %v511_v23  ;;  %v3929_v36 = vld [vmem:[#allocation2 + $0xe0] sm:$0xff]  ;;  %v3937_v43 = vld [vmem:[#allocation2 + $0xd8] sm:$0xff] }
 0x112   : > { %861 = vrot.lane.b32.xlu0 %v3769_v49, %s3057_s7  ;;  %1124 = vrot.lane.b32.xlu1 %v3528_v51, %s3055_s30  ;;  %v2697_v49 = vld [vmem:[#allocation2 + $0x19a] sm:$0xff]  ;;  %v340_v23 = vld [vmem:[#allocation2 + $0xc8] sm:$0xff] }
 0x113   : > { %2068 = vmatprep.mubr.bf16.mxu0 %v1780_v17  ;;  %1675 = vst.msk [vmem:[#allocation3 + $0x2e0] sm:$0xff] %vm199_vm0, %v2697_v49  ;;  %373 = vst.msk [vmem:[#allocation3 + $0x198] sm:$0xff] %vm199_vm0, %v340_v23 }
 0x114   : > { %v509_v59 = vpop.permute.xlu0 %508  ;;  %v1689_v60 = vld [vmem:[#allocation3 + $0x60] sm:$0xff]  ;;  %v1352_v38 = vpop.permute.xlu1 %1351 }
 0x115   : > { %577 = vst.msk [vmem:[#allocation3 + $0x2a0] sm:$0xff] %vm548_vm2, %v509_v59  ;;  %v1779_v37 = vpack.c.bf16 %v1692_v58, %v1689_v60  ;;  %v339_v58 = vld [vmem:[#allocation2 + $0xc0] sm:$0xff] }
 0x116   : > { %1122 = vrot.lane.b32.xlu0 %v3530_v52, %s3055_s30  ;;  %1418 = vst.msk [vmem:[#allocation3 + $0x2c0] sm:$0xff] %vm741_vm3, %v1352_v38  ;;  %478 = vrot.lane.b32.xlu1 %v3458_v27, %s3055_s30 }
 0x117   : > { %2069 = vmatmul.mubr.bf16.gmra.mrb[8].mxu0 %v1779_v37  ;;  %372 = vst.msk [vmem:[#allocation3 + $0x180] sm:$0xff] %vm199_vm0, %v339_v58 }
 0x118   : > { %v1350_v31 = vpop.permute.xlu0 %1349  ;;  %v704_v45 = vpop.permute.xlu1 %703 }
 0x119   : > { %1417 = vst.msk [vmem:[#allocation3 + $0x2a8] sm:$0xff] %vm741_vm3, %v1350_v31  ;;  %771 = vst.msk [vmem:[#allocation3 + $0x2b8] sm:$0xff] %vm741_vm3, %v704_v45 }
 0x11a   : > { %476 = vrot.lane.b32.xlu0 %v3460_v28, %s3055_s30  ;;  %1319 = vrot.lane.b32.xlu1 %v3887_v6, %s3056_s4 }
 0x11c   : > { %v702_v27 = vpop.permute.xlu0 %701  ;;  %v1544_v61 = vpop.permute.xlu1 %1543 }
 0x11d   : > { %770 = vst.msk [vmem:[#allocation3 + $0x2a0] sm:$0xff] %vm741_vm3, %v702_v27 }
 0x11e   : > { %1317 = vrot.lane.b32.xlu0 %v3895_v8, %s3056_s4  ;;  %1610 = vst.msk [vmem:[#allocation3 + $0x2c0] sm:$0xff] %vm937_vm4, %v1544_v61  ;;  %671 = vrot.lane.b32.xlu1 %v3474_v29, %s3056_s4  ;;  %v3979_v61 = vld [vmem:[#allocation2 + $0xf0] sm:$0xff] }
 0x120   : > { %v1542_v28 = vpop.permute.xlu0 %1541  ;;  %v900_v39 = vpop.permute.xlu1 %899 }
 0x121   : > { %1609 = vst.msk [vmem:[#allocation3 + $0x2a8] sm:$0xff] %vm937_vm4, %v1542_v28  ;;  %967 = vst.msk [vmem:[#allocation3 + $0x2b8] sm:$0xff] %vm937_vm4, %v900_v39 }
 0x122   : > { %669 = vrot.lane.b32.xlu0 %v3476_v30, %s3056_s4  ;;  %1511 = vrot.lane.b32.xlu1 %v3572_v1, %s3057_s7 }
 0x124   : > { %v898_v3 = vpop.permute.xlu0 %897  ;;  %v1113_v29 = vpop.permute.xlu1 %1112 }
 0x125   : > { %966 = vst.msk [vmem:[#allocation3 + $0x2a0] sm:$0xff] %vm937_vm4, %v898_v3  ;;  %v1765_v30 = vld [vmem:[#allocation3 + $0x2c0] sm:$0xff] }
 0x126   : > { %1509 = vrot.lane.b32.xlu0 %v3574_v4, %s3057_s7  ;;  %1201 = vst.msk [vmem:[#allocation3 + $0xb0] sm:$0xff] %vm548_vm2, %v1113_v29  ;;  %867 = vrot.lane.b32.xlu1 %v3819_v7, %s3057_s7 }
 0x128   : > { %v1111_v63 = vpop.permute.xlu0 %1110  ;;  %v1762_v21 = vld [vmem:[#allocation3 + $0x2a8] sm:$0xff]  ;;  %v467_v25 = vpop.permute.xlu1 %466  ;;  %v1764_v19 = vld [vmem:[#allocation3 + $0x2b8] sm:$0xff] }
 0x129   : > { %1200 = vst.msk [vmem:[#allocation3 + $0x98] sm:$0xff] %vm548_vm2, %v1111_v63  ;;  %v1816_v24 = vpack.c.bf16 %v1765_v30, %v1762_v21  ;;  %556 = vst.msk [vmem:[#allocation3 + $0xa8] sm:$0xff] %vm548_vm2, %v467_v25  ;;  %v1682_v25 = vld [vmem:[#allocation3 + $0x28] sm:$0xff] }
 0x12a   : > { %865 = vrot.lane.b32.xlu0 %v3827_v9, %s3057_s7  ;;  %1128 = vrot.lane.b32.xlu1 %v3594_v10, %s3055_s30 }
 0x12b   : > { %2164 = vmatprep.mubr.bf16.mxu1 %v1816_v24  ;;  %v1679_v24 = vld [vmem:[#allocation3 + $0x10] sm:$0xff] }
 0x12c   : > { %v465_v48 = vpop.permute.xlu0 %464  ;;  %v1761_v50 = vld [vmem:[#allocation3 + $0x2a0] sm:$0xff]  ;;  %v1308_v20 = vpop.permute.xlu1 %1307 }
 0x12d   : > { %555 = vst.msk [vmem:[#allocation3 + $0x90] sm:$0xff] %vm548_vm2, %v465_v48  ;;  %v1815_v7 = vpack.c.bf16 %v1764_v19, %v1761_v50 }
 0x12e   : > { %1126 = vrot.lane.b32.xlu0 %v3596_v11, %s3055_s30  ;;  %1396 = vst.msk [vmem:[#allocation3 + $0xb0] sm:$0xff] %vm741_vm3, %v1308_v20  ;;  %482 = vrot.lane.b32.xlu1 %v3510_v41, %s3055_s30 }
 0x12f   : > { %2165 = vmatmul.mubr.bf16.gmra.mrb[8].mxu1 %v1815_v7  ;;  %v1775_v7 = vpack.c.bf16 %v1682_v25, %v1679_v24  ;;  %v4059_v24 = vld [vmem:[#allocation2 + $0x128] sm:$0xff]  ;;  %v1727_v25 = vld [vmem:[#allocation3 + $0x190] sm:$0xff] }
 0x130   : > { %v1306_v9 = vpop.permute.xlu0 %1305  ;;  %v660_v46 = vpop.permute.xlu1 %659 }
 0x131   : > { %1395 = vst.msk [vmem:[#allocation3 + $0x98] sm:$0xff] %vm741_vm3, %v1306_v9  ;;  %749 = vst.msk [vmem:[#allocation3 + $0xa8] sm:$0xff] %vm741_vm3, %v660_v46  ;;  %v1685_v46 = vld [vmem:[#allocation3 + $0x40] sm:$0xff] }
 0x132   : > { %480 = vrot.lane.b32.xlu0 %v3512_v42, %s3055_s30  ;;  %1323 = vrot.lane.b32.xlu1 %v3929_v36, %s3056_s4 }
 0x134   : > { %v658_v44 = vpop.permute.xlu0 %657  ;;  %v1500_v41 = vpop.permute.xlu1 %1499 }
 0x135   : > { %748 = vst.msk [vmem:[#allocation3 + $0x90] sm:$0xff] %vm741_vm3, %v658_v44 }
 0x136   : > { %1321 = vrot.lane.b32.xlu0 %v3937_v43, %s3056_s4  ;;  %1588 = vst.msk [vmem:[#allocation3 + $0xb0] sm:$0xff] %vm937_vm4, %v1500_v41  ;;  %675 = vrot.lane.b32.xlu1 %v3528_v51, %s3056_s4  ;;  %v1691_v41 = vld [vmem:[#allocation3 + $0x70] sm:$0xff] }
 0x138   : > { %v1498_v42 = vpop.permute.xlu0 %1497  ;;  %v856_v17 = vpop.permute.xlu1 %855 }
 0x139   : > { %1587 = vst.msk [vmem:[#allocation3 + $0x98] sm:$0xff] %vm937_vm4, %v1498_v42  ;;  %945 = vst.msk [vmem:[#allocation3 + $0xa8] sm:$0xff] %vm937_vm4, %v856_v17  ;;  %v1694_v42 = vld [vmem:[#allocation3 + $0x88] sm:$0xff] }
 0x13a   : > { %673 = vrot.lane.b32.xlu0 %v3530_v52, %s3056_s4  ;;  %1515 = vrot.lane.b32.xlu1 %v3638_v53, %s3057_s7  ;;  %v1781_v23 = vpack.c.bf16 %v1694_v42, %v1691_v41 }
 0x13c   : > { %v854_v57 = vpop.permute.xlu0 %853  ;;  %v1161_v51 = vpop.permute.xlu1 %1160 }
 0x13d   : > { %944 = vst.msk [vmem:[#allocation3 + $0x90] sm:$0xff] %vm937_vm4, %v854_v57  ;;  %v1699_v52 = vld [vmem:[#allocation3 + $0xb0] sm:$0xff]  ;;  %v1697_v57 = vld [vmem:[#allocation3 + $0xa0] sm:$0xff] }
 0x13e   : > { %1513 = vrot.lane.b32.xlu0 %v3640_v54, %s3057_s7  ;;  %1225 = vst.msk [vmem:[#allocation3 + $0x2f0] sm:$0xff] %vm548_vm2, %v1161_v51  ;;  %871 = vrot.lane.b32.xlu1 %v3887_v6, %s3057_s7  ;;  %v1700_v51 = vld [vmem:[#allocation3 + $0xb8] sm:$0xff] }
 0x140   : > { %v1159_v22 = vpop.permute.xlu0 %1158  ;;  %v1696_v59 = vld [vmem:[#allocation3 + $0x98] sm:$0xff]  ;;  %v515_v37 = vpop.permute.xlu1 %514  ;;  %v1698_v38 = vld [vmem:[#allocation3 + $0xa8] sm:$0xff] }
 0x141   : > { %1224 = vst.msk [vmem:[#allocation3 + $0x2d8] sm:$0xff] %vm548_vm2, %v1159_v22  ;;  %v1783_v60 = vpack.c.bf16 %v1699_v52, %v1696_v59  ;;  %580 = vst.msk [vmem:[#allocation3 + $0x2e8] sm:$0xff] %vm548_vm2, %v515_v37  ;;  %v1703_v22 = vld [vmem:[#allocation3 + $0xd0] sm:$0xff]  ;;  %v1706_v59 = vld [vmem:[#allocation3 + $0xe8] sm:$0xff] }
 0x142   : > { %869 = vrot.lane.b32.xlu0 %v3895_v8, %s3057_s7  ;;  %1132 = vrot.lane.b32.xlu1 %v3660_v62, %s3055_s30  ;;  %v3971_v8 = vld [vmem:[#allocation2 + $0xf8] sm:$0xff]  ;;  %v343_v37 = vld [vmem:[#allocation2 + $0xf0] sm:$0xff] }
 0x143   : > { %2076 = vmatprep.mubr.bf16.mxu0 %v1783_v60  ;;  %v1784_v60 = vpack.c.bf16 %v1700_v51, %v1697_v57  ;;  %376 = vst.msk [vmem:[#allocation3 + $0x1e0] sm:$0xff] %vm199_vm0, %v343_v37  ;;  %v1751_v51 = vld [vmem:[#allocation3 + $0x250] sm:$0xff] }
 0x144   : > { %v513_v49 = vpop.permute.xlu0 %512  ;;  %v1695_v5 = vld [vmem:[#allocation3 + $0x90] sm:$0xff]  ;;  %v1356_v6 = vpop.permute.xlu1 %1355 }
 0x145   : > { %579 = vst.msk [vmem:[#allocation3 + $0x2d0] sm:$0xff] %vm548_vm2, %v513_v49  ;;  %v1782_v31 = vpack.c.bf16 %v1698_v38, %v1695_v5  ;;  %v1787_v49 = vpack.c.bf16 %v1706_v59, %v1703_v22 }
 0x146   : > { %1130 = vrot.lane.b32.xlu0 %v3662_v0, %s3055_s30  ;;  %1420 = vst.msk [vmem:[#allocation3 + $0x2f0] sm:$0xff] %vm741_vm3, %v1356_v6  ;;  %486 = vrot.lane.b32.xlu1 %v3572_v1, %s3055_s30 }
 0x147   : > { %2077 = vmatmul.mubr.bf16.gmra.mrb[12].mxu0 %v1782_v31 }
 0x148   : > { %v1354_v45 = vpop.permute.xlu0 %1353  ;;  %v708_v27 = vpop.permute.xlu1 %707 }
 0x149   : > { %1419 = vst.msk [vmem:[#allocation3 + $0x2d8] sm:$0xff] %vm741_vm3, %v1354_v45  ;;  %773 = vst.msk [vmem:[#allocation3 + $0x2e8] sm:$0xff] %vm741_vm3, %v708_v27  ;;  %v1709_v45 = vld [vmem:[#allocation3 + $0x100] sm:$0xff]  ;;  %v1712_v27 = vld [vmem:[#allocation3 + $0x118] sm:$0xff] }
 0x14a   : > { %484 = vrot.lane.b32.xlu0 %v3574_v4, %s3055_s30  ;;  %1327 = vrot.lane.b32.xlu1 %v3971_v8, %s3056_s4 }
 0x14c   : > { %v706_v28 = vpop.permute.xlu0 %705  ;;  %v1548_v1 = vpop.permute.xlu1 %1547 }
 0x14d   : > { %772 = vst.msk [vmem:[#allocation3 + $0x2d0] sm:$0xff] %vm741_vm3, %v706_v28 }
 0x14e   : > { %1325 = vrot.lane.b32.xlu0 %v3979_v61, %s3056_s4  ;;  %1612 = vst.msk [vmem:[#allocation3 + $0x2f0] sm:$0xff] %vm937_vm4, %v1548_v1  ;;  %679 = vrot.lane.b32.xlu1 %v3594_v10, %s3056_s4 }
 0x150   : > { %v1546_v4 = vpop.permute.xlu0 %1545  ;;  %v904_v39 = vpop.permute.xlu1 %903 }
 0x151   : > { %1611 = vst.msk [vmem:[#allocation3 + $0x2d8] sm:$0xff] %vm937_vm4, %v1546_v4  ;;  %969 = vst.msk [vmem:[#allocation3 + $0x2e8] sm:$0xff] %vm937_vm4, %v904_v39  ;;  %v1715_v4 = vld [vmem:[#allocation3 + $0x130] sm:$0xff]  ;;  %v1718_v39 = vld [vmem:[#allocation3 + $0x148] sm:$0xff] }
 0x152   : > { %677 = vrot.lane.b32.xlu0 %v3596_v11, %s3056_s4  ;;  %1519 = vrot.lane.b32.xlu1 %v3693_v32, %s3057_s7 }
 0x154   : > { %v902_v3 = vpop.permute.xlu0 %901  ;;  %v1117_v10 = vpop.permute.xlu1 %1116 }
 0x155   : > { %968 = vst.msk [vmem:[#allocation3 + $0x2d0] sm:$0xff] %vm937_vm4, %v902_v3  ;;  %v1771_v11 = vld [vmem:[#allocation3 + $0x2f0] sm:$0xff] }
 0x156   : > { %1517 = vrot.lane.b32.xlu0 %v3695_v47, %s3057_s7  ;;  %1203 = vst.msk [vmem:[#allocation3 + $0xe0] sm:$0xff] %vm548_vm2, %v1117_v10  ;;  %875 = vrot.lane.b32.xlu1 %v3929_v36, %s3057_s7  ;;  %v1793_v10 = vpack.c.bf16 %v1718_v39, %v1715_v4  ;;  %v1766_v4 = vld [vmem:[#allocation3 + $0x2c8] sm:$0xff] }
 0x158   : > { %v1115_v29 = vpop.permute.xlu0 %1114  ;;  %v1768_v30 = vld [vmem:[#allocation3 + $0x2d8] sm:$0xff]  ;;  %v471_v21 = vpop.permute.xlu1 %470  ;;  %v1770_v19 = vld [vmem:[#allocation3 + $0x2e8] sm:$0xff] }
 0x159   : > { %1202 = vst.msk [vmem:[#allocation3 + $0xc8] sm:$0xff] %vm548_vm2, %v1115_v29  ;;  %v1819_v63 = vpack.c.bf16 %v1771_v11, %v1768_v30  ;;  %558 = vst.msk [vmem:[#allocation3 + $0xd8] sm:$0xff] %vm548_vm2, %v471_v21  ;;  %v1721_v30 = vld [vmem:[#allocation3 + $0x160] sm:$0xff] }
 0x15a   : > { %873 = vrot.lane.b32.xlu0 %v3937_v43, %s3057_s7  ;;  %1136 = vrot.lane.b32.xlu1 %v3714_v34, %s3055_s30  ;;  %v1688_v43 = vld [vmem:[#allocation3 + $0x58] sm:$0xff] }
 0x15b   : > { %2172 = vmatprep.mubr.bf16.mxu1 %v1819_v63  ;;  %v1778_v17 = vpack.c.bf16 %v1688_v43, %v1685_v46  ;;  %v1724_v63 = vld [vmem:[#allocation3 + $0x178] sm:$0xff]  ;;  %v1739_v43 = vld [vmem:[#allocation3 + $0x1f0] sm:$0xff] }
 0x15c   : > { %v469_v48 = vpop.permute.xlu0 %468  ;;  %v1767_v50 = vld [vmem:[#allocation3 + $0x2d0] sm:$0xff]  ;;  %v1312_v9 = vpop.permute.xlu1 %1311 }
 0x15d   : > { %557 = vst.msk [vmem:[#allocation3 + $0xc0] sm:$0xff] %vm548_vm2, %v469_v48  ;;  %v1818_v20 = vpack.c.bf16 %v1770_v19, %v1767_v50  ;;  %v1730_v19 = vld [vmem:[#allocation3 + $0x1a8] sm:$0xff]  ;;  %v4064_v48 = vld [vmem:[#allocation2 + $0x120] sm:$0xff]  ;;  %v1796_v50 = vpack.c.bf16 %v1724_v63, %v1721_v30 }
 0x15e   : > { %1134 = vrot.lane.b32.xlu0 %v3716_v35, %s3055_s30  ;;  %1398 = vst.msk [vmem:[#allocation3 + $0xe0] sm:$0xff] %vm741_vm3, %v1312_v9  ;;  %490 = vrot.lane.b32.xlu1 %v3638_v53, %s3055_s30  ;;  %v1733_v9 = vld [vmem:[#allocation3 + $0x1c0] sm:$0xff] }
 0x15f   : > { %2173 = vmatmul.mubr.bf16.gmra.mrb[12].mxu1 %v1818_v20 }
 0x160   : > { %v1310_v36 = vpop.permute.xlu0 %1309  ;;  %2872 = vmatprep.mubr.msk.bf16.mxu1 %vm199_vm0, %v1775_v7  ;;  %v664_v44 = vpop.permute.xlu1 %663  ;;  %v1799_v7 = vpack.c.bf16 %v1730_v19, %v1727_v25 }
 0x161   : > { %1397 = vst.msk [vmem:[#allocation3 + $0xc8] sm:$0xff] %vm741_vm3, %v1310_v36  ;;  %751 = vst.msk [vmem:[#allocation3 + $0xd8] sm:$0xff] %vm741_vm3, %v664_v44  ;;  %v1736_v36 = vld [vmem:[#allocation3 + $0x1d8] sm:$0xff]  ;;  %v1742_v44 = vld [vmem:[#allocation3 + $0x208] sm:$0xff] }
 0x162   : > { %488 = vrot.lane.b32.xlu0 %v3640_v54, %s3055_s30  ;;  %1331 = vrot.lane.b32.xlu1 %v3751_v40, %s3056_s4  ;;  %v1802_v41 = vpack.c.bf16 %v1736_v36, %v1733_v9 }
 0x164   : > { %v662_v53 = vpop.permute.xlu0 %661  ;;  %v1504_v58 = vpop.permute.xlu1 %1503 }
 0x165   : > { %750 = vst.msk [vmem:[#allocation3 + $0xc0] sm:$0xff] %vm741_vm3, %v662_v53 }
 0x166   : > { %1329 = vrot.lane.b32.xlu0 %v3753_v18, %s3056_s4  ;;  %1590 = vst.msk [vmem:[#allocation3 + $0xe0] sm:$0xff] %vm937_vm4, %v1504_v58  ;;  %683 = vrot.lane.b32.xlu1 %v3660_v62, %s3056_s4  ;;  %v344_v62 = vld [vmem:[#allocation2 + $0xf8] sm:$0xff]  ;;  %v1748_v58 = vld [vmem:[#allocation3 + $0x238] sm:$0xff] }
 0x167   : > { %2873 = vmatmul.mubr.msk.bf16.vlgmr.msra.gmra.mrb[16].mxu1 %vm199_vm0, %v1778_v17  ;;  %377 = vst.msk [vmem:[#allocation3 + $0x1f8] sm:$0xff] %vm199_vm0, %v344_v62 }
 0x168   : > { %v1502_v54 = vpop.permute.xlu0 %1501  ;;  %2876 = vmatprep.mubr.msk.bf16.mxu1 %vm199_vm0, %v1781_v23  ;;  %v860_v52 = vpop.permute.xlu1 %859 }
 0x169   : > { %1589 = vst.msk [vmem:[#allocation3 + $0xc8] sm:$0xff] %vm937_vm4, %v1502_v54  ;;  %947 = vst.msk [vmem:[#allocation3 + $0xd8] sm:$0xff] %vm937_vm4, %v860_v52 }
 0x16a   : > { %681 = vrot.lane.b32.xlu0 %v3662_v0, %s3056_s4  ;;  %1523 = vrot.lane.b32.xlu1 %v3772_v33, %s3057_s7 }
 0x16c   : > { %v858_v38 = vpop.permute.xlu0 %857  ;;  %v1121_v5 = vpop.permute.xlu1 %1120 }
 0x16d   : > { %946 = vst.msk [vmem:[#allocation3 + $0xc0] sm:$0xff] %vm937_vm4, %v858_v38  ;;  %v1705_v0 = vld [vmem:[#allocation3 + $0xe0] sm:$0xff] }
 0x16e   : > { %1521 = vrot.lane.b32.xlu0 %v3774_v26, %s3057_s7  ;;  %1205 = vst.msk [vmem:[#allocation3 + $0x110] sm:$0xff] %vm548_vm2, %v1121_v5  ;;  %879 = vrot.lane.b32.xlu1 %v3971_v8, %s3057_s7  ;;  %v1790_v8 = vpack.c.bf16 %v1712_v27, %v1709_v45  ;;  %v1760_v45 = vld [vmem:[#allocation3 + $0x298] sm:$0xff] }
 0x16f   : > { %2877 = vmatmul.mubr.msk.bf16.gmra.mrb[20].mxu1 %vm199_vm0, %v1784_v60 }
 0x170   : > { %v1119_v31 = vpop.permute.xlu0 %1118  ;;  %v1702_v6 = vld [vmem:[#allocation3 + $0xc8] sm:$0xff]  ;;  %2880 = vmatprep.mubr.msk.bf16.mxu1 %vm199_vm0, %v1787_v49  ;;  %v475_v1 = vpop.permute.xlu1 %474  ;;  %v1704_v15 = vld [vmem:[#allocation3 + $0xd8] sm:$0xff] }
 0x171   : > { %1204 = vst.msk [vmem:[#allocation3 + $0xf8] sm:$0xff] %vm548_vm2, %v1119_v31  ;;  %v1786_v28 = vpack.c.bf16 %v1705_v0, %v1702_v6  ;;  %560 = vst.msk [vmem:[#allocation3 + $0x108] sm:$0xff] %vm548_vm2, %v475_v1  ;;  %v1763_v1 = vld [vmem:[#allocation3 + $0x2b0] sm:$0xff] }
 0x172   : > { %877 = vrot.lane.b32.xlu0 %v3979_v61, %s3057_s7  ;;  %1140 = vrot.lane.b32.xlu1 %v3794_v56, %s3055_s30 }
 0x173   : > { %2084 = vmatprep.mubr.bf16.mxu0 %v1786_v28  ;;  %v2626_v28 = vld [vmem:[#allocation2 + $0x140] sm:$0xff] }
 0x174   : > { %v473_v16 = vpop.permute.xlu0 %472  ;;  %v1701_v3 = vld [vmem:[#allocation3 + $0xc0] sm:$0xff]  ;;  %v1316_v29 = vpop.permute.xlu1 %1315 }
 0x175   : > { %559 = vst.msk [vmem:[#allocation3 + $0xf0] sm:$0xff] %vm548_vm2, %v473_v16  ;;  %v1785_v11 = vpack.c.bf16 %v1704_v15, %v1701_v3  ;;  %v1772_v3 = vld [vmem:[#allocation3 + $0x2f8] sm:$0xff] }
 0x176   : > { %1138 = vrot.lane.b32.xlu0 %v3796_v55, %s3055_s30  ;;  %1400 = vst.msk [vmem:[#allocation3 + $0x110] sm:$0xff] %vm741_vm3, %v1316_v29  ;;  %494 = vrot.lane.b32.xlu1 %v3693_v32, %s3055_s30  ;;  %v2657_v29 = vld [vmem:[#allocation2 + $0x139] sm:$0xff] }
 0x177   : > { %2085 = vmatmul.mubr.bf16.gmra.mrb[16].mxu0 %v1785_v11  ;;  %2881 = vmatmul.mubr.msk.bf16.gmra.mrb[24].mxu1 %vm199_vm0, %v1790_v8  ;;  %v2658_v11 = vld [vmem:[#allocation2 + $0x141] sm:$0xff] }
 0x178   : > { %v1314_v61 = vpop.permute.xlu0 %1313  ;;  %2884 = vmatprep.mubr.msk.bf16.mxu1 %vm199_vm0, %v1793_v10  ;;  %v668_v21 = vpop.permute.xlu1 %667 }
 0x179   : > { %1399 = vst.msk [vmem:[#allocation3 + $0xf8] sm:$0xff] %vm741_vm3, %v1314_v61  ;;  %753 = vst.msk [vmem:[#allocation3 + $0x108] sm:$0xff] %vm741_vm3, %v668_v21 }
 0x17a   : > { %492 = vrot.lane.b32.xlu0 %v3695_v47, %s3055_s30  ;;  %1335 = vrot.lane.b32.xlu1 %v4059_v24, %s3056_s4 }
 0x17c   : > { %v666_v32 = vpop.permute.xlu0 %665  ;;  %v1508_v20 = vpop.permute.xlu1 %1507 }
 0x17d   : > { %752 = vst.msk [vmem:[#allocation3 + $0xf0] sm:$0xff] %vm741_vm3, %v666_v32 }
 0x17e   : > { %1333 = vrot.lane.b32.xlu0 %v4064_v48, %s3056_s4  ;;  %1592 = vst.msk [vmem:[#allocation3 + $0x110] sm:$0xff] %vm937_vm4, %v1508_v20  ;;  %687 = vrot.lane.b32.xlu1 %v3714_v34, %s3056_s4  ;;  %v1805_v34 = vpack.c.bf16 %v1742_v44, %v1739_v43 }
 0x17f   : > { %2885 = vmatmul.mubr.msk.bf16.gmra.mrb[28].mxu1 %vm199_vm0, %v1796_v50 }
 0x180   : > { %v1506_v47 = vpop.permute.xlu0 %1505  ;;  %2888 = vmatprep.mubr.msk.bf16.mxu1 %vm199_vm0, %v1799_v7  ;;  %v864_v46 = vpop.permute.xlu1 %863 }
 0x181   : > { %1591 = vst.msk [vmem:[#allocation3 + $0xf8] sm:$0xff] %vm937_vm4, %v1506_v47  ;;  %949 = vst.msk [vmem:[#allocation3 + $0x108] sm:$0xff] %vm937_vm4, %v864_v46 }
 0x182   : > { %685 = vrot.lane.b32.xlu0 %v3716_v35, %s3056_s4  ;;  %1527 = vrot.lane.b32.xlu1 %v3836_v12, %s3057_s7  ;;  %v1745_v12 = vld [vmem:[#allocation3 + $0x220] sm:$0xff] }
 0x184   : > { %v862_v42 = vpop.permute.xlu0 %861  ;;  %v1125_v17 = vpop.permute.xlu1 %1124 }
 0x185   : > { %948 = vst.msk [vmem:[#allocation3 + $0xf0] sm:$0xff] %vm937_vm4, %v862_v42  ;;  %v1711_v53 = vld [vmem:[#allocation3 + $0x110] sm:$0xff] }
 0x186   : > { %1525 = vrot.lane.b32.xlu0 %v3838_v13, %s3057_s7  ;;  %1207 = vst.msk [vmem:[#allocation3 + $0x140] sm:$0xff] %vm548_vm2, %v1125_v17  ;;  %883 = vrot.lane.b32.xlu1 %v3751_v40, %s3057_s7  ;;  %v1754_v13 = vld [vmem:[#allocation3 + $0x268] sm:$0xff]  ;;  %v1808_v40 = vpack.c.bf16 %v1748_v58, %v1745_v12 }
 0x187   : > { %2889 = vmatmul.mubr.msk.bf16.gmra.mrb[32].mxu1 %vm199_vm0, %v1802_v41  ;;  %v1811_v49 = vpack.c.bf16 %v1754_v13, %v1751_v51 }
 0x188   : > { %v1123_v35 = vpop.permute.xlu0 %1122  ;;  %v1708_v23 = vld [vmem:[#allocation3 + $0xf8] sm:$0xff]  ;;  %2892 = vmatprep.mubr.msk.bf16.mxu1 %vm199_vm0, %v1805_v34  ;;  %v479_v57 = vpop.permute.xlu1 %478  ;;  %v1710_v22 = vld [vmem:[#allocation3 + $0x108] sm:$0xff] }
 0x189   : > { %1206 = vst.msk [vmem:[#allocation3 + $0x128] sm:$0xff] %vm548_vm2, %v1123_v35  ;;  %v1789_v54 = vpack.c.bf16 %v1711_v53, %v1708_v23  ;;  %562 = vst.msk [vmem:[#allocation3 + $0x138] sm:$0xff] %vm548_vm2, %v479_v57 }
 0x18a   : > { %v2754_v52 = vpop.f32.mrb[0].mxu0  ;;  %881 = vrot.lane.b32.xlu0 %v3753_v18, %s3057_s7  ;;  %1144 = vrot.lane.b32.xlu1 %v3829_v2, %s3055_s30  ;;  %v1757_v2 = vld [vmem:[#allocation3 + $0x280] sm:$0xff] }
 0x18b   : > { %v2755_v59 = vpop.f32.mrb[1].mxu0  ;;  %2092 = vmatprep.mubr.bf16.mxu0 %v1789_v54  ;;  %v1814_v39 = vpack.c.bf16 %v1760_v45, %v1757_v2 }
 0x18c   : > { %v4094_v60 = vadd.f32 %v2755_v59, %v2754_v52  ;;  %v2757_v62 = vpop.f32.mrb[2].mxu0  ;;  %v477_v37 = vpop.permute.xlu0 %476  ;;  %v1707_v38 = vld [vmem:[#allocation3 + $0xf0] sm:$0xff] }
 0x18d   : > { %561 = vst.msk [vmem:[#allocation3 + $0x120] sm:$0xff] %vm548_vm2, %v477_v37  ;;  %v2758_v5 = vpop.f32.mrb[3].mxu0  ;;  %v1788_v0 = vpack.c.bf16 %v1710_v22, %v1707_v38  ;;  %v1320_v18 = vpop.permute.xlu1 %1319 }
 0x18e   : > { %v4099_v31 = vadd.f32 %v2758_v5, %v2757_v62  ;;  %1142 = vrot.lane.b32.xlu0 %v3831_v14, %s3055_s30  ;;  %1402 = vst.msk [vmem:[#allocation3 + $0x140] sm:$0xff] %vm741_vm3, %v1320_v18  ;;  %498 = vrot.lane.b32.xlu1 %v3772_v33, %s3055_s30  ;;  %v2625_v14 = vld [vmem:[#allocation2 + $0x138] sm:$0xff]  ;;  %v1817_v33 = vpack.c.bf16 %v1766_v4, %v1763_v1 }
 0x18f   : > { %2093 = vmatmul.mubr.bf16.gmra.mrb[20].mxu0 %v1788_v0  ;;  %2893 = vmatmul.mubr.msk.bf16.gmra.mrb[36].mxu1 %vm199_vm0, %v1808_v40 }
 0x190   : > { %v1318_v6 = vpop.permute.xlu0 %1317  ;;  %2896 = vmatprep.mubr.msk.bf16.mxu1 %vm199_vm0, %v1811_v49 }
 0x191   : > { %1401 = vst.msk [vmem:[#allocation3 + $0x128] sm:$0xff] %vm741_vm3, %v1318_v6  ;;  %v672_v27 = vpop.permute.xlu1 %671 }
 0x192   : > { %496 = vrot.lane.b32.xlu0 %v3774_v26, %s3055_s30  ;;  %755 = vst.msk [vmem:[#allocation3 + $0x138] sm:$0xff] %vm741_vm3, %v672_v27  ;;  %1339 = vrot.lane.b32.xlu1 %v2626_v28, %s3056_s4  ;;  %v1769_v26 = vld [vmem:[#allocation3 + $0x2e0] sm:$0xff] }
 0x193   : > { %v1820_v61 = vpack.c.bf16 %v1772_v3, %v1769_v26 }
 0x194   : > { %v670_v15 = vpop.permute.xlu0 %669 }
 0x195   : > { %754 = vst.msk [vmem:[#allocation3 + $0x120] sm:$0xff] %vm741_vm3, %v670_v15  ;;  %v1512_v8 = vpop.permute.xlu1 %1511 }
 0x196   : > { %1337 = vrot.lane.b32.xlu0 %v2625_v14, %s3056_s4  ;;  %1594 = vst.msk [vmem:[#allocation3 + $0x140] sm:$0xff] %vm937_vm4, %v1512_v8  ;;  %691 = vrot.lane.b32.xlu1 %v3794_v56, %s3056_s4 }
 0x197   : > { %2897 = vmatmul.mubr.msk.bf16.gmra.mrb[40].mxu1 %vm199_vm0, %v1814_v39 }
 0x198   : > { %v1510_v16 = vpop.permute.xlu0 %1509  ;;  %2900 = vmatprep.mubr.msk.bf16.mxu1 %vm199_vm0, %v1817_v33 }
 0x199   : > { %1593 = vst.msk [vmem:[#allocation3 + $0x128] sm:$0xff] %vm937_vm4, %v1510_v16  ;;  %v868_v10 = vpop.permute.xlu1 %867 }
 0x19a   : > { %689 = vrot.lane.b32.xlu0 %v3796_v55, %s3056_s4  ;;  %951 = vst.msk [vmem:[#allocation3 + $0x138] sm:$0xff] %vm937_vm4, %v868_v10  ;;  %1531 = vrot.lane.b32.xlu1 %v2658_v11, %s3057_s7 }
 0x19c   : > { %v866_v30 = vpop.permute.xlu0 %865 }
 0x19d   : > { %950 = vst.msk [vmem:[#allocation3 + $0x120] sm:$0xff] %vm937_vm4, %v866_v30  ;;  %v1129_v56 = vpop.permute.xlu1 %1128  ;;  %v1717_v63 = vld [vmem:[#allocation3 + $0x140] sm:$0xff] }
 0x19e   : > { %1529 = vrot.lane.b32.xlu0 %v2657_v29, %s3057_s7  ;;  %1209 = vst.msk [vmem:[#allocation3 + $0x170] sm:$0xff] %vm548_vm2, %v1129_v56  ;;  %887 = vrot.lane.b32.xlu1 %v4059_v24, %s3057_s7 }
 0x19f   : > { %2901 = vmatmul.mubr.msk.bf16.gmra.mrb[44].mxu1 %vm199_vm0, %v1820_v61 }
 0x1a0   : > { %v1127_v21 = vpop.permute.xlu0 %1126  ;;  %v1714_v55 = vld [vmem:[#allocation3 + $0x128] sm:$0xff] }
 0x1a1   : > { %1208 = vst.msk [vmem:[#allocation3 + $0x158] sm:$0xff] %vm548_vm2, %v1127_v21  ;;  %v1792_v25 = vpack.c.bf16 %v1717_v63, %v1714_v55  ;;  %v483_v19 = vpop.permute.xlu1 %482  ;;  %v1716_v32 = vld [vmem:[#allocation3 + $0x138] sm:$0xff] }
 0x1a2   : > { %v2826_v50 = vpop.f32.mrb[0].mxu1  ;;  %885 = vrot.lane.b32.xlu0 %v4064_v48, %s3057_s7  ;;  %564 = vst.msk [vmem:[#allocation3 + $0x168] sm:$0xff] %vm548_vm2, %v483_v19 }
 0x1a3   : > { %2100 = vmatprep.mubr.bf16.mxu0 %v1792_v25  ;;  %v2827_v7 = vpop.f32.mrb[1].mxu1 }
 0x1a4   : > { %v4135_v20 = vadd.f32 %v2827_v7, %v2826_v50  ;;  %v2829_v47 = vpop.f32.mrb[2].mxu1  ;;  %v481_v9 = vpop.permute.xlu0 %480  ;;  %v1713_v36 = vld [vmem:[#allocation3 + $0x120] sm:$0xff] }
 0x1a5   : > { %563 = vst.msk [vmem:[#allocation3 + $0x150] sm:$0xff] %vm548_vm2, %v481_v9  ;;  %v2830_v24 = vpop.f32.mrb[3].mxu1  ;;  %v1791_v46 = vpack.c.bf16 %v1716_v32, %v1713_v36  ;;  %v1324_v43 = vpop.permute.xlu1 %1323 }
 0x1a6   : > { %v4138_v44 = vadd.f32 %v2830_v24, %v2829_v47  ;;  %1404 = vst.msk [vmem:[#allocation3 + $0x170] sm:$0xff] %vm741_vm3, %v1324_v43 }
 0x1a7   : > { %2101 = vmatmul.mubr.bf16.gmra.mrb[24].mxu0 %v1791_v46 }
 0x1a8   : > { %v1322_v48 = vpop.permute.xlu0 %1321 }
 0x1a9   : > { %1403 = vst.msk [vmem:[#allocation3 + $0x158] sm:$0xff] %vm741_vm3, %v1322_v48  ;;  %v676_v41 = vpop.permute.xlu1 %675 }
 0x1aa   : > { %757 = vst.msk [vmem:[#allocation3 + $0x168] sm:$0xff] %vm741_vm3, %v676_v41 }
 0x1ac   : > { %v674_v42 = vpop.permute.xlu0 %673 }
 0x1ad   : > { %756 = vst.msk [vmem:[#allocation3 + $0x150] sm:$0xff] %vm741_vm3, %v674_v42  ;;  %v1516_v34 = vpop.permute.xlu1 %1515 }
 0x1ae   : > { %1596 = vst.msk [vmem:[#allocation3 + $0x170] sm:$0xff] %vm937_vm4, %v1516_v34 }
 0x1b0   : > { %v1514_v17 = vpop.permute.xlu0 %1513 }
 0x1b1   : > { %1595 = vst.msk [vmem:[#allocation3 + $0x158] sm:$0xff] %vm937_vm4, %v1514_v17  ;;  %v872_v53 = vpop.permute.xlu1 %871 }
 0x1b2   : > { %953 = vst.msk [vmem:[#allocation3 + $0x168] sm:$0xff] %vm937_vm4, %v872_v53 }
 0x1b4   : > { %v870_v35 = vpop.permute.xlu0 %869 }
 0x1b5   : > { %952 = vst.msk [vmem:[#allocation3 + $0x150] sm:$0xff] %vm937_vm4, %v870_v35  ;;  %v1133_v23 = vpop.permute.xlu1 %1132  ;;  %v1723_v12 = vld [vmem:[#allocation3 + $0x170] sm:$0xff] }
 0x1b6   : > { %1211 = vst.msk [vmem:[#allocation3 + $0x1a0] sm:$0xff] %vm548_vm2, %v1133_v23 }
 0x1b8   : > { %v1131_v58 = vpop.permute.xlu0 %1130  ;;  %v1720_v54 = vld [vmem:[#allocation3 + $0x158] sm:$0xff] }
 0x1b9   : > { %1210 = vst.msk [vmem:[#allocation3 + $0x188] sm:$0xff] %vm548_vm2, %v1131_v58  ;;  %v1795_v57 = vpack.c.bf16 %v1723_v12, %v1720_v54  ;;  %v487_v51 = vpop.permute.xlu1 %486  ;;  %v1722_v52 = vld [vmem:[#allocation3 + $0x168] sm:$0xff] }
 0x1ba   : > { %v2760_v13 = vpop.f32.mrb[4].mxu0  ;;  %566 = vst.msk [vmem:[#allocation3 + $0x198] sm:$0xff] %vm548_vm2, %v487_v51 }
 0x1bb   : > { %v2761_v22 = vpop.f32.mrb[5].mxu0  ;;  %2108 = vmatprep.mubr.bf16.mxu0 %v1795_v57 }
 0x1bc   : > { %v4151_v59 = vadd.f32 %v2761_v22, %v2760_v13  ;;  %v485_v40 = vpop.permute.xlu0 %484  ;;  %v2763_v62 = vpop.f32.mrb[6].mxu0  ;;  %v1719_v37 = vld [vmem:[#allocation3 + $0x150] sm:$0xff] }
 0x1bd   : > { %565 = vst.msk [vmem:[#allocation3 + $0x180] sm:$0xff] %vm548_vm2, %v485_v40  ;;  %v2764_v38 = vpop.f32.mrb[7].mxu0  ;;  %v1794_v49 = vpack.c.bf16 %v1722_v52, %v1719_v37  ;;  %v1328_v5 = vpop.permute.xlu1 %1327 }
 0x1be   : > { %v4154_v0 = vadd.f32 %v2764_v38, %v2763_v62  ;;  %1406 = vst.msk [vmem:[#allocation3 + $0x1a0] sm:$0xff] %vm741_vm3, %v1328_v5 }
 0x1bf   : > { %2109 = vmatmul.mubr.bf16.gmra.mrb[28].mxu0 %v1794_v49 }
 0x1c0   : > { %v1326_v18 = vpop.permute.xlu0 %1325 }
 0x1c1   : > { %1405 = vst.msk [vmem:[#allocation3 + $0x188] sm:$0xff] %vm741_vm3, %v1326_v18  ;;  %v680_v6 = vpop.permute.xlu1 %679 }
 0x1c2   : > { %759 = vst.msk [vmem:[#allocation3 + $0x198] sm:$0xff] %vm741_vm3, %v680_v6 }
 0x1c4   : > { %v678_v2 = vpop.permute.xlu0 %677 }
 0x1c5   : > { %758 = vst.msk [vmem:[#allocation3 + $0x180] sm:$0xff] %vm741_vm3, %v678_v2  ;;  %v1520_v45 = vpop.permute.xlu1 %1519 }
 0x1c6   : > { %1598 = vst.msk [vmem:[#allocation3 + $0x1a0] sm:$0xff] %vm937_vm4, %v1520_v45 }
 0x1c8   : > { %v1518_v27 = vpop.permute.xlu0 %1517 }
 0x1c9   : > { %1597 = vst.msk [vmem:[#allocation3 + $0x188] sm:$0xff] %vm937_vm4, %v1518_v27  ;;  %v876_v28 = vpop.permute.xlu1 %875 }
 0x1ca   : > { %955 = vst.msk [vmem:[#allocation3 + $0x198] sm:$0xff] %vm937_vm4, %v876_v28 }
 0x1cc   : > { %v874_v1 = vpop.permute.xlu0 %873 }
 0x1cd   : > { %954 = vst.msk [vmem:[#allocation3 + $0x180] sm:$0xff] %vm937_vm4, %v874_v1  ;;  %v1137_v4 = vpop.permute.xlu1 %1136  ;;  %v1729_v14 = vld [vmem:[#allocation3 + $0x1a0] sm:$0xff] }
 0x1ce   : > { %1213 = vst.msk [vmem:[#allocation3 + $0x1d0] sm:$0xff] %vm548_vm2, %v1137_v4 }
 0x1d0   : > { %v1135_v39 = vpop.permute.xlu0 %1134  ;;  %v1726_v15 = vld [vmem:[#allocation3 + $0x188] sm:$0xff] }
 0x1d1   : > { %1212 = vst.msk [vmem:[#allocation3 + $0x1b8] sm:$0xff] %vm548_vm2, %v1135_v39  ;;  %v1798_v33 = vpack.c.bf16 %v1729_v14, %v1726_v15  ;;  %v491_v8 = vpop.permute.xlu1 %490  ;;  %v1728_v26 = vld [vmem:[#allocation3 + $0x198] sm:$0xff] }
 0x1d2   : > { %v2832_v16 = vpop.f32.mrb[4].mxu1  ;;  %568 = vst.msk [vmem:[#allocation3 + $0x1c8] sm:$0xff] %vm548_vm2, %v491_v8 }
 0x1d3   : > { %2116 = vmatprep.mubr.bf16.mxu0 %v1798_v33  ;;  %v2833_v3 = vpop.f32.mrb[5].mxu1 }
 0x1d4   : > { %v4167_v10 = vadd.f32 %v2833_v3, %v2832_v16  ;;  %v2835_v11 = vpop.f32.mrb[6].mxu1  ;;  %v489_v29 = vpop.permute.xlu0 %488  ;;  %v1725_v61 = vld [vmem:[#allocation3 + $0x180] sm:$0xff] }
 0x1d5   : > { %567 = vst.msk [vmem:[#allocation3 + $0x1b0] sm:$0xff] %vm548_vm2, %v489_v29  ;;  %v2836_v30 = vpop.f32.mrb[7].mxu1  ;;  %v1797_v56 = vpack.c.bf16 %v1728_v26, %v1725_v61  ;;  %v1332_v63 = vpop.permute.xlu1 %1331 }
 0x1d6   : > { %v4170_v21 = vadd.f32 %v2836_v30, %v2835_v11  ;;  %1408 = vst.msk [vmem:[#allocation3 + $0x1d0] sm:$0xff] %vm741_vm3, %v1332_v63 }
 0x1d7   : > { %2117 = vmatmul.mubr.bf16.gmra.mrb[32].mxu0 %v1797_v56 }
 0x1d8   : > { %v1330_v55 = vpop.permute.xlu0 %1329 }
 0x1d9   : > { %1407 = vst.msk [vmem:[#allocation3 + $0x1b8] sm:$0xff] %vm741_vm3, %v1330_v55  ;;  %v684_v25 = vpop.permute.xlu1 %683 }
 0x1da   : > { %761 = vst.msk [vmem:[#allocation3 + $0x1c8] sm:$0xff] %vm741_vm3, %v684_v25 }
 0x1dc   : > { %v682_v19 = vpop.permute.xlu0 %681 }
 0x1dd   : > { %760 = vst.msk [vmem:[#allocation3 + $0x1b0] sm:$0xff] %vm741_vm3, %v682_v19  ;;  %v1524_v50 = vpop.permute.xlu1 %1523 }
 0x1de   : > { %1600 = vst.msk [vmem:[#allocation3 + $0x1d0] sm:$0xff] %vm937_vm4, %v1524_v50 }
 0x1e0   : > { %v1522_v32 = vpop.permute.xlu0 %1521 }
 0x1e1   : > { %1599 = vst.msk [vmem:[#allocation3 + $0x1b8] sm:$0xff] %vm937_vm4, %v1522_v32  ;;  %v880_v7 = vpop.permute.xlu1 %879 }
 0x1e2   : > { %957 = vst.msk [vmem:[#allocation3 + $0x1c8] sm:$0xff] %vm937_vm4, %v880_v7 }
 0x1e4   : > { %v878_v47 = vpop.permute.xlu0 %877 }
 0x1e5   : > { %956 = vst.msk [vmem:[#allocation3 + $0x1b0] sm:$0xff] %vm937_vm4, %v878_v47  ;;  %v1141_v9 = vpop.permute.xlu1 %1140  ;;  %v1735_v36 = vld [vmem:[#allocation3 + $0x1d0] sm:$0xff] }
 0x1e6   : > { %1215 = vst.msk [vmem:[#allocation3 + $0x200] sm:$0xff] %vm548_vm2, %v1141_v9 }
 0x1e8   : > { %v1139_v24 = vpop.permute.xlu0 %1138  ;;  %v1732_v46 = vld [vmem:[#allocation3 + $0x1b8] sm:$0xff] }
 0x1e9   : > { %1214 = vst.msk [vmem:[#allocation3 + $0x1e8] sm:$0xff] %vm548_vm2, %v1139_v24  ;;  %v1801_v43 = vpack.c.bf16 %v1735_v36, %v1732_v46  ;;  %v495_v41 = vpop.permute.xlu1 %494  ;;  %v1734_v42 = vld [vmem:[#allocation3 + $0x1c8] sm:$0xff] }
 0x1ea   : > { %v2766_v48 = vpop.f32.mrb[8].mxu0  ;;  %570 = vst.msk [vmem:[#allocation3 + $0x1f8] sm:$0xff] %vm548_vm2, %v495_v41 }
 0x1eb   : > { %v2767_v34 = vpop.f32.mrb[9].mxu0  ;;  %2124 = vmatprep.mubr.bf16.mxu0 %v1801_v43 }
 0x1ec   : > { %v4183_v17 = vadd.f32 %v2767_v34, %v2766_v48  ;;  %v493_v53 = vpop.permute.xlu0 %492  ;;  %v2769_v35 = vpop.f32.mrb[10].mxu0  ;;  %v1731_v23 = vld [vmem:[#allocation3 + $0x1b0] sm:$0xff] }
 0x1ed   : > { %569 = vst.msk [vmem:[#allocation3 + $0x1e0] sm:$0xff] %vm548_vm2, %v493_v53  ;;  %v2770_v12 = vpop.f32.mrb[11].mxu0  ;;  %v1800_v58 = vpack.c.bf16 %v1734_v42, %v1731_v23  ;;  %v1336_v57 = vpop.permute.xlu1 %1335 }
 0x1ee   : > { %v4186_v54 = vadd.f32 %v2770_v12, %v2769_v35  ;;  %1410 = vst.msk [vmem:[#allocation3 + $0x200] sm:$0xff] %vm741_vm3, %v1336_v57  ;;  %v4219_v35 = vld [vmem:[%s4385_s2] ss:$0 sm:$0xff] }
 0x1ef   : > { %2125 = vmatmul.mubr.bf16.gmra.mrb[36].mxu0 %v1800_v58  ;;  %v2063_v23 = vadd.f32 %v4151_v59, %v4219_v35  ;;  %v2055_v58 = vadd.f32 %v4094_v60, %v4219_v35 }
 0x1f0   : > { %v1334_v51 = vpop.permute.xlu0 %1333 }
 0x1f1   : > { %1409 = vst.msk [vmem:[#allocation3 + $0x1e8] sm:$0xff] %vm741_vm3, %v1334_v51  ;;  %v688_v13 = vpop.permute.xlu1 %687 }
 0x1f2   : > { %763 = vst.msk [vmem:[#allocation3 + $0x1f8] sm:$0xff] %vm741_vm3, %v688_v13  ;;  %v2066_v13 = vadd.f32 %v4154_v0, %v4219_v35 }
 0x1f4   : > { %v686_v52 = vpop.permute.xlu0 %685 }
 0x1f5   : > { %762 = vst.msk [vmem:[#allocation3 + $0x1e0] sm:$0xff] %vm741_vm3, %v686_v52  ;;  %v1528_v22 = vpop.permute.xlu1 %1527 }
 0x1f6   : > { %1602 = vst.msk [vmem:[#allocation3 + $0x200] sm:$0xff] %vm937_vm4, %v1528_v22 }
 0x1f8   : > { %v1526_v40 = vpop.permute.xlu0 %1525 }
 0x1f9   : > { %1601 = vst.msk [vmem:[#allocation3 + $0x1e8] sm:$0xff] %vm937_vm4, %v1526_v40  ;;  %v884_v62 = vpop.permute.xlu1 %883  ;;  %v2058_v40 = vadd.f32 %v4099_v31, %v4219_v35 }
 0x1fa   : > { %959 = vst.msk [vmem:[#allocation3 + $0x1f8] sm:$0xff] %vm937_vm4, %v884_v62 }
 0x1fc   : > { %v882_v37 = vpop.permute.xlu0 %881 }
 0x1fd   : > { %958 = vst.msk [vmem:[#allocation3 + $0x1e0] sm:$0xff] %vm937_vm4, %v882_v37  ;;  %v1145_v38 = vpop.permute.xlu1 %1144  ;;  %v1741_v49 = vld [vmem:[#allocation3 + $0x200] sm:$0xff] }
 0x1fe   : > { %1217 = vst.msk [vmem:[#allocation3 + $0x230] sm:$0xff] %vm548_vm2, %v1145_v38 }
 0x200   : > { %v1143_v5 = vpop.permute.xlu0 %1142  ;;  %v1738_v18 = vld [vmem:[#allocation3 + $0x1e8] sm:$0xff] }
 0x201   : > { %1216 = vst.msk [vmem:[#allocation3 + $0x218] sm:$0xff] %vm548_vm2, %v1143_v5  ;;  %v1804_v6 = vpack.c.bf16 %v1741_v49, %v1738_v18  ;;  %v499_v45 = vpop.permute.xlu1 %498  ;;  %v1740_v27 = vld [vmem:[#allocation3 + $0x1f8] sm:$0xff]  ;;  %v2071_v49 = vadd.f32 %v4183_v17, %v4219_v35 }
 0x202   : > { %v2838_v2 = vpop.f32.mrb[8].mxu1  ;;  %572 = vst.msk [vmem:[#allocation3 + $0x228] sm:$0xff] %vm548_vm2, %v499_v45 }
 0x203   : > { %2132 = vmatprep.mubr.bf16.mxu0 %v1804_v6  ;;  %v2839_v28 = vpop.f32.mrb[9].mxu1 }
 0x204   : > { %v4199_v1 = vadd.f32 %v2839_v28, %v2838_v2  ;;  %v2841_v4 = vpop.f32.mrb[10].mxu1  ;;  %v497_v14 = vpop.permute.xlu0 %496  ;;  %v1737_v39 = vld [vmem:[#allocation3 + $0x1e0] sm:$0xff]  ;;  %v2074_v2 = vadd.f32 %v4186_v54, %v4219_v35 }
 0x205   : > { %571 = vst.msk [vmem:[#allocation3 + $0x210] sm:$0xff] %vm548_vm2, %v497_v14  ;;  %v2842_v15 = vpop.f32.mrb[11].mxu1  ;;  %v1803_v33 = vpack.c.bf16 %v1740_v27, %v1737_v39  ;;  %v1340_v16 = vpop.permute.xlu1 %1339 }
 0x206   : > { %v4202_v8 = vadd.f32 %v2842_v15, %v2841_v4  ;;  %1412 = vst.msk [vmem:[#allocation3 + $0x230] sm:$0xff] %vm741_vm3, %v1340_v16 }
 0x207   : > { %2133 = vmatmul.mubr.bf16.gmra.mrb[40].mxu0 %v1803_v33 }
 0x208   : > { %v1338_v26 = vpop.permute.xlu0 %1337 }
 0x209   : > { %1411 = vst.msk [vmem:[#allocation3 + $0x218] sm:$0xff] %vm741_vm3, %v1338_v26  ;;  %v692_v3 = vpop.permute.xlu1 %691 }
 0x20a   : > { %765 = vst.msk [vmem:[#allocation3 + $0x228] sm:$0xff] %vm741_vm3, %v692_v3 }
 0x20c   : > { %v690_v11 = vpop.permute.xlu0 %689 }
 0x20d   : > { %764 = vst.msk [vmem:[#allocation3 + $0x210] sm:$0xff] %vm741_vm3, %v690_v11  ;;  %v1532_v29 = vpop.permute.xlu1 %1531 }
 0x20e   : > { %1604 = vst.msk [vmem:[#allocation3 + $0x230] sm:$0xff] %vm937_vm4, %v1532_v29 }
 0x210   : > { %v1530_v61 = vpop.permute.xlu0 %1529 }
 0x211   : > { %1603 = vst.msk [vmem:[#allocation3 + $0x218] sm:$0xff] %vm937_vm4, %v1530_v61  ;;  %v888_v30 = vpop.permute.xlu1 %887 }
 0x212   : > { %961 = vst.msk [vmem:[#allocation3 + $0x228] sm:$0xff] %vm937_vm4, %v888_v30 }
 0x214   : > { %v886_v56 = vpop.permute.xlu0 %885 }
 0x215   : > { %960 = vst.msk [vmem:[#allocation3 + $0x210] sm:$0xff] %vm937_vm4, %v886_v56  ;;  %v1747_v63 = vld [vmem:[#allocation3 + $0x230] sm:$0xff] }
 0x218   : > { %v1744_v55 = vld [vmem:[#allocation3 + $0x218] sm:$0xff] }
 0x219   : > { %v1807_v25 = vpack.c.bf16 %v1747_v63, %v1744_v55  ;;  %v1746_v50 = vld [vmem:[#allocation3 + $0x228] sm:$0xff] }
 0x21a   : > { %v2772_v19 = vpop.f32.mrb[12].mxu0 }
 0x21b   : > { %v2773_v32 = vpop.f32.mrb[13].mxu0  ;;  %2140 = vmatprep.mubr.bf16.mxu0 %v1807_v25 }
 0x21c   : > { %v2774_v7 = vadd.f32 %v2773_v32, %v2772_v19  ;;  %v2775_v47 = vpop.f32.mrb[14].mxu0  ;;  %v1743_v9 = vld [vmem:[#allocation3 + $0x210] sm:$0xff] }
 0x21d   : > { %v2776_v36 = vpop.f32.mrb[15].mxu0  ;;  %v1806_v24 = vpack.c.bf16 %v1746_v50, %v1743_v9 }
 0x21e   : > { %v2777_v46 = vadd.f32 %v2776_v36, %v2775_v47  ;;  %v2079_v60 = vadd.f32 %v2774_v7, %v4219_v35 }
 0x21f   : > { %2141 = vmatmul.mubr.bf16.gmra.mrb[44].mxu0 %v1806_v24 }
 0x220   : > { %v2082_v18 = vadd.f32 %v2777_v46, %v4219_v35 }
 0x232   : > { %v2844_v43 = vpop.f32.mrb[12].mxu1 }
 0x233   : > { %v2845_v48 = vpop.f32.mrb[13].mxu1 }
 0x234   : > { %v4212_v41 = vadd.f32 %v2845_v48, %v2844_v43  ;;  %v2847_v42 = vpop.f32.mrb[14].mxu1 }
 0x235   : > { %v2848_v34 = vpop.f32.mrb[15].mxu1 }
 0x236   : > { %v4214_v53 = vadd.f32 %v2848_v34, %v2847_v42 }
 0x23a   : > { %v2874_v12 = vpop.f32.mrb[16].mxu1 }
 0x23b   : > { %v2224_v57 = vadd.f32 %v2874_v12, %v2063_v23  ;;  %v2215_v51 = vpop.f32.mrb[17].mxu1 }
 0x23c   : > { %v2216_v52 = vadd.f32 %v2215_v51, %v2055_v58  ;;  %v2875_v22 = vpop.f32.mrb[18].mxu1 }
 0x23d   : > { %2966 = vtanh.f32 %v2224_v57  ;;  %v2227_v62 = vadd.f32 %v2875_v22, %v2066_v13  ;;  %v2218_v37 = vpop.f32.mrb[19].mxu1 }
 0x23e   : > { %2968 = vtanh.f32 %v2216_v52  ;;  %v2219_v59 = vadd.f32 %v2218_v37, %v2058_v40 }
 0x23f   : > { %2970 = vtanh.f32 %v2227_v62 }
 0x240   : > { %2972 = vtanh.f32 %v2219_v59 }
 0x242   : > { %v2878_v38 = vpop.f32.mrb[20].mxu1 }
 0x243   : > { %v2240_v0 = vadd.f32 %v2878_v38, %v2079_v60  ;;  %v2231_v5 = vpop.f32.mrb[21].mxu1 }
 0x244   : > { %v2232_v6 = vadd.f32 %v2231_v5, %v2071_v49  ;;  %v2879_v31 = vpop.f32.mrb[22].mxu1  ;;  %v2159_v49 = vadd.f32 %v4167_v10, %v4219_v35 }
 0x245   : > { %2974 = vtanh.f32 %v2240_v0  ;;  %v2243_v17 = vadd.f32 %v2879_v31, %v2082_v18  ;;  %v2234_v45 = vpop.f32.mrb[23].mxu1  ;;  %v2151_v18 = vadd.f32 %v4135_v20, %v4219_v35  ;;  %v2175_v20 = vadd.f32 %v4212_v41, %v4219_v35 }
 0x246   : > { %2976 = vtanh.f32 %v2232_v6  ;;  %v2235_v27 = vadd.f32 %v2234_v45, %v2074_v2  ;;  %v2162_v2 = vadd.f32 %v4170_v21, %v4219_v35  ;;  %v2167_v21 = vadd.f32 %v4199_v1, %v4219_v35 }
 0x247   : > { %v2967_v28 = vpop.eup %2966  ;;  %2978 = vtanh.f32 %v2243_v17 }
 0x248   : > { %v2969_v4 = vpop.eup %2968  ;;  %2377 = vst.msk [vmem:[%s4240_s18 + $0x10] sm:$0xff] %vm2374_vm5, %v2967_v28  ;;  %2980 = vtanh.f32 %v2235_v27  ;;  %v2154_v27 = vadd.f32 %v4138_v44, %v4219_v35  ;;  %v2178_v44 = vadd.f32 %v4214_v53, %v4219_v35 }
 0x249   : > { %v2971_v54 = vpop.eup %2970  ;;  %2375 = vst.msk [vmem:[%s4240_s18] sm:$0xff] %vm2374_vm5, %v2969_v4 }
 0x24a   : > { %v2973_v14 = vpop.eup %2972  ;;  %2378 = vst.msk [vmem:[%s4240_s18 + $0x18] sm:$0xff] %vm2374_vm5, %v2971_v54  ;;  %v2778_v39 = vpop.f32.mrb[16].mxu0 }
 0x24b   : > { %v2882_v15 = vpop.f32.mrb[24].mxu1  ;;  %2376 = vst.msk [vmem:[%s4240_s18 + $0x8] sm:$0xff] %vm2374_vm5, %v2973_v14  ;;  %v2779_v33 = vpop.f32.mrb[17].mxu0 }
 0x24c   : > { %v2247_v16 = vpop.f32.mrb[25].mxu1  ;;  %v2780_v26 = vadd.f32 %v2779_v33, %v2778_v39  ;;  %v2781_v3 = vpop.f32.mrb[18].mxu0 }
 0x24d   : > { %v2883_v11 = vpop.f32.mrb[26].mxu1  ;;  %v2782_v29 = vpop.f32.mrb[19].mxu0 }
 0x24e   : > { %v2250_v61 = vpop.f32.mrb[27].mxu1  ;;  %v2783_v30 = vadd.f32 %v2782_v29, %v2781_v3  ;;  %v2087_v56 = vadd.f32 %v2780_v26, %v4219_v35  ;;  %v2170_v26 = vadd.f32 %v4202_v8, %v4219_v35 }
 0x24f   : > { %v2975_v63 = vpop.eup %2974 }
 0x250   : > { %v2977_v55 = vpop.eup %2976  ;;  %2381 = vst.msk [vmem:[%s4240_s18 + $0x30] sm:$0xff] %vm2374_vm5, %v2975_v63  ;;  %v2248_v25 = vadd.f32 %v2247_v16, %v2087_v56  ;;  %v2090_v19 = vadd.f32 %v2783_v30, %v4219_v35 }
 0x251   : > { %v2979_v50 = vpop.eup %2978  ;;  %2379 = vst.msk [vmem:[%s4240_s18 + $0x20] sm:$0xff] %vm2374_vm5, %v2977_v55 }
 0x252   : > { %v2981_v32 = vpop.eup %2980  ;;  %2382 = vst.msk [vmem:[%s4240_s18 + $0x38] sm:$0xff] %vm2374_vm5, %v2979_v50  ;;  %2982 = vtanh.f32 %v2248_v25  ;;  %v2251_v7 = vadd.f32 %v2250_v61, %v2090_v19  ;;  %v4258_v47 = vpop.f32.mrb[28].mxu1 }
 0x253   : > { %2380 = vst.msk [vmem:[%s4240_s18 + $0x28] sm:$0xff] %vm2374_vm5, %v2981_v32  ;;  %v4262_v9 = vpop.f32.mrb[29].mxu1 }
 0x254   : > { %2984 = vtanh.f32 %v2251_v7  ;;  %v4264_v36 = vpop.f32.mrb[30].mxu1 }
 0x255   : > { %v4266_v24 = vpop.f32.mrb[31].mxu1 }
 0x25a   : > { %v4268_v46 = vpop.f32.mrb[32].mxu1 }
 0x25b   : > { %v4270_v43 = vpop.f32.mrb[33].mxu1 }
 0x25c   : > { %v2983_v48 = vpop.eup %2982  ;;  %v4272_v42 = vpop.f32.mrb[34].mxu1 }
 0x25d   : > { %2383 = vst.msk [vmem:[%s4240_s18 + $0x40] sm:$0xff] %vm2374_vm5, %v2983_v48  ;;  %v4276_v34 = vpop.f32.mrb[35].mxu1 }
 0x25e   : > { %v2985_v23 = vpop.eup %2984 }
 0x25f   : > { %2384 = vst.msk [vmem:[%s4240_s18 + $0x48] sm:$0xff] %vm2374_vm5, %v2985_v23 }
 0x262   : > { %v2784_v12 = vpop.f32.mrb[20].mxu0  ;;  %v4280_v58 = vpop.f32.mrb[36].mxu1 }
 0x263   : > { %v2785_v57 = vpop.f32.mrb[21].mxu0  ;;  %v4282_v51 = vpop.f32.mrb[37].mxu1 }
 0x264   : > { %v2786_v13 = vadd.f32 %v2785_v57, %v2784_v12  ;;  %v2787_v52 = vpop.f32.mrb[22].mxu0  ;;  %v4284_v22 = vpop.f32.mrb[38].mxu1 }
 0x265   : > { %v2788_v40 = vpop.f32.mrb[23].mxu0  ;;  %v4286_v62 = vpop.f32.mrb[39].mxu1 }
 0x266   : > { %v2095_v37 = vadd.f32 %v2786_v13, %v4219_v35  ;;  %v2789_v59 = vadd.f32 %v2788_v40, %v2787_v52 }
 0x268   : > { %v2256_v60 = vadd.f32 %v2882_v15, %v2095_v37  ;;  %v2098_v38 = vadd.f32 %v2789_v59, %v4219_v35 }
 0x26a   : > { %2986 = vtanh.f32 %v2256_v60  ;;  %v2259_v0 = vadd.f32 %v2883_v11, %v2098_v38  ;;  %v2898_v5 = vpop.f32.mrb[40].mxu1 }
 0x26b   : > { %v2320_v6 = vadd.f32 %v2898_v5, %v2159_v49  ;;  %v2311_v31 = vpop.f32.mrb[41].mxu1 }
 0x26c   : > { %2988 = vtanh.f32 %v2259_v0  ;;  %v2312_v17 = vadd.f32 %v2311_v31, %v2151_v18  ;;  %v2899_v45 = vpop.f32.mrb[42].mxu1 }
 0x26d   : > { %2990 = vtanh.f32 %v2320_v6  ;;  %v2323_v28 = vadd.f32 %v2899_v45, %v2162_v2  ;;  %v2314_v10 = vpop.f32.mrb[43].mxu1 }
 0x26e   : > { %2992 = vtanh.f32 %v2312_v17  ;;  %v2315_v4 = vadd.f32 %v2314_v10, %v2154_v27 }
 0x26f   : > { %2994 = vtanh.f32 %v2323_v28 }
 0x270   : > { %2996 = vtanh.f32 %v2315_v4 }
 0x272   : > { %v2902_v54 = vpop.f32.mrb[44].mxu1 }
 0x273   : > { %v2336_v14 = vadd.f32 %v2902_v54, %v2175_v20  ;;  %v2327_v39 = vpop.f32.mrb[45].mxu1 }
 0x274   : > { %v2987_v15 = vpop.eup %2986  ;;  %v2328_v33 = vadd.f32 %v2327_v39, %v2167_v21  ;;  %v2903_v16 = vpop.f32.mrb[46].mxu1 }
 0x275   : > { %2385 = vst.msk [vmem:[%s4240_s18 + $0x50] sm:$0xff] %vm2374_vm5, %v2987_v15  ;;  %2998 = vtanh.f32 %v2336_v14  ;;  %v2339_v41 = vadd.f32 %v2903_v16, %v2178_v44  ;;  %v2330_v1 = vpop.f32.mrb[47].mxu1 }
 0x276   : > { %v2989_v3 = vpop.eup %2988  ;;  %3000 = vtanh.f32 %v2328_v33  ;;  %v2331_v11 = vadd.f32 %v2330_v1, %v2170_v26 }
 0x277   : > { %v2991_v29 = vpop.eup %2990  ;;  %2386 = vst.msk [vmem:[%s4240_s18 + $0x58] sm:$0xff] %vm2374_vm5, %v2989_v3  ;;  %3002 = vtanh.f32 %v2339_v41 }
 0x278   : > { %v2993_v53 = vpop.eup %2992  ;;  %2401 = vst.msk [vmem:[%s4240_s18 + $0xd0] sm:$0xff] %vm2374_vm5, %v2991_v29  ;;  %3004 = vtanh.f32 %v2331_v11 }
 0x279   : > { %v2995_v8 = vpop.eup %2994  ;;  %2399 = vst.msk [vmem:[%s4240_s18 + $0xc0] sm:$0xff] %vm2374_vm5, %v2993_v53 }
 0x27a   : > { %v2997_v61 = vpop.eup %2996  ;;  %2402 = vst.msk [vmem:[%s4240_s18 + $0xd8] sm:$0xff] %vm2374_vm5, %v2995_v8  ;;  %v2790_v30 = vpop.f32.mrb[24].mxu0 }
 0x27b   : > { %2400 = vst.msk [vmem:[%s4240_s18 + $0xc8] sm:$0xff] %vm2374_vm5, %v2997_v61  ;;  %v2791_v56 = vpop.f32.mrb[25].mxu0 }
 0x27c   : > { %v2792_v63 = vadd.f32 %v2791_v56, %v2790_v30  ;;  %v2793_v55 = vpop.f32.mrb[26].mxu0 }
 0x27d   : > { %v2794_v25 = vpop.f32.mrb[27].mxu0 }
 0x27e   : > { %v2103_v19 = vadd.f32 %v2792_v63, %v4219_v35  ;;  %v2795_v50 = vadd.f32 %v2794_v25, %v2793_v55 }
 0x27f   : > { %v2999_v32 = vpop.eup %2998 }
 0x280   : > { %v3001_v7 = vpop.eup %3000  ;;  %2405 = vst.msk [vmem:[%s4240_s18 + $0xf0] sm:$0xff] %vm2374_vm5, %v2999_v32  ;;  %v2264_v48 = vadd.f32 %v4262_v9, %v2103_v19  ;;  %v2106_v23 = vadd.f32 %v2795_v50, %v4219_v35 }
 0x281   : > { %v3003_v12 = vpop.eup %3002  ;;  %2403 = vst.msk [vmem:[%s4240_s18 + $0xe0] sm:$0xff] %vm2374_vm5, %v3001_v7 }
 0x282   : > { %v3005_v57 = vpop.eup %3004  ;;  %2406 = vst.msk [vmem:[%s4240_s18 + $0xf8] sm:$0xff] %vm2374_vm5, %v3003_v12  ;;  %3006 = vtanh.f32 %v2264_v48  ;;  %v2267_v13 = vadd.f32 %v4266_v24, %v2106_v23 }
 0x283   : > { %2404 = vst.msk [vmem:[%s4240_s18 + $0xe8] sm:$0xff] %vm2374_vm5, %v3005_v57 }
 0x284   : > { %3008 = vtanh.f32 %v2267_v13 }
 0x28c   : > { %v3007_v52 = vpop.eup %3006 }
 0x28d   : > { %2387 = vst.msk [vmem:[%s4240_s18 + $0x60] sm:$0xff] %vm2374_vm5, %v3007_v52 }
 0x28e   : > { %v3009_v40 = vpop.eup %3008 }
 0x28f   : > { %2388 = vst.msk [vmem:[%s4240_s18 + $0x68] sm:$0xff] %vm2374_vm5, %v3009_v40 }
 0x292   : > { %v2796_v9 = vpop.f32.mrb[28].mxu0 }
 0x293   : > { %v2797_v37 = vpop.f32.mrb[29].mxu0 }
 0x294   : > { %v2798_v59 = vadd.f32 %v2797_v37, %v2796_v9  ;;  %v2799_v60 = vpop.f32.mrb[30].mxu0 }
 0x295   : > { %v2800_v38 = vpop.f32.mrb[31].mxu0 }
 0x296   : > { %v2111_v49 = vadd.f32 %v2798_v59, %v4219_v35  ;;  %v2801_v0 = vadd.f32 %v2800_v38, %v2799_v60 }
 0x298   : > { %v2272_v24 = vadd.f32 %v4258_v47, %v2111_v49  ;;  %v2114_v5 = vadd.f32 %v2801_v0, %v4219_v35 }
 0x29a   : > { %3010 = vtanh.f32 %v2272_v24  ;;  %v2275_v18 = vadd.f32 %v4264_v36, %v2114_v5 }
 0x29c   : > { %3012 = vtanh.f32 %v2275_v18 }
 0x2a4   : > { %v3011_v6 = vpop.eup %3010 }
 0x2a5   : > { %2389 = vst.msk [vmem:[%s4240_s18 + $0x70] sm:$0xff] %vm2374_vm5, %v3011_v6 }
 0x2a6   : > { %v3013_v31 = vpop.eup %3012 }
 0x2a7   : > { %2390 = vst.msk [vmem:[%s4240_s18 + $0x78] sm:$0xff] %vm2374_vm5, %v3013_v31 }
 0x2aa   : > { %v2802_v2 = vpop.f32.mrb[32].mxu0 }
 0x2ab   : > { %v2803_v17 = vpop.f32.mrb[33].mxu0 }
 0x2ac   : > { %v2804_v45 = vadd.f32 %v2803_v17, %v2802_v2  ;;  %v2805_v27 = vpop.f32.mrb[34].mxu0 }
 0x2ad   : > { %v2806_v28 = vpop.f32.mrb[35].mxu0 }
 0x2ae   : > { %v2119_v47 = vadd.f32 %v2804_v45, %v4219_v35  ;;  %v2807_v10 = vadd.f32 %v2806_v28, %v2805_v27 }
 0x2b0   : > { %v2280_v4 = vadd.f32 %v4270_v43, %v2119_v47  ;;  %v2122_v36 = vadd.f32 %v2807_v10, %v4219_v35 }
 0x2b2   : > { %3014 = vtanh.f32 %v2280_v4  ;;  %v2283_v20 = vadd.f32 %v4276_v34, %v2122_v36 }
 0x2b4   : > { %3016 = vtanh.f32 %v2283_v20 }
 0x2bc   : > { %v3015_v54 = vpop.eup %3014 }
 0x2bd   : > { %2391 = vst.msk [vmem:[%s4240_s18 + $0x80] sm:$0xff] %vm2374_vm5, %v3015_v54 }
 0x2be   : > { %v3017_v21 = vpop.eup %3016 }
 0x2bf   : > { %2392 = vst.msk [vmem:[%s4240_s18 + $0x88] sm:$0xff] %vm2374_vm5, %v3017_v21 }
 0x2c2   : > { %v2808_v14 = vpop.f32.mrb[36].mxu0 }
 0x2c3   : > { %v2809_v39 = vpop.f32.mrb[37].mxu0 }
 0x2c4   : > { %v2810_v44 = vadd.f32 %v2809_v39, %v2808_v14  ;;  %v2811_v15 = vpop.f32.mrb[38].mxu0 }
 0x2c5   : > { %v2812_v33 = vpop.f32.mrb[39].mxu0 }
 0x2c6   : > { %v2127_v43 = vadd.f32 %v2810_v44, %v4219_v35  ;;  %v2813_v16 = vadd.f32 %v2812_v33, %v2811_v15 }
 0x2c8   : > { %v2288_v26 = vadd.f32 %v4268_v46, %v2127_v43  ;;  %v2130_v34 = vadd.f32 %v2813_v16, %v4219_v35 }
 0x2ca   : > { %3018 = vtanh.f32 %v2288_v26  ;;  %v2291_v41 = vadd.f32 %v4272_v42, %v2130_v34 }
 0x2cc   : > { %3020 = vtanh.f32 %v2291_v41 }
 0x2d4   : > { %v3019_v1 = vpop.eup %3018 }
 0x2d5   : > { %2393 = vst.msk [vmem:[%s4240_s18 + $0x90] sm:$0xff] %vm2374_vm5, %v3019_v1 }
 0x2d6   : > { %v3021_v3 = vpop.eup %3020 }
 0x2d7   : > { %2394 = vst.msk [vmem:[%s4240_s18 + $0x98] sm:$0xff] %vm2374_vm5, %v3021_v3 }
 0x2da   : > { %v2814_v11 = vpop.f32.mrb[40].mxu0 }
 0x2db   : > { %v2815_v29 = vpop.f32.mrb[41].mxu0 }
 0x2dc   : > { %v2816_v53 = vadd.f32 %v2815_v29, %v2814_v11  ;;  %v2817_v8 = vpop.f32.mrb[42].mxu0 }
 0x2dd   : > { %v2818_v61 = vpop.f32.mrb[43].mxu0 }
 0x2de   : > { %v2135_v46 = vadd.f32 %v2816_v53, %v4219_v35  ;;  %v2819_v30 = vadd.f32 %v2818_v61, %v2817_v8 }
 0x2e0   : > { %v2296_v56 = vadd.f32 %v4282_v51, %v2135_v46  ;;  %v2138_v42 = vadd.f32 %v2819_v30, %v4219_v35 }
 0x2e2   : > { %3022 = vtanh.f32 %v2296_v56  ;;  %v2299_v63 = vadd.f32 %v4286_v62, %v2138_v42 }
 0x2e4   : > { %3024 = vtanh.f32 %v2299_v63 }
 0x2ec   : > { %v3023_v55 = vpop.eup %3022 }
 0x2ed   : > { %2395 = vst.msk [vmem:[%s4240_s18 + $0xa0] sm:$0xff] %vm2374_vm5, %v3023_v55 }
 0x2ee   : > { %v3025_v25 = vpop.eup %3024 }
 0x2ef   : > { %2396 = vst.msk [vmem:[%s4240_s18 + $0xa8] sm:$0xff] %vm2374_vm5, %v3025_v25 }
 0x2f2   : > { %v2820_v19 = vpop.f32.mrb[44].mxu0 }
 0x2f3   : > { %v2821_v50 = vpop.f32.mrb[45].mxu0 }
 0x2f4   : > { %v2822_v32 = vadd.f32 %v2821_v50, %v2820_v19  ;;  %v2823_v7 = vpop.f32.mrb[46].mxu0 }
 0x2f5   : > { %v2824_v48 = vpop.f32.mrb[47].mxu0 }
 0x2f6   : > { %v2143_v51 = vadd.f32 %v2822_v32, %v4219_v35  ;;  %v2825_v23 = vadd.f32 %v2824_v48, %v2823_v7 }
 0x2f8   : > { %v2304_v12 = vadd.f32 %v4280_v58, %v2143_v51  ;;  %v2146_v62 = vadd.f32 %v2825_v23, %v4219_v35 }
 0x2fa   : > { %3026 = vtanh.f32 %v2304_v12  ;;  %v2307_v57 = vadd.f32 %v4284_v22, %v2146_v62 }
 0x2fc   : > { %3028 = vtanh.f32 %v2307_v57 }
 0x304   : > { %v3027_v13 = vpop.eup %3026 }
 0x305   : > { %2397 = vst.msk [vmem:[%s4240_s18 + $0xb0] sm:$0xff] %vm2374_vm5, %v3027_v13 }
 0x306   : > { %v3029_v52 = vpop.eup %3028 }
 0x307   : > { %2398 = vst.msk [vmem:[%s4240_s18 + $0xb8] sm:$0xff] %vm2374_vm5, %v3029_v52 }
 0x308 PF: > { %s13_s14 = sadd.s32 1, %s3052_s14   ;;  %s4387_s12 = smov %s3048_s13 }
 0x309   : > { %p10_p5 = scmp.ge.s32.totalorder %s13_s14, 4   ;;  %s4388_s13 = smov %s4390_s15 }
 0x30b   :  { %12 = sbr.rel (!%p10_p5) target bundleno = 2 (0x2), region = 70 }

</bundles_post_ra>
